<compile_context>
chip_gen: v7x
topology: tpu7x:2x2x1
jax: 0.10.0
libtpu: 0.0.40
codegen_flags: <defaults>
</compile_context>

<pallas_src>
import jax
import jax.numpy as jnp
from jax import lax
from jax.experimental import pallas as pl
from jax.experimental.pallas import tpu as pltpu


# ---------------- fused Pallas kernel (one batch sample per grid step) ----------------

def _fused_convnet_kernel(p1_ref, w1_ref, b1_ref, w2_ref, b2_ref, wfc_ref, bfc_ref,
                          out_ref, r1pad_ref, p2_ref):
    """conv1(5x5,pad2)+ReLU -> conv2(3x3,pad1)+ReLU -> FC, all in VMEM."""
    Hp, Wp, C1 = r1pad_ref.shape          # (H+2, W+2, C1): zero-padded relu1 scratch
    H, W = Hp - 2, Wp - 2
    HW = H * W
    C2 = w2_ref.shape[1]
    ncls = out_ref.shape[1]
    assert w2_ref.shape[0] == 9 * C1      # conv2 kernel size is fixed to 3x3 by the module
    assert p2_ref.shape == (HW, 9 * C1)

    # ---- conv1: one im2col matmul on the MXU (bf16 operands, f32 accumulate) ----
    a1 = jnp.dot(p1_ref[0], w1_ref[...], preferred_element_type=jnp.float32)   # (HW, C1)
    relu1 = jnp.maximum(a1 + b1_ref[...], 0.0)

    # relu1 lives in a zero-padded VMEM scratch (border zeroed, interior overwritten).
    r1pad_ref[...] = jnp.zeros(r1pad_ref.shape, r1pad_ref.dtype)
    r1pad_ref[1:H + 1, 1:W + 1, :] = relu1.reshape(H, W, C1)

    # ---- conv2: pack the 9 shifted windows into one (HW, 288) patch buffer, then a single
    #      K=288 matmul (no vreg accumulator, no per-tap partial sums). ----
    for kh in range(3):
        for kw in range(3):
            j = (kh * 3 + kw) * C1
            win = r1pad_ref[kh:kh + H, kw:kw + W, :]                           # (H, W, C1)
            p2_ref[:, j:j + C1] = win.reshape(HW, C1).astype(p2_ref.dtype)
    a2 = jnp.dot(p2_ref[...], w2_ref[...], preferred_element_type=jnp.float32)  # (HW, C2)
    relu2 = jnp.maximum(a2 + b2_ref[...], 0.0)

    # ---- FC (folded in). wfc_ref is pre-permuted so that
    #        G[c*ncls + cls, c'] = sum_hw wfc[cls, c*HW + hw] * relu2[hw, c']
    #      and scores[cls] = sum_c G[c*ncls + cls, c]   (PyTorch NCHW flatten order),
    #      which avoids any lane-crossing reshape/transpose of relu2. ----
    G = jnp.dot(wfc_ref[...], relu2.astype(jnp.bfloat16),
                preferred_element_type=jnp.float32)                            # (C2*ncls, C2)
    scores = bfc_ref[...]                                                      # (ncls, 1)
    for c in range(C2):
        scores = scores + G[c * ncls:(c + 1) * ncls, c:c + 1]
    out_ref[0] = scores


# ---------------- wrapper-side helpers ----------------

def _im2col(x_nhwc, ksize, pad):
    """(N,H,W,C) -> (N, H*W, ksize*ksize*C) patches in (kh, kw, c)-minor order."""
    N, H, W, C = x_nhwc.shape
    xp = jnp.pad(x_nhwc, ((0, 0), (pad, pad), (pad, pad), (0, 0)))
    cols = [xp[:, kh:kh + H, kw:kw + W, :] for kh in range(ksize) for kw in range(ksize)]
    return jnp.concatenate(cols, axis=-1).reshape(N, H * W, ksize * ksize * C)


def init_params(key, in_channel, channel_1, channel_2, num_classes):
    """PyTorch-layout params: kaiming_normal_ (fan_in, relu) weights, zero biases."""
    k1, k2, k3 = jax.random.split(key, 3)
    w1 = jax.random.normal(k1, (channel_1, in_channel, 5, 5), jnp.float32) \
        * jnp.sqrt(2.0 / (in_channel * 5 * 5))                  # OIHW, like nn.Conv2d
    b1 = jnp.zeros((channel_1,), jnp.float32)
    w2 = jax.random.normal(k2, (channel_2, channel_1, 3, 3), jnp.float32) \
        * jnp.sqrt(2.0 / (channel_1 * 3 * 3))
    b2 = jnp.zeros((channel_2,), jnp.float32)
    wfc = jax.random.normal(k3, (num_classes, channel_2 * 32 * 32), jnp.float32) \
        * jnp.sqrt(2.0 / (channel_2 * 32 * 32))                 # (out_features, in_features)
    bfc = jnp.zeros((num_classes,), jnp.float32)
    return (w1, b1, w2, b2, wfc, bfc)


def pack_params(params, H=32, W=32):
    """One-time re-layout of the PyTorch parameters into kernel-friendly bf16 matrices."""
    w1, b1, w2, b2, wfc, bfc = params
    C1, Cin, KH1, KW1 = w1.shape
    C2 = w2.shape[0]
    ncls = wfc.shape[0]
    assert wfc.shape[1] == C2 * H * W, "fc layer hard-codes channel_2*32*32 input features"
    w1m = jnp.transpose(w1, (2, 3, 1, 0)).reshape(KH1 * KW1 * Cin, C1).astype(jnp.bfloat16)
    w2m = jnp.transpose(w2, (2, 3, 1, 0)).reshape(3 * 3 * C1, C2).astype(jnp.bfloat16)
    # Fold PyTorch's NCHW flatten order into the fc weight:
    #   wfc_cat[c*ncls + cls, h*W + w] = wfc[cls, c*H*W + h*W + w]
    wfc_cat = jnp.transpose(wfc.reshape(ncls, C2, H * W), (1, 0, 2)) \
        .reshape(C2 * ncls, H * W).astype(jnp.bfloat16)
    return (w1m, b1.reshape(1, C1), w2m, b2.reshape(1, C2), wfc_cat, bfc.reshape(ncls, 1))


@jax.jit
def three_layer_convnet_forward(x_nchw, packed_params):
    """Forward pass matching ThreeLayerConvNet. x_nchw: (N, Cin, 32, 32) f32 -> (N, ncls)."""
    w1m, b1r, w2m, b2r, wfc_cat, bfc_col = packed_params
    N, Cin, H, W = x_nchw.shape
    K1, C1 = w1m.shape
    K2, C2 = w2m.shape
    ncls = bfc_col.shape[0]
    HW = H * W
    assert K1 == 5 * 5 * Cin and K2 == 3 * 3 * C1
    assert wfc_cat.shape == (C2 * ncls, HW), "spatial size must be 32x32 for the fc layer"

    # Tiny XLA-side prep: NCHW->NHWC, pad, conv1 im2col, cast to bf16 (weights pre-packed).
    x_nhwc = jnp.transpose(x_nchw, (0, 2, 3, 1))
    p1 = _im2col(x_nhwc, 5, 2).astype(jnp.bfloat16)              # (N, HW, 5*5*Cin)

    out = pl.pallas_call(
        _fused_convnet_kernel,
        out_shape=jax.ShapeDtypeStruct((N, ncls, 1), jnp.float32),
        grid=(N,),
        in_specs=[
            pl.BlockSpec((1, HW, K1), lambda i: (i, 0, 0)),      # per-sample conv1 patches
            pl.BlockSpec((K1, C1), lambda i: (0, 0)),            # resident weights / biases
            pl.BlockSpec((1, C1), lambda i: (0, 0)),
            pl.BlockSpec((K2, C2), lambda i: (0, 0)),
            pl.BlockSpec((1, C2), lambda i: (0, 0)),
            pl.BlockSpec((C2 * ncls, HW), lambda i: (0, 0)),
            pl.BlockSpec((ncls, 1), lambda i: (0, 0)),
        ],
        out_specs=pl.BlockSpec((1, ncls, 1), lambda i: (i, 0, 0)),
        scratch_shapes=[
            pltpu.VMEM((H + 2, W + 2, C1), jnp.float32),         # zero-padded relu1
            pltpu.VMEM((HW, K2), jnp.bfloat16),                  # conv2 im2col patches
        ],
        compiler_params=pltpu.CompilerParams(
            dimension_semantics=("parallel",)),                   # batch split across TCs (v7x)
    )(p1, w1m, b1r, w2m, b2r, wfc_cat, bfc_col)
    return out.reshape(N, ncls)


# ---------------- pure-JAX references for sanity checks ----------------

def forward_ref(x, params):
    """f32 reference identical to the PyTorch module."""
    w1, b1, w2, b2, wfc, bfc = params
    dn = ('NCHW', 'OIHW', 'NCHW')
    y = lax.conv_general_dilated(x, w1, (1, 1), ((2, 2), (2, 2)), dimension_numbers=dn)
    y = jnp.maximum(y + b1[None, :, None, None], 0.0)
    y = lax.conv_general_dilated(y, w2, (1, 1), ((1, 1), (1, 1)), dimension_numbers=dn)
    y = jnp.maximum(y + b2[None, :, None, None], 0.0)
    return y.reshape(y.shape[0], -1) @ wfc.T + bfc


def forward_ref_bf16(x, params):
    """Reference with the same bf16-operand / f32-accumulate rounding as the kernel."""
    w1, b1, w2, b2, wfc, bfc = params
    bf = lambda a: a.astype(jnp.bfloat16)
    dn = ('NCHW', 'OIHW', 'NCHW')
    y = lax.conv_general_dilated(bf(x), bf(w1), (1, 1), ((2, 2), (2, 2)),
                                 dimension_numbers=dn, preferred_element_type=jnp.float32)
    y = jnp.maximum(y + b1[None, :, None, None], 0.0)
    y = lax.conv_general_dilated(bf(y), bf(w2), (1, 1), ((1, 1), (1, 1)),
                                 dimension_numbers=dn, preferred_element_type=jnp.float32)
    y = jnp.maximum(y + b2[None, :, None, None], 0.0)
    flat = bf(y).reshape(y.shape[0], -1)
    return jnp.dot(flat, bf(wfc).T, preferred_element_type=jnp.float32) + bfc


if __name__ == "__main__":
    key = jax.random.PRNGKey(0)
    kx, kp = jax.random.split(key)

    # fc hard-codes channel_2*32*32 input features, so the spatial size must be 32x32.
    N, in_channel, H, W = 2, 3, 32, 32
    channel_1, channel_2, num_classes = 32, 16, 10

    x = jax.random.normal(kx, (N, in_channel, H, W), jnp.float32)
    params = init_params(kp, in_channel, channel_1, channel_2, num_classes)
    packed = pack_params(params, H, W)           # one-time weight re-layout (outside the jit)

    scores = three_layer_convnet_forward(x, packed)
    scores = jax.block_until_ready(scores)
    assert scores.shape == (N, num_classes)

    ref_bf16 = forward_ref_bf16(x, params)
    assert jnp.allclose(scores, ref_bf16, rtol=5e-3, atol=5e-3), \
        "mismatch vs bf16-matched JAX reference"
    ref_f32 = forward_ref(x, params)
    assert jnp.allclose(scores, ref_f32, rtol=5e-2, atol=5e-2), \
        "mismatch vs f32 JAX reference"

    print("KERNEL_OK")
</pallas_src>

<mosaic_0001>
module attributes {stable_mosaic.version = 11 : i64} {
  func.func @_fused_convnet_kernel(%arg0: i32, %arg1: memref<1x1024x75xbf16, #tpu.memory_space<vmem>>, %arg2: memref<75x32xbf16, #tpu.memory_space<vmem>>, %arg3: memref<1x32xf32, #tpu.memory_space<vmem>>, %arg4: memref<288x16xbf16, #tpu.memory_space<vmem>>, %arg5: memref<1x16xf32, #tpu.memory_space<vmem>>, %arg6: memref<160x1024xbf16, #tpu.memory_space<vmem>>, %arg7: memref<10x1xf32, #tpu.memory_space<vmem>>, %arg8: memref<1x10x1xf32, #tpu.memory_space<vmem>>, %arg9: memref<34x34x32xf32, #tpu.memory_space<vmem>>, %arg10: memref<1024x288xbf16, #tpu.memory_space<vmem>>) attributes {dimension_semantics = [#tpu.dimension_semantics<parallel>], iteration_bounds = array<i64: 2>, scalar_prefetch = 0 : i64, scratch_operands = 2 : i64, tpu.core_type = #tpu.core_type<tc>, window_params = [{transform_indices = @transform_0, window_bounds = array<i64: 1, 1024, 75>}, {pipeline_mode = #tpu.pipeline_mode<synchronous>, transform_indices = @transform_1, window_bounds = array<i64: 75, 32>}, {pipeline_mode = #tpu.pipeline_mode<synchronous>, transform_indices = @transform_2, window_bounds = array<i64: 1, 32>}, {pipeline_mode = #tpu.pipeline_mode<synchronous>, transform_indices = @transform_3, window_bounds = array<i64: 288, 16>}, {pipeline_mode = #tpu.pipeline_mode<synchronous>, transform_indices = @transform_4, window_bounds = array<i64: 1, 16>}, {pipeline_mode = #tpu.pipeline_mode<synchronous>, transform_indices = @transform_5, window_bounds = array<i64: 160, 1024>}, {pipeline_mode = #tpu.pipeline_mode<synchronous>, transform_indices = @transform_6, window_bounds = array<i64: 10, 1>}, {transform_indices = @transform_7, window_bounds = array<i64: 1, 10, 1>}]} {
    %c0 = arith.constant 0 : index
    %c0_0 = arith.constant 0 : index
    %c0_1 = arith.constant 0 : index
    %0 = vector.load %arg1[%c0, %c0_0, %c0_1] : memref<1x1024x75xbf16, #tpu.memory_space<vmem>>, vector<1x1024x75xbf16>
    %1 = vector.shape_cast %0 : vector<1x1024x75xbf16> to vector<1024x75xbf16>
    %c0_2 = arith.constant 0 : index
    %c0_3 = arith.constant 0 : index
    %2 = vector.load %arg2[%c0_2, %c0_3] : memref<75x32xbf16, #tpu.memory_space<vmem>>, vector<75x32xbf16>
    %cst = arith.constant dense<0.000000e+00> : vector<1024x32xf32>
    %3 = tpu.matmul %1, %2, %cst {dimension_numbers = #tpu.dot_dimension_numbers<[1], [0], [0], [1], [0, 0, 1, 1], [], []>} : vector<1024x75xbf16>, vector<75x32xbf16>, vector<1024x32xf32> -> vector<1024x32xf32>
    %c0_4 = arith.constant 0 : index
    %c0_5 = arith.constant 0 : index
    %4 = vector.load %arg3[%c0_4, %c0_5] : memref<1x32xf32, #tpu.memory_space<vmem>>, vector<1x32xf32>
    %5 = vector.broadcast %4 : vector<1x32xf32> to vector<1024x32xf32>
    %6 = arith.addf %3, %5 : vector<1024x32xf32>
    %cst_6 = arith.constant 0.000000e+00 : f32
    %7 = vector.broadcast %cst_6 : f32 to vector<1024x32xf32>
    %8 = arith.maximumf %6, %7 : vector<1024x32xf32>
    %cst_7 = arith.constant 0.000000e+00 : f32
    %9 = vector.broadcast %cst_7 : f32 to vector<34x34x32xf32>
    %c0_8 = arith.constant 0 : index
    %c0_9 = arith.constant 0 : index
    %c0_10 = arith.constant 0 : index
    %10 = vector.load %arg9[%c0_8, %c0_9, %c0_10] : memref<34x34x32xf32, #tpu.memory_space<vmem>>, vector<34x34x32xf32>
    tpu.vector_store %arg9[%c0_8, %c0_9, %c0_10], %9 {strides = array<i32>} : memref<34x34x32xf32, #tpu.memory_space<vmem>>, vector<34x34x32xf32>,
    %11 = vector.shape_cast %8 : vector<1024x32xf32> to vector<32x32x32xf32>
    %c1 = arith.constant 1 : index
    %c1_11 = arith.constant 1 : index
    %c0_12 = arith.constant 0 : index
    %12 = vector.load %arg9[%c1, %c1_11, %c0_12] : memref<34x34x32xf32, #tpu.memory_space<vmem>>, vector<32x32x32xf32>
    tpu.vector_store %arg9[%c1, %c1_11, %c0_12], %11 {strides = array<i32>} : memref<34x34x32xf32, #tpu.memory_space<vmem>>, vector<32x32x32xf32>,
    %c0_13 = arith.constant 0 : index
    %c0_14 = arith.constant 0 : index
    %c0_15 = arith.constant 0 : index
    %13 = vector.load %arg9[%c0_13, %c0_14, %c0_15] : memref<34x34x32xf32, #tpu.memory_space<vmem>>, vector<32x32x32xf32>
    %14 = vector.shape_cast %13 : vector<32x32x32xf32> to vector<1024x32xf32>
    %15 = arith.truncf %14 : vector<1024x32xf32> to vector<1024x32xbf16>
    %c0_16 = arith.constant 0 : index
    %c0_17 = arith.constant 0 : index
    %16 = vector.load %arg10[%c0_16, %c0_17] : memref<1024x288xbf16, #tpu.memory_space<vmem>>, vector<1024x32xbf16>
    tpu.vector_store %arg10[%c0_16, %c0_17], %15 {strides = array<i32>} : memref<1024x288xbf16, #tpu.memory_space<vmem>>, vector<1024x32xbf16>,
    %c0_18 = arith.constant 0 : index
    %c1_19 = arith.constant 1 : index
    %c0_20 = arith.constant 0 : index
    %17 = vector.load %arg9[%c0_18, %c1_19, %c0_20] : memref<34x34x32xf32, #tpu.memory_space<vmem>>, vector<32x32x32xf32>
    %18 = vector.shape_cast %17 : vector<32x32x32xf32> to vector<1024x32xf32>
    %19 = arith.truncf %18 : vector<1024x32xf32> to vector<1024x32xbf16>
    %c0_21 = arith.constant 0 : index
    %c32 = arith.constant 32 : index
    %20 = vector.load %arg10[%c0_21, %c32] : memref<1024x288xbf16, #tpu.memory_space<vmem>>, vector<1024x32xbf16>
    tpu.vector_store %arg10[%c0_21, %c32], %19 {strides = array<i32>} : memref<1024x288xbf16, #tpu.memory_space<vmem>>, vector<1024x32xbf16>,
    %c0_22 = arith.constant 0 : index
    %c2 = arith.constant 2 : index
    %c0_23 = arith.constant 0 : index
    %21 = vector.load %arg9[%c0_22, %c2, %c0_23] : memref<34x34x32xf32, #tpu.memory_space<vmem>>, vector<32x32x32xf32>
    %22 = vector.shape_cast %21 : vector<32x32x32xf32> to vector<1024x32xf32>
    %23 = arith.truncf %22 : vector<1024x32xf32> to vector<1024x32xbf16>
    %c0_24 = arith.constant 0 : index
    %c64 = arith.constant 64 : index
    %24 = vector.load %arg10[%c0_24, %c64] : memref<1024x288xbf16, #tpu.memory_space<vmem>>, vector<1024x32xbf16>
    tpu.vector_store %arg10[%c0_24, %c64], %23 {strides = array<i32>} : memref<1024x288xbf16, #tpu.memory_space<vmem>>, vector<1024x32xbf16>,
    %c1_25 = arith.constant 1 : index
    %c0_26 = arith.constant 0 : index
    %c0_27 = arith.constant 0 : index
    %25 = vector.load %arg9[%c1_25, %c0_26, %c0_27] : memref<34x34x32xf32, #tpu.memory_space<vmem>>, vector<32x32x32xf32>
    %26 = vector.shape_cast %25 : vector<32x32x32xf32> to vector<1024x32xf32>
    %27 = arith.truncf %26 : vector<1024x32xf32> to vector<1024x32xbf16>
    %c0_28 = arith.constant 0 : index
    %c96 = arith.constant 96 : index
    %28 = vector.load %arg10[%c0_28, %c96] : memref<1024x288xbf16, #tpu.memory_space<vmem>>, vector<1024x32xbf16>
    tpu.vector_store %arg10[%c0_28, %c96], %27 {strides = array<i32>} : memref<1024x288xbf16, #tpu.memory_space<vmem>>, vector<1024x32xbf16>,
    %c1_29 = arith.constant 1 : index
    %c1_30 = arith.constant 1 : index
    %c0_31 = arith.constant 0 : index
    %29 = vector.load %arg9[%c1_29, %c1_30, %c0_31] : memref<34x34x32xf32, #tpu.memory_space<vmem>>, vector<32x32x32xf32>
    %30 = vector.shape_cast %29 : vector<32x32x32xf32> to vector<1024x32xf32>
    %31 = arith.truncf %30 : vector<1024x32xf32> to vector<1024x32xbf16>
    %c0_32 = arith.constant 0 : index
    %c128 = arith.constant 128 : index
    %32 = vector.load %arg10[%c0_32, %c128] : memref<1024x288xbf16, #tpu.memory_space<vmem>>, vector<1024x32xbf16>
    tpu.vector_store %arg10[%c0_32, %c128], %31 {strides = array<i32>} : memref<1024x288xbf16, #tpu.memory_space<vmem>>, vector<1024x32xbf16>,
    %c1_33 = arith.constant 1 : index
    %c2_34 = arith.constant 2 : index
    %c0_35 = arith.constant 0 : index
    %33 = vector.load %arg9[%c1_33, %c2_34, %c0_35] : memref<34x34x32xf32, #tpu.memory_space<vmem>>, vector<32x32x32xf32>
    %34 = vector.shape_cast %33 : vector<32x32x32xf32> to vector<1024x32xf32>
    %35 = arith.truncf %34 : vector<1024x32xf32> to vector<1024x32xbf16>
    %c0_36 = arith.constant 0 : index
    %c160 = arith.constant 160 : index
    %36 = vector.load %arg10[%c0_36, %c160] : memref<1024x288xbf16, #tpu.memory_space<vmem>>, vector<1024x32xbf16>
    tpu.vector_store %arg10[%c0_36, %c160], %35 {strides = array<i32>} : memref<1024x288xbf16, #tpu.memory_space<vmem>>, vector<1024x32xbf16>,
    %c2_37 = arith.constant 2 : index
    %c0_38 = arith.constant 0 : index
    %c0_39 = arith.constant 0 : index
    %37 = vector.load %arg9[%c2_37, %c0_38, %c0_39] : memref<34x34x32xf32, #tpu.memory_space<vmem>>, vector<32x32x32xf32>
    %38 = vector.shape_cast %37 : vector<32x32x32xf32> to vector<1024x32xf32>
    %39 = arith.truncf %38 : vector<1024x32xf32> to vector<1024x32xbf16>
    %c0_40 = arith.constant 0 : index
    %c192 = arith.constant 192 : index
    %40 = vector.load %arg10[%c0_40, %c192] : memref<1024x288xbf16, #tpu.memory_space<vmem>>, vector<1024x32xbf16>
    tpu.vector_store %arg10[%c0_40, %c192], %39 {strides = array<i32>} : memref<1024x288xbf16, #tpu.memory_space<vmem>>, vector<1024x32xbf16>,
    %c2_41 = arith.constant 2 : index
    %c1_42 = arith.constant 1 : index
    %c0_43 = arith.constant 0 : index
    %41 = vector.load %arg9[%c2_41, %c1_42, %c0_43] : memref<34x34x32xf32, #tpu.memory_space<vmem>>, vector<32x32x32xf32>
    %42 = vector.shape_cast %41 : vector<32x32x32xf32> to vector<1024x32xf32>
    %43 = arith.truncf %42 : vector<1024x32xf32> to vector<1024x32xbf16>
    %c0_44 = arith.constant 0 : index
    %c224 = arith.constant 224 : index
    %44 = vector.load %arg10[%c0_44, %c224] : memref<1024x288xbf16, #tpu.memory_space<vmem>>, vector<1024x32xbf16>
    tpu.vector_store %arg10[%c0_44, %c224], %43 {strides = array<i32>} : memref<1024x288xbf16, #tpu.memory_space<vmem>>, vector<1024x32xbf16>,
    %c2_45 = arith.constant 2 : index
    %c2_46 = arith.constant 2 : index
    %c0_47 = arith.constant 0 : index
    %45 = vector.load %arg9[%c2_45, %c2_46, %c0_47] : memref<34x34x32xf32, #tpu.memory_space<vmem>>, vector<32x32x32xf32>
    %46 = vector.shape_cast %45 : vector<32x32x32xf32> to vector<1024x32xf32>
    %47 = arith.truncf %46 : vector<1024x32xf32> to vector<1024x32xbf16>
    %c0_48 = arith.constant 0 : index
    %c256 = arith.constant 256 : index
    %48 = vector.load %arg10[%c0_48, %c256] : memref<1024x288xbf16, #tpu.memory_space<vmem>>, vector<1024x32xbf16>
    tpu.vector_store %arg10[%c0_48, %c256], %47 {strides = array<i32>} : memref<1024x288xbf16, #tpu.memory_space<vmem>>, vector<1024x32xbf16>,
    %c0_49 = arith.constant 0 : index
    %c0_50 = arith.constant 0 : index
    %49 = vector.load %arg10[%c0_49, %c0_50] : memref<1024x288xbf16, #tpu.memory_space<vmem>>, vector<1024x288xbf16>
    %c0_51 = arith.constant 0 : index
    %c0_52 = arith.constant 0 : index
    %50 = vector.load %arg4[%c0_51, %c0_52] : memref<288x16xbf16, #tpu.memory_space<vmem>>, vector<288x16xbf16>
    %cst_53 = arith.constant dense<0.000000e+00> : vector<1024x16xf32>
    %51 = tpu.matmul %49, %50, %cst_53 {dimension_numbers = #tpu.dot_dimension_numbers<[1], [0], [0], [1], [0, 0, 1, 1], [], []>} : vector<1024x288xbf16>, vector<288x16xbf16>, vector<1024x16xf32> -> vector<1024x16xf32>
    %c0_54 = arith.constant 0 : index
    %c0_55 = arith.constant 0 : index
    %52 = vector.load %arg5[%c0_54, %c0_55] : memref<1x16xf32, #tpu.memory_space<vmem>>, vector<1x16xf32>
    %53 = vector.broadcast %52 : vector<1x16xf32> to vector<1024x16xf32>
    %54 = arith.addf %51, %53 : vector<1024x16xf32>
    %cst_56 = arith.constant 0.000000e+00 : f32
    %55 = vector.broadcast %cst_56 : f32 to vector<1024x16xf32>
    %56 = arith.maximumf %54, %55 : vector<1024x16xf32>
    %c0_57 = arith.constant 0 : index
    %c0_58 = arith.constant 0 : index
    %57 = vector.load %arg6[%c0_57, %c0_58] : memref<160x1024xbf16, #tpu.memory_space<vmem>>, vector<160x1024xbf16>
    %58 = arith.truncf %56 : vector<1024x16xf32> to vector<1024x16xbf16>
    %cst_59 = arith.constant dense<0.000000e+00> : vector<160x16xf32>
    %59 = tpu.matmul %57, %58, %cst_59 {dimension_numbers = #tpu.dot_dimension_numbers<[1], [0], [0], [1], [0, 0, 1, 1], [], []>} : vector<160x1024xbf16>, vector<1024x16xbf16>, vector<160x16xf32> -> vector<160x16xf32>
    %c0_60 = arith.constant 0 : index
    %c0_61 = arith.constant 0 : index
    %60 = vector.load %arg7[%c0_60, %c0_61] : memref<10x1xf32, #tpu.memory_space<vmem>>, vector<10x1xf32>
    %61 = vector.extract_strided_slice %59 {offsets = [0, 0], sizes = [10, 1], strides = [1, 1]} : vector<160x16xf32> to vector<10x1xf32>
    %62 = arith.addf %60, %61 : vector<10x1xf32>
    %63 = vector.extract_strided_slice %59 {offsets = [10, 1], sizes = [10, 1], strides = [1, 1]} : vector<160x16xf32> to vector<10x1xf32>
    %64 = arith.addf %62, %63 : vector<10x1xf32>
    %65 = vector.extract_strided_slice %59 {offsets = [20, 2], sizes = [10, 1], strides = [1, 1]} : vector<160x16xf32> to vector<10x1xf32>
    %66 = arith.addf %64, %65 : vector<10x1xf32>
    %67 = vector.extract_strided_slice %59 {offsets = [30, 3], sizes = [10, 1], strides = [1, 1]} : vector<160x16xf32> to vector<10x1xf32>
    %68 = arith.addf %66, %67 : vector<10x1xf32>
    %69 = vector.extract_strided_slice %59 {offsets = [40, 4], sizes = [10, 1], strides = [1, 1]} : vector<160x16xf32> to vector<10x1xf32>
    %70 = arith.addf %68, %69 : vector<10x1xf32>
    %71 = vector.extract_strided_slice %59 {offsets = [50, 5], sizes = [10, 1], strides = [1, 1]} : vector<160x16xf32> to vector<10x1xf32>
    %72 = arith.addf %70, %71 : vector<10x1xf32>
    %73 = vector.extract_strided_slice %59 {offsets = [60, 6], sizes = [10, 1], strides = [1, 1]} : vector<160x16xf32> to vector<10x1xf32>
    %74 = arith.addf %72, %73 : vector<10x1xf32>
    %75 = vector.extract_strided_slice %59 {offsets = [70, 7], sizes = [10, 1], strides = [1, 1]} : vector<160x16xf32> to vector<10x1xf32>
    %76 = arith.addf %74, %75 : vector<10x1xf32>
    %77 = vector.extract_strided_slice %59 {offsets = [80, 8], sizes = [10, 1], strides = [1, 1]} : vector<160x16xf32> to vector<10x1xf32>
    %78 = arith.addf %76, %77 : vector<10x1xf32>
    %79 = vector.extract_strided_slice %59 {offsets = [90, 9], sizes = [10, 1], strides = [1, 1]} : vector<160x16xf32> to vector<10x1xf32>
    %80 = arith.addf %78, %79 : vector<10x1xf32>
    %81 = vector.extract_strided_slice %59 {offsets = [100, 10], sizes = [10, 1], strides = [1, 1]} : vector<160x16xf32> to vector<10x1xf32>
    %82 = arith.addf %80, %81 : vector<10x1xf32>
    %83 = vector.extract_strided_slice %59 {offsets = [110, 11], sizes = [10, 1], strides = [1, 1]} : vector<160x16xf32> to vector<10x1xf32>
    %84 = arith.addf %82, %83 : vector<10x1xf32>
    %85 = vector.extract_strided_slice %59 {offsets = [120, 12], sizes = [10, 1], strides = [1, 1]} : vector<160x16xf32> to vector<10x1xf32>
    %86 = arith.addf %84, %85 : vector<10x1xf32>
    %87 = vector.extract_strided_slice %59 {offsets = [130, 13], sizes = [10, 1], strides = [1, 1]} : vector<160x16xf32> to vector<10x1xf32>
    %88 = arith.addf %86, %87 : vector<10x1xf32>
    %89 = vector.extract_strided_slice %59 {offsets = [140, 14], sizes = [10, 1], strides = [1, 1]} : vector<160x16xf32> to vector<10x1xf32>
    %90 = arith.addf %88, %89 : vector<10x1xf32>
    %91 = vector.extract_strided_slice %59 {offsets = [150, 15], sizes = [10, 1], strides = [1, 1]} : vector<160x16xf32> to vector<10x1xf32>
    %92 = arith.addf %90, %91 : vector<10x1xf32>
    %c0_62 = arith.constant 0 : index
    %c0_63 = arith.constant 0 : index
    %c0_64 = arith.constant 0 : index
    %93 = vector.load %arg8[%c0_62, %c0_63, %c0_64] : memref<1x10x1xf32, #tpu.memory_space<vmem>>, vector<1x10x1xf32>
    %94 = vector.shape_cast %93 : vector<1x10x1xf32> to vector<10x1xf32>
    %95 = vector.shape_cast %92 : vector<10x1xf32> to vector<1x10x1xf32>
    tpu.vector_store %arg8[%c0_62, %c0_63, %c0_64], %95 {strides = array<i32>} : memref<1x10x1xf32, #tpu.memory_space<vmem>>, vector<1x10x1xf32>,
    return
  }
  func.func @transform_0(%arg0: i32) -> (i32, i32, i32) {
    %c0_i32 = arith.constant 0 : i32
    %c0_i32_0 = arith.constant 0 : i32
    %c0_i32_1 = arith.constant 0 : i32
    return %arg0, %c0_i32, %c0_i32_0 : i32, i32, i32
  }
  func.func @transform_1(%arg0: i32) -> (i32, i32) {
    %c0_i32 = arith.constant 0 : i32
    %c0_i32_0 = arith.constant 0 : i32
    %c0_i32_1 = arith.constant 0 : i32
    return %c0_i32, %c0_i32_0 : i32, i32
  }
  func.func @transform_2(%arg0: i32) -> (i32, i32) {
    %c0_i32 = arith.constant 0 : i32
    %c0_i32_0 = arith.constant 0 : i32
    %c0_i32_1 = arith.constant 0 : i32
    return %c0_i32, %c0_i32_0 : i32, i32
  }
  func.func @transform_3(%arg0: i32) -> (i32, i32) {
    %c0_i32 = arith.constant 0 : i32
    %c0_i32_0 = arith.constant 0 : i32
    %c0_i32_1 = arith.constant 0 : i32
    return %c0_i32, %c0_i32_0 : i32, i32
  }
  func.func @transform_4(%arg0: i32) -> (i32, i32) {
    %c0_i32 = arith.constant 0 : i32
    %c0_i32_0 = arith.constant 0 : i32
    %c0_i32_1 = arith.constant 0 : i32
    return %c0_i32, %c0_i32_0 : i32, i32
  }
  func.func @transform_5(%arg0: i32) -> (i32, i32) {
    %c0_i32 = arith.constant 0 : i32
    %c0_i32_0 = arith.constant 0 : i32
    %c0_i32_1 = arith.constant 0 : i32
    return %c0_i32, %c0_i32_0 : i32, i32
  }
  func.func @transform_6(%arg0: i32) -> (i32, i32) {
    %c0_i32 = arith.constant 0 : i32
    %c0_i32_0 = arith.constant 0 : i32
    %c0_i32_1 = arith.constant 0 : i32
    return %c0_i32, %c0_i32_0 : i32, i32
  }
  func.func @transform_7(%arg0: i32) -> (i32, i32, i32) {
    %c0_i32 = arith.constant 0 : i32
    %c0_i32_0 = arith.constant 0 : i32
    %c0_i32_1 = arith.constant 0 : i32
    return %arg0, %c0_i32, %c0_i32_0 : i32, i32, i32
  }
}

</mosaic_0001>

<bundles_post_ra>
// kernel: three_layer_convnet_forward.1
= control target key start
LH: loop header
LB: loop body
LE: loop exit
PB: predicated region body
PF: predicated region fallthrough
CT: control target
= control target key end

     0   :  { %s10024_s24 = smov 0   ;;  %s13534_s0 = inlined_call_operand.vmem [shape: bf16[2,1024,75], index: 0, kind: input, shape index: {}]   ;;  %s13535_s1 = inlined_call_operand.vmem [shape: bf16[75,32], index: 1, kind: input, shape index: {}]   ;;  %s13536_s2 = inlined_call_operand.vmem [shape: f32[1,32], index: 2, kind: input, shape index: {}]   ;;  %s13537_s3 = inlined_call_operand.vmem [shape: bf16[288,16], index: 3, kind: input, shape index: {}]   ;;  %s13538_s4 = inlined_call_operand.vmem [shape: f32[1,16], index: 4, kind: input, shape index: {}]   ;;  %s13539_s5 = inlined_call_operand.vmem [shape: bf16[160,1024], index: 5, kind: input, shape index: {}]   ;;  %s13540_s6 = inlined_call_operand.vmem [shape: f32[10,1], index: 6, kind: input, shape index: {}]   ;;  %s13541_s7 = inlined_call_operand.vmem [shape: f32[2,10,1], index: 7, kind: output, shape index: {}]  }
   0x1 LB: > { %s8781_s25 = sadd.s32 4294967295, %s9961_s24   ;;  %p8785_p0 = scmp.ge.s32.totalorder %s9961_s24, 1  ;;  %s9961_s24 = sphi %s10024_s24, %s17_s24  }
   0x2   : > { %p237_p1 = scmp.lt.s32.totalorder %s9961_s24, 3 }
   0x4   : > { %p238_p2 = pnand %p8785_p0, %p237_p1 }
   0x6   : > { %241 = sbr.rel (%p238_p2) target bundleno = 1792 (0x700), region = 48 }
   0xd   : > { %v9861_v0 = vld [vmem:[%s13535_s1] sm:$0xff]   ;;  %v9862_v1 = vld [vmem:[%s13535_s1 + $0x8] sm:$0xff]   ;;  %vm967_vm0 = vcmask 1044480   ;;  %vm968_vm1 = vcmask 1045504   ;;  %v9863_v2 = vld [vmem:[%s13535_s1 + $0x10] sm:$0xff]   ;;  %v9963_v3 = vmov 65535  }
   0xe   : > { %9530 = vmatprep.subr.bf16.mxu0 %v9861_v0  ;;  %v969_v4 = vsel %vm967_vm0, 4294967295, %v9963_v3  ;;  %p269_p3 = scmp.lt.s32.totalorder %s8781_s25, 1  ;;  %v9864_v5 = vld [vmem:[%s13535_s1 + $0x18] sm:$0xff]   ;;  %v9865_v6 = vld [vmem:[%s13535_s1 + $0x20] sm:$0x3f]   ;;  %vm774_vm2 = vcmask 613376  }
   0xf   : > { %9531 = vmatpush3.bf16.msra.mxu0 %v9861_v0  ;;  %v970_v7 = vsel %vm968_vm1, %v969_v4, 0  ;;  %vm1647_vm3 = vcmask 261120   ;;  %v9964_v30 = vmov 0.0   ;;  %vm1652_vm4 = vcmask 254976   ;;  %s9965_s17 = smov 32   ;;  %s9966_s18 = smov 64  }
  0x10   : > { %9532 = vmatprep.subr.bf16.mxu0 %v9862_v1  ;;  %s13635_s25 = smov (!%p269_p3, %s8781_s25), 1  ;;  %v972_v9 = vand.u32 %v9865_v6, %v970_v7  ;;  %1656 = vst.msk [vmem:[#allocation2 + $0x38] sm:$0xff] %vm1647_vm3, %v9964_v30  ;;  %1657 = vst.msk [vmem:[#allocation2 + $0x40] sm:$0xff] %vm1647_vm3, %v9964_v30  ;;  %v9967_v7 = vmov 0   ;;  %vm2652_vm5 = vcmask 523520   ;;  %vm3165_vm6 = vcmask 785920  }
  0x11   : > { %s9089_s13 = sshll.u32 %s13635_s25, 9  ;;  %1648 = vst.msk [vmem:[#allocation2] sm:$0xff] %vm1647_vm3, %v9964_v30  ;;  %1649 = vst.msk [vmem:[#allocation2 + $0x8] sm:$0xff] %vm1647_vm3, %v9964_v30  ;;  %9800 = vmatprep.subr.bf16.mxu1 %v9967_v7  ;;  %s9968_s8 = smov 96   ;;  %vm3678_vm7 = vcmask 1048320   ;;  %vm8559_vm8 = vcmask 1043456  }
  0x12   : > { %s10054_s16 = scalar_lea.vmem %s13534_s0, %s9089_s13  ;;  %1650 = vst.msk [vmem:[#allocation2 + $0x10] sm:$0xff] %vm1647_vm3, %v9964_v30  ;;  %1651 = vst.msk [vmem:[#allocation2 + $0x18] sm:$0xff] %vm1647_vm3, %v9964_v30  ;;  %s9969_s9 = smov 127   ;;  %vm8572_vm9 = vcmask 1041408   ;;  %vm8724_vm10 = vcmask 1024   ;;  %vm8722_vm11 = vcmask 7168  }
  0x13   : > { %9533 = vmatpush3.bf16.msra.mxu0 %v9862_v1  ;;  %v9866_v8 = vld [vmem:[%s10054_s16] sm:$0xff]   ;;  %v9867_v10 = vld [vmem:[%s10054_s16 + $0x8] sm:$0xff]   ;;  %v9868_v11 = vld [vmem:[%s10054_s16 + $0x10] sm:$0xff]   ;;  %1654 = vst.msk [vmem:[#allocation2 + $0x28] sm:$0xff] %vm1647_vm3, %v9964_v30  ;;  %s9970_s10 = smov 126   ;;  %s9971_s11 = smov 125  }
  0x14   : > { %9534 = vmatprep.subr.bf16.mxu0 %v9863_v2  ;;  %9540 = vmatprep.mubr.msk.bf16.mxu0 %vm774_vm2, %v9866_v8  ;;  %v9869_v12 = vld [vmem:[%s10054_s16 + $0x18] sm:$0xff]   ;;  %v9870_v13 = vld [vmem:[%s10054_s16 + $0x20] sm:$0xff]   ;;  %v9871_v14 = vld [vmem:[%s10054_s16 + $0x28] sm:$0xff]   ;;  %1655 = vst.msk [vmem:[#allocation2 + $0x30] sm:$0xff] %vm1647_vm3, %v9964_v30  ;;  %s9972_s12 = smov 124   ;;  %s9974_s13 = smov 122  }
  0x15   : > { %v9872_v15 = vld [vmem:[%s10054_s16 + $0x30] sm:$0xff]   ;;  %v9873_v16 = vld [vmem:[%s10054_s16 + $0x38] sm:$0xff]   ;;  %v9874_v17 = vld [vmem:[%s10054_s16 + $0x40] sm:$0xff]   ;;  %1659 = vst.msk [vmem:[#allocation2 + $0x50] sm:$0xff] %vm1647_vm3, %v9964_v30  ;;  %s9975_s14 = smov 121   ;;  %s9976_s15 = smov 120  }
  0x16   : > { %v9875_v18 = vld [vmem:[%s10054_s16 + $0x48] sm:$0xff]   ;;  %v9876_v19 = vld [vmem:[%s10054_s16 + $0x50] sm:$0xff]   ;;  %v9877_v20 = vld [vmem:[%s10054_s16 + $0x58] sm:$0xff]   ;;  %1660 = vst.msk [vmem:[#allocation2 + $0x58] sm:$0xff] %vm1647_vm3, %v9964_v30  ;;  %s9977_s19 = smov 119   ;;  %s9978_s20 = smov 118  }
  0x17   : > { %9535 = vmatpush3.bf16.msra.mxu0 %v9863_v2  ;;  %v9878_v21 = vld [vmem:[%s10054_s16 + $0x60] sm:$0xff]   ;;  %v9879_v22 = vld [vmem:[%s10054_s16 + $0x68] sm:$0xff]   ;;  %v9880_v23 = vld [vmem:[%s10054_s16 + $0x70] sm:$0xff]   ;;  %1661 = vst.msk [vmem:[#allocation2 + $0x60] sm:$0xff] %vm1647_vm3, %v9964_v30  ;;  %s9982_s21 = smov 114   ;;  %s9983_s22 = smov 113  }
  0x18   : > { %9536 = vmatprep.subr.bf16.mxu0 %v9864_v5  ;;  %v9881_v24 = vld [vmem:[%s10054_s16 + $0x78] sm:$0xff]   ;;  %v9882_v25 = vld [vmem:[%s10054_s16 + $0x80] sm:$0xff]   ;;  %v9883_v26 = vld [vmem:[%s10054_s16 + $0x88] sm:$0xff]   ;;  %1662 = vst.msk [vmem:[#allocation2 + $0x68] sm:$0xff] %vm1647_vm3, %v9964_v30  ;;  %s9090_s29 = sshll.u32 %s13635_s25, 4 }
  0x19   : > { %v9884_v27 = vld [vmem:[%s10054_s16 + $0x90] sm:$0xff]   ;;  %v9885_v28 = vld [vmem:[%s10054_s16 + $0x98] sm:$0xff]   ;;  %v9886_v29 = vld [vmem:[%s10054_s16 + $0xa0] sm:$0xff]   ;;  %1664 = vst.msk [vmem:[#allocation2 + $0x78] sm:$0xff] %vm1647_vm3, %v9964_v30 }
  0x1a   : > { %1665 = vst.msk [vmem:[#allocation2 + $0x80] sm:$0xff] %vm1647_vm3, %v9964_v30  ;;  %1666 = vst.msk [vmem:[#allocation2 + $0x88] sm:$0xff] %vm1647_vm3, %v9964_v30  ;;  %v9887_v31 = vld [vmem:[%s10054_s16 + $0xa8] sm:$0xff]   ;;  %v9888_v32 = vld [vmem:[%s10054_s16 + $0xb0] sm:$0xff]  }
  0x1b   : > { %9537 = vmatpush3.bf16.msra.mxu0 %v9864_v5  ;;  %1667 = vst.msk [vmem:[#allocation2 + $0x90] sm:$0xff] %vm1647_vm3, %v9964_v30  ;;  %1669 = vst.msk [vmem:[#allocation2 + $0xa0] sm:$0xff] %vm1647_vm3, %v9964_v30  ;;  %v2204_v33 = vld [vmem:[#allocation2 + $0x1] sm:$0xff]  ;;  %v2205_v34 = vld [vmem:[#allocation2 + $0x9] sm:$0xff] }
  0x1c   : > { %9538 = vmatprep.subr.bf16.mxu0 %v972_v9  ;;  %1670 = vst.msk [vmem:[#allocation2 + $0xa8] sm:$0xff] %vm1647_vm3, %v9964_v30  ;;  %1671 = vst.msk [vmem:[#allocation2 + $0xb0] sm:$0xff] %vm1647_vm3, %v9964_v30  ;;  %v2332_v35 = vpack.c.bf16 %v2205_v34, %v2204_v33  ;;  %v9889_v36 = vld [vmem:[%s10054_s16 + $0xb8] sm:$0xff]   ;;  %v2717_v37 = vld [vmem:[#allocation2 + $0x2] sm:$0xff] }
  0x1d   : > { %1672 = vst.msk [vmem:[#allocation2 + $0xb8] sm:$0xff] %vm1647_vm3, %v9964_v30  ;;  %1674 = vst.msk [vmem:[#allocation2 + $0xc8] sm:$0xff] %vm1647_vm3, %v9964_v30  ;;  %v2718_v38 = vld [vmem:[#allocation2 + $0xa] sm:$0xff]  ;;  %v9890_v40 = vld [vmem:[%s10054_s16 + $0xc0] sm:$0xff]  }
  0x1e   : > { %1675 = vst.msk [vmem:[#allocation2 + $0xd0] sm:$0xff] %vm1647_vm3, %v9964_v30  ;;  %1676 = vst.msk [vmem:[#allocation2 + $0xd8] sm:$0xff] %vm1647_vm3, %v9964_v30  ;;  %2460 = vrot.lane.b32.xlu1 %v2332_v35, %s9965_s17  ;;  %v2845_v39 = vpack.c.bf16 %v2718_v38, %v2717_v37  ;;  %v2206_v41 = vld [vmem:[#allocation2 + $0x11] sm:$0xff]  ;;  %v9891_v44 = vld [vmem:[%s10054_s16 + $0xc8] sm:$0xff]  }
  0x1f   : > { %9539 = vmatpush3.bf16.msra.mxu0 %v972_v9  ;;  %1677 = vst.msk [vmem:[#allocation2 + $0xe0] sm:$0xff] %vm1647_vm3, %v9964_v30  ;;  %1679 = vst.msk [vmem:[#allocation2 + $0xf0] sm:$0xff] %vm1647_vm3, %v9964_v30  ;;  %v2719_v45 = vld [vmem:[#allocation2 + $0x12] sm:$0xff]  ;;  %v9894_v50 = vld [vmem:[%s10054_s16 + $0xe0] sm:$0xff]  }
  0x20   : > { %1680 = vst.msk [vmem:[#allocation2 + $0xf8] sm:$0xff] %vm1647_vm3, %v9964_v30  ;;  %1681 = vst.msk [vmem:[#allocation2 + $0x100] sm:$0xff] %vm1647_vm3, %v9964_v30  ;;  %v9892_v48 = vld [vmem:[%s10054_s16 + $0xd0] sm:$0xff]   ;;  %v9893_v49 = vld [vmem:[%s10054_s16 + $0xd8] sm:$0xff]   ;;  %6327 = vmatprep.subr.bf16.mxu0 %v9967_v7 }
  0x21   : > { %1682 = vst.msk [vmem:[#allocation2 + $0x108] sm:$0xff] %vm1647_vm3, %v9964_v30  ;;  %1684 = vst.msk [vmem:[#allocation2 + $0x118] sm:$0xff] %vm1647_vm3, %v9964_v30  ;;  %v9895_v51 = vld [vmem:[%s10054_s16 + $0xe8] sm:$0xff]   ;;  %v9896_v52 = vld [vmem:[%s10054_s16 + $0xf0] sm:$0xff]  }
  0x22   : > { %9541 = vmatmul.mubr.msk.bf16.vlgmr.msra.gmra.mrb[0].mxu0 %vm774_vm2, %v9867_v10  ;;  %1685 = vst.msk [vmem:[#allocation2 + $0x120] sm:$0xff] %vm1647_vm3, %v9964_v30  ;;  %1686 = vst.msk [vmem:[#allocation2 + $0x128] sm:$0xff] %vm1647_vm3, %v9964_v30  ;;  %2973 = vrot.lane.b32.xlu1 %v2845_v39, %s9966_s18  ;;  %v9897_v53 = vld [vmem:[%s10054_s16 + $0xf8] sm:$0xff]   ;;  %v9898_v54 = vld [vmem:[%s10054_s16 + $0x100] sm:$0xff]  }
  0x23   : > { %9544 = vmatprep.mubr.msk.bf16.mxu0 %vm774_vm2, %v9868_v11  ;;  %1687 = vst.msk [vmem:[#allocation2 + $0x130] sm:$0xff] %vm1647_vm3, %v9964_v30  ;;  %1689 = vst.msk [vmem:[#allocation2 + $0x140] sm:$0xff] %vm1647_vm3, %v9964_v30  ;;  %v9899_v55 = vld [vmem:[%s10054_s16 + $0x108] sm:$0xff]   ;;  %v9900_v56 = vld [vmem:[%s10054_s16 + $0x110] sm:$0xff]  }
  0x24   : > { %1690 = vst.msk [vmem:[#allocation2 + $0x148] sm:$0xff] %vm1647_vm3, %v9964_v30  ;;  %1691 = vst.msk [vmem:[#allocation2 + $0x150] sm:$0xff] %vm1647_vm3, %v9964_v30  ;;  %v9901_v57 = vld [vmem:[%s10054_s16 + $0x118] sm:$0xff]   ;;  %v9902_v58 = vld [vmem:[%s10054_s16 + $0x120] sm:$0xff]  }
  0x25   : > { %1692 = vst.msk [vmem:[#allocation2 + $0x158] sm:$0xff] %vm1647_vm3, %v9964_v30  ;;  %1694 = vst.msk [vmem:[#allocation2 + $0x168] sm:$0xff] %vm1647_vm3, %v9964_v30  ;;  %v9903_v59 = vld [vmem:[%s10054_s16 + $0x128] sm:$0xff]   ;;  %v9904_v60 = vld [vmem:[%s10054_s16 + $0x130] sm:$0xff]  }
  0x26   : > { %1695 = vst.msk [vmem:[#allocation2 + $0x170] sm:$0xff] %vm1647_vm3, %v9964_v30  ;;  %1696 = vst.msk [vmem:[#allocation2 + $0x178] sm:$0xff] %vm1647_vm3, %v9964_v30  ;;  %v9905_v61 = vld [vmem:[%s10054_s16 + $0x138] sm:$0xff]   ;;  %v9906_v62 = vld [vmem:[%s10054_s16 + $0x140] sm:$0xff]  }
  0x27   : > { %1697 = vst.msk [vmem:[#allocation2 + $0x180] sm:$0xff] %vm1647_vm3, %v9964_v30  ;;  %1699 = vst.msk [vmem:[#allocation2 + $0x190] sm:$0xff] %vm1647_vm3, %v9964_v30  ;;  %v9907_v63 = vld [vmem:[%s10054_s16 + $0x148] sm:$0xff]   ;;  %v9908_v0 = vld [vmem:[%s10054_s16 + $0x150] sm:$0xff]  }
  0x28   : > { %1700 = vst.msk [vmem:[#allocation2 + $0x198] sm:$0xff] %vm1647_vm3, %v9964_v30  ;;  %1701 = vst.msk [vmem:[#allocation2 + $0x1a0] sm:$0xff] %vm1647_vm3, %v9964_v30  ;;  %v9909_v1 = vld [vmem:[%s10054_s16 + $0x158] sm:$0xff]   ;;  %v9910_v2 = vld [vmem:[%s10054_s16 + $0x160] sm:$0xff]  }
  0x29   : > { %1702 = vst.msk [vmem:[#allocation2 + $0x1a8] sm:$0xff] %vm1647_vm3, %v9964_v30  ;;  %1704 = vst.msk [vmem:[#allocation2 + $0x1b8] sm:$0xff] %vm1647_vm3, %v9964_v30  ;;  %v9911_v3 = vld [vmem:[%s10054_s16 + $0x168] sm:$0xff]   ;;  %v9912_v4 = vld [vmem:[%s10054_s16 + $0x170] sm:$0xff]  }
  0x2a   : > { %9545 = vmatmul.mubr.msk.bf16.gmra.mrb[4].mxu0 %vm774_vm2, %v9869_v12  ;;  %1705 = vst.msk [vmem:[#allocation2 + $0x1c0] sm:$0xff] %vm1647_vm3, %v9964_v30  ;;  %1706 = vst.msk [vmem:[#allocation2 + $0x1c8] sm:$0xff] %vm1647_vm3, %v9964_v30  ;;  %v9913_v5 = vld [vmem:[%s10054_s16 + $0x178] sm:$0xff]   ;;  %v9914_v6 = vld [vmem:[%s10054_s16 + $0x180] sm:$0xff]  }
  0x2b   : > { %9548 = vmatprep.mubr.msk.bf16.mxu0 %vm774_vm2, %v9870_v13  ;;  %1707 = vst.msk [vmem:[#allocation2 + $0x1d0] sm:$0xff] %vm1647_vm3, %v9964_v30  ;;  %1709 = vst.msk [vmem:[#allocation2 + $0x1e0] sm:$0xff] %vm1647_vm3, %v9964_v30  ;;  %v9915_v8 = vld [vmem:[%s10054_s16 + $0x188] sm:$0xff]   ;;  %v9916_v9 = vld [vmem:[%s13537_s3] sm:$0xff]  }
  0x2c   : > { %1710 = vst.msk [vmem:[#allocation2 + $0x1e8] sm:$0xff] %vm1647_vm3, %v9964_v30  ;;  %1711 = vst.msk [vmem:[#allocation2 + $0x1f0] sm:$0xff] %vm1647_vm3, %v9964_v30  ;;  %6328 = vmatpush1.bf16.msra.mxu0 %v9916_v9  ;;  %9816 = vmatpush1.bf16.msra.mxu1 %v9916_v9  ;;  %v9917_v10 = vld [vmem:[%s13537_s3 + $0x8] sm:$0xff]   ;;  %v9918_v11 = vld [vmem:[%s10054_s16 + $0x190] sm:$0xff]  }
  0x2d   : > { %1712 = vst.msk [vmem:[#allocation2 + $0x1f8] sm:$0xff] %vm1647_vm3, %v9964_v30  ;;  %1714 = vst.msk [vmem:[#allocation2 + $0x208] sm:$0xff] %vm1647_vm3, %v9964_v30  ;;  %6329 = vmatprep.subr.bf16.mxu0 %v9967_v7  ;;  %9801 = vmatprep.subr.bf16.mxu1 %v9967_v7  ;;  %v9919_v12 = vld [vmem:[%s10054_s16 + $0x198] sm:$0xff]   ;;  %v9920_v13 = vld [vmem:[%s13537_s3 + $0x10] sm:$0xff]  }
  0x2e   : > { %1715 = vst.msk [vmem:[#allocation2 + $0x210] sm:$0xff] %vm1647_vm3, %v9964_v30  ;;  %1716 = vst.msk [vmem:[#allocation2 + $0x218] sm:$0xff] %vm1647_vm3, %v9964_v30  ;;  %v9927_v34 = vld [vmem:[%s10054_s16 + $0x1b8] sm:$0xff]   ;;  %v9928_v35 = vld [vmem:[%s13537_s3 + $0x30] sm:$0xff]  }
  0x2f   : > { %1717 = vst.msk [vmem:[#allocation2 + $0x220] sm:$0xff] %vm1647_vm3, %v9964_v30  ;;  %1719 = vst.msk [vmem:[#allocation2 + $0x230] sm:$0xff] %vm1647_vm3, %v9964_v30 }
  0x30   : > { %1720 = vst.msk [vmem:[#allocation2 + $0x238] sm:$0xff] %vm1647_vm3, %v9964_v30  ;;  %1721 = vst.msk [vmem:[#allocation2 + $0x240] sm:$0xff] %vm1647_vm3, %v9964_v30  ;;  %6330 = vmatpush1.bf16.msra.mxu0 %v9917_v10  ;;  %9817 = vmatpush1.bf16.msra.mxu1 %v9917_v10 }
  0x31   : > { %1722 = vst.msk [vmem:[#allocation2 + $0x248] sm:$0xff] %vm1647_vm3, %v9964_v30  ;;  %1724 = vst.msk [vmem:[#allocation2 + $0x258] sm:$0xff] %vm1647_vm3, %v9964_v30  ;;  %6331 = vmatprep.subr.bf16.mxu0 %v9967_v7  ;;  %9802 = vmatprep.subr.bf16.mxu1 %v9967_v7 }
  0x32   : > { %9549 = vmatmul.mubr.msk.bf16.gmra.mrb[8].mxu0 %vm774_vm2, %v9871_v14  ;;  %1725 = vst.msk [vmem:[#allocation2 + $0x260] sm:$0xff] %vm1647_vm3, %v9964_v30  ;;  %1726 = vst.msk [vmem:[#allocation2 + $0x268] sm:$0xff] %vm1647_vm3, %v9964_v30  ;;  %v1949_v14 = vld [vmem:[#allocation2 + $0x8] sm:$0xff] }
  0x33   : > { %9552 = vmatprep.mubr.msk.bf16.mxu0 %vm774_vm2, %v9872_v15  ;;  %1727 = vst.msk [vmem:[#allocation2 + $0x270] sm:$0xff] %vm1647_vm3, %v9964_v30  ;;  %1729 = vst.msk [vmem:[#allocation2 + $0x280] sm:$0xff] %vm1647_vm3, %v9964_v30  ;;  %v1948_v15 = vld [vmem:[#allocation2] sm:$0xff] }
  0x34   : > { %1730 = vst.msk [vmem:[#allocation2 + $0x288] sm:$0xff] %vm1647_vm3, %v9964_v30  ;;  %1731 = vst.msk [vmem:[#allocation2 + $0x290] sm:$0xff] %vm1647_vm3, %v9964_v30  ;;  %6332 = vmatpush1.bf16.msra.mxu0 %v9920_v13  ;;  %9818 = vmatpush1.bf16.msra.mxu1 %v9920_v13 }
  0x35   : > { %1732 = vst.msk [vmem:[#allocation2 + $0x298] sm:$0xff] %vm1647_vm3, %v9964_v30  ;;  %1734 = vst.msk [vmem:[#allocation2 + $0x2a8] sm:$0xff] %vm1647_vm3, %v9964_v30  ;;  %6333 = vmatprep.subr.bf16.mxu0 %v9967_v7  ;;  %9803 = vmatprep.subr.bf16.mxu1 %v9967_v7 }
  0x36   : > { %1735 = vst.msk [vmem:[#allocation2 + $0x2b0] sm:$0xff] %vm1647_vm3, %v9964_v30  ;;  %1736 = vst.msk [vmem:[#allocation2 + $0x2b8] sm:$0xff] %vm1647_vm3, %v9964_v30 }
  0x37   : > { %1737 = vst.msk [vmem:[#allocation2 + $0x2c0] sm:$0xff] %vm1647_vm3, %v9964_v30  ;;  %1739 = vst.msk [vmem:[#allocation2 + $0x2d0] sm:$0xff] %vm1647_vm3, %v9964_v30 }
  0x38   : > { %1740 = vst.msk [vmem:[#allocation2 + $0x2d8] sm:$0xff] %vm1647_vm3, %v9964_v30  ;;  %1741 = vst.msk [vmem:[#allocation2 + $0x2e0] sm:$0xff] %vm1647_vm3, %v9964_v30 }
  0x39   : > { %1742 = vst.msk [vmem:[#allocation2 + $0x2e8] sm:$0xff] %vm1647_vm3, %v9964_v30  ;;  %1744 = vst.msk [vmem:[#allocation2 + $0x2f8] sm:$0xff] %vm1647_vm3, %v9964_v30 }
  0x3a   : > { %9553 = vmatmul.mubr.msk.bf16.gmra.mrb[12].mxu0 %vm774_vm2, %v9873_v16  ;;  %1745 = vst.msk [vmem:[#allocation2 + $0x300] sm:$0xff] %vm1647_vm3, %v9964_v30  ;;  %1746 = vst.msk [vmem:[#allocation2 + $0x308] sm:$0xff] %vm1647_vm3, %v9964_v30  ;;  %v2076_v16 = vpack.c.bf16 %v1949_v14, %v1948_v15 }
  0x3b   : > { %9556 = vmatprep.mubr.msk.bf16.mxu0 %vm774_vm2, %v9874_v17  ;;  %1747 = vst.msk [vmem:[#allocation2 + $0x310] sm:$0xff] %vm1647_vm3, %v9964_v30  ;;  %1749 = vst.msk [vmem:[#allocation2 + $0x320] sm:$0xff] %vm1647_vm3, %v9964_v30 }
  0x3c   : > { %1750 = vst.msk [vmem:[#allocation2 + $0x328] sm:$0xff] %vm1647_vm3, %v9964_v30  ;;  %1751 = vst.msk [vmem:[#allocation2 + $0x330] sm:$0xff] %vm1647_vm3, %v9964_v30 }
  0x3d   : > { %1752 = vst.msk [vmem:[#allocation2 + $0x338] sm:$0xff] %vm1647_vm3, %v9964_v30  ;;  %1754 = vst.msk [vmem:[#allocation2 + $0x348] sm:$0xff] %vm1647_vm3, %v9964_v30 }
  0x3e   : > { %1755 = vst.msk [vmem:[#allocation2 + $0x350] sm:$0xff] %vm1647_vm3, %v9964_v30  ;;  %1756 = vst.msk [vmem:[#allocation2 + $0x358] sm:$0xff] %vm1647_vm3, %v9964_v30 }
  0x3f   : > { %1757 = vst.msk [vmem:[#allocation2 + $0x360] sm:$0xff] %vm1647_vm3, %v9964_v30  ;;  %1759 = vst.msk [vmem:[#allocation2 + $0x370] sm:$0xff] %vm1647_vm3, %v9964_v30 }
  0x40   : > { %1760 = vst.msk [vmem:[#allocation2 + $0x378] sm:$0xff] %vm1647_vm3, %v9964_v30  ;;  %1761 = vst.msk [vmem:[#allocation2 + $0x380] sm:$0xff] %vm1647_vm3, %v9964_v30 }
  0x41   : > { %1762 = vst.msk [vmem:[#allocation2 + $0x388] sm:$0xff] %vm1647_vm3, %v9964_v30  ;;  %1764 = vst.msk [vmem:[#allocation2 + $0x398] sm:$0xff] %vm1647_vm3, %v9964_v30 }
  0x42   : > { %9557 = vmatmul.mubr.msk.bf16.gmra.mrb[16].mxu0 %vm774_vm2, %v9875_v18  ;;  %1765 = vst.msk [vmem:[#allocation2 + $0x3a0] sm:$0xff] %vm1647_vm3, %v9964_v30  ;;  %1766 = vst.msk [vmem:[#allocation2 + $0x3a8] sm:$0xff] %vm1647_vm3, %v9964_v30  ;;  %v9921_v18 = vld [vmem:[%s13537_s3 + $0x18] sm:$0xff]  }
  0x43   : > { %9560 = vmatprep.mubr.msk.bf16.mxu0 %vm774_vm2, %v9876_v19  ;;  %1767 = vst.msk [vmem:[#allocation2 + $0x3b0] sm:$0xff] %vm1647_vm3, %v9964_v30  ;;  %1769 = vst.msk [vmem:[#allocation2 + $0x3c0] sm:$0xff] %vm1647_vm3, %v9964_v30  ;;  %v9922_v19 = vld [vmem:[%s10054_s16 + $0x1a0] sm:$0xff]   ;;  %6334 = vmatpush1.bf16.msra.mxu0 %v9921_v18 }
  0x44   : > { %1770 = vst.msk [vmem:[#allocation2 + $0x3c8] sm:$0xff] %vm1647_vm3, %v9964_v30  ;;  %1771 = vst.msk [vmem:[#allocation2 + $0x3d0] sm:$0xff] %vm1647_vm3, %v9964_v30  ;;  %6335 = vmatprep.subr.bf16.mxu0 %v9967_v7  ;;  %9819 = vmatpush1.bf16.msra.mxu1 %v9921_v18 }
  0x45   : > { %1772 = vst.msk [vmem:[#allocation2 + $0x3d8] sm:$0xff] %vm1647_vm3, %v9964_v30  ;;  %1774 = vst.msk [vmem:[#allocation2 + $0x3e8] sm:$0xff] %vm1647_vm3, %v9964_v30  ;;  %9804 = vmatprep.subr.bf16.mxu1 %v9967_v7 }
  0x46   : > { %1775 = vst.msk [vmem:[#allocation2 + $0x3f0] sm:$0xff] %vm1647_vm3, %v9964_v30  ;;  %1776 = vst.msk [vmem:[#allocation2 + $0x3f8] sm:$0xff] %vm1647_vm3, %v9964_v30 }
  0x47   : > { %1777 = vst.msk [vmem:[#allocation2 + $0x400] sm:$0xff] %vm1647_vm3, %v9964_v30  ;;  %1779 = vst.msk [vmem:[#allocation2 + $0x410] sm:$0xff] %vm1647_vm3, %v9964_v30 }
  0x48   : > { %1780 = vst.msk [vmem:[#allocation2 + $0x418] sm:$0xff] %vm1647_vm3, %v9964_v30  ;;  %1781 = vst.msk [vmem:[#allocation2 + $0x420] sm:$0xff] %vm1647_vm3, %v9964_v30 }
  0x49   : > { %1782 = vst.msk [vmem:[#allocation2 + $0x428] sm:$0xff] %vm1647_vm3, %v9964_v30  ;;  %1784 = vst.msk [vmem:[#allocation2 + $0x438] sm:$0xff] %vm1647_vm3, %v9964_v30 }
  0x4a   : > { %9561 = vmatmul.mubr.msk.bf16.gmra.mrb[20].mxu0 %vm774_vm2, %v9877_v20  ;;  %1785 = vst.msk [vmem:[#allocation2 + $0x440] sm:$0xff] %vm1647_vm3, %v9964_v30  ;;  %1786 = vst.msk [vmem:[#allocation2 + $0x448] sm:$0xff] %vm1647_vm3, %v9964_v30 }
  0x4b   : > { %9564 = vmatprep.mubr.msk.bf16.mxu0 %vm774_vm2, %v9878_v21  ;;  %1787 = vst.msk [vmem:[#allocation2 + $0x450] sm:$0xff] %vm1647_vm3, %v9964_v30  ;;  %1789 = vst.msk [vmem:[#allocation2 + $0x460] sm:$0xff] %vm1647_vm3, %v9964_v30  ;;  %v9923_v21 = vld [vmem:[%s10054_s16 + $0x1a8] sm:$0xff]  }
  0x4c   : > { %1790 = vst.msk [vmem:[#allocation2 + $0x468] sm:$0xff] %vm1647_vm3, %v9964_v30  ;;  %1791 = vst.msk [vmem:[#allocation2 + $0x470] sm:$0xff] %vm1647_vm3, %v9964_v30 }
  0x4d   : > { %1792 = vst.msk [vmem:[#allocation2 + $0x478] sm:$0xff] %vm1647_vm3, %v9964_v30  ;;  %1794 = vst.msk [vmem:[#allocation2 + $0x488] sm:$0xff] %vm1647_vm3, %v9964_v30 }
  0x4e   : > { %1795 = vst.msk [vmem:[#allocation2 + $0x490] sm:$0xff] %vm1647_vm3, %v9964_v30  ;;  %1796 = vst.msk [vmem:[#allocation2 + $0x498] sm:$0xff] %vm1647_vm3, %v9964_v30 }
  0x4f   : > { %1797 = vst.msk [vmem:[#allocation2 + $0x4a0] sm:$0xff] %vm1647_vm3, %v9964_v30  ;;  %1799 = vst.msk [vmem:[#allocation2 + $0x4b0] sm:$0xff] %vm1647_vm3, %v9964_v30 }
  0x50   : > { %1800 = vst.msk [vmem:[#allocation2 + $0x4b8] sm:$0xff] %vm1647_vm3, %v9964_v30  ;;  %1801 = vst.msk [vmem:[#allocation2 + $0x4c0] sm:$0xff] %vm1647_vm3, %v9964_v30 }
  0x51   : > { %1802 = vst.msk [vmem:[#allocation2 + $0x4c8] sm:$0xff] %vm1647_vm3, %v9964_v30  ;;  %1804 = vst.msk [vmem:[#allocation2 + $0x4d8] sm:$0xff] %vm1647_vm3, %v9964_v30 }
  0x52   : > { %9565 = vmatmul.mubr.msk.bf16.gmra.mrb[24].mxu0 %vm774_vm2, %v9879_v22  ;;  %1805 = vst.msk [vmem:[#allocation2 + $0x4e0] sm:$0xff] %vm1647_vm3, %v9964_v30  ;;  %1806 = vst.msk [vmem:[#allocation2 + $0x4e8] sm:$0xff] %vm1647_vm3, %v9964_v30  ;;  %v9924_v22 = vld [vmem:[%s13537_s3 + $0x20] sm:$0xff]  }
  0x53   : > { %9568 = vmatprep.mubr.msk.bf16.mxu0 %vm774_vm2, %v9880_v23  ;;  %1807 = vst.msk [vmem:[#allocation2 + $0x4f0] sm:$0xff] %vm1647_vm3, %v9964_v30  ;;  %1809 = vst.msk [vmem:[#allocation2 + $0x500] sm:$0xff] %vm1647_vm3, %v9964_v30  ;;  %v1950_v23 = vld [vmem:[#allocation2 + $0x10] sm:$0xff]  ;;  %6336 = vmatpush1.bf16.msra.mxu0 %v9924_v22 }
  0x54   : > { %1810 = vst.msk [vmem:[#allocation2 + $0x508] sm:$0xff] %vm1647_vm3, %v9964_v30  ;;  %1811 = vst.msk [vmem:[#allocation2 + $0x510] sm:$0xff] %vm1647_vm3, %v9964_v30  ;;  %6337 = vmatprep.subr.bf16.mxu0 %v9967_v7  ;;  %9820 = vmatpush1.bf16.msra.mxu1 %v9924_v22  ;;  %v9935_v22 = vld [vmem:[%s10054_s16 + $0x1d8] sm:$0xff]  }
  0x55   : > { %1812 = vst.msk [vmem:[#allocation2 + $0x518] sm:$0xff] %vm1647_vm3, %v9964_v30  ;;  %1814 = vst.msk [vmem:[#allocation2 + $0x528] sm:$0xff] %vm1647_vm3, %v9964_v30  ;;  %9805 = vmatprep.subr.bf16.mxu1 %v9967_v7 }
  0x56   : > { %1815 = vst.msk [vmem:[#allocation2 + $0x530] sm:$0xff] %vm1647_vm3, %v9964_v30  ;;  %1816 = vst.msk [vmem:[#allocation2 + $0x538] sm:$0xff] %vm1647_vm3, %v9964_v30 }
  0x57   : > { %1817 = vst.msk [vmem:[#allocation2 + $0x540] sm:$0xff] %vm1647_vm3, %v9964_v30  ;;  %2140 = vst.msk [vmem:[#allocation3] sm:$0xff] %vm1647_vm3, %v2076_v16  ;;  %v9933_v16 = vld [vmem:[%s13537_s3 + $0x48] sm:$0xff]  }
  0x58   : > { %1658 = vst.msk [vmem:[#allocation2 + $0x48] sm:$0x3] %vm1652_vm4, %v9964_v30  ;;  %1653 = vst.msk [vmem:[#allocation2 + $0x20] sm:$0x3] %vm1652_vm4, %v9964_v30 }
  0x59   : > { %1663 = vst.msk [vmem:[#allocation2 + $0x70] sm:$0x3] %vm1652_vm4, %v9964_v30  ;;  %1668 = vst.msk [vmem:[#allocation2 + $0x98] sm:$0x3] %vm1652_vm4, %v9964_v30 }
  0x5a   : > { %9569 = vmatmul.mubr.msk.bf16.gmra.mrb[28].mxu0 %vm774_vm2, %v9881_v24  ;;  %1673 = vst.msk [vmem:[#allocation2 + $0xc0] sm:$0x3] %vm1652_vm4, %v9964_v30  ;;  %1678 = vst.msk [vmem:[#allocation2 + $0xe8] sm:$0x3] %vm1652_vm4, %v9964_v30  ;;  %v1951_v24 = vld [vmem:[#allocation2 + $0x18] sm:$0xff] }
  0x5b   : > { %9572 = vmatprep.mubr.msk.bf16.mxu0 %vm774_vm2, %v9882_v25  ;;  %1683 = vst.msk [vmem:[#allocation2 + $0x110] sm:$0x3] %vm1652_vm4, %v9964_v30  ;;  %1688 = vst.msk [vmem:[#allocation2 + $0x138] sm:$0x3] %vm1652_vm4, %v9964_v30  ;;  %v2077_v25 = vpack.c.bf16 %v1951_v24, %v1950_v23 }
  0x5c   : > { %1693 = vst.msk [vmem:[#allocation2 + $0x160] sm:$0x3] %vm1652_vm4, %v9964_v30  ;;  %1698 = vst.msk [vmem:[#allocation2 + $0x188] sm:$0x3] %vm1652_vm4, %v9964_v30 }
  0x5d   : > { %1703 = vst.msk [vmem:[#allocation2 + $0x1b0] sm:$0x3] %vm1652_vm4, %v9964_v30  ;;  %1708 = vst.msk [vmem:[#allocation2 + $0x1d8] sm:$0x3] %vm1652_vm4, %v9964_v30 }
  0x5e   : > { %1713 = vst.msk [vmem:[#allocation2 + $0x200] sm:$0x3] %vm1652_vm4, %v9964_v30  ;;  %1718 = vst.msk [vmem:[#allocation2 + $0x228] sm:$0x3] %vm1652_vm4, %v9964_v30 }
  0x5f   : > { %1723 = vst.msk [vmem:[#allocation2 + $0x250] sm:$0x3] %vm1652_vm4, %v9964_v30  ;;  %1728 = vst.msk [vmem:[#allocation2 + $0x278] sm:$0x3] %vm1652_vm4, %v9964_v30  ;;  %v2207_v42 = vld [vmem:[#allocation2 + $0x19] sm:$0xff] }
  0x60   : > { %1733 = vst.msk [vmem:[#allocation2 + $0x2a0] sm:$0x3] %vm1652_vm4, %v9964_v30  ;;  %1738 = vst.msk [vmem:[#allocation2 + $0x2c8] sm:$0x3] %vm1652_vm4, %v9964_v30  ;;  %v2333_v43 = vpack.c.bf16 %v2207_v42, %v2206_v41  ;;  %v2720_v46 = vld [vmem:[#allocation2 + $0x1a] sm:$0xff] }
  0x61   : > { %1743 = vst.msk [vmem:[#allocation2 + $0x2f0] sm:$0x3] %vm1652_vm4, %v9964_v30  ;;  %1748 = vst.msk [vmem:[#allocation2 + $0x318] sm:$0x3] %vm1652_vm4, %v9964_v30  ;;  %v2846_v47 = vpack.c.bf16 %v2720_v46, %v2719_v45 }
  0x62   : > { %9573 = vmatmul.mubr.msk.bf16.gmra.mrb[32].mxu0 %vm774_vm2, %v9883_v26  ;;  %1753 = vst.msk [vmem:[#allocation2 + $0x340] sm:$0x3] %vm1652_vm4, %v9964_v30  ;;  %1758 = vst.msk [vmem:[#allocation2 + $0x368] sm:$0x3] %vm1652_vm4, %v9964_v30  ;;  %2462 = vrot.lane.b32.xlu1 %v2333_v43, %s9965_s17 }
  0x63   : > { %9576 = vmatprep.mubr.msk.bf16.mxu0 %vm774_vm2, %v9884_v27  ;;  %1763 = vst.msk [vmem:[#allocation2 + $0x390] sm:$0x3] %vm1652_vm4, %v9964_v30  ;;  %1768 = vst.msk [vmem:[#allocation2 + $0x3b8] sm:$0x3] %vm1652_vm4, %v9964_v30  ;;  %v9925_v27 = vld [vmem:[%s13537_s3 + $0x28] sm:$0xff]  }
  0x64   : > { %1773 = vst.msk [vmem:[#allocation2 + $0x3e0] sm:$0x3] %vm1652_vm4, %v9964_v30  ;;  %1778 = vst.msk [vmem:[#allocation2 + $0x408] sm:$0x3] %vm1652_vm4, %v9964_v30  ;;  %6338 = vmatpush1.bf16.msra.mxu0 %v9925_v27  ;;  %9821 = vmatpush1.bf16.msra.mxu1 %v9925_v27  ;;  %v9936_v27 = vld [vmem:[%s13537_s3 + $0x50] sm:$0xff]  }
  0x65   : > { %1783 = vst.msk [vmem:[#allocation2 + $0x430] sm:$0x3] %vm1652_vm4, %v9964_v30  ;;  %1788 = vst.msk [vmem:[#allocation2 + $0x458] sm:$0x3] %vm1652_vm4, %v9964_v30  ;;  %6339 = vmatprep.subr.bf16.mxu0 %v9967_v7  ;;  %9806 = vmatprep.subr.bf16.mxu1 %v9967_v7 }
  0x66   : > { %1793 = vst.msk [vmem:[#allocation2 + $0x480] sm:$0x3] %vm1652_vm4, %v9964_v30  ;;  %1798 = vst.msk [vmem:[#allocation2 + $0x4a8] sm:$0x3] %vm1652_vm4, %v9964_v30  ;;  %2975 = vrot.lane.b32.xlu1 %v2846_v47, %s9966_s18  ;;  %v9930_v47 = vld [vmem:[%s10054_s16 + $0x1c0] sm:$0xff]  }
  0x67   : > { %1803 = vst.msk [vmem:[#allocation2 + $0x4d0] sm:$0x3] %vm1652_vm4, %v9964_v30  ;;  %1808 = vst.msk [vmem:[#allocation2 + $0x4f8] sm:$0x3] %vm1652_vm4, %v9964_v30 }
  0x68   : > { %1813 = vst.msk [vmem:[#allocation2 + $0x520] sm:$0x3] %vm1652_vm4, %v9964_v30  ;;  %1818 = vst.msk [vmem:[#allocation2 + $0x548] sm:$0x3] %vm1652_vm4, %v9964_v30  ;;  %6340 = vmatpush1.bf16.msra.mxu0 %v9928_v35  ;;  %9822 = vmatpush1.bf16.msra.mxu1 %v9928_v35 }
  0x69   : > { %2141 = vst.msk [vmem:[#allocation3 + $0x18] sm:$0xff] %vm1647_vm3, %v2077_v25  ;;  %6341 = vmatprep.subr.bf16.mxu0 %v9967_v7  ;;  %9807 = vmatprep.subr.bf16.mxu1 %v9967_v7 }
  0x6a   : > { %9577 = vmatmul.mubr.msk.bf16.gmra.mrb[36].mxu0 %vm774_vm2, %v9885_v28  ;;  %v9926_v28 = vld [vmem:[%s10054_s16 + $0x1b0] sm:$0xff]  }
  0x6b   : > { %9580 = vmatprep.mubr.msk.bf16.mxu0 %vm774_vm2, %v9886_v29  ;;  %v10547_v29 = vld [vmem:[%s13536_s2] ss:$0 sm:$0xff] }
  0x72   : > { %9581 = vmatmul.mubr.msk.bf16.gmra.mrb[40].mxu0 %vm774_vm2, %v9887_v31 }
  0x73   : > { %9584 = vmatprep.mubr.msk.bf16.mxu0 %vm774_vm2, %v9888_v32 }
  0x7a   : > { %9585 = vmatmul.mubr.msk.bf16.gmra.mrb[44].mxu0 %vm774_vm2, %v9889_v36 }
  0x7b   : > { %9588 = vmatprep.mubr.msk.bf16.mxu0 %vm774_vm2, %v9890_v40 }
  0x82   : > { %9589 = vmatmul.mubr.msk.bf16.gmra.mrb[48].mxu0 %vm774_vm2, %v9891_v44  ;;  %v9929_v44 = vld [vmem:[%s13537_s3 + $0x38] sm:$0xff]  }
  0x83   : > { %9592 = vmatprep.mubr.msk.bf16.mxu0 %vm774_vm2, %v9892_v48  ;;  %6342 = vmatpush1.bf16.msra.mxu0 %v9929_v44 }
  0x84   : > { %6343 = vmatprep.subr.bf16.mxu0 %v9967_v7  ;;  %9823 = vmatpush1.bf16.msra.mxu1 %v9929_v44 }
  0x85   : > { %9808 = vmatprep.subr.bf16.mxu1 %v9967_v7 }
  0x8a   : > { %9593 = vmatmul.mubr.msk.bf16.gmra.mrb[52].mxu0 %vm774_vm2, %v9893_v49 }
  0x8b   : > { %9596 = vmatprep.mubr.msk.bf16.mxu0 %vm774_vm2, %v9894_v50  ;;  %v9931_v50 = vld [vmem:[%s10054_s16 + $0x1c8] sm:$0xff]  }
  0x90   : > { %v2461_v17 = vpop.permute.xlu1 %2460 }
  0x91   : > { %2653 = vst.msk [vmem:[#allocation3] sm:$0xff] %vm2652_vm5, %v2461_v17  ;;  %v9934_v17 = vld [vmem:[%s10054_s16 + $0x1d0] sm:$0xff]  }
  0x92   : > { %9597 = vmatmul.mubr.msk.bf16.gmra.mrb[56].mxu0 %vm774_vm2, %v9895_v51  ;;  %v9932_v51 = vld [vmem:[%s13537_s3 + $0x40] sm:$0xff]  }
  0x93   : > { %9600 = vmatprep.mubr.msk.bf16.mxu0 %vm774_vm2, %v9896_v52  ;;  %6344 = vmatpush1.bf16.msra.mxu0 %v9932_v51 }
  0x94   : > { %v2974_v20 = vpop.permute.xlu1 %2973  ;;  %6345 = vmatprep.subr.bf16.mxu0 %v9967_v7  ;;  %9824 = vmatpush1.bf16.msra.mxu1 %v9932_v51 }
  0x95   : > { %3166 = vst.msk [vmem:[#allocation3] sm:$0xff] %vm3165_vm6, %v2974_v20  ;;  %9809 = vmatprep.subr.bf16.mxu1 %v9967_v7 }
  0x97   : > { %6346 = vmatpush1.bf16.msra.mxu0 %v9933_v16 }
  0x98   : > { %6347 = vmatprep.subr.bf16.mxu0 %v9967_v7  ;;  %9825 = vmatpush1.bf16.msra.mxu1 %v9933_v16  ;;  %v9942_v16 = vld [vmem:[%s10054_s16 + $0x1f0] sm:$0xff]  }
  0x99   : > { %9810 = vmatprep.subr.bf16.mxu1 %v9967_v7 }
  0x9a   : > { %9601 = vmatmul.mubr.msk.bf16.gmra.mrb[60].mxu0 %vm774_vm2, %v9897_v53 }
  0x9b   : > { %9604 = vmatprep.mubr.msk.bf16.mxu0 %vm774_vm2, %v9898_v54  ;;  %6348 = vmatpush1.bf16.msra.mxu0 %v9936_v27 }
  0x9c   : > { %6349 = vmatprep.subr.bf16.mxu0 %v9967_v7  ;;  %9826 = vmatpush1.bf16.msra.mxu1 %v9936_v27 }
  0x9d   : > { %9811 = vmatprep.subr.bf16.mxu1 %v9967_v7 }
  0xa2   : > { %9605 = vmatmul.mubr.msk.bf16.gmra.mrb[64].mxu0 %vm774_vm2, %v9899_v55 }
  0xa3   : > { %9608 = vmatprep.mubr.msk.bf16.mxu0 %vm774_vm2, %v9900_v56 }
  0xaa   : > { %9609 = vmatmul.mubr.msk.bf16.gmra.mrb[68].mxu0 %vm774_vm2, %v9901_v57 }
  0xab   : > { %9612 = vmatprep.mubr.msk.bf16.mxu0 %vm774_vm2, %v9902_v58 }
  0xb2   : > { %9613 = vmatmul.mubr.msk.bf16.gmra.mrb[72].mxu0 %vm774_vm2, %v9903_v59 }
  0xb3   : > { %9616 = vmatprep.mubr.msk.bf16.mxu0 %vm774_vm2, %v9904_v60 }
  0xba   : > { %9617 = vmatmul.mubr.msk.bf16.gmra.mrb[76].mxu0 %vm774_vm2, %v9905_v61 }
  0xbb   : > { %9620 = vmatprep.mubr.msk.bf16.mxu0 %vm774_vm2, %v9906_v62 }
  0xc2   : > { %9621 = vmatmul.mubr.msk.bf16.gmra.mrb[80].mxu0 %vm774_vm2, %v9907_v63 }
  0xc3   : > { %9624 = vmatprep.mubr.msk.bf16.mxu0 %vm774_vm2, %v9908_v0 }
  0xca   : > { %9625 = vmatmul.mubr.msk.bf16.gmra.mrb[84].mxu0 %vm774_vm2, %v9909_v1 }
  0xcb   : > { %9628 = vmatprep.mubr.msk.bf16.mxu0 %vm774_vm2, %v9910_v2 }
  0xd2   : > { %9629 = vmatmul.mubr.msk.bf16.gmra.mrb[88].mxu0 %vm774_vm2, %v9911_v3 }
  0xd3   : > { %9632 = vmatprep.mubr.msk.bf16.mxu0 %vm774_vm2, %v9912_v4 }
  0xd4   : > { %v2463_v26 = vpop.permute.xlu1 %2462 }
  0xd5   : > { %2654 = vst.msk [vmem:[#allocation3 + $0x18] sm:$0xff] %vm2652_vm5, %v2463_v26 }
  0xd8   : > { %v2976_v30 = vpop.permute.xlu1 %2975 }
  0xd9   : > { %3167 = vst.msk [vmem:[#allocation3 + $0x18] sm:$0xff] %vm3165_vm6, %v2976_v30 }
  0xda   : > { %9633 = vmatmul.mubr.msk.bf16.gmra.mrb[92].mxu0 %vm774_vm2, %v9913_v5 }
  0xdb   : > { %9636 = vmatprep.mubr.msk.bf16.mxu0 %vm774_vm2, %v9914_v6 }
  0xe2   : > { %9637 = vmatmul.mubr.msk.bf16.gmra.mrb[96].mxu0 %vm774_vm2, %v9915_v8 }
  0xe3   : > { %9640 = vmatprep.mubr.msk.bf16.mxu0 %vm774_vm2, %v9918_v11 }
  0xea   : > { %9641 = vmatmul.mubr.msk.bf16.gmra.mrb[100].mxu0 %vm774_vm2, %v9919_v12 }
  0xeb   : > { %9644 = vmatprep.mubr.msk.bf16.mxu0 %vm774_vm2, %v9922_v19 }
  0xf2   : > { %9645 = vmatmul.mubr.msk.bf16.gmra.mrb[104].mxu0 %vm774_vm2, %v9923_v21 }
  0xf3   : > { %9648 = vmatprep.mubr.msk.bf16.mxu0 %vm774_vm2, %v9926_v28 }
  0xf5   : > { %v9542_v31 = vpop.f32.mrb[0].mxu0 }
  0xf6   : > { %v1017_v32 = vadd.f32 %v9542_v31, %v10547_v29  ;;  %v1008_v33 = vpop.f32.mrb[1].mxu0 }
  0xf7   : > { %v1009_v36 = vadd.f32 %v10547_v29, %v1008_v33  ;;  %v9543_v37 = vpop.f32.mrb[2].mxu0 }
  0xf8   : > { %v1521_v38 = vmax.f32 %v1017_v32, 0.0  ;;  %v1020_v39 = vadd.f32 %v9543_v37, %v10547_v29  ;;  %v1011_v40 = vpop.f32.mrb[3].mxu0 }
  0xf9   : > { %v1519_v41 = vmax.f32 %v1009_v36, 0.0  ;;  %v1012_v42 = vadd.f32 %v10547_v29, %v1011_v40  ;;  %v9937_v40 = vld [vmem:[%s13537_s3 + $0x58] sm:$0xff]  }
  0xfa   : > { %1822 = vst.msk [vmem:[#allocation2 + $0x39] sm:$0xff] %vm1647_vm3, %v1521_v38  ;;  %v1522_v43 = vmax.f32 %v1020_v39, 0.0  ;;  %9649 = vmatmul.mubr.msk.bf16.gmra.mrb[108].mxu0 %vm774_vm2, %v9927_v34  ;;  %9827 = vmatpush1.bf16.msra.mxu1 %v9937_v40 }
  0xfb   : > { %1820 = vst.msk [vmem:[#allocation2 + $0x29] sm:$0xff] %vm1647_vm3, %v1519_v41  ;;  %v1520_v45 = vmax.f32 %v1012_v42, 0.0  ;;  %9652 = vmatprep.mubr.msk.bf16.mxu0 %vm774_vm2, %v9930_v47  ;;  %6350 = vmatpush1.bf16.msra.mxu0 %v9937_v40 }
  0xfc   : > { %1823 = vst.msk [vmem:[#allocation2 + $0x41] sm:$0xff] %vm1647_vm3, %v1522_v43  ;;  %6351 = vmatprep.subr.bf16.mxu0 %v9967_v7  ;;  %9812 = vmatprep.subr.bf16.mxu1 %v9967_v7 }
  0xfd   : > { %1821 = vst.msk [vmem:[#allocation2 + $0x31] sm:$0xff] %vm1647_vm3, %v1520_v45  ;;  %v9546_v46 = vpop.f32.mrb[4].mxu0 }
  0xfe   : > { %v1033_v48 = vadd.f32 %v9546_v46, %v10547_v29  ;;  %v1024_v49 = vpop.f32.mrb[5].mxu0 }
  0xff   : > { %v1025_v52 = vadd.f32 %v10547_v29, %v1024_v49  ;;  %v9547_v53 = vpop.f32.mrb[6].mxu0 }
 0x100   : > { %v1525_v54 = vmax.f32 %v1033_v48, 0.0  ;;  %v1036_v55 = vadd.f32 %v9547_v53, %v10547_v29  ;;  %v1027_v56 = vpop.f32.mrb[7].mxu0 }
 0x101   : > { %v1523_v57 = vmax.f32 %v1025_v52, 0.0  ;;  %v1028_v58 = vadd.f32 %v10547_v29, %v1027_v56  ;;  %v2210_v60 = vld [vmem:[#allocation2 + $0x39] sm:$0xff] }
 0x102   : > { %1826 = vst.msk [vmem:[#allocation2 + $0x61] sm:$0xff] %vm1647_vm3, %v1525_v54  ;;  %v1526_v59 = vmax.f32 %v1036_v55, 0.0  ;;  %9653 = vmatmul.mubr.msk.bf16.gmra.mrb[112].mxu0 %vm774_vm2, %v9931_v50  ;;  %v3230_v4 = vld [vmem:[#allocation2 + $0x28] sm:$0xff]  ;;  %v9938_v50 = vld [vmem:[%s10054_s16 + $0x1e0] sm:$0xff]  }
 0x103   : > { %1824 = vst.msk [vmem:[#allocation2 + $0x51] sm:$0xff] %vm1647_vm3, %v1523_v57  ;;  %v1524_v61 = vmax.f32 %v1028_v58, 0.0  ;;  %v4001_v62 = vld [vmem:[#allocation2 + $0x3a] sm:$0xff]  ;;  %v4002_v63 = vld [vmem:[#allocation2 + $0x42] sm:$0xff]  ;;  %9656 = vmatprep.mubr.msk.bf16.mxu0 %vm774_vm2, %v9934_v17 }
 0x104   : > { %v2211_v0 = vld [vmem:[#allocation2 + $0x41] sm:$0xff]  ;;  %1827 = vst.msk [vmem:[#allocation2 + $0x69] sm:$0xff] %vm1647_vm3, %v1526_v59  ;;  %v4128_v1 = vpack.c.bf16 %v4002_v63, %v4001_v62  ;;  %v2209_v3 = vld [vmem:[#allocation2 + $0x31] sm:$0xff]  ;;  %v3743_v5 = vld [vmem:[#allocation2 + $0x29] sm:$0xff] }
 0x105   : > { %v2335_v2 = vpack.c.bf16 %v2211_v0, %v2210_v60  ;;  %1825 = vst.msk [vmem:[#allocation2 + $0x59] sm:$0xff] %vm1647_vm3, %v1524_v61  ;;  %v3231_v6 = vld [vmem:[#allocation2 + $0x30] sm:$0xff]  ;;  %v9550_v8 = vpop.f32.mrb[8].mxu0  ;;  %v3232_v9 = vld [vmem:[#allocation2 + $0x38] sm:$0xff]  ;;  %v3233_v10 = vld [vmem:[#allocation2 + $0x40] sm:$0xff] }
 0x106   : > { %4257 = vrot.lane.b32.xlu0 %v4128_v1, %s9965_s17  ;;  %v10592_v11 = vpack.c.bf16 %v3231_v6, %v3230_v4  ;;  %v1049_v12 = vadd.f32 %v9550_v8, %v10547_v29  ;;  %v10595_v13 = vpack.c.bf16 %v3233_v10, %v3232_v9  ;;  %v1040_v14 = vpop.f32.mrb[9].mxu0  ;;  %v3744_v15 = vld [vmem:[#allocation2 + $0x31] sm:$0xff]  ;;  %v2208_v18 = vld [vmem:[#allocation2 + $0x29] sm:$0xff]  ;;  %v9940_v55 = vld [vmem:[%s13537_s3 + $0x60] sm:$0xff]  }
 0x107   : > { %2466 = vrot.lane.b32.xlu1 %v2335_v2, %s9965_s17  ;;  %3936 = vst.msk [vmem:[#allocation3 + $0x20] sm:$0xff] %vm1647_vm3, %v2335_v2  ;;  %v1041_v19 = vadd.f32 %v10547_v29, %v1040_v14  ;;  %v9551_v20 = vpop.f32.mrb[10].mxu0  ;;  %v3871_v21 = vpack.c.bf16 %v3744_v15, %v3743_v5  ;;  %v2334_v23 = vpack.c.bf16 %v2209_v3, %v2208_v18  ;;  %v2721_v28 = vld [vmem:[#allocation2 + $0x2a] sm:$0xff]  ;;  %v2722_v30 = vld [vmem:[#allocation2 + $0x32] sm:$0xff] }
 0x108   : > { %v1529_v24 = vmax.f32 %v1049_v12, 0.0  ;;  %v1052_v25 = vadd.f32 %v9551_v20, %v10547_v29  ;;  %v1043_v26 = vpop.f32.mrb[11].mxu0  ;;  %2143 = vst.msk [vmem:[#allocation3 + $0x48] sm:$0xff] %vm1647_vm3, %v10595_v13  ;;  %2142 = vst.msk [vmem:[#allocation3 + $0x30] sm:$0xff] %vm1647_vm3, %v10592_v11  ;;  %v2847_v37 = vpack.c.bf16 %v2722_v30, %v2721_v28  ;;  %v9939_v54 = vld [vmem:[%s10054_s16 + $0x1e8] sm:$0xff]   ;;  %6352 = vmatpush1.bf16.msra.mxu0 %v9940_v55  ;;  %9828 = vmatpush1.bf16.msra.mxu1 %v9940_v55  ;;  %v9943_v17 = vld [vmem:[%s10054_s16 + $0x1f8] sm:$0xff]  }
 0x109   : > { %v5026_v31 = vld [vmem:[#allocation2 + $0x61] sm:$0xff]  ;;  %v1527_v32 = vmax.f32 %v1041_v19, 0.0  ;;  %v1044_v33 = vadd.f32 %v10547_v29, %v1043_v26  ;;  %3935 = vst.msk [vmem:[#allocation3 + $0x8] sm:$0xff] %vm1647_vm3, %v3871_v21  ;;  %6353 = vmatprep.subr.bf16.mxu0 %v9967_v7  ;;  %9813 = vmatprep.subr.bf16.mxu1 %v9967_v7  ;;  %s9973_s16 = smov 123  }
 0x10a   : > { %2464 = vrot.lane.b32.xlu0 %v2334_v23, %s9965_s17  ;;  %1830 = vst.msk [vmem:[#allocation2 + $0x89] sm:$0xff] %vm1647_vm3, %v1529_v24  ;;  %v1530_v34 = vmax.f32 %v1052_v25, 0.0  ;;  %9657 = vmatmul.mubr.msk.bf16.gmra.mrb[116].mxu0 %vm774_vm2, %v9935_v22  ;;  %v3747_v48 = vld [vmem:[#allocation2 + $0x51] sm:$0xff]  ;;  %v9941_v6 = vld [vmem:[%s13537_s3 + $0x68] sm:$0xff]  }
 0x10b   : > { %2979 = vrot.lane.b32.xlu1 %v4128_v1, %s9966_s18  ;;  %v5027_v35 = vld [vmem:[#allocation2 + $0x69] sm:$0xff]  ;;  %1828 = vst.msk [vmem:[#allocation2 + $0x79] sm:$0xff] %vm1647_vm3, %v1527_v32  ;;  %v1528_v36 = vmax.f32 %v1044_v33, 0.0  ;;  %9660 = vmatprep.mubr.msk.bf16.mxu0 %vm774_vm2, %v9938_v50 }
 0x10c   : > { %v4005_v38 = vld [vmem:[#allocation2 + $0x62] sm:$0xff]  ;;  %v10622_v39 = vpack.c.bf16 %v5027_v35, %v5026_v31  ;;  %1831 = vst.msk [vmem:[#allocation2 + $0x91] sm:$0xff] %vm1647_vm3, %v1530_v34  ;;  %v4006_v41 = vld [vmem:[#allocation2 + $0x6a] sm:$0xff]  ;;  %v3748_v49 = vld [vmem:[#allocation2 + $0x59] sm:$0xff]  ;;  %6354 = vmatpush1.bf16.msra.mxu0 %v9941_v6  ;;  %9829 = vmatpush1.bf16.msra.mxu1 %v9941_v6 }
 0x10d   : > { %1829 = vst.msk [vmem:[#allocation2 + $0x81] sm:$0xff] %vm1647_vm3, %v1528_v36  ;;  %v3236_v42 = vld [vmem:[#allocation2 + $0x60] sm:$0xff]  ;;  %v3237_v43 = vld [vmem:[#allocation2 + $0x68] sm:$0xff]  ;;  %v9554_v44 = vpop.f32.mrb[12].mxu0  ;;  %v3873_v53 = vpack.c.bf16 %v3748_v49, %v3747_v48  ;;  %v1956_v56 = vld [vmem:[#allocation2 + $0x50] sm:$0xff]  ;;  %v10644_v57 = vpack.c.bf16 %v4006_v41, %v4005_v38  ;;  %6355 = vmatprep.subr.bf16.mxu0 %v9967_v7  ;;  %9814 = vmatprep.subr.bf16.mxu1 %v9967_v7 }
 0x10e   : > { %4255 = vrot.lane.b32.xlu0 %v2847_v37, %s9965_s17  ;;  %v10632_v45 = vpack.c.bf16 %v3237_v43, %v3236_v42  ;;  %v1065_v46 = vadd.f32 %v9554_v44, %v10547_v29  ;;  %v1056_v47 = vpop.f32.mrb[13].mxu0  ;;  %3938 = vst.msk [vmem:[#allocation3 + $0x50] sm:$0xff] %vm1647_vm3, %v10622_v39  ;;  %v1957_v61 = vld [vmem:[#allocation2 + $0x58] sm:$0xff]  ;;  %v5538_v12 = vld [vmem:[#allocation2 + $0x62] sm:$0xff]  ;;  %v4512_v19 = vld [vmem:[#allocation2 + $0x50] sm:$0xff] }
 0x10f   : > { %2977 = vrot.lane.b32.xlu1 %v2847_v37, %s9966_s18  ;;  %v1057_v51 = vadd.f32 %v10547_v29, %v1056_v47  ;;  %v9555_v52 = vpop.f32.mrb[14].mxu0  ;;  %v5536_v62 = vld [vmem:[#allocation2 + $0x52] sm:$0xff]  ;;  %v5537_v63 = vld [vmem:[#allocation2 + $0x5a] sm:$0xff]  ;;  %3937 = vst.msk [vmem:[#allocation3 + $0x38] sm:$0xff] %vm1647_vm3, %v3873_v53  ;;  %v2080_v2 = vpack.c.bf16 %v1957_v61, %v1956_v56  ;;  %v5539_v33 = vld [vmem:[#allocation2 + $0x6a] sm:$0xff] }
 0x110   : > { %v1533_v58 = vmax.f32 %v1065_v46, 0.0  ;;  %v1068_v59 = vadd.f32 %v9555_v52, %v10547_v29  ;;  %v1059_v60 = vpop.f32.mrb[15].mxu0  ;;  %2145 = vst.msk [vmem:[#allocation3 + $0x78] sm:$0xff] %vm1647_vm3, %v10632_v45  ;;  %v5664_v3 = vpack.c.bf16 %v5537_v63, %v5536_v62  ;;  %v4003_v9 = vld [vmem:[#allocation2 + $0x52] sm:$0xff]  ;;  %v4004_v10 = vld [vmem:[#allocation2 + $0x5a] sm:$0xff]  ;;  %v5665_v38 = vpack.c.bf16 %v5539_v33, %v5538_v12 }
 0x111   : > { %v1531_v0 = vmax.f32 %v1057_v51, 0.0  ;;  %v1060_v1 = vadd.f32 %v10547_v29, %v1059_v60  ;;  %2144 = vst.msk [vmem:[#allocation3 + $0x60] sm:$0xff] %vm1647_vm3, %v2080_v2  ;;  %v3753_v8 = vld [vmem:[#allocation2 + $0x89] sm:$0xff]  ;;  %v10681_v25 = vpack.c.bf16 %v4004_v10, %v4003_v9  ;;  %v4513_v34 = vld [vmem:[#allocation2 + $0x58] sm:$0xff] }
 0x112   : > { %4261 = vrot.lane.b32.xlu0 %v10644_v57, %s9965_s17  ;;  %1834 = vst.msk [vmem:[#allocation2 + $0xb1] sm:$0xff] %vm1647_vm3, %v1533_v58  ;;  %v1534_v4 = vmax.f32 %v1068_v59, 0.0  ;;  %9661 = vmatmul.mubr.msk.bf16.gmra.mrb[120].mxu0 %vm774_vm2, %v9939_v54  ;;  %5728 = vst.msk [vmem:[#allocation3 + $0x10] sm:$0xff] %vm1647_vm3, %v5664_v3  ;;  %v9944_v22 = vld [vmem:[%s13537_s3 + $0x70] sm:$0xff]   ;;  %v3751_v31 = vld [vmem:[#allocation2 + $0x79] sm:$0xff] }
 0x113   : > { %3486 = vrot.lane.b32.xlu1 %v10592_v11, %s9968_s8  ;;  %1832 = vst.msk [vmem:[#allocation2 + $0xa1] sm:$0xff] %vm1647_vm3, %v1531_v0  ;;  %v1532_v5 = vmax.f32 %v1060_v1, 0.0  ;;  %v3754_v18 = vld [vmem:[#allocation2 + $0x91] sm:$0xff]  ;;  %9664 = vmatprep.mubr.msk.bf16.mxu0 %vm774_vm2, %v9942_v16  ;;  %5729 = vst.msk [vmem:[#allocation3 + $0x28] sm:$0xff] %vm1647_vm3, %v5665_v38  ;;  %v5025_v48 = vld [vmem:[#allocation2 + $0x59] sm:$0xff] }
 0x114   : > { %1835 = vst.msk [vmem:[#allocation2 + $0xb9] sm:$0xff] %vm1647_vm3, %v1534_v4  ;;  %v3876_v23 = vpack.c.bf16 %v3754_v18, %v3753_v8  ;;  %v1962_v24 = vld [vmem:[#allocation2 + $0x88] sm:$0xff]  ;;  %v5540_v40 = vld [vmem:[#allocation2 + $0x7a] sm:$0xff]  ;;  %6356 = vmatpush1.bf16.msra.mxu0 %v9944_v22  ;;  %v5024_v47 = vld [vmem:[#allocation2 + $0x51] sm:$0xff]  ;;  %9830 = vmatpush1.bf16.msra.mxu1 %v9944_v22 }
 0x115   : > { %1833 = vst.msk [vmem:[#allocation2 + $0xa9] sm:$0xff] %vm1647_vm3, %v1532_v5  ;;  %v9558_v11 = vpop.f32.mrb[16].mxu0  ;;  %v3752_v32 = vld [vmem:[#allocation2 + $0x81] sm:$0xff]  ;;  %v9945_v46 = vld [vmem:[%s13537_s3 + $0x78] sm:$0xff]   ;;  %6357 = vmatprep.subr.bf16.mxu0 %v9967_v7  ;;  %9815 = vmatprep.subr.bf16.mxu1 %v9967_v7  ;;  %v5542_v58 = vld [vmem:[#allocation2 + $0x8a] sm:$0xff]  ;;  %v5152_v61 = vpack.c.bf16 %v5025_v48, %v5024_v47 }
 0x116   : > { %5282 = vrot.lane.b32.xlu0 %v10622_v39, %s9968_s8  ;;  %v1081_v14 = vadd.f32 %v9558_v11, %v10547_v29  ;;  %v1072_v15 = vpop.f32.mrb[17].mxu0  ;;  %3940 = vst.msk [vmem:[#allocation3 + $0x80] sm:$0xff] %vm1647_vm3, %v3876_v23  ;;  %v3875_v37 = vpack.c.bf16 %v3752_v32, %v3751_v31  ;;  %v5541_v41 = vld [vmem:[#allocation2 + $0x82] sm:$0xff]  ;;  %v5543_v59 = vld [vmem:[#allocation2 + $0x92] sm:$0xff] }
 0x117   : > { %3488 = vrot.lane.b32.xlu1 %v10595_v13, %s9968_s8  ;;  %v1073_v20 = vadd.f32 %v10547_v29, %v1072_v15  ;;  %v9559_v21 = vpop.f32.mrb[18].mxu0  ;;  %v1963_v13 = vld [vmem:[#allocation2 + $0x90] sm:$0xff]  ;;  %v5666_v43 = vpack.c.bf16 %v5541_v41, %v5540_v40  ;;  %v5667_v0 = vpack.c.bf16 %v5543_v59, %v5542_v58  ;;  %v1960_v2 = vld [vmem:[#allocation2 + $0x78] sm:$0xff]  ;;  %v1961_v3 = vld [vmem:[#allocation2 + $0x80] sm:$0xff] }
 0x118   : > { %v1537_v26 = vmax.f32 %v1081_v14, 0.0  ;;  %v1084_v27 = vadd.f32 %v9559_v21, %v10547_v29  ;;  %v1075_v28 = vpop.f32.mrb[19].mxu0  ;;  %v2083_v30 = vpack.c.bf16 %v1963_v13, %v1962_v24  ;;  %3939 = vst.msk [vmem:[#allocation3 + $0x68] sm:$0xff] %vm1647_vm3, %v3875_v37  ;;  %6358 = vmatpush1.bf16.msra.mxu0 %v9945_v46  ;;  %9831 = vmatpush1.bf16.msra.mxu1 %v9945_v46  ;;  %v5030_v14 = vld [vmem:[#allocation2 + $0x89] sm:$0xff]  ;;  %v5031_v15 = vld [vmem:[#allocation2 + $0x91] sm:$0xff]  ;;  %v5028_v46 = vld [vmem:[#allocation2 + $0x79] sm:$0xff] }
 0x119   : > { %v1535_v35 = vmax.f32 %v1073_v20, 0.0  ;;  %v1076_v36 = vadd.f32 %v10547_v29, %v1075_v28  ;;  %5730 = vst.msk [vmem:[#allocation3 + $0x40] sm:$0xff] %vm1647_vm3, %v5666_v43  ;;  %v3757_v52 = vld [vmem:[#allocation2 + $0xb1] sm:$0xff]  ;;  %v2082_v6 = vpack.c.bf16 %v1961_v3, %v1960_v2  ;;  %5731 = vst.msk [vmem:[#allocation3 + $0x58] sm:$0xff] %vm1647_vm3, %v5667_v0  ;;  %v10733_v21 = vpack.c.bf16 %v5031_v15, %v5030_v14  ;;  %v5029_v47 = vld [vmem:[#allocation2 + $0x81] sm:$0xff] }
 0x11a   : > { %4259 = vrot.lane.b32.xlu0 %v10681_v25, %s9965_s17  ;;  %1838 = vst.msk [vmem:[#allocation2 + $0xd9] sm:$0xff] %vm1647_vm3, %v1537_v26  ;;  %v1538_v42 = vmax.f32 %v1084_v27, 0.0  ;;  %2147 = vst.msk [vmem:[#allocation3 + $0xa8] sm:$0xff] %vm1647_vm3, %v2083_v30  ;;  %9665 = vmatmul.mubr.msk.bf16.gmra.mrb[124].mxu0 %vm774_vm2, %v9943_v17  ;;  %v3755_v32 = vld [vmem:[#allocation2 + $0xa1] sm:$0xff] }
 0x11b   : > { %2470 = vrot.lane.b32.xlu1 %v10622_v39, %s9965_s17  ;;  %1836 = vst.msk [vmem:[#allocation2 + $0xc9] sm:$0xff] %vm1647_vm3, %v1535_v35  ;;  %v1536_v44 = vmax.f32 %v1076_v36, 0.0  ;;  %v4640_v39 = vpack.c.bf16 %v4513_v34, %v4512_v19  ;;  %v3758_v53 = vld [vmem:[#allocation2 + $0xb9] sm:$0xff]  ;;  %2146 = vst.msk [vmem:[#allocation3 + $0x90] sm:$0xff] %vm1647_vm3, %v2082_v6  ;;  %v4009_v35 = vld [vmem:[#allocation2 + $0x8a] sm:$0xff] }
 0x11c   : > { %1839 = vst.msk [vmem:[#allocation2 + $0xe1] sm:$0xff] %vm1647_vm3, %v1538_v42  ;;  %v3878_v56 = vpack.c.bf16 %v3758_v53, %v3757_v52  ;;  %v5544_v60 = vld [vmem:[#allocation2 + $0xa2] sm:$0xff]  ;;  %v5545_v1 = vld [vmem:[#allocation2 + $0xaa] sm:$0xff]  ;;  %v5546_v8 = vld [vmem:[#allocation2 + $0xb2] sm:$0xff] }
 0x11d   : > { %1837 = vst.msk [vmem:[#allocation2 + $0xd1] sm:$0xff] %vm1647_vm3, %v1536_v44  ;;  %v9562_v49 = vpop.f32.mrb[20].mxu0  ;;  %v5668_v7 = vpack.c.bf16 %v5545_v1, %v5544_v60  ;;  %v5547_v9 = vld [vmem:[#allocation2 + $0xba] sm:$0xff]  ;;  %v1966_v13 = vld [vmem:[#allocation2 + $0xb0] sm:$0xff]  ;;  %v1965_v2 = vld [vmem:[#allocation2 + $0xa8] sm:$0xff] }
 0x11e   : > { %4768 = vrot.lane.b32.xlu0 %v4640_v39, %s9966_s18  ;;  %v1097_v50 = vadd.f32 %v9562_v49, %v10547_v29  ;;  %v1088_v51 = vpop.f32.mrb[21].mxu0  ;;  %3942 = vst.msk [vmem:[#allocation3 + $0xb0] sm:$0xff] %vm1647_vm3, %v3878_v56  ;;  %v5669_v11 = vpack.c.bf16 %v5547_v9, %v5546_v8  ;;  %v9946_v19 = vld [vmem:[%s13537_s3 + $0x80] sm:$0xff]   ;;  %v1967_v26 = vld [vmem:[#allocation2 + $0xb8] sm:$0xff]  ;;  %v3756_v33 = vld [vmem:[#allocation2 + $0xa9] sm:$0xff] }
 0x11f   : > { %2983 = vrot.lane.b32.xlu1 %v10644_v57, %s9966_s18  ;;  %v1089_v54 = vadd.f32 %v10547_v29, %v1088_v51  ;;  %v9563_v55 = vpop.f32.mrb[22].mxu0  ;;  %5732 = vst.msk [vmem:[#allocation3 + $0x70] sm:$0xff] %vm1647_vm3, %v5668_v7  ;;  %9668 = vmatprep.subr.bf16.mxu0 %v9946_v19  ;;  %v2085_v31 = vpack.c.bf16 %v1967_v26, %v1966_v13  ;;  %v4010_v36 = vld [vmem:[#allocation2 + $0x92] sm:$0xff]  ;;  %v1964_v1 = vld [vmem:[#allocation2 + $0xa0] sm:$0xff] }
 0x120   : > { %v1541_v62 = vmax.f32 %v1097_v50, 0.0  ;;  %v1100_v57 = vadd.f32 %v9563_v55, %v10547_v29  ;;  %v1091_v63 = vpop.f32.mrb[23].mxu0  ;;  %5733 = vst.msk [vmem:[#allocation3 + $0x88] sm:$0xff] %vm1647_vm3, %v5669_v11  ;;  %v3877_v40 = vpack.c.bf16 %v3756_v33, %v3755_v32  ;;  %v10755_v55 = vpack.c.bf16 %v5029_v47, %v5028_v46  ;;  %v4007_v19 = vld [vmem:[#allocation2 + $0x7a] sm:$0xff]  ;;  %v5034_v46 = vld [vmem:[#allocation2 + $0xb1] sm:$0xff] }
 0x121   : > { %v1539_v4 = vmax.f32 %v1089_v54, 0.0  ;;  %v1092_v5 = vadd.f32 %v10547_v29, %v1091_v63  ;;  %2149 = vst.msk [vmem:[#allocation3 + $0xd8] sm:$0xff] %vm1647_vm3, %v2085_v31  ;;  %v3761_v54 = vld [vmem:[#allocation2 + $0xd9] sm:$0xff]  ;;  %v2084_v8 = vpack.c.bf16 %v1965_v2, %v1964_v1 }
 0x122   : > { %5280 = vrot.lane.b32.xlu0 %v5152_v61, %s9968_s8  ;;  %1842 = vst.msk [vmem:[#allocation2 + $0x101] sm:$0xff] %vm1647_vm3, %v1541_v62  ;;  %v1542_v10 = vmax.f32 %v1100_v57, 0.0  ;;  %3941 = vst.msk [vmem:[#allocation3 + $0x98] sm:$0xff] %vm1647_vm3, %v3877_v40  ;;  %v5035_v47 = vld [vmem:[#allocation2 + $0xb9] sm:$0xff] }
 0x123   : > { %3490 = vrot.lane.b32.xlu1 %v4640_v39, %s9968_s8  ;;  %1840 = vst.msk [vmem:[#allocation2 + $0xf1] sm:$0xff] %vm1647_vm3, %v1539_v4  ;;  %v1540_v12 = vmax.f32 %v1092_v5, 0.0  ;;  %v5550_v34 = vld [vmem:[#allocation2 + $0xda] sm:$0xff]  ;;  %v5551_v41 = vld [vmem:[#allocation2 + $0xe2] sm:$0xff]  ;;  %v4132_v39 = vpack.c.bf16 %v4010_v36, %v4009_v35  ;;  %v4519_v5 = vld [vmem:[#allocation2 + $0x90] sm:$0xff] }
 0x124   : > { %1843 = vst.msk [vmem:[#allocation2 + $0x109] sm:$0xff] %vm1647_vm3, %v1542_v10  ;;  %v5548_v20 = vld [vmem:[#allocation2 + $0xca] sm:$0xff]  ;;  %v5549_v24 = vld [vmem:[#allocation2 + $0xd2] sm:$0xff]  ;;  %v5671_v43 = vpack.c.bf16 %v5551_v41, %v5550_v34  ;;  %v3762_v59 = vld [vmem:[#allocation2 + $0xe1] sm:$0xff] }
 0x125   : > { %1841 = vst.msk [vmem:[#allocation2 + $0xf9] sm:$0xff] %vm1647_vm3, %v1540_v12  ;;  %v9566_v16 = vpop.f32.mrb[24].mxu0  ;;  %v5670_v30 = vpack.c.bf16 %v5549_v24, %v5548_v20  ;;  %v3880_v63 = vpack.c.bf16 %v3762_v59, %v3761_v54  ;;  %v1970_v3 = vld [vmem:[#allocation2 + $0xd8] sm:$0xff]  ;;  %v4518_v4 = vld [vmem:[#allocation2 + $0x88] sm:$0xff]  ;;  %v1971_v9 = vld [vmem:[#allocation2 + $0xe0] sm:$0xff] }
 0x126   : > { %4770 = vrot.lane.b32.xlu0 %v10632_v45, %s9966_s18  ;;  %v1113_v17 = vadd.f32 %v9566_v16, %v10547_v29  ;;  %v1104_v18 = vpop.f32.mrb[25].mxu0  ;;  %5735 = vst.msk [vmem:[#allocation3 + $0xb8] sm:$0xff] %vm1647_vm3, %v5671_v43  ;;  %v2087_v11 = vpack.c.bf16 %v1971_v9, %v1970_v3  ;;  %v4516_v12 = vld [vmem:[#allocation2 + $0x78] sm:$0xff]  ;;  %2148 = vst.msk [vmem:[#allocation3 + $0xc0] sm:$0xff] %vm1647_vm3, %v2084_v8  ;;  %v1968_v36 = vld [vmem:[#allocation2 + $0xc8] sm:$0xff] }
 0x127   : > { %3492 = vrot.lane.b32.xlu1 %v10632_v45, %s9968_s8  ;;  %v1105_v22 = vadd.f32 %v10547_v29, %v1104_v18  ;;  %v9567_v23 = vpop.f32.mrb[26].mxu0  ;;  %5734 = vst.msk [vmem:[#allocation3 + $0xa0] sm:$0xff] %vm1647_vm3, %v5670_v30  ;;  %3944 = vst.msk [vmem:[#allocation3 + $0xe0] sm:$0xff] %vm1647_vm3, %v3880_v63  ;;  %v4517_v18 = vld [vmem:[#allocation2 + $0x80] sm:$0xff]  ;;  %v1969_v43 = vld [vmem:[#allocation2 + $0xd0] sm:$0xff] }
 0x128   : > { %v1545_v27 = vmax.f32 %v1113_v17, 0.0  ;;  %v1116_v28 = vadd.f32 %v9567_v23, %v10547_v29  ;;  %v1107_v45 = vpop.f32.mrb[27].mxu0  ;;  %v10771_v17 = vpack.c.bf16 %v4519_v5, %v4518_v4  ;;  %2151 = vst.msk [vmem:[#allocation3 + $0x108] sm:$0xff] %vm1647_vm3, %v2087_v11  ;;  %v4642_v31 = vpack.c.bf16 %v4517_v18, %v4516_v12  ;;  %v4014_v63 = vld [vmem:[#allocation2 + $0xba] sm:$0xff] }
 0x129   : > { %v1543_v37 = vmax.f32 %v1105_v22, 0.0  ;;  %v1108_v38 = vadd.f32 %v10547_v29, %v1107_v45  ;;  %v4008_v22 = vld [vmem:[#allocation2 + $0x82] sm:$0xff]  ;;  %v3760_v45 = vld [vmem:[#allocation2 + $0xd1] sm:$0xff] }
 0x12a   : > { %5286 = vrot.lane.b32.xlu0 %v10733_v21, %s9968_s8  ;;  %1846 = vst.msk [vmem:[#allocation2 + $0x129] sm:$0xff] %vm1647_vm3, %v1545_v27  ;;  %v1546_v42 = vmax.f32 %v1116_v28, 0.0  ;;  %v3765_v30 = vld [vmem:[#allocation2 + $0x101] sm:$0xff]  ;;  %v1972_v12 = vld [vmem:[#allocation2 + $0xf0] sm:$0xff] }
 0x12b   : > { %2468 = vrot.lane.b32.xlu1 %v5152_v61, %s9965_s17  ;;  %1844 = vst.msk [vmem:[#allocation2 + $0x119] sm:$0xff] %vm1647_vm3, %v1543_v37  ;;  %v1544_v44 = vmax.f32 %v1108_v38, 0.0  ;;  %v5554_v60 = vld [vmem:[#allocation2 + $0x102] sm:$0xff]  ;;  %v5555_v61 = vld [vmem:[#allocation2 + $0x10a] sm:$0xff]  ;;  %v10787_v37 = vpack.c.bf16 %v4008_v22, %v4007_v19 }
 0x12c   : > { %1847 = vst.msk [vmem:[#allocation2 + $0x131] sm:$0xff] %vm1647_vm3, %v1546_v42  ;;  %v4019_v48 = vld [vmem:[#allocation2 + $0xf2] sm:$0xff]  ;;  %v4020_v49 = vld [vmem:[#allocation2 + $0xfa] sm:$0xff]  ;;  %v5673_v0 = vpack.c.bf16 %v5555_v61, %v5554_v60  ;;  %v3766_v35 = vld [vmem:[#allocation2 + $0x109] sm:$0xff] }
 0x12d   : > { %1845 = vst.msk [vmem:[#allocation2 + $0x121] sm:$0xff] %vm1647_vm3, %v1544_v44  ;;  %v9570_v50 = vpop.f32.mrb[28].mxu0  ;;  %v10752_v51 = vpack.c.bf16 %v4020_v49, %v4019_v48  ;;  %v3882_v42 = vpack.c.bf16 %v3766_v35, %v3765_v30  ;;  %v1974_v44 = vld [vmem:[#allocation2 + $0x100] sm:$0xff] }
 0x12e   : > { %4265 = vrot.lane.b32.xlu0 %v4132_v39, %s9965_s17  ;;  %v1129_v52 = vadd.f32 %v9570_v50, %v10547_v29  ;;  %v1120_v53 = vpop.f32.mrb[29].mxu0  ;;  %5737 = vst.msk [vmem:[#allocation3 + $0xe8] sm:$0xff] %vm1647_vm3, %v5673_v0  ;;  %v2086_v50 = vpack.c.bf16 %v1969_v43, %v1968_v36  ;;  %v4520_v8 = vld [vmem:[#allocation2 + $0xa0] sm:$0xff] }
 0x12f   : > { %2981 = vrot.lane.b32.xlu1 %v10681_v25, %s9966_s18  ;;  %v1121_v56 = vadd.f32 %v10547_v29, %v1120_v53  ;;  %v9571_v58 = vpop.f32.mrb[30].mxu0  ;;  %5736 = vst.msk [vmem:[#allocation3 + $0xd0] sm:$0xff] %vm1647_vm3, %v10752_v51  ;;  %v3763_v53 = vld [vmem:[#allocation2 + $0xf1] sm:$0xff]  ;;  %3946 = vst.msk [vmem:[#allocation3 + $0x110] sm:$0xff] %vm1647_vm3, %v3882_v42  ;;  %v5033_v42 = vld [vmem:[#allocation2 + $0xa9] sm:$0xff] }
 0x130   : > { %v1549_v62 = vmax.f32 %v1129_v52, 0.0  ;;  %v1132_v57 = vadd.f32 %v9571_v58, %v10547_v29  ;;  %v1123_v25 = vpop.f32.mrb[31].mxu0  ;;  %2150 = vst.msk [vmem:[#allocation3 + $0xf0] sm:$0xff] %vm1647_vm3, %v2086_v50 }
 0x131   : > { %v1547_v7 = vmax.f32 %v1121_v56, 0.0  ;;  %v1124_v6 = vadd.f32 %v10547_v29, %v1123_v25  ;;  %v3764_v56 = vld [vmem:[#allocation2 + $0xf9] sm:$0xff] }
 0x132   : > { %5284 = vrot.lane.b32.xlu0 %v10755_v55, %s9968_s8  ;;  %1850 = vst.msk [vmem:[#allocation2 + $0x151] sm:$0xff] %vm1647_vm3, %v1549_v62  ;;  %v1550_v10 = vmax.f32 %v1132_v57, 0.0  ;;  %v3881_v61 = vpack.c.bf16 %v3764_v56, %v3763_v53  ;;  %v10802_v62 = vpack.c.bf16 %v5035_v47, %v5034_v46  ;;  %v4013_v57 = vld [vmem:[#allocation2 + $0xb2] sm:$0xff] }
 0x133   : > { %2474 = vrot.lane.b32.xlu1 %v10733_v21, %s9965_s17  ;;  %v4025_v14 = vld [vmem:[#allocation2 + $0x12a] sm:$0xff]  ;;  %v4026_v15 = vld [vmem:[#allocation2 + $0x132] sm:$0xff]  ;;  %1848 = vst.msk [vmem:[#allocation2 + $0x141] sm:$0xff] %vm1647_vm3, %v1547_v7  ;;  %v1548_v16 = vmax.f32 %v1124_v6, 0.0 }
 0x134   : > { %v10773_v20 = vpack.c.bf16 %v4026_v15, %v4025_v14  ;;  %1851 = vst.msk [vmem:[#allocation2 + $0x159] sm:$0xff] %vm1647_vm3, %v1550_v10  ;;  %v3759_v21 = vld [vmem:[#allocation2 + $0xc9] sm:$0xff]  ;;  %v4023_v23 = vld [vmem:[#allocation2 + $0x11a] sm:$0xff]  ;;  %3945 = vst.msk [vmem:[#allocation3 + $0xf8] sm:$0xff] %vm1647_vm3, %v3881_v61  ;;  %v10818_v15 = vpack.c.bf16 %v4014_v63, %v4013_v57 }
 0x135   : > { %1849 = vst.msk [vmem:[#allocation2 + $0x149] sm:$0xff] %vm1647_vm3, %v1548_v16  ;;  %v4024_v24 = vld [vmem:[#allocation2 + $0x122] sm:$0xff]  ;;  %v9574_v13 = vpop.f32.mrb[32].mxu0  ;;  %v3879_v34 = vpack.c.bf16 %v3760_v45, %v3759_v21  ;;  %v3770_v6 = vld [vmem:[#allocation2 + $0x131] sm:$0xff] }
 0x136   : > { %4774 = vrot.lane.b32.xlu0 %v10771_v17, %s9966_s18  ;;  %v10781_v26 = vpack.c.bf16 %v4024_v24, %v4023_v23  ;;  %v1145_v27 = vadd.f32 %v9574_v13, %v10547_v29  ;;  %v1136_v28 = vpop.f32.mrb[33].mxu0  ;;  %5739 = vst.msk [vmem:[#allocation3 + $0x118] sm:$0xff] %vm1647_vm3, %v10773_v20  ;;  %v3769_v7 = vld [vmem:[#allocation2 + $0x129] sm:$0xff]  ;;  %v1973_v14 = vld [vmem:[#allocation2 + $0xf8] sm:$0xff]  ;;  %v3768_v30 = vld [vmem:[#allocation2 + $0x121] sm:$0xff] }
 0x137   : > { %2987 = vrot.lane.b32.xlu1 %v4132_v39, %s9966_s18  ;;  %v1137_v32 = vadd.f32 %v10547_v29, %v1136_v28  ;;  %v9575_v33 = vpop.f32.mrb[34].mxu0  ;;  %v1975_v39 = vld [vmem:[#allocation2 + $0x108] sm:$0xff]  ;;  %3943 = vst.msk [vmem:[#allocation3 + $0xc8] sm:$0xff] %vm1647_vm3, %v3879_v34  ;;  %v3884_v11 = vpack.c.bf16 %v3770_v6, %v3769_v7  ;;  %v2088_v21 = vpack.c.bf16 %v1973_v14, %v1972_v12  ;;  %v1979_v23 = vld [vmem:[#allocation2 + $0x130] sm:$0xff]  ;;  %v3767_v24 = vld [vmem:[#allocation2 + $0x119] sm:$0xff] }
 0x138   : > { %v1553_v38 = vmax.f32 %v1145_v27, 0.0  ;;  %v1148_v40 = vadd.f32 %v9575_v33, %v10547_v29  ;;  %v1139_v41 = vpop.f32.mrb[35].mxu0  ;;  %5738 = vst.msk [vmem:[#allocation3 + $0x100] sm:$0xff] %vm1647_vm3, %v10781_v26  ;;  %v2089_v52 = vpack.c.bf16 %v1975_v39, %v1974_v44  ;;  %v1978_v22 = vld [vmem:[#allocation2 + $0x128] sm:$0xff]  ;;  %v3883_v33 = vpack.c.bf16 %v3768_v30, %v3767_v24  ;;  %v1976_v46 = vld [vmem:[#allocation2 + $0x118] sm:$0xff]  ;;  %v1977_v47 = vld [vmem:[#allocation2 + $0x120] sm:$0xff] }
 0x139   : > { %v1551_v48 = vmax.f32 %v1137_v32, 0.0  ;;  %v1140_v49 = vadd.f32 %v10547_v29, %v1139_v41  ;;  %v4521_v13 = vld [vmem:[#allocation2 + $0xa8] sm:$0xff]  ;;  %3948 = vst.msk [vmem:[#allocation3 + $0x140] sm:$0xff] %vm1647_vm3, %v3884_v11  ;;  %v2091_v45 = vpack.c.bf16 %v1979_v23, %v1978_v22  ;;  %2152 = vst.msk [vmem:[#allocation3 + $0x120] sm:$0xff] %vm1647_vm3, %v2088_v21  ;;  %v2090_v50 = vpack.c.bf16 %v1977_v47, %v1976_v46 }
 0x13a   : > { %4263 = vrot.lane.b32.xlu0 %v10787_v37, %s9965_s17  ;;  %1854 = vst.msk [vmem:[#allocation2 + $0x179] sm:$0xff] %vm1647_vm3, %v1553_v38  ;;  %v1554_v54 = vmax.f32 %v1148_v40, 0.0  ;;  %2153 = vst.msk [vmem:[#allocation3 + $0x138] sm:$0xff] %vm1647_vm3, %v2089_v52  ;;  %v10833_v40 = vpack.c.bf16 %v4521_v13, %v4520_v8  ;;  %v3771_v56 = vld [vmem:[#allocation2 + $0x141] sm:$0xff]  ;;  %v4012_v14 = vld [vmem:[#allocation2 + $0xaa] sm:$0xff] }
 0x13b   : > { %4772 = vrot.lane.b32.xlu1 %v4642_v31, %s9966_s18  ;;  %v4029_v58 = vld [vmem:[#allocation2 + $0x152] sm:$0xff]  ;;  %v4030_v59 = vld [vmem:[#allocation2 + $0x15a] sm:$0xff]  ;;  %1852 = vst.msk [vmem:[#allocation2 + $0x169] sm:$0xff] %vm1647_vm3, %v1551_v48  ;;  %v1552_v60 = vmax.f32 %v1140_v49, 0.0  ;;  %2155 = vst.msk [vmem:[#allocation3 + $0x168] sm:$0xff] %vm1647_vm3, %v2091_v45 }
 0x13c   : > { %v10804_v25 = vpack.c.bf16 %v4030_v59, %v4029_v58  ;;  %1855 = vst.msk [vmem:[#allocation2 + $0x181] sm:$0xff] %vm1647_vm3, %v1554_v54  ;;  %v4027_v0 = vld [vmem:[#allocation2 + $0x142] sm:$0xff]  ;;  %v4028_v1 = vld [vmem:[#allocation2 + $0x14a] sm:$0xff]  ;;  %v3774_v34 = vld [vmem:[#allocation2 + $0x159] sm:$0xff] }
 0x13d   : > { %1853 = vst.msk [vmem:[#allocation2 + $0x171] sm:$0xff] %vm1647_vm3, %v1552_v60  ;;  %v9578_v2 = vpop.f32.mrb[36].mxu0  ;;  %v10812_v3 = vpack.c.bf16 %v4028_v1, %v4027_v0  ;;  %3947 = vst.msk [vmem:[#allocation3 + $0x128] sm:$0xff] %vm1647_vm3, %v3883_v33  ;;  %v4522_v48 = vld [vmem:[#allocation2 + $0xb0] sm:$0xff]  ;;  %v4523_v49 = vld [vmem:[#allocation2 + $0xb8] sm:$0xff] }
 0x13e   : > { %5290 = vrot.lane.b32.xlu0 %v10802_v62, %s9968_s8  ;;  %v1161_v4 = vadd.f32 %v9578_v2, %v10547_v29  ;;  %v1152_v5 = vpop.f32.mrb[37].mxu0  ;;  %5741 = vst.msk [vmem:[#allocation3 + $0x148] sm:$0xff] %vm1647_vm3, %v10804_v25  ;;  %v1982_v52 = vld [vmem:[#allocation2 + $0x150] sm:$0xff]  ;;  %v1983_v53 = vld [vmem:[#allocation2 + $0x158] sm:$0xff]  ;;  %2154 = vst.msk [vmem:[#allocation3 + $0x150] sm:$0xff] %vm1647_vm3, %v2090_v50 }
 0x13f   : > { %3494 = vrot.lane.b32.xlu1 %v4642_v31, %s9968_s8  ;;  %v1153_v9 = vadd.f32 %v10547_v29, %v1152_v5  ;;  %v9579_v10 = vpop.f32.mrb[38].mxu0  ;;  %5740 = vst.msk [vmem:[#allocation3 + $0x130] sm:$0xff] %vm1647_vm3, %v10812_v3  ;;  %v3773_v31 = vld [vmem:[#allocation2 + $0x151] sm:$0xff]  ;;  %v3772_v58 = vld [vmem:[#allocation2 + $0x149] sm:$0xff]  ;;  %v1980_v57 = vld [vmem:[#allocation2 + $0x140] sm:$0xff] }
 0x140   : > { %v1557_v16 = vmax.f32 %v1161_v4, 0.0  ;;  %v1164_v18 = vadd.f32 %v9579_v10, %v10547_v29  ;;  %v1155_v19 = vpop.f32.mrb[39].mxu0  ;;  %v3886_v38 = vpack.c.bf16 %v3774_v34, %v3773_v31  ;;  %v3885_v60 = vpack.c.bf16 %v3772_v58, %v3771_v56  ;;  %v1981_v63 = vld [vmem:[#allocation2 + $0x148] sm:$0xff]  ;;  %v4525_v58 = vld [vmem:[#allocation2 + $0xd0] sm:$0xff] }
 0x141   : > { %v1555_v27 = vmax.f32 %v1153_v9, 0.0  ;;  %v1156_v28 = vadd.f32 %v10547_v29, %v1155_v19  ;;  %v3777_v59 = vld [vmem:[#allocation2 + $0x179] sm:$0xff]  ;;  %v2092_v1 = vpack.c.bf16 %v1981_v63, %v1980_v57  ;;  %v4645_v10 = vpack.c.bf16 %v4523_v49, %v4522_v48  ;;  %v4011_v12 = vld [vmem:[#allocation2 + $0xa2] sm:$0xff] }
 0x142   : > { %4269 = vrot.lane.b32.xlu0 %v10818_v15, %s9965_s17  ;;  %1858 = vst.msk [vmem:[#allocation2 + $0x1a1] sm:$0xff] %vm1647_vm3, %v1557_v16  ;;  %v1558_v32 = vmax.f32 %v1164_v18, 0.0  ;;  %3950 = vst.msk [vmem:[#allocation3 + $0x170] sm:$0xff] %vm1647_vm3, %v3886_v38  ;;  %v3775_v5 = vld [vmem:[#allocation2 + $0x169] sm:$0xff]  ;;  %v10868_v16 = vpack.c.bf16 %v4012_v14, %v4011_v12  ;;  %v5038_v18 = vld [vmem:[#allocation2 + $0xd9] sm:$0xff] }
 0x143   : > { %3496 = vrot.lane.b32.xlu1 %v10771_v17, %s9968_s8  ;;  %v4033_v35 = vld [vmem:[#allocation2 + $0x17a] sm:$0xff]  ;;  %v4034_v29 = vld [vmem:[#allocation2 + $0x182] sm:$0xff]  ;;  %1856 = vst.msk [vmem:[#allocation2 + $0x191] sm:$0xff] %vm1647_vm3, %v1555_v27  ;;  %v1556_v36 = vmax.f32 %v1156_v28, 0.0  ;;  %3949 = vst.msk [vmem:[#allocation3 + $0x158] sm:$0xff] %vm1647_vm3, %v3885_v60 }
 0x144   : > { %v5032_v17 = vld [vmem:[#allocation2 + $0xa1] sm:$0xff]  ;;  %v10835_v41 = vpack.c.bf16 %v4034_v29, %v4033_v35  ;;  %1859 = vst.msk [vmem:[#allocation2 + $0x1a9] sm:$0xff] %vm1647_vm3, %v1558_v32  ;;  %v4031_v43 = vld [vmem:[#allocation2 + $0x16a] sm:$0xff]  ;;  %v4032_v44 = vld [vmem:[#allocation2 + $0x172] sm:$0xff] }
 0x145   : > { %1857 = vst.msk [vmem:[#allocation2 + $0x199] sm:$0xff] %vm1647_vm3, %v1556_v36  ;;  %v10845_v39 = vpack.c.bf16 %v4032_v44, %v4031_v43  ;;  %v10849_v54 = vpack.c.bf16 %v5033_v42, %v5032_v17  ;;  %v3778_v61 = vld [vmem:[#allocation2 + $0x181] sm:$0xff]  ;;  %v1986_v2 = vld [vmem:[#allocation2 + $0x178] sm:$0xff]  ;;  %v1985_v9 = vld [vmem:[#allocation2 + $0x170] sm:$0xff]  ;;  %v9582_v21 = vpop.f32.mrb[40].mxu0 }
 0x146   : > { %4776 = vrot.lane.b32.xlu0 %v10833_v40, %s9966_s18  ;;  %5743 = vst.msk [vmem:[#allocation3 + $0x178] sm:$0xff] %vm1647_vm3, %v10835_v41  ;;  %v3888_v0 = vpack.c.bf16 %v3778_v61, %v3777_v59  ;;  %v1987_v4 = vld [vmem:[#allocation2 + $0x180] sm:$0xff]  ;;  %v3776_v6 = vld [vmem:[#allocation2 + $0x171] sm:$0xff]  ;;  %v1984_v8 = vld [vmem:[#allocation2 + $0x168] sm:$0xff]  ;;  %v1168_v13 = vpop.f32.mrb[41].mxu0 }
 0x147   : > { %2472 = vrot.lane.b32.xlu1 %v10755_v55, %s9965_s17  ;;  %5742 = vst.msk [vmem:[#allocation3 + $0x160] sm:$0xff] %vm1647_vm3, %v10845_v39  ;;  %v2093_v55 = vpack.c.bf16 %v1983_v53, %v1982_v52  ;;  %v2095_v7 = vpack.c.bf16 %v1987_v4, %v1986_v2  ;;  %2156 = vst.msk [vmem:[#allocation3 + $0x180] sm:$0xff] %vm1647_vm3, %v2092_v1  ;;  %v2094_v11 = vpack.c.bf16 %v1985_v9, %v1984_v8  ;;  %v5039_v19 = vld [vmem:[#allocation2 + $0xe1] sm:$0xff]  ;;  %v9583_v45 = vpop.f32.mrb[42].mxu0  ;;  %v5036_v63 = vld [vmem:[#allocation2 + $0xc9] sm:$0xff] }
 0x148   : > { %3952 = vst.msk [vmem:[#allocation3 + $0x1a0] sm:$0xff] %vm1647_vm3, %v3888_v0  ;;  %v5159_v30 = vpack.c.bf16 %v5039_v19, %v5038_v18  ;;  %v4017_v32 = vld [vmem:[#allocation2 + $0xda] sm:$0xff]  ;;  %v4018_v33 = vld [vmem:[#allocation2 + $0xe2] sm:$0xff]  ;;  %v1171_v35 = vpop.f32.mrb[43].mxu0  ;;  %v5037_v0 = vld [vmem:[#allocation2 + $0xd1] sm:$0xff] }
 0x149   : > { %2157 = vst.msk [vmem:[#allocation3 + $0x198] sm:$0xff] %vm1647_vm3, %v2093_v55  ;;  %2159 = vst.msk [vmem:[#allocation3 + $0x1c8] sm:$0xff] %vm1647_vm3, %v2095_v7  ;;  %v3781_v42 = vld [vmem:[#allocation2 + $0x1a1] sm:$0xff]  ;;  %v4136_v48 = vpack.c.bf16 %v4018_v33, %v4017_v32  ;;  %v10907_v1 = vpack.c.bf16 %v5037_v0, %v5036_v63  ;;  %v4526_v2 = vld [vmem:[#allocation2 + $0xd8] sm:$0xff] }
 0x14a   : > { %5288 = vrot.lane.b32.xlu0 %v10849_v54, %s9968_s8  ;;  %2158 = vst.msk [vmem:[#allocation3 + $0x1b0] sm:$0xff] %vm1647_vm3, %v2094_v11  ;;  %v3779_v52 = vld [vmem:[#allocation2 + $0x191] sm:$0xff]  ;;  %v4524_v56 = vld [vmem:[#allocation2 + $0xc8] sm:$0xff]  ;;  %v4527_v4 = vld [vmem:[#allocation2 + $0xe0] sm:$0xff] }
 0x14b   : > { %2985 = vrot.lane.b32.xlu1 %v10787_v37, %s9966_s18  ;;  %v3887_v37 = vpack.c.bf16 %v3776_v6, %v3775_v5  ;;  %v4037_v23 = vld [vmem:[#allocation2 + $0x1a2] sm:$0xff]  ;;  %v4038_v24 = vld [vmem:[#allocation2 + $0x1aa] sm:$0xff]  ;;  %v4646_v57 = vpack.c.bf16 %v4525_v58, %v4524_v56  ;;  %v4647_v5 = vpack.c.bf16 %v4527_v4, %v4526_v2  ;;  %v4016_v6 = vld [vmem:[#allocation2 + $0xd2] sm:$0xff] }
 0x14c   : > { %v10880_v27 = vpack.c.bf16 %v4038_v24, %v4037_v23  ;;  %v4035_v38 = vld [vmem:[#allocation2 + $0x192] sm:$0xff]  ;;  %v4036_v17 = vld [vmem:[#allocation2 + $0x19a] sm:$0xff]  ;;  %v3782_v44 = vld [vmem:[#allocation2 + $0x1a9] sm:$0xff] }
 0x14d   : > { %3951 = vst.msk [vmem:[#allocation3 + $0x188] sm:$0xff] %vm1647_vm3, %v3887_v37  ;;  %v10892_v43 = vpack.c.bf16 %v4036_v17, %v4035_v38  ;;  %v1990_v46 = vld [vmem:[#allocation2 + $0x1a0] sm:$0xff]  ;;  %v1991_v47 = vld [vmem:[#allocation2 + $0x1a8] sm:$0xff]  ;;  %v3890_v49 = vpack.c.bf16 %v3782_v44, %v3781_v42  ;;  %v1988_v55 = vld [vmem:[#allocation2 + $0x190] sm:$0xff]  ;;  %v9586_v8 = vpop.f32.mrb[44].mxu0 }
 0x14e   : > { %4778 = vrot.lane.b32.xlu0 %v4645_v10, %s9966_s18  ;;  %5745 = vst.msk [vmem:[#allocation3 + $0x1a8] sm:$0xff] %vm1647_vm3, %v10880_v27  ;;  %v2097_v50 = vpack.c.bf16 %v1991_v47, %v1990_v46  ;;  %v3780_v53 = vld [vmem:[#allocation2 + $0x199] sm:$0xff]  ;;  %v4015_v7 = vld [vmem:[#allocation2 + $0xca] sm:$0xff]  ;;  %v1184_v9 = vpop.f32.mrb[45].mxu0  ;;  %v5042_v14 = vld [vmem:[#allocation2 + $0x101] sm:$0xff] }
 0x14f   : > { %2478 = vrot.lane.b32.xlu1 %v10802_v62, %s9965_s17  ;;  %v10877_v62 = vld [vmem:[%s13536_s2] ss:$0 sm:$0xff]  ;;  %5744 = vst.msk [vmem:[#allocation3 + $0x190] sm:$0xff] %vm1647_vm3, %v10892_v43  ;;  %v3889_v59 = vpack.c.bf16 %v3780_v53, %v3779_v52  ;;  %v1989_v60 = vld [vmem:[#allocation2 + $0x198] sm:$0xff]  ;;  %3954 = vst.msk [vmem:[#allocation3 + $0x1d0] sm:$0xff] %vm1647_vm3, %v3890_v49  ;;  %v9587_v12 = vpop.f32.mrb[46].mxu0 }
 0x150   : > { %v1177_v22 = vadd.f32 %v10877_v62, %v9582_v21  ;;  %v1169_v28 = vadd.f32 %v10877_v62, %v1168_v13  ;;  %v1180_v31 = vadd.f32 %v10877_v62, %v9583_v45  ;;  %v1172_v36 = vadd.f32 %v10877_v62, %v1171_v35  ;;  %2161 = vst.msk [vmem:[#allocation3 + $0x1f8] sm:$0xff] %vm1647_vm3, %v2097_v50  ;;  %v1187_v19 = vpop.f32.mrb[47].mxu0  ;;  %v4022_v32 = vld [vmem:[#allocation2 + $0x10a] sm:$0xff]  ;;  %v4529_v49 = vld [vmem:[#allocation2 + $0xf8] sm:$0xff] }
 0x151   : > { %v2096_v61 = vpack.c.bf16 %v1989_v60, %v1988_v55  ;;  %3953 = vst.msk [vmem:[#allocation3 + $0x1b8] sm:$0xff] %vm1647_vm3, %v3889_v59  ;;  %v1185_v11 = vadd.f32 %v10877_v62, %v1184_v9  ;;  %v1196_v18 = vadd.f32 %v10877_v62, %v9587_v12  ;;  %v5040_v56 = vld [vmem:[#allocation2 + $0xf1] sm:$0xff]  ;;  %v5041_v58 = vld [vmem:[#allocation2 + $0xf9] sm:$0xff]  ;;  %v4531_v63 = vld [vmem:[#allocation2 + $0x108] sm:$0xff] }
 0x152   : > { %4267 = vrot.lane.b32.xlu0 %v10868_v16, %s9965_s17  ;;  %v1559_v34 = vmax.f32 %v1169_v28, 0.0  ;;  %v1562_v29 = vmax.f32 %v1180_v31, 0.0  ;;  %v4021_v31 = vld [vmem:[#allocation2 + $0x102] sm:$0xff]  ;;  %v5047_v12 = vld [vmem:[#allocation2 + $0x131] sm:$0xff] }
 0x153   : > { %2991 = vrot.lane.b32.xlu1 %v10818_v15, %s9966_s18  ;;  %v1561_v15 = vmax.f32 %v1177_v22, 0.0  ;;  %2160 = vst.msk [vmem:[#allocation3 + $0x1e0] sm:$0xff] %vm1647_vm3, %v2096_v61  ;;  %v1563_v21 = vmax.f32 %v1185_v11, 0.0  ;;  %v1188_v22 = vadd.f32 %v10877_v62, %v1187_v19  ;;  %v1566_v13 = vmax.f32 %v1196_v18, 0.0 }
 0x154   : > { %1860 = vst.msk [vmem:[#allocation2 + $0x1b9] sm:$0xff] %vm1647_vm3, %v1559_v34  ;;  %1863 = vst.msk [vmem:[#allocation2 + $0x1d1] sm:$0xff] %vm1647_vm3, %v1562_v29  ;;  %v4138_v17 = vpack.c.bf16 %v4022_v32, %v4021_v31  ;;  %v10947_v61 = vpack.c.bf16 %v5041_v58, %v5040_v56 }
 0x155   : > { %1862 = vst.msk [vmem:[#allocation2 + $0x1c9] sm:$0xff] %vm1647_vm3, %v1561_v15  ;;  %1864 = vst.msk [vmem:[#allocation2 + $0x1e1] sm:$0xff] %vm1647_vm3, %v1563_v21  ;;  %v9590_v4 = vpop.f32.mrb[48].mxu0 }
 0x156   : > { %5294 = vrot.lane.b32.xlu0 %v5159_v30, %s9968_s8  ;;  %1867 = vst.msk [vmem:[#allocation2 + $0x1f9] sm:$0xff] %vm1647_vm3, %v1566_v13 }
 0x157   : > { %3498 = vrot.lane.b32.xlu1 %v10833_v40, %s9968_s8  ;;  %v1560_v40 = vmax.f32 %v1172_v36, 0.0 }
 0x159   : > { %1861 = vst.msk [vmem:[#allocation2 + $0x1c1] sm:$0xff] %vm1647_vm3, %v1560_v40  ;;  %v4528_v40 = vld [vmem:[#allocation2 + $0xf0] sm:$0xff] }
 0x15a   : > { %4273 = vrot.lane.b32.xlu0 %v4136_v48, %s9965_s17  ;;  %v4648_v55 = vpack.c.bf16 %v4529_v49, %v4528_v40 }
 0x15b   : > { %3500 = vrot.lane.b32.xlu1 %v4645_v10, %s9968_s8  ;;  %v10916_v10 = vpack.c.bf16 %v4016_v6, %v4015_v7  ;;  %v4042_v24 = vld [vmem:[#allocation2 + $0x1d2] sm:$0xff]  ;;  %v1200_v7 = vpop.f32.mrb[49].mxu0 }
 0x15c   : > { %v4041_v23 = vld [vmem:[#allocation2 + $0x1ca] sm:$0xff]  ;;  %v3783_v46 = vld [vmem:[#allocation2 + $0x1b9] sm:$0xff] }
 0x15d   : > { %v10925_v28 = vpack.c.bf16 %v4042_v24, %v4041_v23  ;;  %v3785_v35 = vld [vmem:[#allocation2 + $0x1c9] sm:$0xff]  ;;  %v3786_v29 = vld [vmem:[#allocation2 + $0x1d1] sm:$0xff]  ;;  %v5579_v19 = vld [vmem:[#allocation2 + $0x1fa] sm:$0xff] }
 0x15e   : > { %4780 = vrot.lane.b32.xlu0 %v4646_v57, %s9966_s18  ;;  %v1995_v38 = vld [vmem:[#allocation2 + $0x1d0] sm:$0xff]  ;;  %v3892_v42 = vpack.c.bf16 %v3786_v29, %v3785_v35  ;;  %v3790_v35 = vld [vmem:[#allocation2 + $0x1f9] sm:$0xff] }
 0x15f   : > { %2476 = vrot.lane.b32.xlu1 %v10849_v54, %s9965_s17  ;;  %v1193_v54 = vadd.f32 %v10877_v62, %v9586_v8  ;;  %5747 = vst.msk [vmem:[#allocation3 + $0x1d8] sm:$0xff] %vm1647_vm3, %v10925_v28  ;;  %v1996_v40 = vld [vmem:[#allocation2 + $0x1e0] sm:$0xff] }
 0x160   : > { %v5572_v15 = vld [vmem:[#allocation2 + $0x1ba] sm:$0xff]  ;;  %v5573_v33 = vld [vmem:[#allocation2 + $0x1c2] sm:$0xff]  ;;  %3956 = vst.msk [vmem:[#allocation3 + $0x200] sm:$0xff] %vm1647_vm3, %v3892_v42 }
 0x161   : > { %v1565_v37 = vmax.f32 %v1193_v54, 0.0  ;;  %v10934_v34 = vpack.c.bf16 %v5573_v33, %v5572_v15  ;;  %v1994_v36 = vld [vmem:[#allocation2 + $0x1c8] sm:$0xff]  ;;  %v1993_v52 = vld [vmem:[#allocation2 + $0x1c0] sm:$0xff] }
 0x162   : > { %5292 = vrot.lane.b32.xlu0 %v10907_v1, %s9968_s8  ;;  %v2099_v44 = vpack.c.bf16 %v1995_v38, %v1994_v36  ;;  %v3784_v47 = vld [vmem:[#allocation2 + $0x1c1] sm:$0xff]  ;;  %v5046_v54 = vld [vmem:[#allocation2 + $0x129] sm:$0xff] }
 0x163   : > { %2989 = vrot.lane.b32.xlu1 %v10868_v16, %s9966_s18  ;;  %v5043_v16 = vld [vmem:[#allocation2 + $0x109] sm:$0xff]  ;;  %1866 = vst.msk [vmem:[#allocation2 + $0x1f1] sm:$0xff] %vm1647_vm3, %v1565_v37  ;;  %5746 = vst.msk [vmem:[#allocation3 + $0x1c0] sm:$0xff] %vm1647_vm3, %v10934_v34  ;;  %v3891_v50 = vpack.c.bf16 %v3784_v47, %v3783_v46  ;;  %v5163_v15 = vpack.c.bf16 %v5047_v12, %v5046_v54 }
 0x164   : > { %v5161_v45 = vpack.c.bf16 %v5043_v16, %v5042_v14  ;;  %2163 = vst.msk [vmem:[#allocation3 + $0x228] sm:$0xff] %vm1647_vm3, %v2099_v44  ;;  %v9591_v14 = vpop.f32.mrb[50].mxu0 }
 0x165   : > { %3955 = vst.msk [vmem:[#allocation3 + $0x1e8] sm:$0xff] %vm1647_vm3, %v3891_v50  ;;  %v1203_v23 = vpop.f32.mrb[51].mxu0  ;;  %v4532_v50 = vld [vmem:[#allocation2 + $0x118] sm:$0xff] }
 0x166   : > { %4782 = vrot.lane.b32.xlu0 %v4647_v5, %s9966_s18  ;;  %v1204_v13 = vadd.f32 %v10877_v62, %v1203_v23 }
 0x167   : > { %2482 = vrot.lane.b32.xlu1 %v5159_v30, %s9965_s17  ;;  %v1564_v30 = vmax.f32 %v1188_v22, 0.0  ;;  %v1212_v22 = vadd.f32 %v10877_v62, %v9591_v14  ;;  %v5051_v14 = vld [vmem:[#allocation2 + $0x159] sm:$0xff] }
 0x168   : > { %v1568_v32 = vmax.f32 %v1204_v13, 0.0 }
 0x169   : > { %1865 = vst.msk [vmem:[#allocation2 + $0x1e9] sm:$0xff] %vm1647_vm3, %v1564_v30  ;;  %v1570_v31 = vmax.f32 %v1212_v22, 0.0 }
 0x16a   : > { %4271 = vrot.lane.b32.xlu0 %v10916_v10, %s9965_s17  ;;  %v5578_v18 = vld [vmem:[#allocation2 + $0x1f2] sm:$0xff]  ;;  %1869 = vst.msk [vmem:[#allocation2 + $0x211] sm:$0xff] %vm1647_vm3, %v1568_v32 }
 0x16b   : > { %2995 = vrot.lane.b32.xlu1 %v4136_v48, %s9966_s18  ;;  %v1992_v48 = vld [vmem:[#allocation2 + $0x1b8] sm:$0xff]  ;;  %v10973_v24 = vpack.c.bf16 %v5579_v19, %v5578_v18  ;;  %1871 = vst.msk [vmem:[#allocation2 + $0x221] sm:$0xff] %vm1647_vm3, %v1570_v31 }
 0x16c   : > { %v2098_v53 = vpack.c.bf16 %v1993_v52, %v1992_v48  ;;  %v3789_v33 = vld [vmem:[#allocation2 + $0x1f1] sm:$0xff]  ;;  %v4533_v52 = vld [vmem:[#allocation2 + $0x120] sm:$0xff] }
 0x16d   : > { %5749 = vst.msk [vmem:[#allocation3 + $0x208] sm:$0xff] %vm1647_vm3, %v10973_v24  ;;  %v3894_v36 = vpack.c.bf16 %v3790_v35, %v3789_v33  ;;  %v1999_v38 = vld [vmem:[#allocation2 + $0x1f8] sm:$0xff]  ;;  %v4650_v58 = vpack.c.bf16 %v4533_v52, %v4532_v50  ;;  %v9949_v50 = vld [vmem:[%s13537_s3 + $0x80] sm:$0xff]  }
 0x16e   : > { %5298 = vrot.lane.b32.xlu0 %v5161_v45, %s9968_s8  ;;  %2162 = vst.msk [vmem:[#allocation3 + $0x210] sm:$0xff] %vm1647_vm3, %v2098_v53 }
 0x16f   : > { %3502 = vrot.lane.b32.xlu1 %v4646_v57, %s9968_s8  ;;  %v4530_v57 = vld [vmem:[#allocation2 + $0x100] sm:$0xff]  ;;  %3958 = vst.msk [vmem:[#allocation3 + $0x230] sm:$0xff] %vm1647_vm3, %v3894_v36 }
 0x170   : > { %v10955_v2 = vpack.c.bf16 %v4531_v63, %v4530_v57  ;;  %v5576_v37 = vld [vmem:[#allocation2 + $0x1e2] sm:$0xff]  ;;  %v5577_v11 = vld [vmem:[#allocation2 + $0x1ea] sm:$0xff] }
 0x171   : > { %v10966_v16 = vpack.c.bf16 %v5577_v11, %v5576_v37  ;;  %v1998_v29 = vld [vmem:[#allocation2 + $0x1f0] sm:$0xff]  ;;  %v1997_v49 = vld [vmem:[#allocation2 + $0x1e8] sm:$0xff] }
 0x172   : > { %4277 = vrot.lane.b32.xlu0 %v4138_v17, %s9965_s17  ;;  %v3788_v42 = vld [vmem:[#allocation2 + $0x1e9] sm:$0xff]  ;;  %v2101_v47 = vpack.c.bf16 %v1999_v38, %v1998_v29  ;;  %v2100_v53 = vpack.c.bf16 %v1997_v49, %v1996_v40 }
 0x173   : > { %3504 = vrot.lane.b32.xlu1 %v4647_v5, %s9968_s8  ;;  %v1209_v5 = vadd.f32 %v10877_v62, %v9590_v4  ;;  %5748 = vst.msk [vmem:[#allocation3 + $0x1f0] sm:$0xff] %vm1647_vm3, %v10966_v16  ;;  %v5583_v22 = vld [vmem:[#allocation2 + $0x222] sm:$0xff] }
 0x174   : > { %2165 = vst.msk [vmem:[#allocation3 + $0x258] sm:$0xff] %vm1647_vm3, %v2101_v47  ;;  %2164 = vst.msk [vmem:[#allocation3 + $0x240] sm:$0xff] %vm1647_vm3, %v2100_v53  ;;  %v9947_v29 = vld [vmem:[%s13537_s3 + $0x88] sm:$0xff]  }
 0x175   : > { %v1569_v9 = vmax.f32 %v1209_v5, 0.0  ;;  %v4537_v49 = vld [vmem:[#allocation2 + $0x148] sm:$0xff] }
 0x176   : > { %4784 = vrot.lane.b32.xlu0 %v4648_v55, %s9966_s18 }
 0x177   : > { %2480 = vrot.lane.b32.xlu1 %v10907_v1, %s9965_s17  ;;  %1870 = vst.msk [vmem:[#allocation2 + $0x219] sm:$0xff] %vm1647_vm3, %v1569_v9  ;;  %v5050_v9 = vld [vmem:[#allocation2 + $0x151] sm:$0xff] }
 0x178   : > { %v4258_v59 = vpop.permute.xlu0 %4257  ;;  %v11036_v33 = vpack.c.bf16 %v5051_v14, %v5050_v9  ;;  %v4538_v9 = vld [vmem:[#allocation2 + $0x150] sm:$0xff] }
 0x179   : > { %v2467_v60 = vpop.permute.xlu1 %2466  ;;  %4448 = vst.msk [vmem:[#allocation3 + $0x20] sm:$0xff] %vm2652_vm5, %v4258_v59  ;;  %v5044_v59 = vld [vmem:[#allocation2 + $0x119] sm:$0xff] }
 0x17a   : > { %2656 = vst.msk [vmem:[#allocation3 + $0x48] sm:$0xff] %vm2652_vm5, %v2467_v60  ;;  %5296 = vrot.lane.b32.xlu0 %v10947_v61, %s9968_s8  ;;  %v5045_v60 = vld [vmem:[#allocation2 + $0x121] sm:$0xff] }
 0x17b   : > { %2993 = vrot.lane.b32.xlu1 %v10916_v10, %s9966_s18  ;;  %v1201_v10 = vadd.f32 %v10877_v62, %v1200_v7  ;;  %v9594_v7 = vpop.f32.mrb[52].mxu0 }
 0x17c   : > { %v2465_v1 = vpop.permute.xlu0 %2464 }
 0x17d   : > { %v2980_v0 = vpop.permute.xlu1 %2979  ;;  %2655 = vst.msk [vmem:[#allocation3 + $0x30] sm:$0xff] %vm2652_vm5, %v2465_v1  ;;  %v1567_v21 = vmax.f32 %v1201_v10, 0.0  ;;  %v4534_v1 = vld [vmem:[#allocation2 + $0x128] sm:$0xff] }
 0x17e   : > { %3169 = vst.msk [vmem:[#allocation3 + $0x48] sm:$0xff] %vm3165_vm6, %v2980_v0  ;;  %4786 = vrot.lane.b32.xlu0 %v10955_v2, %s9966_s18  ;;  %v11001_v0 = vpack.c.bf16 %v5045_v60, %v5044_v59  ;;  %v5581_v12 = vld [vmem:[#allocation2 + $0x212] sm:$0xff]  ;;  %v2003_v47 = vld [vmem:[#allocation2 + $0x220] sm:$0xff] }
 0x17f   : > { %2486 = vrot.lane.b32.xlu1 %v5161_v45, %s9965_s17  ;;  %1868 = vst.msk [vmem:[#allocation2 + $0x209] sm:$0xff] %vm1647_vm3, %v1567_v21  ;;  %v5582_v21 = vld [vmem:[#allocation2 + $0x21a] sm:$0xff] }
 0x180   : > { %v4256_v8 = vpop.permute.xlu0 %4255 }
 0x181   : > { %v2978_v6 = vpop.permute.xlu1 %2977  ;;  %4447 = vst.msk [vmem:[#allocation3 + $0x8] sm:$0xff] %vm2652_vm5, %v4256_v8 }
 0x182   : > { %3168 = vst.msk [vmem:[#allocation3 + $0x30] sm:$0xff] %vm3165_vm6, %v2978_v6  ;;  %4275 = vrot.lane.b32.xlu0 %v10752_v51, %s9965_s17  ;;  %v1225_v6 = vadd.f32 %v10877_v62, %v9594_v7 }
 0x183   : > { %2999 = vrot.lane.b32.xlu1 %v4138_v17, %s9966_s18  ;;  %v3787_v17 = vld [vmem:[#allocation2 + $0x1e1] sm:$0xff] }
 0x184   : > { %v4262_v30 = vpop.permute.xlu0 %4261  ;;  %v3893_v48 = vpack.c.bf16 %v3788_v42, %v3787_v17  ;;  %v1573_v10 = vmax.f32 %v1225_v6, 0.0  ;;  %v3793_v17 = vld [vmem:[#allocation2 + $0x219] sm:$0xff] }
 0x185   : > { %v3487_v45 = vpop.permute.xlu1 %3486  ;;  %4450 = vst.msk [vmem:[#allocation3 + $0x50] sm:$0xff] %vm2652_vm5, %v4262_v30  ;;  %v11029_v30 = vpack.c.bf16 %v5583_v22, %v5582_v21  ;;  %v4536_v42 = vld [vmem:[#allocation2 + $0x140] sm:$0xff] }
 0x186   : > { %3679 = vst.msk [vmem:[#allocation3] sm:$0xff] %vm3678_vm7, %v3487_v45  ;;  %5302 = vrot.lane.b32.xlu0 %v5163_v15, %s9968_s8  ;;  %v5580_v11 = vld [vmem:[#allocation2 + $0x20a] sm:$0xff]  ;;  %v5794_v6 = vld [vmem:[#allocation3 + $0x10] sm:$0xff] }
 0x187   : > { %3506 = vrot.lane.b32.xlu1 %v4648_v55, %s9968_s8  ;;  %3957 = vst.msk [vmem:[#allocation3 + $0x218] sm:$0xff] %vm1647_vm3, %v3893_v48  ;;  %v11020_v19 = vpack.c.bf16 %v5581_v12, %v5580_v11  ;;  %1874 = vst.msk [vmem:[#allocation2 + $0x241] sm:$0xff] %vm1647_vm3, %v1573_v10  ;;  %v2000_v60 = vld [vmem:[#allocation2 + $0x208] sm:$0xff]  ;;  %v4539_v10 = vld [vmem:[#allocation2 + $0x158] sm:$0xff] }
 0x188   : > { %v5283_v46 = vpop.permute.xlu0 %5282  ;;  %5751 = vst.msk [vmem:[#allocation3 + $0x238] sm:$0xff] %vm1647_vm3, %v11029_v30  ;;  %v11083_v22 = vpack.c.bf16 %v4539_v10, %v4538_v9 }
 0x189   : > { %v3489_v44 = vpop.permute.xlu1 %3488  ;;  %5750 = vst.msk [vmem:[#allocation3 + $0x220] sm:$0xff] %vm1647_vm3, %v11020_v19 }
 0x18a   : > { %3680 = vst.msk [vmem:[#allocation3 + $0x18] sm:$0xff] %vm3678_vm7, %v3489_v44  ;;  %4281 = vrot.lane.b32.xlu0 %v10773_v20, %s9965_s17  ;;  %v3794_v44 = vld [vmem:[#allocation2 + $0x221] sm:$0xff] }
 0x18b   : > { %3508 = vrot.lane.b32.xlu1 %v10955_v2, %s9968_s8  ;;  %v4535_v2 = vld [vmem:[#allocation2 + $0x130] sm:$0xff]  ;;  %v3896_v52 = vpack.c.bf16 %v3794_v44, %v3793_v17  ;;  %v5054_v17 = vld [vmem:[#allocation2 + $0x179] sm:$0xff] }
 0x18c   : > { %v4260_v56 = vpop.permute.xlu0 %4259  ;;  %v11009_v5 = vpack.c.bf16 %v4535_v2, %v4534_v1 }
 0x18d   : > { %v2471_v55 = vpop.permute.xlu1 %2470  ;;  %4449 = vst.msk [vmem:[#allocation3 + $0x38] sm:$0xff] %vm2652_vm5, %v4260_v56  ;;  %v5792_v38 = vld [vmem:[#allocation3] sm:$0xff] }
 0x18e   : > { %2658 = vst.msk [vmem:[#allocation3 + $0x78] sm:$0xff] %vm2652_vm5, %v2471_v55  ;;  %4788 = vrot.lane.b32.xlu0 %v4650_v58, %s9966_s18  ;;  %v3791_v55 = vld [vmem:[#allocation2 + $0x209] sm:$0xff]  ;;  %v3792_v56 = vld [vmem:[#allocation2 + $0x211] sm:$0xff] }
 0x18f   : > { %2484 = vrot.lane.b32.xlu1 %v10947_v61, %s9965_s17  ;;  %v3895_v59 = vpack.c.bf16 %v3792_v56, %v3791_v55  ;;  %3960 = vst.msk [vmem:[#allocation3 + $0x260] sm:$0xff] %vm1647_vm3, %v3896_v52 }
 0x190   : > { %v4769_v63 = vpop.permute.xlu0 %4768 }
 0x191   : > { %v2984_v57 = vpop.permute.xlu1 %2983  ;;  %4960 = vst.msk [vmem:[#allocation3 + $0x8] sm:$0xff] %vm3165_vm6, %v4769_v63  ;;  %v5795_v7 = vld [vmem:[#allocation3 + $0x18] sm:$0xff] }
 0x192   : > { %3171 = vst.msk [vmem:[#allocation3 + $0x78] sm:$0xff] %vm3165_vm6, %v2984_v57  ;;  %5300 = vrot.lane.b32.xlu0 %v11001_v0, %s9968_s8  ;;  %v2001_v57 = vld [vmem:[#allocation2 + $0x210] sm:$0xff] }
 0x193   : > { %2997 = vrot.lane.b32.xlu1 %v10752_v51, %s9966_s18  ;;  %v1216_v51 = vpop.f32.mrb[53].mxu0  ;;  %v2102_v63 = vpack.c.bf16 %v2001_v57, %v2000_v60  ;;  %3959 = vst.msk [vmem:[#allocation3 + $0x248] sm:$0xff] %vm1647_vm3, %v3895_v59 }
 0x194   : > { %v5281_v61 = vpop.permute.xlu0 %5280  ;;  %v1217_v37 = vadd.f32 %v10877_v62, %v1216_v51  ;;  %v9595_v18 = vpop.f32.mrb[54].mxu0 }
 0x195   : > { %v3491_v4 = vpop.permute.xlu1 %3490  ;;  %5472 = vst.msk [vmem:[#allocation3 + $0x8] sm:$0xff] %vm3678_vm7, %v5281_v61  ;;  %v1228_v13 = vadd.f32 %v10877_v62, %v9595_v18  ;;  %v1219_v45 = vpop.f32.mrb[55].mxu0  ;;  %v5048_v61 = vld [vmem:[#allocation2 + $0x141] sm:$0xff] }
 0x196   : > { %3681 = vst.msk [vmem:[#allocation3 + $0x30] sm:$0xff] %vm3678_vm7, %v3491_v4  ;;  %4790 = vrot.lane.b32.xlu0 %v11009_v5, %s9966_s18  ;;  %v1571_v23 = vmax.f32 %v1217_v37, 0.0  ;;  %v11062_v4 = vpack.c.bf16 %v4537_v49, %v4536_v42  ;;  %v9598_v37 = vpop.f32.mrb[56].mxu0 }
 0x197   : > { %2490 = vrot.lane.b32.xlu1 %v5163_v15, %s9965_s17  ;;  %v1220_v15 = vadd.f32 %v10877_v62, %v1219_v45  ;;  %v1574_v35 = vmax.f32 %v1228_v13, 0.0  ;;  %2166 = vst.msk [vmem:[#allocation3 + $0x270] sm:$0xff] %vm1647_vm3, %v2102_v63  ;;  %v1232_v11 = vpop.f32.mrb[57].mxu0 }
 0x198   : > { %v4771_v54 = vpop.permute.xlu0 %4770  ;;  %1872 = vst.msk [vmem:[#allocation2 + $0x231] sm:$0xff] %vm1647_vm3, %v1571_v23  ;;  %v1233_v12 = vadd.f32 %v10877_v62, %v1232_v11  ;;  %v9599_v14 = vpop.f32.mrb[58].mxu0  ;;  %v3797_v11 = vld [vmem:[#allocation2 + $0x241] sm:$0xff] }
 0x199   : > { %v3493_v8 = vpop.permute.xlu1 %3492  ;;  %4961 = vst.msk [vmem:[#allocation3 + $0x20] sm:$0xff] %vm3165_vm6, %v4771_v54  ;;  %v1572_v36 = vmax.f32 %v1220_v15, 0.0  ;;  %v1244_v13 = vadd.f32 %v10877_v62, %v9599_v14  ;;  %v1235_v45 = vpop.f32.mrb[59].mxu0  ;;  %v5797_v15 = vld [vmem:[#allocation3 + $0x28] sm:$0xff] }
 0x19a   : > { %3682 = vst.msk [vmem:[#allocation3 + $0x48] sm:$0xff] %vm3678_vm7, %v3493_v8  ;;  %5473 = vst.msk [vmem:[#allocation3 + $0x20] sm:$0xff] %vm3678_vm7, %v5283_v46  ;;  %4279 = vrot.lane.b32.xlu0 %v10781_v26, %s9965_s17  ;;  %v2002_v46 = vld [vmem:[#allocation2 + $0x218] sm:$0xff] }
 0x19b   : > { %3003 = vrot.lane.b32.xlu1 %v10773_v20, %s9966_s18  ;;  %1875 = vst.msk [vmem:[#allocation2 + $0x249] sm:$0xff] %vm1647_vm3, %v1574_v35  ;;  %1873 = vst.msk [vmem:[#allocation2 + $0x239] sm:$0xff] %vm1647_vm3, %v1572_v36  ;;  %v2103_v53 = vpack.c.bf16 %v2003_v47, %v2002_v46  ;;  %v5800_v35 = vld [vmem:[#allocation3 + $0x40] sm:$0xff] }
 0x19c   : > { %v11034_v32 = vpop.permute.xlu0 %5286  ;;  %v5793_v20 = vld [vmem:[#allocation3 + $0x8] sm:$0xff] }
 0x19d   : > { %v2469_v31 = vpop.permute.xlu1 %2468  ;;  %6359 = vmatprep.mubr.bf16.mxu0 %v5793_v20  ;;  %2167 = vst.msk [vmem:[#allocation3 + $0x288] sm:$0xff] %vm1647_vm3, %v2103_v53  ;;  %v9602_v20 = vpop.f32.mrb[60].mxu0  ;;  %v5798_v9 = vld [vmem:[#allocation3 + $0x30] sm:$0xff] }
 0x19e   : > { %2657 = vst.msk [vmem:[#allocation3 + $0x60] sm:$0xff] %vm2652_vm5, %v2469_v31  ;;  %5306 = vrot.lane.b32.xlu0 %v11036_v33, %s9968_s8  ;;  %6360 = vmatmul.mubr.bf16.vlgmr.msra.gmra.mrb[128].mxu0 %v5792_v38  ;;  %v1578_v31 = vmax.f32 %v1244_v13, 0.0  ;;  %v1248_v36 = vpop.f32.mrb[61].mxu0 }
 0x19f   : > { %3510 = vrot.lane.b32.xlu1 %v4650_v58, %s9968_s8  ;;  %9669 = vmatpush3.bf16.msra.mxu0 %v9949_v50  ;;  %v1249_v44 = vadd.f32 %v10877_v62, %v1248_v36  ;;  %v9603_v49 = vpop.f32.mrb[62].mxu0  ;;  %v3795_v13 = vld [vmem:[#allocation2 + $0x231] sm:$0xff]  ;;  %v4540_v36 = vld [vmem:[#allocation2 + $0x168] sm:$0xff] }
 0x1a0   : > { %v4266_v40 = vpop.permute.xlu0 %4265  ;;  %9670 = vmatprep.subr.bf16.mxu0 %v9947_v29  ;;  %1879 = vst.msk [vmem:[#allocation2 + $0x271] sm:$0xff] %vm1647_vm3, %v1578_v31  ;;  %v1260_v56 = vadd.f32 %v10877_v62, %v9603_v49 }
 0x1a1   : > { %v2982_v48 = vpop.permute.xlu1 %2981  ;;  %4452 = vst.msk [vmem:[#allocation3 + $0x80] sm:$0xff] %vm2652_vm5, %v4266_v40  ;;  %v5796_v58 = vld [vmem:[#allocation3 + $0x20] sm:$0xff]  ;;  %v1579_v55 = vmax.f32 %v1249_v44, 0.0 }
 0x1a2   : > { %3170 = vst.msk [vmem:[#allocation3 + $0x60] sm:$0xff] %vm3165_vm6, %v2982_v48  ;;  %4285 = vrot.lane.b32.xlu0 %v10804_v25, %s9965_s17  ;;  %6367 = vmatprep.mubr.bf16.mxu0 %v5796_v58  ;;  %v5584_v46 = vld [vmem:[#allocation2 + $0x232] sm:$0xff]  ;;  %v5585_v47 = vld [vmem:[#allocation2 + $0x23a] sm:$0xff]  ;;  %v5586_v52 = vld [vmem:[#allocation2 + $0x242] sm:$0xff]  ;;  %v1251_v58 = vpop.f32.mrb[63].mxu0 }
 0x1a3   : > { %3512 = vrot.lane.b32.xlu1 %v11009_v5, %s9968_s8  ;;  %9671 = vmatpush3.bf16.msra.mxu0 %v9947_v29  ;;  %v5049_v5 = vld [vmem:[#allocation2 + $0x149] sm:$0xff]  ;;  %v1257_v29 = vadd.f32 %v10877_v62, %v9602_v20  ;;  %v5055_v48 = vld [vmem:[#allocation2 + $0x181] sm:$0xff]  ;;  %v11104_v50 = vpack.c.bf16 %v5585_v47, %v5584_v46  ;;  %v1252_v60 = vadd.f32 %v10877_v62, %v1251_v58  ;;  %v9606_v57 = vpop.f32.mrb[64].mxu0  ;;  %v2005_v46 = vld [vmem:[#allocation2 + $0x238] sm:$0xff] }
 0x1a4   : > { %v5285_v2 = vpop.permute.xlu0 %5284  ;;  %v11071_v54 = vpack.c.bf16 %v5049_v5, %v5048_v61  ;;  %v5587_v53 = vld [vmem:[#allocation2 + $0x24a] sm:$0xff]  ;;  %1880 = vst.msk [vmem:[#allocation2 + $0x281] sm:$0xff] %vm1647_vm3, %v1579_v55  ;;  %v1273_v61 = vadd.f32 %v10877_v62, %v9606_v57 }
 0x1a5   : > { %v2475_v1 = vpop.permute.xlu1 %2474  ;;  %v1581_v40 = vmax.f32 %v1257_v29, 0.0  ;;  %v11112_v59 = vpack.c.bf16 %v5587_v53, %v5586_v52  ;;  %5752 = vst.msk [vmem:[#allocation3 + $0x250] sm:$0xff] %vm1647_vm3, %v11104_v50  ;;  %v2004_v29 = vld [vmem:[#allocation2 + $0x230] sm:$0xff] }
 0x1a6   : > { %2660 = vst.msk [vmem:[#allocation3 + $0xa8] sm:$0xff] %vm2652_vm5, %v2475_v1  ;;  %4792 = vrot.lane.b32.xlu0 %v11062_v4, %s9966_s18  ;;  %6368 = vmatmul.mubr.bf16.gmra.mrb[132].mxu0 %v5795_v7  ;;  %v11118_v1 = vpack.c.bf16 %v5055_v48, %v5054_v17  ;;  %v5803_v7 = vld [vmem:[#allocation3 + $0x58] sm:$0xff]  ;;  %v1585_v10 = vmax.f32 %v1273_v61, 0.0  ;;  %v2104_v49 = vpack.c.bf16 %v2005_v46, %v2004_v29  ;;  %v5809_v61 = vld [vmem:[#allocation3 + $0x88] sm:$0xff] }
 0x1a7   : > { %2488 = vrot.lane.b32.xlu1 %v11001_v0, %s9965_s17  ;;  %9672 = vmatprep.mubr.msk.bf16.mxu0 %vm1647_vm3, %v5794_v6  ;;  %v1241_v0 = vadd.f32 %v10877_v62, %v9598_v37  ;;  %1882 = vst.msk [vmem:[#allocation2 + $0x291] sm:$0xff] %vm1647_vm3, %v1581_v40  ;;  %5753 = vst.msk [vmem:[#allocation3 + $0x268] sm:$0xff] %vm1647_vm3, %v11112_v59  ;;  %v5806_v6 = vld [vmem:[#allocation3 + $0x70] sm:$0xff]  ;;  %v5052_v57 = vld [vmem:[#allocation2 + $0x169] sm:$0xff] }
 0x1a8   : > { %v4775_v8 = vpop.permute.xlu0 %4774  ;;  %1886 = vst.msk [vmem:[#allocation2 + $0x2b9] sm:$0xff] %vm1647_vm3, %v1585_v10  ;;  %2168 = vst.msk [vmem:[#allocation3 + $0x2a0] sm:$0xff] %vm1647_vm3, %v2104_v49 }
 0x1a9   : > { %v2988_v51 = vpop.permute.xlu1 %2987  ;;  %4963 = vst.msk [vmem:[#allocation3 + $0x50] sm:$0xff] %vm3165_vm6, %v4775_v8  ;;  %v1577_v23 = vmax.f32 %v1241_v0, 0.0  ;;  %v1264_v8 = vpop.f32.mrb[65].mxu0 }
 0x1aa   : > { %3173 = vst.msk [vmem:[#allocation3 + $0xa8] sm:$0xff] %vm3165_vm6, %v2988_v51  ;;  %5304 = vrot.lane.b32.xlu0 %v11071_v54, %s9968_s8  ;;  %v1580_v51 = vmax.f32 %v1252_v60, 0.0  ;;  %v1265_v37 = vadd.f32 %v10877_v62, %v1264_v8  ;;  %v9607_v0 = vpop.f32.mrb[66].mxu0  ;;  %v5812_v8 = vld [vmem:[#allocation3 + $0xa0] sm:$0xff] }
 0x1ab   : > { %5475 = vst.msk [vmem:[#allocation3 + $0x50] sm:$0xff] %vm3678_vm7, %v11034_v32  ;;  %3001 = vrot.lane.b32.xlu1 %v10781_v26, %s9966_s18  ;;  %v1575_v26 = vmax.f32 %v1233_v12, 0.0  ;;  %v1236_v32 = vadd.f32 %v10877_v62, %v1235_v45  ;;  %v3798_v12 = vld [vmem:[#allocation2 + $0x249] sm:$0xff]  ;;  %v1276_v14 = vadd.f32 %v10877_v62, %v9607_v0 }
 0x1ac   : > { %v4264_v21 = vpop.permute.xlu0 %4263  ;;  %1878 = vst.msk [vmem:[#allocation2 + $0x269] sm:$0xff] %vm1647_vm3, %v1577_v23  ;;  %1881 = vst.msk [vmem:[#allocation2 + $0x289] sm:$0xff] %vm1647_vm3, %v1580_v51  ;;  %v2007_v23 = vld [vmem:[#allocation2 + $0x248] sm:$0xff]  ;;  %v1583_v31 = vmax.f32 %v1265_v37, 0.0  ;;  %v5801_v51 = vld [vmem:[#allocation3 + $0x48] sm:$0xff] }
 0x1ad   : > { %v4773_v18 = vpop.permute.xlu1 %4772  ;;  %4451 = vst.msk [vmem:[#allocation3 + $0x68] sm:$0xff] %vm2652_vm5, %v4264_v21  ;;  %v1576_v42 = vmax.f32 %v1236_v32, 0.0  ;;  %v2006_v21 = vld [vmem:[#allocation2 + $0x240] sm:$0xff]  ;;  %v1586_v17 = vmax.f32 %v1276_v14, 0.0  ;;  %v4542_v14 = vld [vmem:[#allocation2 + $0x178] sm:$0xff] }
 0x1ae   : > { %4962 = vst.msk [vmem:[#allocation3 + $0x38] sm:$0xff] %vm3165_vm6, %v4773_v18  ;;  %4794 = vrot.lane.b32.xlu0 %v11083_v22, %s9966_s18  ;;  %9673 = vmatmul.mubr.msk.bf16.vlgmr.msra.gmra.mrb[136].mxu0 %vm1647_vm3, %v5797_v15  ;;  %v3898_v18 = vpack.c.bf16 %v3798_v12, %v3797_v11  ;;  %v2105_v20 = vpack.c.bf16 %v2007_v23, %v2006_v21 }
 0x1af   : > { %5474 = vst.msk [vmem:[#allocation3 + $0x38] sm:$0xff] %vm3678_vm7, %v5285_v2  ;;  %2494 = vrot.lane.b32.xlu1 %v11036_v33, %s9965_s17  ;;  %9676 = vmatprep.mubr.msk.bf16.mxu0 %vm1647_vm3, %v5800_v35  ;;  %v1582_v2 = vmax.f32 %v1260_v56, 0.0  ;;  %v3796_v35 = vld [vmem:[#allocation2 + $0x239] sm:$0xff] }
 0x1b0   : > { %1876 = vst.msk [vmem:[#allocation2 + $0x259] sm:$0xff] %vm1647_vm3, %v1575_v26  ;;  %v11099_v38 = vpop.permute.xlu0 %5290  ;;  %1877 = vst.msk [vmem:[#allocation2 + $0x261] sm:$0xff] %vm1647_vm3, %v1576_v42  ;;  %v3897_v44 = vpack.c.bf16 %v3796_v35, %v3795_v13 }
 0x1b1   : > { %v3495_v33 = vpop.permute.xlu1 %3494  ;;  %1883 = vst.msk [vmem:[#allocation2 + $0x299] sm:$0xff] %vm1647_vm3, %v1582_v2  ;;  %3962 = vst.msk [vmem:[#allocation3 + $0x290] sm:$0xff] %vm1647_vm3, %v3898_v18 }
 0x1b2   : > { %3683 = vst.msk [vmem:[#allocation3 + $0x60] sm:$0xff] %vm3678_vm7, %v3495_v33  ;;  %4283 = vrot.lane.b32.xlu0 %v10812_v3, %s9965_s17  ;;  %v5802_v15 = vld [vmem:[#allocation3 + $0x50] sm:$0xff]  ;;  %v4541_v33 = vld [vmem:[#allocation2 + $0x170] sm:$0xff] }
 0x1b3   : > { %3007 = vrot.lane.b32.xlu1 %v10804_v25, %s9966_s18  ;;  %1884 = vst.msk [vmem:[#allocation2 + $0x2a9] sm:$0xff] %vm1647_vm3, %v1583_v31  ;;  %2169 = vst.msk [vmem:[#allocation3 + $0x2b8] sm:$0xff] %vm1647_vm3, %v2105_v20  ;;  %v11151_v56 = vpack.c.bf16 %v4541_v33, %v4540_v36  ;;  %v5815_v33 = vld [vmem:[#allocation3 + $0xb8] sm:$0xff] }
 0x1b4   : > { %v4270_v63 = vpop.permute.xlu0 %4269  ;;  %1887 = vst.msk [vmem:[#allocation2 + $0x2c1] sm:$0xff] %vm1647_vm3, %v1586_v17  ;;  %3961 = vst.msk [vmem:[#allocation3 + $0x278] sm:$0xff] %vm1647_vm3, %v3897_v44 }
 0x1b5   : > { %v3497_v25 = vpop.permute.xlu1 %3496  ;;  %4454 = vst.msk [vmem:[#allocation3 + $0xb0] sm:$0xff] %vm2652_vm5, %v4270_v63 }
 0x1b6   : > { %3684 = vst.msk [vmem:[#allocation3 + $0x78] sm:$0xff] %vm3678_vm7, %v3497_v25  ;;  %v5799_v5 = vld [vmem:[#allocation3 + $0x38] sm:$0xff]  ;;  %5310 = vrot.lane.b32.xlu0 %v11118_v1, %s9968_s8  ;;  %9677 = vmatmul.mubr.msk.bf16.gmra.mrb[140].mxu0 %vm1647_vm3, %v5803_v7  ;;  %v5053_v25 = vld [vmem:[#allocation2 + $0x171] sm:$0xff] }
 0x1b7   : > { %3514 = vrot.lane.b32.xlu1 %v11062_v4, %s9968_s8  ;;  %6375 = vmatprep.mubr.bf16.mxu1 %v5799_v5  ;;  %v1267_v4 = vpop.f32.mrb[67].mxu0  ;;  %v11168_v0 = vpack.c.bf16 %v5053_v25, %v5052_v57 }
 0x1b8   : > { %6376 = vmatmul.mubr.bf16.vlgmr.msra.gmra.mrb[0].mxu1 %v5798_v9  ;;  %9680 = vmatprep.mubr.msk.bf16.mxu0 %vm1647_vm3, %v5806_v6  ;;  %v4777_v45 = vpop.permute.xlu0 %4776  ;;  %v1268_v32 = vadd.f32 %v10877_v62, %v1267_v4  ;;  %v9610_v42 = vpop.f32.mrb[68].mxu0  ;;  %v4543_v4 = vld [vmem:[#allocation2 + $0x180] sm:$0xff] }
 0x1b9   : > { %v2473_v26 = vpop.permute.xlu1 %2472  ;;  %4964 = vst.msk [vmem:[#allocation3 + $0x68] sm:$0xff] %vm3165_vm6, %v4777_v45  ;;  %6383 = vmatprep.mubr.bf16.mxu1 %v5802_v15  ;;  %v1289_v48 = vadd.f32 %v10877_v62, %v9610_v42  ;;  %v1280_v40 = vpop.f32.mrb[69].mxu0  ;;  %v11184_v20 = vpack.c.bf16 %v4543_v4, %v4542_v14  ;;  %v5804_v46 = vld [vmem:[#allocation3 + $0x60] sm:$0xff]  ;;  %v5821_v14 = vld [vmem:[#allocation3 + $0xe8] sm:$0xff] }
 0x1ba   : > { %2659 = vst.msk [vmem:[#allocation3 + $0x90] sm:$0xff] %vm2652_vm5, %v2473_v26  ;;  %4289 = vrot.lane.b32.xlu0 %v10835_v41, %s9965_s17  ;;  %v1584_v47 = vmax.f32 %v1268_v32, 0.0  ;;  %v1281_v52 = vadd.f32 %v10877_v62, %v1280_v40  ;;  %v9611_v53 = vpop.f32.mrb[70].mxu0 }
 0x1bb   : > { %3516 = vrot.lane.b32.xlu1 %v11083_v22, %s9968_s8  ;;  %v1589_v58 = vmax.f32 %v1289_v48, 0.0  ;;  %v1292_v60 = vadd.f32 %v10877_v62, %v9611_v53  ;;  %v1283_v2 = vpop.f32.mrb[71].mxu0  ;;  %v5058_v48 = vld [vmem:[#allocation2 + $0x1a1] sm:$0xff]  ;;  %v5059_v53 = vld [vmem:[#allocation2 + $0x1a9] sm:$0xff] }
 0x1bc   : > { %v5289_v55 = vpop.permute.xlu0 %5288  ;;  %1885 = vst.msk [vmem:[#allocation2 + $0x2b1] sm:$0xff] %vm1647_vm3, %v1584_v47  ;;  %v1587_v63 = vmax.f32 %v1281_v52, 0.0  ;;  %v1284_v7 = vadd.f32 %v10877_v62, %v1283_v2  ;;  %v9614_v6 = vpop.f32.mrb[72].mxu0  ;;  %v5818_v47 = vld [vmem:[#allocation3 + $0xd0] sm:$0xff] }
 0x1bd   : > { %v2986_v22 = vpop.permute.xlu1 %2985  ;;  %5476 = vst.msk [vmem:[#allocation3 + $0x68] sm:$0xff] %vm3678_vm7, %v5289_v55  ;;  %v1590_v5 = vmax.f32 %v1292_v60, 0.0  ;;  %v1305_v9 = vadd.f32 %v10877_v62, %v9614_v6  ;;  %v1296_v10 = vpop.f32.mrb[73].mxu0  ;;  %v4056_v60 = vld [vmem:[#allocation2 + $0x262] sm:$0xff] }
 0x1be   : > { %3172 = vst.msk [vmem:[#allocation3 + $0x90] sm:$0xff] %vm3165_vm6, %v2986_v22  ;;  %4796 = vrot.lane.b32.xlu0 %v11151_v56, %s9966_s18  ;;  %9681 = vmatmul.mubr.msk.bf16.gmra.mrb[144].mxu0 %vm1647_vm3, %v5809_v61  ;;  %v1588_v11 = vmax.f32 %v1284_v7, 0.0  ;;  %v1297_v12 = vadd.f32 %v10877_v62, %v1296_v10  ;;  %v9615_v21 = vpop.f32.mrb[74].mxu0  ;;  %v5590_v61 = vld [vmem:[#allocation2 + $0x26a] sm:$0xff] }
 0x1bf   : > { %2492 = vrot.lane.b32.xlu1 %v11071_v54, %s9965_s17  ;;  %1890 = vst.msk [vmem:[#allocation2 + $0x2e1] sm:$0xff] %vm1647_vm3, %v1589_v58  ;;  %1888 = vst.msk [vmem:[#allocation2 + $0x2d1] sm:$0xff] %vm1647_vm3, %v1587_v63  ;;  %9684 = vmatprep.mubr.msk.bf16.mxu0 %vm1647_vm3, %v5812_v8  ;;  %v1593_v18 = vmax.f32 %v1305_v9, 0.0  ;;  %v1308_v13 = vadd.f32 %v10877_v62, %v9615_v21  ;;  %v1299_v26 = vpop.f32.mrb[75].mxu0  ;;  %v4055_v58 = vld [vmem:[#allocation2 + $0x25a] sm:$0xff]  ;;  %v5807_v4 = vld [vmem:[#allocation3 + $0x78] sm:$0xff] }
 0x1c0   : > { %6384 = vmatmul.mubr.bf16.gmra.mrb[4].mxu1 %v5801_v51  ;;  %v4779_v37 = vpop.permute.xlu0 %4778  ;;  %1891 = vst.msk [vmem:[#allocation2 + $0x2e9] sm:$0xff] %vm1647_vm3, %v1590_v5  ;;  %1889 = vst.msk [vmem:[#allocation2 + $0x2d9] sm:$0xff] %vm1647_vm3, %v1588_v11  ;;  %v1591_v23 = vmax.f32 %v1297_v12, 0.0  ;;  %v1300_v45 = vadd.f32 %v10877_v62, %v1299_v26  ;;  %v9618_v15 = vpop.f32.mrb[76].mxu0  ;;  %v11210_v2 = vpack.c.bf16 %v4056_v60, %v4055_v58  ;;  %v5591_v5 = vld [vmem:[#allocation2 + $0x272] sm:$0xff] }
 0x1c1   : > { %v2479_v54 = vpop.permute.xlu1 %2478  ;;  %4965 = vst.msk [vmem:[#allocation3 + $0x80] sm:$0xff] %vm3165_vm6, %v4779_v37  ;;  %v1321_v35 = vadd.f32 %v10877_v62, %v9618_v15  ;;  %v1312_v36 = vpop.f32.mrb[77].mxu0  ;;  %v5691_v8 = vpack.c.bf16 %v5591_v5, %v5590_v61  ;;  %v11222_v37 = vpack.c.bf16 %v5059_v53, %v5058_v48  ;;  %v3801_v15 = vld [vmem:[#allocation2 + $0x269] sm:$0xff] }
 0x1c2   : > { %2662 = vst.msk [vmem:[#allocation3 + $0xd8] sm:$0xff] %vm2652_vm5, %v2479_v54  ;;  %5308 = vrot.lane.b32.xlu0 %v11168_v0, %s9968_s8  ;;  %v1592_v29 = vmax.f32 %v1300_v45, 0.0  ;;  %v1313_v42 = vadd.f32 %v10877_v62, %v1312_v36  ;;  %v9619_v44 = vpop.f32.mrb[78].mxu0  ;;  %v2009_v36 = vld [vmem:[#allocation2 + $0x260] sm:$0xff]  ;;  %v2010_v48 = vld [vmem:[#allocation2 + $0x268] sm:$0xff] }
 0x1c3   : > { %5477 = vst.msk [vmem:[#allocation3 + $0x80] sm:$0xff] %vm3678_vm7, %v11099_v38  ;;  %3005 = vrot.lane.b32.xlu1 %v10812_v3, %s9966_s18  ;;  %v1594_v3 = vmax.f32 %v1308_v13, 0.0  ;;  %v1597_v17 = vmax.f32 %v1321_v35, 0.0  ;;  %v1315_v49 = vpop.f32.mrb[79].mxu0  ;;  %v3800_v35 = vld [vmem:[#allocation2 + $0x261] sm:$0xff] }
 0x1c4   : > { %1894 = vst.msk [vmem:[#allocation2 + $0x309] sm:$0xff] %vm1647_vm3, %v1593_v18  ;;  %v4268_v32 = vpop.permute.xlu0 %4267  ;;  %v5805_v38 = vld [vmem:[#allocation3 + $0x68] sm:$0xff]  ;;  %1892 = vst.msk [vmem:[#allocation2 + $0x2f9] sm:$0xff] %vm1647_vm3, %v1591_v23  ;;  %v1595_v22 = vmax.f32 %v1313_v42, 0.0  ;;  %v9622_v63 = vpop.f32.mrb[80].mxu0  ;;  %v5824_v18 = vld [vmem:[#allocation3 + $0x100] sm:$0xff] }
 0x1c5   : > { %v2992_v31 = vpop.permute.xlu1 %2991  ;;  %4453 = vst.msk [vmem:[#allocation3 + $0x98] sm:$0xff] %vm2652_vm5, %v4268_v32  ;;  %6391 = vmatprep.mubr.bf16.mxu1 %v5805_v38  ;;  %v1328_v51 = vpop.f32.mrb[81].mxu0  ;;  %v3799_v32 = vld [vmem:[#allocation2 + $0x259] sm:$0xff] }
 0x1c6   : > { %3175 = vst.msk [vmem:[#allocation3 + $0xd8] sm:$0xff] %vm3165_vm6, %v2992_v31  ;;  %4798 = vrot.lane.b32.xlu0 %v11184_v20, %s9966_s18  ;;  %9685 = vmatmul.mubr.msk.bf16.gmra.mrb[148].mxu0 %vm1647_vm3, %v5815_v33  ;;  %v9623_v10 = vpop.f32.mrb[82].mxu0  ;;  %v3802_v31 = vld [vmem:[#allocation2 + $0x271] sm:$0xff] }
 0x1c7   : > { %2498 = vrot.lane.b32.xlu1 %v11118_v1, %s9965_s17  ;;  %1895 = vst.msk [vmem:[#allocation2 + $0x311] sm:$0xff] %vm1647_vm3, %v1594_v3  ;;  %1893 = vst.msk [vmem:[#allocation2 + $0x301] sm:$0xff] %vm1647_vm3, %v1592_v29  ;;  %v11201_v1 = vld [vmem:[%s13536_s2] ss:$0 sm:$0xff]  ;;  %9688 = vmatprep.mubr.msk.bf16.mxu0 %vm1647_vm3, %v5818_v47  ;;  %v1331_v23 = vpop.f32.mrb[83].mxu0  ;;  %v2008_v29 = vld [vmem:[#allocation2 + $0x258] sm:$0xff] }
 0x1c8   : > { %v1324_v40 = vadd.f32 %v11201_v1, %v9619_v44  ;;  %6392 = vmatmul.mubr.bf16.gmra.mrb[8].mxu1 %v5804_v46  ;;  %v11205_v52 = vpop.permute.xlu0 %5294  ;;  %1898 = vst.msk [vmem:[#allocation2 + $0x331] sm:$0xff] %vm1647_vm3, %v1597_v17  ;;  %v1316_v55 = vadd.f32 %v11201_v1, %v1315_v49  ;;  %1896 = vst.msk [vmem:[#allocation2 + $0x321] sm:$0xff] %vm1647_vm3, %v1595_v22  ;;  %v1337_v6 = vadd.f32 %v11201_v1, %v9622_v63  ;;  %v9626_v45 = vpop.f32.mrb[84].mxu0  ;;  %v4544_v49 = vld [vmem:[#allocation2 + $0x190] sm:$0xff] }
 0x1c9   : > { %v3499_v62 = vpop.permute.xlu1 %3498  ;;  %v1329_v9 = vadd.f32 %v11201_v1, %v1328_v51  ;;  %5754 = vst.msk [vmem:[#allocation3 + $0x280] sm:$0xff] %vm1647_vm3, %v11210_v2  ;;  %v1340_v12 = vadd.f32 %v11201_v1, %v9623_v10  ;;  %5755 = vst.msk [vmem:[#allocation3 + $0x298] sm:$0xff] %vm1647_vm3, %v5691_v8  ;;  %v1332_v26 = vadd.f32 %v11201_v1, %v1331_v23  ;;  %v1344_v3 = vpop.f32.mrb[85].mxu0  ;;  %v5056_v51 = vld [vmem:[#allocation2 + $0x191] sm:$0xff]  ;;  %v5057_v8 = vld [vmem:[#allocation2 + $0x199] sm:$0xff] }
 0x1ca   : > { %3685 = vst.msk [vmem:[#allocation3 + $0x90] sm:$0xff] %vm3678_vm7, %v3499_v62  ;;  %v5808_v57 = vld [vmem:[#allocation3 + $0x80] sm:$0xff]  ;;  %v1598_v25 = vmax.f32 %v1324_v40, 0.0  ;;  %4287 = vrot.lane.b32.xlu0 %v10845_v39, %s9965_s17  ;;  %v1596_v7 = vmax.f32 %v1316_v55, 0.0  ;;  %v1601_v11 = vmax.f32 %v1337_v6, 0.0  ;;  %v1353_v38 = vadd.f32 %v11201_v1, %v9626_v45  ;;  %v4545_v62 = vld [vmem:[#allocation2 + $0x198] sm:$0xff] }
 0x1cb   : > { %3011 = vrot.lane.b32.xlu1 %v10835_v41, %s9966_s18  ;;  %6399 = vmatprep.mubr.bf16.mxu1 %v5808_v57  ;;  %v1599_v21 = vmax.f32 %v1329_v9, 0.0  ;;  %v1602_v13 = vmax.f32 %v1340_v12, 0.0  ;;  %v1600_v42 = vmax.f32 %v1332_v26, 0.0  ;;  %v1345_v44 = vadd.f32 %v11201_v1, %v1344_v3  ;;  %v2011_v40 = vld [vmem:[#allocation2 + $0x270] sm:$0xff]  ;;  %v9627_v22 = vpop.f32.mrb[86].mxu0  ;;  %v4546_v45 = vld [vmem:[#allocation2 + $0x1a0] sm:$0xff] }
 0x1cc   : > { %1899 = vst.msk [vmem:[#allocation2 + $0x339] sm:$0xff] %vm1647_vm3, %v1598_v25  ;;  %v4274_v54 = vpop.permute.xlu0 %4273  ;;  %1897 = vst.msk [vmem:[#allocation2 + $0x329] sm:$0xff] %vm1647_vm3, %v1596_v7  ;;  %v3899_v46 = vpack.c.bf16 %v3800_v35, %v3799_v32  ;;  %v2106_v47 = vpack.c.bf16 %v2009_v36, %v2008_v29  ;;  %v1605_v53 = vmax.f32 %v1353_v38, 0.0  ;;  %v2107_v55 = vpack.c.bf16 %v2011_v40, %v2010_v48  ;;  %v1347_v57 = vpop.f32.mrb[87].mxu0  ;;  %v5833_v48 = vld [vmem:[#allocation3 + $0x148] sm:$0xff] }
 0x1cd   : > { %v3501_v41 = vpop.permute.xlu1 %3500  ;;  %4456 = vst.msk [vmem:[#allocation3 + $0xe0] sm:$0xff] %vm2652_vm5, %v4274_v54  ;;  %v1603_v58 = vmax.f32 %v1345_v44, 0.0  ;;  %v1356_v60 = vadd.f32 %v11201_v1, %v9627_v22  ;;  %v1348_v25 = vadd.f32 %v11201_v1, %v1347_v57  ;;  %v9630_v63 = vpop.f32.mrb[88].mxu0  ;;  %v11255_v5 = vpack.c.bf16 %v4545_v62, %v4544_v49  ;;  %v5062_v22 = vld [vmem:[#allocation2 + $0x1c9] sm:$0xff]  ;;  %v5063_v57 = vld [vmem:[#allocation2 + $0x1d1] sm:$0xff] }
 0x1ce   : > { %3686 = vst.msk [vmem:[#allocation3 + $0xa8] sm:$0xff] %vm3678_vm7, %v3501_v41  ;;  %5314 = vrot.lane.b32.xlu0 %v11222_v37, %s9968_s8  ;;  %9689 = vmatmul.mubr.msk.bf16.gmra.mrb[152].mxu0 %vm1647_vm3, %v5821_v14  ;;  %v1369_v6 = vadd.f32 %v11201_v1, %v9630_v63  ;;  %v1360_v10 = vpop.f32.mrb[89].mxu0  ;;  %v5827_v41 = vld [vmem:[#allocation3 + $0x118] sm:$0xff]  ;;  %v5830_v14 = vld [vmem:[#allocation3 + $0x130] sm:$0xff]  ;;  %v11271_v23 = vpack.c.bf16 %v5057_v8, %v5056_v51  ;;  %v4061_v8 = vld [vmem:[#allocation2 + $0x292] sm:$0xff] }
 0x1cf   : > { %3518 = vrot.lane.b32.xlu1 %v11151_v56, %s9968_s8  ;;  %1902 = vst.msk [vmem:[#allocation2 + $0x359] sm:$0xff] %vm1647_vm3, %v1601_v11  ;;  %1900 = vst.msk [vmem:[#allocation2 + $0x349] sm:$0xff] %vm1647_vm3, %v1599_v21  ;;  %v3900_v56 = vpack.c.bf16 %v3802_v31, %v3801_v15  ;;  %9692 = vmatprep.mubr.msk.bf16.mxu0 %vm1647_vm3, %v5824_v18  ;;  %v1606_v7 = vmax.f32 %v1356_v60, 0.0  ;;  %v1604_v9 = vmax.f32 %v1348_v25, 0.0  ;;  %v9631_v12 = vpop.f32.mrb[90].mxu0  ;;  %v4547_v15 = vld [vmem:[#allocation2 + $0x1a8] sm:$0xff] }
 0x1d0   : > { %6400 = vmatmul.mubr.bf16.gmra.mrb[12].mxu1 %v5807_v4  ;;  %v4781_v17 = vpop.permute.xlu0 %4780  ;;  %1903 = vst.msk [vmem:[#allocation2 + $0x361] sm:$0xff] %vm1647_vm3, %v1602_v13  ;;  %1901 = vst.msk [vmem:[#allocation2 + $0x351] sm:$0xff] %vm1647_vm3, %v1600_v42  ;;  %v1609_v54 = vmax.f32 %v1369_v6, 0.0  ;;  %v1361_v11 = vadd.f32 %v11201_v1, %v1360_v10  ;;  %v1372_v4 = vadd.f32 %v11201_v1, %v9631_v12  ;;  %v1363_v18 = vpop.f32.mrb[91].mxu0 }
 0x1d1   : > { %v2477_v33 = vpop.permute.xlu1 %2476  ;;  %4966 = vst.msk [vmem:[#allocation3 + $0x98] sm:$0xff] %vm3165_vm6, %v4781_v17  ;;  %v1364_v26 = vadd.f32 %v11201_v1, %v1363_v18  ;;  %v9634_v32 = vpop.f32.mrb[92].mxu0  ;;  %v11287_v17 = vpack.c.bf16 %v4547_v15, %v4546_v45  ;;  %v5839_v45 = vld [vmem:[#allocation3 + $0x178] sm:$0xff]  ;;  %v5842_v15 = vld [vmem:[#allocation3 + $0x190] sm:$0xff] }
 0x1d2   : > { %2661 = vst.msk [vmem:[#allocation3 + $0xc0] sm:$0xff] %vm2652_vm5, %v2477_v33  ;;  %4293 = vrot.lane.b32.xlu0 %v10880_v27, %s9965_s17  ;;  %v1607_v13 = vmax.f32 %v1361_v11, 0.0  ;;  %v1610_v31 = vmax.f32 %v1372_v4, 0.0  ;;  %v1385_v3 = vadd.f32 %v11201_v1, %v9634_v32 }
 0x1d3   : > { %3964 = vst.msk [vmem:[#allocation3 + $0x2c0] sm:$0xff] %vm1647_vm3, %v3900_v56  ;;  %3520 = vrot.lane.b32.xlu1 %v11184_v20, %s9968_s8  ;;  %3963 = vst.msk [vmem:[#allocation3 + $0x2a8] sm:$0xff] %vm1647_vm3, %v3899_v46  ;;  %v1608_v38 = vmax.f32 %v1364_v26, 0.0  ;;  %v1376_v56 = vpop.f32.mrb[93].mxu0 }
 0x1d4   : > { %2170 = vst.msk [vmem:[#allocation3 + $0x2d0] sm:$0xff] %vm1647_vm3, %v2106_v47  ;;  %1906 = vst.msk [vmem:[#allocation2 + $0x381] sm:$0xff] %vm1647_vm3, %v1605_v53  ;;  %v5293_v61 = vpop.permute.xlu0 %5292  ;;  %v1377_v35 = vadd.f32 %v11201_v1, %v1376_v56  ;;  %v9635_v29 = vpop.f32.mrb[94].mxu0  ;;  %v5810_v47 = vld [vmem:[#allocation3 + $0x90] sm:$0xff]  ;;  %v5836_v53 = vld [vmem:[#allocation3 + $0x160] sm:$0xff] }
 0x1d5   : > { %2171 = vst.msk [vmem:[#allocation3 + $0x2e8] sm:$0xff] %vm1647_vm3, %v2107_v55  ;;  %v2990_v20 = vpop.permute.xlu1 %2989  ;;  %1904 = vst.msk [vmem:[#allocation2 + $0x371] sm:$0xff] %vm1647_vm3, %v1603_v58  ;;  %v1388_v42 = vadd.f32 %v11201_v1, %v9635_v29  ;;  %v1379_v46 = vpop.f32.mrb[95].mxu0  ;;  %v5813_v26 = vld [vmem:[#allocation3 + $0xa8] sm:$0xff] }
 0x1d6   : > { %3174 = vst.msk [vmem:[#allocation3 + $0xc0] sm:$0xff] %vm3165_vm6, %v2990_v20  ;;  %4800 = vrot.lane.b32.xlu0 %v11255_v5, %s9966_s18  ;;  %9693 = vmatmul.mubr.msk.bf16.gmra.mrb[156].mxu0 %vm1647_vm3, %v5827_v41  ;;  %v1611_v44 = vmax.f32 %v1377_v35, 0.0  ;;  %v1380_v49 = vadd.f32 %v11201_v1, %v1379_v46  ;;  %v9638_v62 = vpop.f32.mrb[96].mxu0  ;;  %v4059_v20 = vld [vmem:[#allocation2 + $0x282] sm:$0xff]  ;;  %v3805_v35 = vld [vmem:[#allocation2 + $0x291] sm:$0xff]  ;;  %v3806_v29 = vld [vmem:[#allocation2 + $0x299] sm:$0xff] }
 0x1d7   : > { %5478 = vst.msk [vmem:[#allocation3 + $0x98] sm:$0xff] %vm3678_vm7, %v5293_v61  ;;  %2496 = vrot.lane.b32.xlu1 %v11168_v0, %s9965_s17  ;;  %9696 = vmatprep.mubr.msk.bf16.mxu0 %vm1647_vm3, %v5830_v14  ;;  %v1614_v40 = vmax.f32 %v1388_v42, 0.0  ;;  %v1392_v55 = vpop.f32.mrb[97].mxu0  ;;  %v4060_v61 = vld [vmem:[#allocation2 + $0x28a] sm:$0xff]  ;;  %v2012_v42 = vld [vmem:[#allocation2 + $0x280] sm:$0xff] }
 0x1d8   : > { %1907 = vst.msk [vmem:[#allocation2 + $0x389] sm:$0xff] %vm1647_vm3, %v1606_v7  ;;  %1905 = vst.msk [vmem:[#allocation2 + $0x379] sm:$0xff] %vm1647_vm3, %v1604_v9  ;;  %v4783_v21 = vpop.permute.xlu0 %4782  ;;  %v1612_v25 = vmax.f32 %v1380_v49, 0.0  ;;  %v1393_v63 = vadd.f32 %v11201_v1, %v1392_v55  ;;  %v9639_v51 = vpop.f32.mrb[98].mxu0  ;;  %v4062_v9 = vld [vmem:[#allocation2 + $0x29a] sm:$0xff]  ;;  %v11308_v10 = vpack.c.bf16 %v4060_v61, %v4059_v20 }
 0x1d9   : > { %v2483_v0 = vpop.permute.xlu1 %2482  ;;  %1910 = vst.msk [vmem:[#allocation2 + $0x3a9] sm:$0xff] %vm1647_vm3, %v1609_v54  ;;  %1908 = vst.msk [vmem:[#allocation2 + $0x399] sm:$0xff] %vm1647_vm3, %v1607_v13  ;;  %v1404_v54 = vadd.f32 %v11201_v1, %v9639_v51  ;;  %v1395_v11 = vpop.f32.mrb[99].mxu0  ;;  %v11316_v12 = vpack.c.bf16 %v4062_v9, %v4061_v8  ;;  %v4549_v55 = vld [vmem:[#allocation2 + $0x1c0] sm:$0xff] }
 0x1da   : > { %2664 = vst.msk [vmem:[#allocation3 + $0x108] sm:$0xff] %vm2652_vm5, %v2483_v0  ;;  %5312 = vrot.lane.b32.xlu0 %v11271_v23, %s9968_s8  ;;  %v1615_v41 = vmax.f32 %v1393_v63, 0.0  ;;  %v1396_v14 = vadd.f32 %v11201_v1, %v1395_v11  ;;  %v9642_v4 = vpop.f32.mrb[100].mxu0  ;;  %v11322_v0 = vpack.c.bf16 %v5063_v57, %v5062_v22  ;;  %v2015_v22 = vld [vmem:[#allocation2 + $0x298] sm:$0xff]  ;;  %v5061_v11 = vld [vmem:[#allocation2 + $0x1c1] sm:$0xff] }
 0x1db   : > { %4967 = vst.msk [vmem:[#allocation3 + $0xb0] sm:$0xff] %vm3165_vm6, %v4783_v21  ;;  %3009 = vrot.lane.b32.xlu1 %v10845_v39, %s9966_s18  ;;  %v1613_v39 = vmax.f32 %v1385_v3, 0.0  ;;  %v1618_v21 = vmax.f32 %v1404_v54, 0.0  ;;  %v1417_v13 = vadd.f32 %v11201_v1, %v9642_v4  ;;  %v1408_v32 = vpop.f32.mrb[101].mxu0  ;;  %v5060_v54 = vld [vmem:[#allocation2 + $0x1b9] sm:$0xff] }
 0x1dc   : > { %5479 = vst.msk [vmem:[#allocation3 + $0xb0] sm:$0xff] %vm3678_vm7, %v11205_v52  ;;  %v4272_v33 = vpop.permute.xlu0 %4271  ;;  %v1409_v3 = vadd.f32 %v11201_v1, %v1408_v32  ;;  %v9643_v56 = vpop.f32.mrb[102].mxu0  ;;  %v11372_v32 = vpack.c.bf16 %v5061_v11, %v5060_v54 }
 0x1dd   : > { %1911 = vst.msk [vmem:[#allocation2 + $0x3b1] sm:$0xff] %vm1647_vm3, %v1610_v31  ;;  %v2996_v36 = vpop.permute.xlu1 %2995  ;;  %1909 = vst.msk [vmem:[#allocation2 + $0x3a1] sm:$0xff] %vm1647_vm3, %v1608_v38  ;;  %v1616_v31 = vmax.f32 %v1396_v14, 0.0  ;;  %v1621_v38 = vmax.f32 %v1417_v13, 0.0 }
 0x1de   : > { %v5811_v52 = vld [vmem:[#allocation3 + $0x98] sm:$0xff]  ;;  %3177 = vst.msk [vmem:[#allocation3 + $0x108] sm:$0xff] %vm3165_vm6, %v2996_v36  ;;  %4802 = vrot.lane.b32.xlu0 %v11287_v17, %s9966_s18  ;;  %9697 = vmatmul.mubr.msk.bf16.gmra.mrb[160].mxu0 %vm1647_vm3, %v5833_v48  ;;  %v1619_v48 = vmax.f32 %v1409_v3, 0.0 }
 0x1df   : > { %4455 = vst.msk [vmem:[#allocation3 + $0xc8] sm:$0xff] %vm2652_vm5, %v4272_v33  ;;  %6407 = vmatprep.mubr.bf16.mxu1 %v5811_v52  ;;  %2502 = vrot.lane.b32.xlu1 %v11222_v37, %s9965_s17  ;;  %v1401_v37 = vadd.f32 %v11201_v1, %v9638_v62  ;;  %v3803_v36 = vld [vmem:[#allocation2 + $0x281] sm:$0xff]  ;;  %v1420_v33 = vadd.f32 %v11201_v1, %v9643_v56 }
 0x1e0   : > { %1914 = vst.msk [vmem:[#allocation2 + $0x3d1] sm:$0xff] %vm1647_vm3, %v1613_v39  ;;  %6408 = vmatmul.mubr.bf16.gmra.mrb[16].mxu1 %v5810_v47  ;;  %1912 = vst.msk [vmem:[#allocation2 + $0x3c1] sm:$0xff] %vm1647_vm3, %v1611_v44  ;;  %9700 = vmatprep.mubr.msk.bf16.mxu0 %vm1647_vm3, %v5836_v53  ;;  %v11303_v60 = vpop.permute.xlu0 %5298  ;;  %v3902_v52 = vpack.c.bf16 %v3806_v29, %v3805_v35  ;;  %v3804_v39 = vld [vmem:[#allocation2 + $0x289] sm:$0xff] }
 0x1e1   : > { %v3503_v58 = vpop.permute.xlu1 %3502  ;;  %1915 = vst.msk [vmem:[#allocation2 + $0x3d9] sm:$0xff] %vm1647_vm3, %v1614_v40  ;;  %v1617_v6 = vmax.f32 %v1401_v37, 0.0  ;;  %1913 = vst.msk [vmem:[#allocation2 + $0x3c9] sm:$0xff] %vm1647_vm3, %v1612_v25  ;;  %v2013_v44 = vld [vmem:[#allocation2 + $0x288] sm:$0xff]  ;;  %v3901_v49 = vpack.c.bf16 %v3804_v39, %v3803_v36  ;;  %v2014_v53 = vld [vmem:[#allocation2 + $0x290] sm:$0xff] }
 0x1e2   : > { %3687 = vst.msk [vmem:[#allocation3 + $0xc0] sm:$0xff] %vm3678_vm7, %v3503_v58  ;;  %4291 = vrot.lane.b32.xlu0 %v10892_v43, %s9965_s17  ;;  %v2108_v62 = vpack.c.bf16 %v2013_v44, %v2012_v42  ;;  %v4548_v37 = vld [vmem:[#allocation2 + $0x1b8] sm:$0xff]  ;;  %v1622_v58 = vmax.f32 %v1420_v33, 0.0  ;;  %v2109_v25 = vpack.c.bf16 %v2015_v22, %v2014_v53  ;;  %v4550_v56 = vld [vmem:[#allocation2 + $0x1c8] sm:$0xff]  ;;  %v4551_v35 = vld [vmem:[#allocation2 + $0x1d0] sm:$0xff] }
 0x1e3   : > { %v5814_v7 = vld [vmem:[#allocation3 + $0xb0] sm:$0xff]  ;;  %3015 = vrot.lane.b32.xlu1 %v10880_v27, %s9966_s18  ;;  %1918 = vst.msk [vmem:[#allocation2 + $0x3f9] sm:$0xff] %vm1647_vm3, %v1617_v6  ;;  %5756 = vst.msk [vmem:[#allocation3 + $0x2b0] sm:$0xff] %vm1647_vm3, %v11308_v10  ;;  %v11356_v8 = vpack.c.bf16 %v4549_v55, %v4548_v37  ;;  %v5851_v53 = vld [vmem:[#allocation3 + $0x1d8] sm:$0xff] }
 0x1e4   : > { %6415 = vmatprep.mubr.bf16.mxu1 %v5814_v7  ;;  %v4278_v18 = vpop.permute.xlu0 %4277  ;;  %1916 = vst.msk [vmem:[#allocation2 + $0x3e9] sm:$0xff] %vm1647_vm3, %v1615_v41  ;;  %5757 = vst.msk [vmem:[#allocation3 + $0x2c8] sm:$0xff] %vm1647_vm3, %v11316_v12 }
 0x1e5   : > { %v3505_v27 = vpop.permute.xlu1 %3504  ;;  %4458 = vst.msk [vmem:[#allocation3 + $0x110] sm:$0xff] %vm2652_vm5, %v4278_v18 }
 0x1e6   : > { %3688 = vst.msk [vmem:[#allocation3 + $0xd8] sm:$0xff] %vm3678_vm7, %v3505_v27  ;;  %5318 = vrot.lane.b32.xlu0 %v11322_v0, %s9968_s8  ;;  %9701 = vmatmul.mubr.msk.bf16.gmra.mrb[164].mxu0 %vm1647_vm3, %v5839_v45  ;;  %v5845_v27 = vld [vmem:[#allocation3 + $0x1a8] sm:$0xff] }
 0x1e7   : > { %3522 = vrot.lane.b32.xlu1 %v11255_v5, %s9968_s8  ;;  %1919 = vst.msk [vmem:[#allocation2 + $0x401] sm:$0xff] %vm1647_vm3, %v1618_v21  ;;  %1917 = vst.msk [vmem:[#allocation2 + $0x3f1] sm:$0xff] %vm1647_vm3, %v1616_v31  ;;  %v1411_v5 = vpop.f32.mrb[103].mxu0  ;;  %9704 = vmatprep.mubr.msk.bf16.mxu0 %vm1647_vm3, %v5842_v15 }
 0x1e8   : > { %6416 = vmatmul.mubr.bf16.gmra.mrb[20].mxu1 %v5813_v26  ;;  %v4785_v47 = vpop.permute.xlu0 %4784  ;;  %1922 = vst.msk [vmem:[#allocation2 + $0x421] sm:$0xff] %vm1647_vm3, %v1621_v38  ;;  %v1412_v40 = vadd.f32 %v11201_v1, %v1411_v5  ;;  %v9646_v57 = vpop.f32.mrb[104].mxu0  ;;  %3966 = vst.msk [vmem:[#allocation3 + $0x2f0] sm:$0xff] %vm1647_vm3, %v3902_v52  ;;  %v5848_v26 = vld [vmem:[#allocation3 + $0x1c0] sm:$0xff] }
 0x1e9   : > { %v2481_v46 = vpop.permute.xlu1 %2480  ;;  %4968 = vst.msk [vmem:[#allocation3 + $0xc8] sm:$0xff] %vm3165_vm6, %v4785_v47  ;;  %v1433_v20 = vadd.f32 %v11201_v1, %v9646_v57  ;;  %v1424_v61 = vpop.f32.mrb[105].mxu0  ;;  %v11388_v47 = vpack.c.bf16 %v4551_v35, %v4550_v56  ;;  %v5816_v22 = vld [vmem:[#allocation3 + $0xc0] sm:$0xff] }
 0x1ea   : > { %2663 = vst.msk [vmem:[#allocation3 + $0xf0] sm:$0xff] %vm2652_vm5, %v2481_v46  ;;  %4297 = vrot.lane.b32.xlu0 %v10925_v28, %s9965_s17  ;;  %v1620_v63 = vmax.f32 %v1412_v40, 0.0  ;;  %v1425_v7 = vadd.f32 %v11201_v1, %v1424_v61  ;;  %v9647_v6 = vpop.f32.mrb[106].mxu0  ;;  %v5854_v40 = vld [vmem:[#allocation3 + $0x1f0] sm:$0xff]  ;;  %v5066_v57 = vld [vmem:[#allocation2 + $0x1f1] sm:$0xff] }
 0x1eb   : > { %3524 = vrot.lane.b32.xlu1 %v11287_v17, %s9968_s8  ;;  %1920 = vst.msk [vmem:[#allocation2 + $0x411] sm:$0xff] %vm1647_vm3, %v1619_v48  ;;  %3965 = vst.msk [vmem:[#allocation3 + $0x2d8] sm:$0xff] %vm1647_vm3, %v3901_v49  ;;  %v1625_v9 = vmax.f32 %v1433_v20, 0.0  ;;  %v1436_v41 = vadd.f32 %v11201_v1, %v9647_v6  ;;  %v1427_v4 = vpop.f32.mrb[107].mxu0  ;;  %v5067_v61 = vld [vmem:[#allocation2 + $0x1f9] sm:$0xff] }
 0x1ec   : > { %2172 = vst.msk [vmem:[#allocation3 + $0x300] sm:$0xff] %vm1647_vm3, %v2108_v62  ;;  %1923 = vst.msk [vmem:[#allocation2 + $0x429] sm:$0xff] %vm1647_vm3, %v1622_v58  ;;  %v5297_v51 = vpop.permute.xlu0 %5296  ;;  %v1623_v14 = vmax.f32 %v1425_v7, 0.0  ;;  %v1428_v21 = vadd.f32 %v11201_v1, %v1427_v4  ;;  %v9650_v13 = vpop.f32.mrb[108].mxu0  ;;  %v4066_v4 = vld [vmem:[#allocation2 + $0x2c2] sm:$0xff] }
 0x1ed   : > { %2173 = vst.msk [vmem:[#allocation3 + $0x318] sm:$0xff] %vm1647_vm3, %v2109_v25  ;;  %v2994_v17 = vpop.permute.xlu1 %2993  ;;  %1921 = vst.msk [vmem:[#allocation2 + $0x419] sm:$0xff] %vm1647_vm3, %v1620_v63  ;;  %v1626_v18 = vmax.f32 %v1436_v41, 0.0  ;;  %v1449_v45 = vadd.f32 %v11201_v1, %v9650_v13  ;;  %v1440_v15 = vpop.f32.mrb[109].mxu0  ;;  %v5819_v35 = vld [vmem:[#allocation3 + $0xd8] sm:$0xff] }
 0x1ee   : > { %3176 = vst.msk [vmem:[#allocation3 + $0xf0] sm:$0xff] %vm3165_vm6, %v2994_v17  ;;  %4804 = vrot.lane.b32.xlu0 %v11356_v8, %s9966_s18  ;;  %9705 = vmatmul.mubr.msk.bf16.gmra.mrb[168].mxu0 %vm1647_vm3, %v5845_v27  ;;  %v1624_v38 = vmax.f32 %v1428_v21, 0.0  ;;  %v1441_v3 = vadd.f32 %v11201_v1, %v1440_v15  ;;  %v9651_v36 = vpop.f32.mrb[110].mxu0  ;;  %v4063_v17 = vld [vmem:[#allocation2 + $0x2aa] sm:$0xff] }
 0x1ef   : > { %5480 = vst.msk [vmem:[#allocation3 + $0xc8] sm:$0xff] %vm3678_vm7, %v5297_v51  ;;  %2500 = vrot.lane.b32.xlu1 %v11271_v23, %s9965_s17  ;;  %9708 = vmatprep.mubr.msk.bf16.mxu0 %vm1647_vm3, %v5848_v26  ;;  %v1629_v29 = vmax.f32 %v1449_v45, 0.0  ;;  %v1452_v5 = vadd.f32 %v11201_v1, %v9651_v36  ;;  %v1443_v52 = vpop.f32.mrb[111].mxu0  ;;  %v4064_v51 = vld [vmem:[#allocation2 + $0x2b2] sm:$0xff] }
 0x1f0   : > { %1926 = vst.msk [vmem:[#allocation2 + $0x449] sm:$0xff] %vm1647_vm3, %v1625_v9  ;;  %1924 = vst.msk [vmem:[#allocation2 + $0x439] sm:$0xff] %vm1647_vm3, %v1623_v14  ;;  %v4787_v31 = vpop.permute.xlu0 %4786  ;;  %v1627_v33 = vmax.f32 %v1441_v3, 0.0  ;;  %v1444_v39 = vadd.f32 %v11201_v1, %v1443_v52  ;;  %v9654_v42 = vpop.f32.mrb[112].mxu0  ;;  %v11409_v11 = vpack.c.bf16 %v4064_v51, %v4063_v17  ;;  %v4065_v14 = vld [vmem:[#allocation2 + $0x2ba] sm:$0xff] }
 0x1f1   : > { %v2487_v23 = vpop.permute.xlu1 %2486  ;;  %1927 = vst.msk [vmem:[#allocation2 + $0x451] sm:$0xff] %vm1647_vm3, %v1626_v18  ;;  %1925 = vst.msk [vmem:[#allocation2 + $0x441] sm:$0xff] %vm1647_vm3, %v1624_v38  ;;  %v1465_v48 = vadd.f32 %v11201_v1, %v9654_v42  ;;  %v1456_v62 = vpop.f32.mrb[113].mxu0  ;;  %v11417_v13 = vpack.c.bf16 %v4066_v4, %v4065_v14  ;;  %v5860_v38 = vld [vmem:[#allocation3 + $0x220] sm:$0xff]  ;;  %v5863_v4 = vld [vmem:[#allocation3 + $0x238] sm:$0xff] }
 0x1f2   : > { %2666 = vst.msk [vmem:[#allocation3 + $0x138] sm:$0xff] %vm2652_vm5, %v2487_v23  ;;  %5316 = vrot.lane.b32.xlu0 %v11372_v32, %s9968_s8  ;;  %v1628_v49 = vmax.f32 %v1444_v39, 0.0  ;;  %v1457_v55 = vadd.f32 %v11201_v1, %v1456_v62  ;;  %v9655_v58 = vpop.f32.mrb[114].mxu0  ;;  %v11423_v23 = vpack.c.bf16 %v5067_v61, %v5066_v57  ;;  %v2018_v62 = vld [vmem:[#allocation2 + $0x2b8] sm:$0xff] }
 0x1f3   : > { %4969 = vst.msk [vmem:[#allocation3 + $0xe0] sm:$0xff] %vm3165_vm6, %v4787_v31  ;;  %3013 = vrot.lane.b32.xlu1 %v10892_v43, %s9966_s18  ;;  %v1630_v43 = vmax.f32 %v1452_v5, 0.0  ;;  %v1633_v37 = vmax.f32 %v1465_v48, 0.0  ;;  %v1468_v25 = vadd.f32 %v11201_v1, %v9655_v58  ;;  %v5857_v31 = vld [vmem:[#allocation3 + $0x208] sm:$0xff] }
 0x1f4   : > { %5481 = vst.msk [vmem:[#allocation3 + $0xe0] sm:$0xff] %vm3678_vm7, %v11303_v60  ;;  %v4276_v46 = vpop.permute.xlu0 %4275  ;;  %v1631_v7 = vmax.f32 %v1457_v55, 0.0  ;;  %v3808_v5 = vld [vmem:[#allocation2 + $0x2b1] sm:$0xff] }
 0x1f5   : > { %1930 = vst.msk [vmem:[#allocation2 + $0x471] sm:$0xff] %vm1647_vm3, %v1629_v29  ;;  %v3000_v44 = vpop.permute.xlu1 %2999  ;;  %1928 = vst.msk [vmem:[#allocation2 + $0x461] sm:$0xff] %vm1647_vm3, %v1627_v33  ;;  %v1634_v41 = vmax.f32 %v1468_v25, 0.0  ;;  %v3807_v33 = vld [vmem:[#allocation2 + $0x2a9] sm:$0xff] }
 0x1f6   : > { %v5817_v60 = vld [vmem:[#allocation3 + $0xc8] sm:$0xff]  ;;  %3179 = vst.msk [vmem:[#allocation3 + $0x138] sm:$0xff] %vm3165_vm6, %v3000_v44  ;;  %4806 = vrot.lane.b32.xlu0 %v11388_v47, %s9966_s18  ;;  %9709 = vmatmul.mubr.msk.bf16.gmra.mrb[172].mxu0 %vm1647_vm3, %v5851_v53  ;;  %v3903_v44 = vpack.c.bf16 %v3808_v5, %v3807_v33  ;;  %v2019_v53 = vld [vmem:[#allocation2 + $0x2c0] sm:$0xff] }
 0x1f7   : > { %4457 = vst.msk [vmem:[#allocation3 + $0xf8] sm:$0xff] %vm2652_vm5, %v4276_v46  ;;  %6423 = vmatprep.mubr.bf16.mxu1 %v5817_v60  ;;  %2506 = vrot.lane.b32.xlu1 %v11322_v0, %s9965_s17  ;;  %v1459_v0 = vpop.f32.mrb[115].mxu0  ;;  %v2016_v46 = vld [vmem:[#allocation2 + $0x2a8] sm:$0xff]  ;;  %v2017_v60 = vld [vmem:[#allocation2 + $0x2b0] sm:$0xff]  ;;  %v2111_v25 = vpack.c.bf16 %v2019_v53, %v2018_v62 }
 0x1f8   : > { %1931 = vst.msk [vmem:[#allocation2 + $0x479] sm:$0xff] %vm1647_vm3, %v1630_v43  ;;  %6424 = vmatmul.mubr.bf16.gmra.mrb[24].mxu1 %v5816_v22  ;;  %1929 = vst.msk [vmem:[#allocation2 + $0x469] sm:$0xff] %vm1647_vm3, %v1628_v49  ;;  %v11403_v20 = vpop.permute.xlu0 %5302  ;;  %9712 = vmatprep.mubr.msk.bf16.mxu0 %vm1647_vm3, %v5854_v40  ;;  %v1460_v6 = vadd.f32 %v11201_v1, %v1459_v0  ;;  %v9658_v54 = vpop.f32.mrb[116].mxu0  ;;  %v3809_v43 = vld [vmem:[#allocation2 + $0x2b9] sm:$0xff]  ;;  %v2110_v40 = vpack.c.bf16 %v2017_v60, %v2016_v46  ;;  %v3810_v49 = vld [vmem:[#allocation2 + $0x2c1] sm:$0xff] }
 0x1f9   : > { %v3507_v63 = vpop.permute.xlu1 %3506  ;;  %1934 = vst.msk [vmem:[#allocation2 + $0x499] sm:$0xff] %vm1647_vm3, %v1633_v37  ;;  %1932 = vst.msk [vmem:[#allocation2 + $0x489] sm:$0xff] %vm1647_vm3, %v1631_v7  ;;  %v1481_v18 = vadd.f32 %v11201_v1, %v9658_v54  ;;  %v1472_v21 = vpop.f32.mrb[117].mxu0  ;;  %v3904_v57 = vpack.c.bf16 %v3810_v49, %v3809_v43  ;;  %v4552_v0 = vld [vmem:[#allocation2 + $0x1e0] sm:$0xff]  ;;  %v4067_v46 = vld [vmem:[#allocation2 + $0x2d2] sm:$0xff] }
 0x1fa   : > { %3689 = vst.msk [vmem:[#allocation3 + $0xf0] sm:$0xff] %vm3678_vm7, %v3507_v63  ;;  %4295 = vrot.lane.b32.xlu0 %v10934_v34, %s9965_s17  ;;  %v1632_v27 = vmax.f32 %v1460_v6, 0.0  ;;  %v1473_v26 = vadd.f32 %v11201_v1, %v1472_v21  ;;  %v9659_v45 = vpop.f32.mrb[118].mxu0  ;;  %v4553_v63 = vld [vmem:[#allocation2 + $0x1e8] sm:$0xff] }
 0x1fb   : > { %v5820_v9 = vld [vmem:[#allocation3 + $0xe0] sm:$0xff]  ;;  %3019 = vrot.lane.b32.xlu1 %v10925_v28, %s9966_s18  ;;  %1935 = vst.msk [vmem:[#allocation2 + $0x4a1] sm:$0xff] %vm1647_vm3, %v1634_v41  ;;  %5758 = vst.msk [vmem:[#allocation3 + $0x2e0] sm:$0xff] %vm1647_vm3, %v11409_v11  ;;  %v1637_v3 = vmax.f32 %v1481_v18, 0.0  ;;  %v1484_v56 = vadd.f32 %v11201_v1, %v9659_v45  ;;  %v1475_v36 = vpop.f32.mrb[119].mxu0  ;;  %v11457_v14 = vpack.c.bf16 %v4553_v63, %v4552_v0  ;;  %v5064_v21 = vld [vmem:[#allocation2 + $0x1e1] sm:$0xff] }
 0x1fc   : > { %6431 = vmatprep.mubr.bf16.mxu1 %v5820_v9  ;;  %v4282_v15 = vpop.permute.xlu0 %4281  ;;  %1933 = vst.msk [vmem:[#allocation2 + $0x491] sm:$0xff] %vm1647_vm3, %v1632_v27  ;;  %5759 = vst.msk [vmem:[#allocation3 + $0x2f8] sm:$0xff] %vm1647_vm3, %v11417_v13  ;;  %v1635_v29 = vmax.f32 %v1473_v26, 0.0  ;;  %v1476_v39 = vadd.f32 %v11201_v1, %v1475_v36  ;;  %v9662_v42 = vpop.f32.mrb[120].mxu0  ;;  %v5065_v26 = vld [vmem:[#allocation2 + $0x1e9] sm:$0xff]  ;;  %v5866_v45 = vld [vmem:[#allocation3 + $0x250] sm:$0xff] }
 0x1fd   : > { %v3509_v28 = vpop.permute.xlu1 %3508  ;;  %4460 = vst.msk [vmem:[#allocation3 + $0x140] sm:$0xff] %vm2652_vm5, %v4282_v15  ;;  %v1638_v52 = vmax.f32 %v1484_v56, 0.0  ;;  %v1488_v48 = vpop.f32.mrb[121].mxu0  ;;  %v11472_v33 = vpack.c.bf16 %v5065_v26, %v5064_v21  ;;  %v4070_v62 = vld [vmem:[#allocation2 + $0x2ea] sm:$0xff]  ;;  %v3812_v0 = vld [vmem:[#allocation2 + $0x2d9] sm:$0xff] }
 0x1fe   : > { %3690 = vst.msk [vmem:[#allocation3 + $0x108] sm:$0xff] %vm3678_vm7, %v3509_v28  ;;  %5322 = vrot.lane.b32.xlu0 %v11423_v23, %s9968_s8  ;;  %9713 = vmatmul.mubr.msk.bf16.gmra.mrb[176].mxu0 %vm1647_vm3, %v5857_v31  ;;  %v1636_v55 = vmax.f32 %v1476_v39, 0.0  ;;  %v1489_v58 = vadd.f32 %v11201_v1, %v1488_v48  ;;  %v9663_v7 = vpop.f32.mrb[122].mxu0  ;;  %v4555_v39 = vld [vmem:[#allocation2 + $0x1f8] sm:$0xff]  ;;  %v2022_v21 = vld [vmem:[#allocation2 + $0x2e0] sm:$0xff]  ;;  %v2023_v26 = vld [vmem:[#allocation2 + $0x2e8] sm:$0xff] }
 0x1ff   : > { %3526 = vrot.lane.b32.xlu1 %v11356_v8, %s9968_s8  ;;  %1938 = vst.msk [vmem:[#allocation2 + $0x4c1] sm:$0xff] %vm1647_vm3, %v1637_v3  ;;  %1936 = vst.msk [vmem:[#allocation2 + $0x4b1] sm:$0xff] %vm1647_vm3, %v1635_v29  ;;  %v1497_v8 = vadd.f32 %v11201_v1, %v9662_v42  ;;  %9716 = vmatprep.mubr.msk.bf16.mxu0 %vm1647_vm3, %v5860_v38  ;;  %v1500_v17 = vadd.f32 %v11201_v1, %v9663_v7  ;;  %v1491_v51 = vpop.f32.mrb[123].mxu0 }
 0x200   : > { %6432 = vmatmul.mubr.bf16.gmra.mrb[28].mxu1 %v5819_v35  ;;  %v4789_v37 = vpop.permute.xlu0 %4788  ;;  %1939 = vst.msk [vmem:[#allocation2 + $0x4c9] sm:$0xff] %vm1647_vm3, %v1638_v52  ;;  %3967 = vst.msk [vmem:[#allocation3 + $0x308] sm:$0xff] %vm1647_vm3, %v3903_v44  ;;  %v1639_v6 = vmax.f32 %v1489_v58, 0.0  ;;  %v1492_v9 = vadd.f32 %v11201_v1, %v1491_v51  ;;  %v9666_v41 = vpop.f32.mrb[124].mxu0  ;;  %v4554_v52 = vld [vmem:[#allocation2 + $0x1f0] sm:$0xff]  ;;  %v5070_v58 = vld [vmem:[#allocation2 + $0x219] sm:$0xff] }
 0x201   : > { %v2485_v22 = vpop.permute.xlu1 %2484  ;;  %4970 = vst.msk [vmem:[#allocation3 + $0xf8] sm:$0xff] %vm3165_vm6, %v4789_v37  ;;  %v1641_v61 = vmax.f32 %v1497_v8, 0.0  ;;  %v1642_v27 = vmax.f32 %v1500_v17, 0.0  ;;  %v1513_v18 = vadd.f32 %v11201_v1, %v9666_v41  ;;  %v1504_v15 = vpop.f32.mrb[125].mxu0  ;;  %v11487_v48 = vpack.c.bf16 %v4555_v39, %v4554_v52  ;;  %v5822_v53 = vld [vmem:[#allocation3 + $0xf0] sm:$0xff]  ;;  %v2021_v51 = vld [vmem:[#allocation2 + $0x2d8] sm:$0xff] }
 0x202   : > { %2665 = vst.msk [vmem:[#allocation3 + $0x120] sm:$0xff] %vm2652_vm5, %v2485_v22  ;;  %4301 = vrot.lane.b32.xlu0 %v10973_v24, %s9965_s17  ;;  %v1640_v28 = vmax.f32 %v1492_v9, 0.0  ;;  %v1505_v38 = vadd.f32 %v11201_v1, %v1504_v15  ;;  %v9667_v3 = vpop.f32.mrb[126].mxu0  ;;  %v3813_v9 = vld [vmem:[#allocation2 + $0x2e1] sm:$0xff]  ;;  %v3814_v41 = vld [vmem:[#allocation2 + $0x2e9] sm:$0xff] }
 0x203   : > { %2174 = vst.msk [vmem:[#allocation3 + $0x330] sm:$0xff] %vm1647_vm3, %v2110_v40  ;;  %3528 = vrot.lane.b32.xlu1 %v11388_v47, %s9968_s8  ;;  %1937 = vst.msk [vmem:[#allocation2 + $0x4b9] sm:$0xff] %vm1647_vm3, %v1636_v55  ;;  %v1645_v31 = vmax.f32 %v1513_v18, 0.0  ;;  %v1516_v56 = vadd.f32 %v11201_v1, %v9667_v3  ;;  %v1507_v35 = vpop.f32.mrb[127].mxu0  ;;  %v4069_v40 = vld [vmem:[#allocation2 + $0x2e2] sm:$0xff]  ;;  %v3906_v18 = vpack.c.bf16 %v3814_v41, %v3813_v9  ;;  %v4557_v3 = vld [vmem:[#allocation2 + $0x210] sm:$0xff] }
 0x204   : > { %3968 = vst.msk [vmem:[#allocation3 + $0x320] sm:$0xff] %vm1647_vm3, %v3904_v57  ;;  %2175 = vst.msk [vmem:[#allocation3 + $0x348] sm:$0xff] %vm1647_vm3, %v2111_v25  ;;  %v5301_v47 = vpop.permute.xlu0 %5300  ;;  %v1508_v5 = vadd.f32 %v11201_v1, %v1507_v35  ;;  %v5869_v1 = vld [vmem:[#allocation3 + $0x268] sm:$0xff]  ;;  %v11498_v22 = vpack.c.bf16 %v4070_v62, %v4069_v40  ;;  %v5071_v57 = vld [vmem:[#allocation2 + $0x221] sm:$0xff] }
 0x205   : > { %1942 = vst.msk [vmem:[#allocation2 + $0x4e9] sm:$0xff] %vm1647_vm3, %v1641_v61  ;;  %v2998_v54 = vpop.permute.xlu1 %2997  ;;  %1940 = vst.msk [vmem:[#allocation2 + $0x4d9] sm:$0xff] %vm1647_vm3, %v1639_v6  ;;  %v1646_v42 = vmax.f32 %v1516_v56, 0.0  ;;  %v3811_v25 = vld [vmem:[#allocation2 + $0x2d1] sm:$0xff]  ;;  %v4072_v40 = vld [vmem:[#allocation2 + $0x302] sm:$0xff] }
 0x206   : > { %3178 = vst.msk [vmem:[#allocation3 + $0x120] sm:$0xff] %vm3165_vm6, %v2998_v54  ;;  %4808 = vrot.lane.b32.xlu0 %v11457_v14, %s9966_s18  ;;  %9717 = vmatmul.mubr.msk.bf16.gmra.mrb[180].mxu0 %vm1647_vm3, %v5863_v4  ;;  %v1644_v44 = vmax.f32 %v1508_v5, 0.0  ;;  %v3905_v7 = vpack.c.bf16 %v3812_v0, %v3811_v25  ;;  %v2020_v6 = vld [vmem:[#allocation2 + $0x2d0] sm:$0xff]  ;;  %v11513_v4 = vpack.c.bf16 %v5071_v57, %v5070_v58  ;;  %v5825_v15 = vld [vmem:[#allocation3 + $0x108] sm:$0xff] }
 0x207   : > { %5482 = vst.msk [vmem:[#allocation3 + $0xf8] sm:$0xff] %vm3678_vm7, %v5301_v47  ;;  %2504 = vrot.lane.b32.xlu1 %v11372_v32, %s9965_s17  ;;  %9720 = vmatprep.mubr.msk.bf16.mxu0 %vm1647_vm3, %v5866_v45  ;;  %v1643_v32 = vmax.f32 %v1505_v38, 0.0  ;;  %v5878_v45 = vld [vmem:[#allocation3 + $0x2b0] sm:$0xff]  ;;  %v5069_v5 = vld [vmem:[#allocation2 + $0x211] sm:$0xff]  ;;  %v5075_v25 = vld [vmem:[#allocation2 + $0x249] sm:$0xff] }
 0x208   : > { %1943 = vst.msk [vmem:[#allocation2 + $0x4f1] sm:$0xff] %vm1647_vm3, %v1642_v27  ;;  %1941 = vst.msk [vmem:[#allocation2 + $0x4e1] sm:$0xff] %vm1647_vm3, %v1640_v28  ;;  %v4791_v36 = vpop.permute.xlu0 %4790  ;;  %v5875_v27 = vld [vmem:[#allocation3 + $0x298] sm:$0xff]  ;;  %v2113_v28 = vpack.c.bf16 %v2023_v26, %v2022_v21  ;;  %v5884_v52 = vld [vmem:[#allocation3 + $0x2e0] sm:$0xff] }
 0x209   : > { %v2491_v29 = vpop.permute.xlu1 %2490  ;;  %1946 = vst.msk [vmem:[#allocation2 + $0x511] sm:$0xff] %vm1647_vm3, %v1645_v31  ;;  %1944 = vst.msk [vmem:[#allocation2 + $0x501] sm:$0xff] %vm1647_vm3, %v1643_v32  ;;  %v5068_v32 = vld [vmem:[#allocation2 + $0x209] sm:$0xff]  ;;  %v3818_v41 = vld [vmem:[#allocation2 + $0x311] sm:$0xff] }
 0x20a   : > { %2668 = vst.msk [vmem:[#allocation3 + $0x168] sm:$0xff] %vm2652_vm5, %v2491_v29  ;;  %5320 = vrot.lane.b32.xlu0 %v11472_v33, %s9968_s8 }
 0x20b   : > { %4971 = vst.msk [vmem:[#allocation3 + $0x110] sm:$0xff] %vm3165_vm6, %v4791_v36  ;;  %3017 = vrot.lane.b32.xlu1 %v10934_v34, %s9966_s18  ;;  %v5872_v34 = vld [vmem:[#allocation3 + $0x280] sm:$0xff]  ;;  %v5881_v36 = vld [vmem:[#allocation3 + $0x2c8] sm:$0xff] }
 0x20c   : > { %5483 = vst.msk [vmem:[#allocation3 + $0x110] sm:$0xff] %vm3678_vm7, %v11403_v20  ;;  %v4280_v43 = vpop.permute.xlu0 %4279  ;;  %v4068_v20 = vld [vmem:[#allocation2 + $0x2da] sm:$0xff] }
 0x20d   : > { %1947 = vst.msk [vmem:[#allocation2 + $0x519] sm:$0xff] %vm1647_vm3, %v1646_v42  ;;  %v3004_v60 = vpop.permute.xlu1 %3003  ;;  %1945 = vst.msk [vmem:[#allocation2 + $0x509] sm:$0xff] %vm1647_vm3, %v1644_v44  ;;  %v11492_v49 = vpack.c.bf16 %v4068_v20, %v4067_v46  ;;  %v11543_v44 = vpack.c.bf16 %v5069_v5, %v5068_v32  ;;  %v4559_v46 = vld [vmem:[#allocation2 + $0x220] sm:$0xff] }
 0x20e   : > { %v5823_v8 = vld [vmem:[#allocation3 + $0xf8] sm:$0xff]  ;;  %3181 = vst.msk [vmem:[#allocation3 + $0x168] sm:$0xff] %vm3165_vm6, %v3004_v60  ;;  %4810 = vrot.lane.b32.xlu0 %v11487_v48, %s9966_s18  ;;  %9721 = vmatmul.mubr.msk.bf16.gmra.mrb[184].mxu0 %vm1647_vm3, %v5869_v1  ;;  %v4558_v1 = vld [vmem:[#allocation2 + $0x218] sm:$0xff] }
 0x20f   : > { %4459 = vst.msk [vmem:[#allocation3 + $0x128] sm:$0xff] %vm2652_vm5, %v4280_v43  ;;  %6439 = vmatprep.mubr.bf16.mxu1 %v5823_v8  ;;  %2510 = vrot.lane.b32.xlu1 %v11423_v23, %s9965_s17  ;;  %v4071_v60 = vld [vmem:[#allocation2 + $0x2fa] sm:$0xff]  ;;  %v4663_v20 = vpack.c.bf16 %v4559_v46, %v4558_v1  ;;  %v5609_v1 = vld [vmem:[#allocation2 + $0x32a] sm:$0xff] }
 0x210   : > { %6440 = vmatmul.mubr.bf16.gmra.mrb[32].mxu1 %v5822_v53  ;;  %5760 = vst.msk [vmem:[#allocation3 + $0x310] sm:$0xff] %vm1647_vm3, %v11492_v49  ;;  %v11503_v55 = vpop.permute.xlu0 %5306  ;;  %9724 = vmatprep.mubr.msk.bf16.mxu0 %vm1647_vm3, %v5872_v34  ;;  %5761 = vst.msk [vmem:[#allocation3 + $0x328] sm:$0xff] %vm1647_vm3, %v11498_v22  ;;  %v5606_v34 = vld [vmem:[#allocation2 + $0x30a] sm:$0xff]  ;;  %v11556_v53 = vpack.c.bf16 %v4072_v40, %v4071_v60 }
 0x211   : > { %v3511_v37 = vpop.permute.xlu1 %3510  ;;  %3969 = vst.msk [vmem:[#allocation3 + $0x338] sm:$0xff] %vm1647_vm3, %v3905_v7  ;;  %3970 = vst.msk [vmem:[#allocation3 + $0x350] sm:$0xff] %vm1647_vm3, %v3906_v18 }
 0x212   : > { %3691 = vst.msk [vmem:[#allocation3 + $0x120] sm:$0xff] %vm3678_vm7, %v3511_v37  ;;  %4299 = vrot.lane.b32.xlu0 %v10966_v16, %s9965_s17 }
 0x213   : > { %v5826_v23 = vld [vmem:[#allocation3 + $0x110] sm:$0xff]  ;;  %3023 = vrot.lane.b32.xlu1 %v10973_v24, %s9966_s18  ;;  %v2112_v24 = vpack.c.bf16 %v2021_v51, %v2020_v6  ;;  %2177 = vst.msk [vmem:[#allocation3 + $0x378] sm:$0xff] %vm1647_vm3, %v2113_v28  ;;  %5762 = vst.msk [vmem:[#allocation3 + $0x340] sm:$0xff] %vm1647_vm3, %v11556_v53  ;;  %v2024_v6 = vld [vmem:[#allocation2 + $0x2f8] sm:$0xff] }
 0x214   : > { %v5658_v63 = vld [vmem:[#allocation2 + $0x512] sm:$0xff]  ;;  %v5659_v61 = vld [vmem:[#allocation2 + $0x51a] sm:$0xff]  ;;  %6447 = vmatprep.mubr.bf16.mxu1 %v5826_v23  ;;  %v4286_v47 = vpop.permute.xlu0 %4285  ;;  %v3817_v51 = vld [vmem:[#allocation2 + $0x309] sm:$0xff] }
 0x215   : > { %v5725_v17 = vpack.c.bf16 %v5659_v61, %v5658_v63  ;;  %v3513_v54 = vpop.permute.xlu1 %3512  ;;  %4462 = vst.msk [vmem:[#allocation3 + $0x170] sm:$0xff] %vm2652_vm5, %v4286_v47  ;;  %v5074_v23 = vld [vmem:[#allocation2 + $0x241] sm:$0xff]  ;;  %v3815_v63 = vld [vmem:[#allocation2 + $0x2f9] sm:$0xff]  ;;  %v2027_v47 = vld [vmem:[#allocation2 + $0x310] sm:$0xff]  ;;  %v3908_v21 = vpack.c.bf16 %v3818_v41, %v3817_v51 }
 0x216   : > { %3692 = vst.msk [vmem:[#allocation3 + $0x138] sm:$0xff] %vm3678_vm7, %v3513_v54  ;;  %5326 = vrot.lane.b32.xlu0 %v11513_v4, %s9968_s8  ;;  %9725 = vmatmul.mubr.msk.bf16.gmra.mrb[188].mxu0 %vm1647_vm3, %v5875_v27  ;;  %v3816_v61 = vld [vmem:[#allocation2 + $0x301] sm:$0xff] }
 0x217   : > { %5789 = vst.msk [vmem:[#allocation3 + $0x5c8] sm:$0xff] %vm1647_vm3, %v5725_v17  ;;  %3530 = vrot.lane.b32.xlu1 %v11457_v14, %s9968_s8  ;;  %2176 = vst.msk [vmem:[#allocation3 + $0x360] sm:$0xff] %vm1647_vm3, %v2112_v24  ;;  %9728 = vmatprep.mubr.msk.bf16.mxu0 %vm1647_vm3, %v5878_v45  ;;  %v4556_v14 = vld [vmem:[#allocation2 + $0x208] sm:$0xff]  ;;  %v5890_v62 = vld [vmem:[#allocation3 + $0x310] sm:$0xff]  ;;  %v3907_v7 = vpack.c.bf16 %v3816_v61, %v3815_v63  ;;  %v5177_v24 = vpack.c.bf16 %v5075_v25, %v5074_v23 }
 0x218   : > { %6448 = vmatmul.mubr.bf16.gmra.mrb[36].mxu1 %v5825_v15  ;;  %v4793_v38 = vpop.permute.xlu0 %4792  ;;  %v11534_v29 = vpack.c.bf16 %v4557_v3, %v4556_v14  ;;  %v2025_v17 = vld [vmem:[#allocation2 + $0x300] sm:$0xff]  ;;  %v2026_v54 = vld [vmem:[#allocation2 + $0x308] sm:$0xff]  ;;  %v5893_v18 = vld [vmem:[#allocation3 + $0x328] sm:$0xff]  ;;  %3972 = vst.msk [vmem:[#allocation3 + $0x380] sm:$0xff] %vm1647_vm3, %v3908_v21 }
 0x219   : > { %v2489_v31 = vpop.permute.xlu1 %2488  ;;  %4972 = vst.msk [vmem:[#allocation3 + $0x128] sm:$0xff] %vm3165_vm6, %v4793_v38  ;;  %v5828_v37 = vld [vmem:[#allocation3 + $0x120] sm:$0xff]  ;;  %v2114_v9 = vpack.c.bf16 %v2025_v17, %v2024_v6  ;;  %v4561_v38 = vld [vmem:[#allocation2 + $0x238] sm:$0xff]  ;;  %v2028_v25 = vld [vmem:[#allocation2 + $0x320] sm:$0xff] }
 0x21a   : > { %2667 = vst.msk [vmem:[#allocation3 + $0x150] sm:$0xff] %vm2652_vm5, %v2489_v31  ;;  %4305 = vrot.lane.b32.xlu0 %v11029_v30, %s9965_s17  ;;  %v5896_v45 = vld [vmem:[#allocation3 + $0x340] sm:$0xff]  ;;  %v2029_v63 = vld [vmem:[#allocation2 + $0x328] sm:$0xff] }
 0x21b   : > { %3532 = vrot.lane.b32.xlu1 %v11487_v48, %s9968_s8  ;;  %3971 = vst.msk [vmem:[#allocation3 + $0x368] sm:$0xff] %vm1647_vm3, %v3907_v7  ;;  %2178 = vst.msk [vmem:[#allocation3 + $0x390] sm:$0xff] %vm1647_vm3, %v2114_v9  ;;  %v4560_v31 = vld [vmem:[#allocation2 + $0x230] sm:$0xff]  ;;  %v3822_v7 = vld [vmem:[#allocation2 + $0x339] sm:$0xff]  ;;  %v2116_v9 = vpack.c.bf16 %v2029_v63, %v2028_v25 }
 0x21c   : > { %v5305_v35 = vpop.permute.xlu0 %5304  ;;  %v3820_v23 = vld [vmem:[#allocation2 + $0x329] sm:$0xff]  ;;  %v3821_v61 = vld [vmem:[#allocation2 + $0x331] sm:$0xff]  ;;  %v5083_v25 = vld [vmem:[#allocation2 + $0x299] sm:$0xff] }
 0x21d   : > { %v3002_v56 = vpop.permute.xlu1 %3001  ;;  %5484 = vst.msk [vmem:[#allocation3 + $0x128] sm:$0xff] %vm3678_vm7, %v5305_v35  ;;  %v5831_v26 = vld [vmem:[#allocation3 + $0x138] sm:$0xff]  ;;  %v3910_v41 = vpack.c.bf16 %v3822_v7, %v3821_v61 }
 0x21e   : > { %3180 = vst.msk [vmem:[#allocation3 + $0x150] sm:$0xff] %vm3165_vm6, %v3002_v56  ;;  %4812 = vrot.lane.b32.xlu0 %v11534_v29, %s9966_s18  ;;  %9729 = vmatmul.mubr.msk.bf16.gmra.mrb[192].mxu0 %vm1647_vm3, %v5881_v36  ;;  %v11592_v56 = vpack.c.bf16 %v4561_v38, %v4560_v31  ;;  %v5073_v36 = vld [vmem:[#allocation2 + $0x239] sm:$0xff]  ;;  %v3823_v7 = vld [vmem:[#allocation2 + $0x349] sm:$0xff] }
 0x21f   : > { %2508 = vrot.lane.b32.xlu1 %v11472_v33, %s9965_s17  ;;  %9732 = vmatprep.mubr.msk.bf16.mxu0 %vm1647_vm3, %v5884_v52  ;;  %v5887_v33 = vld [vmem:[#allocation3 + $0x2f8] sm:$0xff]  ;;  %2180 = vst.msk [vmem:[#allocation3 + $0x3c0] sm:$0xff] %vm1647_vm3, %v2116_v9  ;;  %3974 = vst.msk [vmem:[#allocation3 + $0x3b0] sm:$0xff] %vm1647_vm3, %v3910_v41 }
 0x220   : > { %v4795_v42 = vpop.permute.xlu0 %4794 }
 0x221   : > { %v2495_v39 = vpop.permute.xlu1 %2494  ;;  %4973 = vst.msk [vmem:[#allocation3 + $0x140] sm:$0xff] %vm3165_vm6, %v4795_v42  ;;  %v4563_v42 = vld [vmem:[#allocation2 + $0x248] sm:$0xff] }
 0x222   : > { %2670 = vst.msk [vmem:[#allocation3 + $0x198] sm:$0xff] %vm2652_vm5, %v2495_v39  ;;  %5324 = vrot.lane.b32.xlu0 %v11543_v44, %s9968_s8  ;;  %v4562_v39 = vld [vmem:[#allocation2 + $0x240] sm:$0xff] }
 0x223   : > { %5485 = vst.msk [vmem:[#allocation3 + $0x140] sm:$0xff] %vm3678_vm7, %v11503_v55  ;;  %3021 = vrot.lane.b32.xlu1 %v10966_v16, %s9966_s18  ;;  %v5607_v16 = vld [vmem:[#allocation2 + $0x312] sm:$0xff] }
 0x224   : > { %v4284_v8 = vpop.permute.xlu0 %4283  ;;  %v5829_v48 = vld [vmem:[#allocation3 + $0x128] sm:$0xff]  ;;  %v11561_v55 = vpack.c.bf16 %v5607_v16, %v5606_v34 }
 0x225   : > { %v3008_v43 = vpop.permute.xlu1 %3007  ;;  %4461 = vst.msk [vmem:[#allocation3 + $0x158] sm:$0xff] %vm2652_vm5, %v4284_v8  ;;  %6455 = vmatprep.mubr.bf16.mxu1 %v5829_v48  ;;  %v5610_v48 = vld [vmem:[#allocation2 + $0x332] sm:$0xff] }
 0x226   : > { %3183 = vst.msk [vmem:[#allocation3 + $0x198] sm:$0xff] %vm3165_vm6, %v3008_v43  ;;  %4814 = vrot.lane.b32.xlu0 %v4663_v20, %s9966_s18  ;;  %6456 = vmatmul.mubr.bf16.gmra.mrb[40].mxu1 %v5828_v37  ;;  %v4665_v43 = vpack.c.bf16 %v4563_v42, %v4562_v39  ;;  %v5078_v37 = vld [vmem:[#allocation2 + $0x269] sm:$0xff] }
 0x227   : > { %2514 = vrot.lane.b32.xlu1 %v11513_v4, %s9965_s17  ;;  %9733 = vmatmul.mubr.msk.bf16.gmra.mrb[196].mxu0 %vm1647_vm3, %v5887_v33  ;;  %5763 = vst.msk [vmem:[#allocation3 + $0x358] sm:$0xff] %vm1647_vm3, %v11561_v55 }
 0x228   : > { %v11566_v57 = vpop.permute.xlu0 %5310  ;;  %9736 = vmatprep.mubr.msk.bf16.mxu0 %vm1647_vm3, %v5890_v62 }
 0x229   : > { %v3515_v58 = vpop.permute.xlu1 %3514 }
 0x22a   : > { %3693 = vst.msk [vmem:[#allocation3 + $0x150] sm:$0xff] %vm3678_vm7, %v3515_v58  ;;  %v5832_v0 = vld [vmem:[#allocation3 + $0x140] sm:$0xff]  ;;  %4303 = vrot.lane.b32.xlu0 %v11020_v19, %s9965_s17 }
 0x22b   : > { %3027 = vrot.lane.b32.xlu1 %v11029_v30, %s9966_s18  ;;  %6463 = vmatprep.mubr.bf16.mxu1 %v5832_v0  ;;  %v2115_v30 = vpack.c.bf16 %v2027_v47, %v2026_v54  ;;  %v5079_v58 = vld [vmem:[#allocation2 + $0x271] sm:$0xff] }
 0x22c   : > { %v4290_v27 = vpop.permute.xlu0 %4289  ;;  %v11630_v51 = vpack.c.bf16 %v5079_v58, %v5078_v37  ;;  %v2030_v54 = vld [vmem:[#allocation2 + $0x330] sm:$0xff]  ;;  %v2031_v47 = vld [vmem:[#allocation2 + $0x338] sm:$0xff] }
 0x22d   : > { %v3517_v4 = vpop.permute.xlu1 %3516  ;;  %4464 = vst.msk [vmem:[#allocation3 + $0x1a0] sm:$0xff] %vm2652_vm5, %v4290_v27  ;;  %v5082_v37 = vld [vmem:[#allocation2 + $0x291] sm:$0xff] }
 0x22e   : > { %3694 = vst.msk [vmem:[#allocation3 + $0x168] sm:$0xff] %vm3678_vm7, %v3517_v4  ;;  %5330 = vrot.lane.b32.xlu0 %v5177_v24, %s9968_s8  ;;  %6464 = vmatmul.mubr.bf16.gmra.mrb[44].mxu1 %v5831_v26  ;;  %v5899_v35 = vld [vmem:[#allocation3 + $0x358] sm:$0xff]  ;;  %v4058_v4 = vld [vmem:[#allocation2 + $0x272] sm:$0xff]  ;;  %v11690_v41 = vpack.c.bf16 %v5083_v25, %v5082_v37 }
 0x22f   : > { %3534 = vrot.lane.b32.xlu1 %v11534_v29, %s9968_s8  ;;  %2179 = vst.msk [vmem:[#allocation3 + $0x3a8] sm:$0xff] %vm1647_vm3, %v2115_v30  ;;  %9737 = vmatmul.mubr.msk.bf16.gmra.mrb[200].mxu0 %vm1647_vm3, %v5893_v18  ;;  %v5072_v29 = vld [vmem:[#allocation2 + $0x231] sm:$0xff] }
 0x230   : > { %v4797_v15 = vpop.permute.xlu0 %4796  ;;  %9740 = vmatprep.mubr.msk.bf16.mxu0 %vm1647_vm3, %v5896_v45  ;;  %v11601_v52 = vpack.c.bf16 %v5073_v36, %v5072_v29  ;;  %v5613_v29 = vld [vmem:[#allocation2 + $0x352] sm:$0xff]  ;;  %v5614_v36 = vld [vmem:[#allocation2 + $0x35a] sm:$0xff] }
 0x231   : > { %v2493_v28 = vpop.permute.xlu1 %2492  ;;  %4974 = vst.msk [vmem:[#allocation3 + $0x158] sm:$0xff] %vm3165_vm6, %v4797_v15  ;;  %v4565_v15 = vld [vmem:[#allocation2 + $0x260] sm:$0xff]  ;;  %v4570_v37 = vld [vmem:[#allocation2 + $0x290] sm:$0xff] }
 0x232   : > { %2669 = vst.msk [vmem:[#allocation3 + $0x180] sm:$0xff] %vm2652_vm5, %v2493_v28  ;;  %4309 = vrot.lane.b32.xlu0 %v11112_v59, %s9965_s17  ;;  %v4564_v28 = vld [vmem:[#allocation2 + $0x258] sm:$0xff] }
 0x233   : > { %3536 = vrot.lane.b32.xlu1 %v4663_v20, %s9968_s8  ;;  %v5611_v20 = vld [vmem:[#allocation2 + $0x33a] sm:$0xff] }
 0x234   : > { %v5309_v3 = vpop.permute.xlu0 %5308  ;;  %v11615_v40 = vpack.c.bf16 %v5611_v20, %v5610_v48  ;;  %v5616_v20 = vld [vmem:[#allocation2 + $0x372] sm:$0xff] }
 0x235   : > { %v3006_v14 = vpop.permute.xlu1 %3005  ;;  %5486 = vst.msk [vmem:[#allocation3 + $0x158] sm:$0xff] %vm3678_vm7, %v5309_v3  ;;  %v5837_v18 = vld [vmem:[#allocation3 + $0x168] sm:$0xff] }
 0x236   : > { %3182 = vst.msk [vmem:[#allocation3 + $0x180] sm:$0xff] %vm3165_vm6, %v3006_v14  ;;  %4816 = vrot.lane.b32.xlu0 %v11592_v56, %s9966_s18  ;;  %v4666_v14 = vpack.c.bf16 %v4565_v15, %v4564_v28  ;;  %v5076_v3 = vld [vmem:[#allocation2 + $0x259] sm:$0xff] }
 0x237   : > { %2512 = vrot.lane.b32.xlu1 %v11543_v44, %s9965_s17  ;;  %9741 = vmatmul.mubr.msk.bf16.gmra.mrb[204].mxu0 %vm1647_vm3, %v5899_v35  ;;  %v5608_v44 = vld [vmem:[#allocation2 + $0x322] sm:$0xff]  ;;  %5765 = vst.msk [vmem:[#allocation3 + $0x388] sm:$0xff] %vm1647_vm3, %v11615_v40  ;;  %v5612_v35 = vld [vmem:[#allocation2 + $0x34a] sm:$0xff]  ;;  %v5620_v15 = vld [vmem:[#allocation2 + $0x39a] sm:$0xff] }
 0x238   : > { %v4799_v5 = vpop.permute.xlu0 %4798  ;;  %v11611_v8 = vpack.c.bf16 %v5609_v1, %v5608_v44  ;;  %v11656_v42 = vpack.c.bf16 %v5613_v29, %v5612_v35  ;;  %v5615_v44 = vld [vmem:[#allocation2 + $0x362] sm:$0xff]  ;;  %v5623_v35 = vld [vmem:[#allocation2 + $0x3b2] sm:$0xff] }
 0x239   : > { %v2499_v32 = vpop.permute.xlu1 %2498  ;;  %4975 = vst.msk [vmem:[#allocation3 + $0x170] sm:$0xff] %vm3165_vm6, %v4799_v5  ;;  %v4566_v1 = vld [vmem:[#allocation2 + $0x268] sm:$0xff]  ;;  %v4568_v29 = vld [vmem:[#allocation2 + $0x280] sm:$0xff] }
 0x23a   : > { %2672 = vst.msk [vmem:[#allocation3 + $0x1c8] sm:$0xff] %vm2652_vm5, %v2499_v32  ;;  %5328 = vrot.lane.b32.xlu0 %v11601_v52, %s9968_s8 }
 0x23b   : > { %5487 = vst.msk [vmem:[#allocation3 + $0x170] sm:$0xff] %vm3678_vm7, %v11566_v57  ;;  %3025 = vrot.lane.b32.xlu1 %v11020_v19, %s9966_s18  ;;  %v5834_v19 = vld [vmem:[#allocation3 + $0x150] sm:$0xff] }
 0x23c   : > { %v4288_v33 = vpop.permute.xlu0 %4287  ;;  %v5835_v60 = vld [vmem:[#allocation3 + $0x158] sm:$0xff]  ;;  %5764 = vst.msk [vmem:[#allocation3 + $0x370] sm:$0xff] %vm1647_vm3, %v11611_v8  ;;  %5766 = vst.msk [vmem:[#allocation3 + $0x3a0] sm:$0xff] %vm1647_vm3, %v11656_v42 }
 0x23d   : > { %v3012_v46 = vpop.permute.xlu1 %3011  ;;  %4463 = vst.msk [vmem:[#allocation3 + $0x188] sm:$0xff] %vm2652_vm5, %v4288_v33  ;;  %6471 = vmatprep.mubr.bf16.mxu1 %v5835_v60  ;;  %v3819_v57 = vld [vmem:[#allocation2 + $0x321] sm:$0xff]  ;;  %v11660_v33 = vpack.c.bf16 %v5615_v44, %v5614_v36 }
 0x23e   : > { %3185 = vst.msk [vmem:[#allocation3 + $0x1c8] sm:$0xff] %vm3165_vm6, %v3012_v46  ;;  %4818 = vrot.lane.b32.xlu0 %v4665_v43, %s9966_s18  ;;  %6472 = vmatmul.mubr.bf16.gmra.mrb[48].mxu1 %v5834_v19  ;;  %v3909_v0 = vpack.c.bf16 %v3820_v23, %v3819_v57  ;;  %v5905_v21 = vld [vmem:[#allocation3 + $0x388] sm:$0xff]  ;;  %v4567_v46 = vld [vmem:[#allocation2 + $0x270] sm:$0xff]  ;;  %v4569_v36 = vld [vmem:[#allocation2 + $0x288] sm:$0xff] }
 0x23f   : > { %2518 = vrot.lane.b32.xlu1 %v5177_v24, %s9965_s17  ;;  %v2117_v24 = vpack.c.bf16 %v2031_v47, %v2030_v54  ;;  %5767 = vst.msk [vmem:[#allocation3 + $0x3b8] sm:$0xff] %vm1647_vm3, %v11660_v33  ;;  %v4667_v48 = vpack.c.bf16 %v4567_v46, %v4566_v1  ;;  %v5617_v19 = vld [vmem:[#allocation2 + $0x37a] sm:$0xff]  ;;  %v5619_v57 = vld [vmem:[#allocation2 + $0x38a] sm:$0xff]  ;;  %v4668_v46 = vpack.c.bf16 %v4569_v36, %v4568_v29 }
 0x240   : > { %v11623_v62 = vpop.permute.xlu0 %5314  ;;  %3973 = vst.msk [vmem:[#allocation3 + $0x398] sm:$0xff] %vm1647_vm3, %v3909_v0  ;;  %v11677_v58 = vpack.c.bf16 %v5617_v19, %v5616_v20  ;;  %v2032_v47 = vld [vmem:[#allocation2 + $0x348] sm:$0xff] }
 0x241   : > { %v3519_v34 = vpop.permute.xlu1 %3518  ;;  %2181 = vst.msk [vmem:[#allocation3 + $0x3d8] sm:$0xff] %vm1647_vm3, %v2117_v24  ;;  %v3826_v24 = vld [vmem:[#allocation2 + $0x361] sm:$0xff] }
 0x242   : > { %3695 = vst.msk [vmem:[#allocation3 + $0x180] sm:$0xff] %vm3678_vm7, %v3519_v34  ;;  %v5838_v16 = vld [vmem:[#allocation3 + $0x170] sm:$0xff]  ;;  %4307 = vrot.lane.b32.xlu0 %v11104_v50, %s9965_s17 }
 0x243   : > { %3031 = vrot.lane.b32.xlu1 %v11112_v59, %s9966_s18  ;;  %6479 = vmatprep.mubr.bf16.mxu1 %v5838_v16  ;;  %v4057_v59 = vld [vmem:[#allocation2 + $0x26a] sm:$0xff]  ;;  %v5902_v27 = vld [vmem:[#allocation3 + $0x370] sm:$0xff]  ;;  %5768 = vst.msk [vmem:[#allocation3 + $0x3d0] sm:$0xff] %vm1647_vm3, %v11677_v58 }
 0x244   : > { %v4294_v17 = vpop.permute.xlu0 %4293  ;;  %9744 = vmatprep.mubr.msk.bf16.mxu0 %vm1647_vm3, %v5902_v27  ;;  %v11643_v45 = vpack.c.bf16 %v4058_v4, %v4057_v59  ;;  %v5618_v34 = vld [vmem:[#allocation2 + $0x382] sm:$0xff]  ;;  %v5908_v0 = vld [vmem:[#allocation3 + $0x3a0] sm:$0xff]  ;;  %v3825_v4 = vld [vmem:[#allocation2 + $0x359] sm:$0xff] }
 0x245   : > { %v3521_v6 = vpop.permute.xlu1 %3520  ;;  %4466 = vst.msk [vmem:[#allocation3 + $0x1d0] sm:$0xff] %vm2652_vm5, %v4294_v17  ;;  %9745 = vmatmul.mubr.msk.bf16.gmra.mrb[208].mxu0 %vm1647_vm3, %v5905_v21  ;;  %v11680_v63 = vpack.c.bf16 %v5619_v57, %v5618_v34  ;;  %v2033_v59 = vld [vmem:[#allocation2 + $0x350] sm:$0xff]  ;;  %v2035_v21 = vld [vmem:[#allocation2 + $0x360] sm:$0xff]  ;;  %v4571_v57 = vld [vmem:[#allocation2 + $0x298] sm:$0xff] }
 0x246   : > { %3696 = vst.msk [vmem:[#allocation3 + $0x198] sm:$0xff] %vm3678_vm7, %v3521_v6  ;;  %5334 = vrot.lane.b32.xlu0 %v11630_v51, %s9968_s8  ;;  %6480 = vmatmul.mubr.bf16.gmra.mrb[52].mxu1 %v5837_v18  ;;  %v5911_v61 = vld [vmem:[#allocation3 + $0x3b8] sm:$0xff]  ;;  %v3824_v6 = vld [vmem:[#allocation2 + $0x351] sm:$0xff]  ;;  %v2118_v27 = vpack.c.bf16 %v2033_v59, %v2032_v47 }
 0x247   : > { %3538 = vrot.lane.b32.xlu1 %v11592_v56, %s9968_s8  ;;  %v5077_v56 = vld [vmem:[#allocation2 + $0x261] sm:$0xff]  ;;  %9748 = vmatprep.mubr.msk.bf16.mxu0 %vm1647_vm3, %v5908_v0  ;;  %5769 = vst.msk [vmem:[#allocation3 + $0x3e8] sm:$0xff] %vm1647_vm3, %v11680_v63  ;;  %v3911_v54 = vpack.c.bf16 %v3824_v6, %v3823_v7  ;;  %v2034_v18 = vld [vmem:[#allocation2 + $0x358] sm:$0xff]  ;;  %v4669_v6 = vpack.c.bf16 %v4571_v57, %v4570_v37  ;;  %v5084_v37 = vld [vmem:[#allocation2 + $0x2a9] sm:$0xff] }
 0x248   : > { %v4801_v26 = vpop.permute.xlu0 %4800  ;;  %v5178_v39 = vpack.c.bf16 %v5077_v56, %v5076_v3  ;;  %v2119_v28 = vpack.c.bf16 %v2035_v21, %v2034_v18  ;;  %2182 = vst.msk [vmem:[#allocation3 + $0x3f0] sm:$0xff] %vm1647_vm3, %v2118_v27  ;;  %v5087_v21 = vld [vmem:[#allocation2 + $0x2c1] sm:$0xff] }
 0x249   : > { %v2497_v30 = vpop.permute.xlu1 %2496  ;;  %4976 = vst.msk [vmem:[#allocation3 + $0x188] sm:$0xff] %vm3165_vm6, %v4801_v26  ;;  %v3912_v26 = vpack.c.bf16 %v3826_v24, %v3825_v4  ;;  %v5086_v4 = vld [vmem:[#allocation2 + $0x2b9] sm:$0xff]  ;;  %v5631_v24 = vld [vmem:[#allocation2 + $0x402] sm:$0xff] }
 0x24a   : > { %2671 = vst.msk [vmem:[#allocation3 + $0x1b0] sm:$0xff] %vm2652_vm5, %v2497_v30  ;;  %4313 = vrot.lane.b32.xlu0 %v11643_v45, %s9965_s17  ;;  %v11757_v36 = vpack.c.bf16 %v5087_v21, %v5086_v4  ;;  %v4574_v21 = vld [vmem:[#allocation2 + $0x2b8] sm:$0xff] }
 0x24b   : > { %3540 = vrot.lane.b32.xlu1 %v4665_v43, %s9968_s8  ;;  %3975 = vst.msk [vmem:[#allocation3 + $0x3c8] sm:$0xff] %vm1647_vm3, %v3911_v54  ;;  %3976 = vst.msk [vmem:[#allocation3 + $0x3e0] sm:$0xff] %vm1647_vm3, %v3912_v26  ;;  %v5630_v54 = vld [vmem:[#allocation2 + $0x3fa] sm:$0xff] }
 0x24c   : > { %v5313_v38 = vpop.permute.xlu0 %5312  ;;  %2183 = vst.msk [vmem:[#allocation3 + $0x408] sm:$0xff] %vm1647_vm3, %v2119_v28  ;;  %v5711_v26 = vpack.c.bf16 %v5631_v24, %v5630_v54 }
 0x24d   : > { %v3010_v31 = vpop.permute.xlu1 %3009  ;;  %5488 = vst.msk [vmem:[#allocation3 + $0x188] sm:$0xff] %vm3678_vm7, %v5313_v38  ;;  %9749 = vmatmul.mubr.msk.bf16.gmra.mrb[212].mxu0 %vm1647_vm3, %v5911_v61  ;;  %v5843_v30 = vld [vmem:[#allocation3 + $0x198] sm:$0xff] }
 0x24e   : > { %3184 = vst.msk [vmem:[#allocation3 + $0x1b0] sm:$0xff] %vm3165_vm6, %v3010_v31  ;;  %4820 = vrot.lane.b32.xlu0 %v4666_v14, %s9966_s18  ;;  %v5621_v31 = vld [vmem:[#allocation2 + $0x3a2] sm:$0xff]  ;;  %v5622_v38 = vld [vmem:[#allocation2 + $0x3aa] sm:$0xff] }
 0x24f   : > { %2516 = vrot.lane.b32.xlu1 %v11601_v52, %s9965_s17  ;;  %v11700_v56 = vpack.c.bf16 %v5621_v31, %v5620_v15  ;;  %v4572_v31 = vld [vmem:[#allocation2 + $0x2a8] sm:$0xff]  ;;  %5775 = vst.msk [vmem:[#allocation3 + $0x478] sm:$0xff] %vm1647_vm3, %v5711_v26  ;;  %v11785_v26 = vld [vmem:[%s13538_s4] ss:$0 sm:$0xff] }
 0x250   : > { %v4803_v5 = vpop.permute.xlu0 %4802 }
 0x251   : > { %v2503_v32 = vpop.permute.xlu1 %2502  ;;  %4977 = vst.msk [vmem:[#allocation3 + $0x1a0] sm:$0xff] %vm3165_vm6, %v4803_v5  ;;  %v11706_v5 = vpack.c.bf16 %v5623_v35, %v5622_v38  ;;  %v4573_v38 = vld [vmem:[#allocation2 + $0x2b0] sm:$0xff] }
 0x252   : > { %2674 = vst.msk [vmem:[#allocation3 + $0x1f8] sm:$0xff] %vm2652_vm5, %v2503_v32  ;;  %5332 = vrot.lane.b32.xlu0 %v5178_v39, %s9968_s8  ;;  %v5914_v32 = vld [vmem:[#allocation3 + $0x3d0] sm:$0xff] }
 0x253   : > { %5489 = vst.msk [vmem:[#allocation3 + $0x1a0] sm:$0xff] %vm3678_vm7, %v11623_v62  ;;  %3029 = vrot.lane.b32.xlu1 %v11104_v50, %s9966_s18  ;;  %v5840_v50 = vld [vmem:[#allocation3 + $0x180] sm:$0xff]  ;;  %9752 = vmatprep.mubr.msk.bf16.mxu0 %vm1647_vm3, %v5914_v32 }
 0x254   : > { %v4292_v60 = vpop.permute.xlu0 %4291  ;;  %v5841_v43 = vld [vmem:[#allocation3 + $0x188] sm:$0xff]  ;;  %5770 = vst.msk [vmem:[#allocation3 + $0x400] sm:$0xff] %vm1647_vm3, %v11700_v56  ;;  %5771 = vst.msk [vmem:[#allocation3 + $0x418] sm:$0xff] %vm1647_vm3, %v11706_v5 }
 0x255   : > { %v3016_v52 = vpop.permute.xlu1 %3015  ;;  %4465 = vst.msk [vmem:[#allocation3 + $0x1b8] sm:$0xff] %vm2652_vm5, %v4292_v60  ;;  %6487 = vmatprep.mubr.bf16.mxu1 %v5841_v43  ;;  %v5624_v60 = vld [vmem:[#allocation2 + $0x3c2] sm:$0xff]  ;;  %v5625_v43 = vld [vmem:[#allocation2 + $0x3ca] sm:$0xff] }
 0x256   : > { %3187 = vst.msk [vmem:[#allocation3 + $0x1f8] sm:$0xff] %vm3165_vm6, %v3016_v52  ;;  %4822 = vrot.lane.b32.xlu0 %v4667_v48, %s9966_s18  ;;  %6488 = vmatmul.mubr.bf16.gmra.mrb[56].mxu1 %v5840_v50  ;;  %v5081_v52 = vld [vmem:[#allocation2 + $0x289] sm:$0xff]  ;;  %v11725_v34 = vpack.c.bf16 %v5625_v43, %v5624_v60  ;;  %v2038_v43 = vld [vmem:[#allocation2 + $0x380] sm:$0xff] }
 0x257   : > { %3542 = vrot.lane.b32.xlu1 %v4666_v14, %s9968_s8  ;;  %v3830_v60 = vld [vmem:[#allocation2 + $0x389] sm:$0xff] }
 0x258   : > { %v11675_v16 = vpop.permute.xlu0 %5318  ;;  %5772 = vst.msk [vmem:[#allocation3 + $0x430] sm:$0xff] %vm1647_vm3, %v11725_v34 }
 0x259   : > { %v3523_v62 = vpop.permute.xlu1 %3522 }
 0x25a   : > { %3697 = vst.msk [vmem:[#allocation3 + $0x1b0] sm:$0xff] %vm3678_vm7, %v3523_v62  ;;  %v5844_v23 = vld [vmem:[#allocation3 + $0x1a0] sm:$0xff]  ;;  %4311 = vrot.lane.b32.xlu0 %v11210_v2, %s9965_s17  ;;  %v5627_v62 = vld [vmem:[#allocation2 + $0x3da] sm:$0xff] }
 0x25b   : > { %3544 = vrot.lane.b32.xlu1 %v4667_v48, %s9968_s8  ;;  %6495 = vmatprep.mubr.bf16.mxu1 %v5844_v23  ;;  %v5626_v48 = vld [vmem:[#allocation2 + $0x3d2] sm:$0xff]  ;;  %v5923_v25 = vld [vmem:[#allocation3 + $0x418] sm:$0xff] }
 0x25c   : > { %v4298_v9 = vpop.permute.xlu0 %4297  ;;  %v5920_v23 = vld [vmem:[#allocation3 + $0x400] sm:$0xff] }
 0x25d   : > { %v3525_v17 = vpop.permute.xlu1 %3524  ;;  %4468 = vst.msk [vmem:[#allocation3 + $0x200] sm:$0xff] %vm2652_vm5, %v4298_v9  ;;  %v5629_v9 = vld [vmem:[#allocation2 + $0x3f2] sm:$0xff] }
 0x25e   : > { %3698 = vst.msk [vmem:[#allocation3 + $0x1c8] sm:$0xff] %vm3678_vm7, %v3525_v17  ;;  %5338 = vrot.lane.b32.xlu0 %v11690_v41, %s9968_s8  ;;  %6496 = vmatmul.mubr.bf16.gmra.mrb[60].mxu1 %v5843_v30  ;;  %v5628_v17 = vld [vmem:[#allocation2 + $0x3ea] sm:$0xff] }
 0x25f   : > { %2520 = vrot.lane.b32.xlu1 %v5178_v39, %s9965_s17  ;;  %v5917_v39 = vld [vmem:[#allocation3 + $0x3e8] sm:$0xff]  ;;  %v5710_v27 = vpack.c.bf16 %v5629_v9, %v5628_v17  ;;  %v5926_v30 = vld [vmem:[#allocation3 + $0x430] sm:$0xff]  ;;  %v5935_v9 = vld [vmem:[#allocation3 + $0x478] sm:$0xff] }
 0x260   : > { %v4805_v3 = vpop.permute.xlu0 %4804  ;;  %9753 = vmatmul.mubr.msk.bf16.gmra.mrb[216].mxu0 %vm1647_vm3, %v5917_v39  ;;  %v2036_v39 = vld [vmem:[#allocation2 + $0x370] sm:$0xff] }
 0x261   : > { %v2501_v14 = vpop.permute.xlu1 %2500  ;;  %4978 = vst.msk [vmem:[#allocation3 + $0x1b8] sm:$0xff] %vm3165_vm6, %v4805_v3  ;;  %9756 = vmatprep.mubr.msk.bf16.mxu0 %vm1647_vm3, %v5920_v23  ;;  %v3828_v3 = vld [vmem:[#allocation2 + $0x379] sm:$0xff]  ;;  %v4670_v23 = vpack.c.bf16 %v4573_v38, %v4572_v31  ;;  %v5638_v31 = vld [vmem:[#allocation2 + $0x44a] sm:$0xff] }
 0x262   : > { %2673 = vst.msk [vmem:[#allocation3 + $0x1e0] sm:$0xff] %vm2652_vm5, %v2501_v14  ;;  %4317 = vrot.lane.b32.xlu0 %v11316_v12, %s9965_s17  ;;  %v3827_v14 = vld [vmem:[#allocation2 + $0x371] sm:$0xff] }
 0x263   : > { %3033 = vrot.lane.b32.xlu1 %v11210_v2, %s9966_s18  ;;  %v5080_v2 = vld [vmem:[#allocation2 + $0x281] sm:$0xff]  ;;  %5774 = vst.msk [vmem:[#allocation3 + $0x460] sm:$0xff] %vm1647_vm3, %v5710_v27  ;;  %v3913_v32 = vpack.c.bf16 %v3828_v3, %v3827_v14 }
 0x264   : > { %v5317_v1 = vpop.permute.xlu0 %5316  ;;  %v11723_v19 = vpack.c.bf16 %v5081_v52, %v5080_v2 }
 0x265   : > { %v3014_v44 = vpop.permute.xlu1 %3013  ;;  %5490 = vst.msk [vmem:[#allocation3 + $0x1b8] sm:$0xff] %vm3678_vm7, %v5317_v1  ;;  %v3829_v1 = vld [vmem:[#allocation2 + $0x381] sm:$0xff] }
 0x266   : > { %3186 = vst.msk [vmem:[#allocation3 + $0x1e0] sm:$0xff] %vm3165_vm6, %v3014_v44  ;;  %4824 = vrot.lane.b32.xlu0 %v4668_v46, %s9966_s18  ;;  %v2037_v44 = vld [vmem:[#allocation2 + $0x378] sm:$0xff] }
 0x267   : > { %2522 = vrot.lane.b32.xlu1 %v11630_v51, %s9965_s17  ;;  %v5709_v51 = vpack.c.bf16 %v5627_v62, %v5626_v48  ;;  %v2120_v52 = vpack.c.bf16 %v2037_v44, %v2036_v39  ;;  %v2039_v48 = vld [vmem:[#allocation2 + $0x388] sm:$0xff]  ;;  %3977 = vst.msk [vmem:[#allocation3 + $0x3f8] sm:$0xff] %vm1647_vm3, %v3913_v32 }
 0x268   : > { %v4807_v20 = vpop.permute.xlu0 %4806  ;;  %9757 = vmatmul.mubr.msk.bf16.gmra.mrb[220].mxu0 %vm1647_vm3, %v5923_v25  ;;  %v2121_v62 = vpack.c.bf16 %v2039_v48, %v2038_v43  ;;  %v5632_v25 = vld [vmem:[#allocation2 + $0x412] sm:$0xff] }
 0x269   : > { %v2507_v50 = vpop.permute.xlu1 %2506  ;;  %4979 = vst.msk [vmem:[#allocation3 + $0x1d0] sm:$0xff] %vm3165_vm6, %v4807_v20  ;;  %9760 = vmatprep.mubr.msk.bf16.mxu0 %vm1647_vm3, %v5926_v30  ;;  %v3914_v20 = vpack.c.bf16 %v3830_v60, %v3829_v1  ;;  %v4575_v30 = vld [vmem:[#allocation2 + $0x2c0] sm:$0xff] }
 0x26a   : > { %2676 = vst.msk [vmem:[#allocation3 + $0x228] sm:$0xff] %vm2652_vm5, %v2507_v50  ;;  %5336 = vrot.lane.b32.xlu0 %v11723_v19, %s9968_s8  ;;  %v5849_v50 = vld [vmem:[#allocation3 + $0x1c8] sm:$0xff]  ;;  %v4671_v14 = vpack.c.bf16 %v4575_v30, %v4574_v21 }
 0x26b   : > { %5491 = vst.msk [vmem:[#allocation3 + $0x1d0] sm:$0xff] %vm3678_vm7, %v11675_v16  ;;  %3546 = vrot.lane.b32.xlu1 %v4668_v46, %s9968_s8  ;;  %v5846_v16 = vld [vmem:[#allocation3 + $0x1b0] sm:$0xff] }
 0x26c   : > { %5773 = vst.msk [vmem:[#allocation3 + $0x448] sm:$0xff] %vm1647_vm3, %v5709_v51  ;;  %v4296_v61 = vpop.permute.xlu0 %4295  ;;  %v5847_v7 = vld [vmem:[#allocation3 + $0x1b8] sm:$0xff]  ;;  %2184 = vst.msk [vmem:[#allocation3 + $0x420] sm:$0xff] %vm1647_vm3, %v2120_v52  ;;  %v5085_v51 = vld [vmem:[#allocation2 + $0x2b1] sm:$0xff] }
 0x26d   : > { %v3020_v0 = vpop.permute.xlu1 %3019  ;;  %4467 = vst.msk [vmem:[#allocation3 + $0x1e8] sm:$0xff] %vm2652_vm5, %v4296_v61  ;;  %6503 = vmatprep.mubr.bf16.mxu1 %v5847_v7  ;;  %v5932_v61 = vld [vmem:[#allocation3 + $0x460] sm:$0xff]  ;;  %v11777_v24 = vpack.c.bf16 %v5085_v51, %v5084_v37 }
 0x26e   : > { %3189 = vst.msk [vmem:[#allocation3 + $0x228] sm:$0xff] %vm3165_vm6, %v3020_v0  ;;  %4826 = vrot.lane.b32.xlu0 %v4669_v6, %s9966_s18  ;;  %6504 = vmatmul.mubr.bf16.gmra.mrb[64].mxu1 %v5846_v16  ;;  %v5633_v0 = vld [vmem:[#allocation2 + $0x41a] sm:$0xff]  ;;  %v5635_v16 = vld [vmem:[#allocation2 + $0x42a] sm:$0xff] }
 0x26f   : > { %3035 = vrot.lane.b32.xlu1 %v11643_v45, %s9966_s18  ;;  %3978 = vst.msk [vmem:[#allocation3 + $0x410] sm:$0xff] %vm1647_vm3, %v3914_v20  ;;  %2185 = vst.msk [vmem:[#allocation3 + $0x438] sm:$0xff] %vm1647_vm3, %v2121_v62  ;;  %v5712_v7 = vpack.c.bf16 %v5633_v0, %v5632_v25  ;;  %v4577_v25 = vld [vmem:[#allocation2 + $0x2d8] sm:$0xff] }
 0x270   : > { %v11744_v59 = vpop.permute.xlu0 %5322 }
 0x271   : > { %v3527_v47 = vpop.permute.xlu1 %3526  ;;  %v11747_v45 = vpop.f32.mrb[128].mxu0  ;;  %5776 = vst.msk [vmem:[#allocation3 + $0x490] sm:$0xff] %vm1647_vm3, %v5712_v7  ;;  %v5641_v7 = vld [vmem:[#allocation2 + $0x46a] sm:$0xff] }
 0x272   : > { %3699 = vst.msk [vmem:[#allocation3 + $0x1e0] sm:$0xff] %vm3678_vm7, %v3527_v47  ;;  %v5850_v18 = vld [vmem:[#allocation3 + $0x1d0] sm:$0xff]  ;;  %4315 = vrot.lane.b32.xlu0 %v11308_v10, %s9965_s17  ;;  %v6363_v15 = vpop.f32.mrb[129].mxu0  ;;  %v6362_v1 = vadd.f32 %v11785_v26, %v11747_v45 }
 0x273   : > { %3548 = vrot.lane.b32.xlu1 %v4669_v6, %s9968_s8  ;;  %v5929_v28 = vld [vmem:[#allocation3 + $0x448] sm:$0xff]  ;;  %6511 = vmatprep.mubr.bf16.mxu1 %v5850_v18  ;;  %v11755_v35 = vpop.f32.mrb[130].mxu0  ;;  %v5634_v6 = vld [vmem:[#allocation2 + $0x422] sm:$0xff] }
 0x274   : > { %9761 = vmatmul.mubr.msk.bf16.gmra.mrb[224].mxu0 %vm1647_vm3, %v5929_v28  ;;  %v6366_v46 = vpop.f32.mrb[131].mxu0  ;;  %v4302_v2 = vpop.permute.xlu0 %4301  ;;  %v5713_v54 = vpack.c.bf16 %v5635_v16, %v5634_v6  ;;  %v5636_v28 = vld [vmem:[#allocation2 + $0x43a] sm:$0xff]  ;;  %v5637_v15 = vld [vmem:[#allocation2 + $0x442] sm:$0xff]  ;;  %v5642_v6 = vld [vmem:[#allocation2 + $0x472] sm:$0xff] }
 0x275   : > { %v3529_v29 = vpop.permute.xlu1 %3528  ;;  %4470 = vst.msk [vmem:[#allocation3 + $0x230] sm:$0xff] %vm2652_vm5, %v4302_v2  ;;  %9764 = vmatprep.mubr.msk.bf16.mxu0 %vm1647_vm3, %v5932_v61  ;;  %v5714_v3 = vpack.c.bf16 %v5637_v15, %v5636_v28  ;;  %v5640_v61 = vld [vmem:[#allocation2 + $0x462] sm:$0xff] }
 0x276   : > { %3700 = vst.msk [vmem:[#allocation3 + $0x1f8] sm:$0xff] %vm3678_vm7, %v3529_v29  ;;  %5342 = vrot.lane.b32.xlu0 %v11757_v36, %s9968_s8  ;;  %6512 = vmatmul.mubr.bf16.gmra.mrb[68].mxu1 %v5849_v50  ;;  %v5639_v29 = vld [vmem:[#allocation2 + $0x452] sm:$0xff] }
 0x277   : > { %2524 = vrot.lane.b32.xlu1 %v11723_v19, %s9965_s17  ;;  %5777 = vst.msk [vmem:[#allocation3 + $0x4a8] sm:$0xff] %vm1647_vm3, %v5713_v54  ;;  %v5715_v44 = vpack.c.bf16 %v5639_v29, %v5638_v31  ;;  %5778 = vst.msk [vmem:[#allocation3 + $0x4c0] sm:$0xff] %vm1647_vm3, %v5714_v3  ;;  %v5716_v54 = vpack.c.bf16 %v5641_v7, %v5640_v61  ;;  %v5089_v31 = vld [vmem:[#allocation2 + $0x2d9] sm:$0xff] }
 0x278   : > { %v4809_v19 = vpop.permute.xlu0 %4808  ;;  %v5938_v2 = vld [vmem:[#allocation3 + $0x490] sm:$0xff] }
 0x279   : > { %v2505_v57 = vpop.permute.xlu1 %2504  ;;  %4980 = vst.msk [vmem:[#allocation3 + $0x1e8] sm:$0xff] %vm3165_vm6, %v4809_v19  ;;  %v6369_v17 = vpop.f32.mrb[132].mxu0  ;;  %v5852_v51 = vld [vmem:[#allocation3 + $0x1e0] sm:$0xff]  ;;  %v5646_v61 = vld [vmem:[#allocation2 + $0x49a] sm:$0xff] }
 0x27a   : > { %2675 = vst.msk [vmem:[#allocation3 + $0x210] sm:$0xff] %vm2652_vm5, %v2505_v57  ;;  %4828 = vrot.lane.b32.xlu0 %v4670_v23, %s9966_s18  ;;  %v6371_v47 = vpop.f32.mrb[133].mxu0  ;;  %v6370_v32 = vadd.f32 %v11785_v26, %v6369_v17 }
 0x27b   : > { %3037 = vrot.lane.b32.xlu1 %v11308_v10, %s9966_s18  ;;  %v6372_v4 = vpop.f32.mrb[134].mxu0  ;;  %5779 = vst.msk [vmem:[#allocation3 + $0x4d8] sm:$0xff] %vm1647_vm3, %v5715_v44  ;;  %v5643_v47 = vld [vmem:[#allocation2 + $0x47a] sm:$0xff]  ;;  %5780 = vst.msk [vmem:[#allocation3 + $0x4f0] sm:$0xff] %vm1647_vm3, %v5716_v54 }
 0x27c   : > { %9765 = vmatmul.mubr.msk.bf16.gmra.mrb[228].mxu0 %vm1647_vm3, %v5935_v9  ;;  %v6374_v10 = vpop.f32.mrb[135].mxu0  ;;  %v5321_v18 = vpop.permute.xlu0 %5320  ;;  %v6373_v52 = vadd.f32 %v11785_v26, %v6372_v4  ;;  %v5717_v21 = vpack.c.bf16 %v5643_v47, %v5642_v6  ;;  %v5647_v6 = vld [vmem:[#allocation2 + $0x4a2] sm:$0xff] }
 0x27d   : > { %v3018_v27 = vpop.permute.xlu1 %3017  ;;  %5492 = vst.msk [vmem:[#allocation3 + $0x1e8] sm:$0xff] %vm3678_vm7, %v5321_v18  ;;  %9768 = vmatprep.mubr.msk.bf16.mxu0 %vm1647_vm3, %v5938_v2  ;;  %v5088_v10 = vld [vmem:[#allocation2 + $0x2d1] sm:$0xff]  ;;  %v5719_v54 = vpack.c.bf16 %v5647_v6, %v5646_v61 }
 0x27e   : > { %3188 = vst.msk [vmem:[#allocation3 + $0x210] sm:$0xff] %vm3165_vm6, %v3018_v27  ;;  %5340 = vrot.lane.b32.xlu0 %v11777_v24, %s9968_s8  ;;  %v5941_v45 = vld [vmem:[#allocation3 + $0x4a8] sm:$0xff]  ;;  %v5944_v18 = vld [vmem:[#allocation3 + $0x4c0] sm:$0xff] }
 0x27f   : > { %3550 = vrot.lane.b32.xlu1 %v4670_v23, %s9968_s8  ;;  %5781 = vst.msk [vmem:[#allocation3 + $0x508] sm:$0xff] %vm1647_vm3, %v5717_v21  ;;  %v4579_v21 = vld [vmem:[#allocation2 + $0x2e8] sm:$0xff]  ;;  %5783 = vst.msk [vmem:[#allocation3 + $0x538] sm:$0xff] %vm1647_vm3, %v5719_v54 }
 0x280   : > { %v4811_v39 = vpop.permute.xlu0 %4810 }
 0x281   : > { %v2511_v38 = vpop.permute.xlu1 %2510  ;;  %4981 = vst.msk [vmem:[#allocation3 + $0x200] sm:$0xff] %vm3165_vm6, %v4811_v39  ;;  %v9674_v46 = vpop.f32.mrb[136].mxu0 }
 0x282   : > { %2678 = vst.msk [vmem:[#allocation3 + $0x258] sm:$0xff] %vm2652_vm5, %v2511_v38  ;;  %4830 = vrot.lane.b32.xlu0 %v4671_v14, %s9966_s18  ;;  %v6915_v60 = vadd.f32 %v9674_v46, %v6370_v32  ;;  %v6906_v43 = vpop.f32.mrb[137].mxu0  ;;  %v5947_v38 = vld [vmem:[#allocation3 + $0x4d8] sm:$0xff]  ;;  %v2040_v46 = vld [vmem:[#allocation2 + $0x398] sm:$0xff] }
 0x283   : > { %2526 = vrot.lane.b32.xlu1 %v11690_v41, %s9965_s17  ;;  %5493 = vst.msk [vmem:[#allocation3 + $0x200] sm:$0xff] %vm3678_vm7, %v11744_v59  ;;  %v6365_v41 = vadd.f32 %v11785_v26, %v11755_v35  ;;  %v6907_v48 = vadd.f32 %v6906_v43, %v6362_v1  ;;  %v9675_v50 = vpop.f32.mrb[138].mxu0  ;;  %v4576_v35 = vld [vmem:[#allocation2 + $0x2d0] sm:$0xff]  ;;  %v3832_v1 = vld [vmem:[#allocation2 + $0x3a1] sm:$0xff] }
 0x284   : > { %9769 = vmatmul.mubr.msk.bf16.gmra.mrb[232].mxu0 %vm1647_vm3, %v5941_v45  ;;  %v6918_v62 = vadd.f32 %v9675_v50, %v6373_v52  ;;  %v6909_v37 = vpop.f32.mrb[139].mxu0  ;;  %v4300_v59 = vpop.permute.xlu0 %4299  ;;  %v5853_v57 = vld [vmem:[#allocation3 + $0x1e8] sm:$0xff]  ;;  %v7419_v0 = vmax.f32 %v6915_v60, 0.0  ;;  %v11819_v27 = vpack.c.bf16 %v4577_v25, %v4576_v35  ;;  %v11835_v60 = vpack.c.bf16 %v5089_v31, %v5088_v10  ;;  %v2041_v45 = vld [vmem:[#allocation2 + $0x3a0] sm:$0xff] }
 0x285   : > { %v3024_v20 = vpop.permute.xlu1 %3023  ;;  %v6910_v23 = vadd.f32 %v6909_v37, %v6365_v41  ;;  %4469 = vst.msk [vmem:[#allocation3 + $0x218] sm:$0xff] %vm2652_vm5, %v4300_v59  ;;  %6519 = vmatprep.mubr.bf16.mxu1 %v5853_v57  ;;  %v7417_v16 = vmax.f32 %v6907_v48, 0.0  ;;  %9772 = vmatprep.mubr.msk.bf16.mxu0 %vm1647_vm3, %v5944_v18  ;;  %v3833_v41 = vld [vmem:[#allocation2 + $0x3a9] sm:$0xff]  ;;  %v3834_v48 = vld [vmem:[#allocation2 + $0x3b1] sm:$0xff]  ;;  %v2122_v59 = vpack.c.bf16 %v2041_v45, %v2040_v46  ;;  %v4578_v18 = vld [vmem:[#allocation2 + $0x2e0] sm:$0xff] }
 0x286   : > { %3191 = vst.msk [vmem:[#allocation3 + $0x258] sm:$0xff] %vm3165_vm6, %v3024_v20  ;;  %v7420_v19 = vmax.f32 %v6918_v62, 0.0  ;;  %4319 = vrot.lane.b32.xlu0 %v11409_v11, %s9965_s17  ;;  %6520 = vmatmul.mubr.bf16.gmra.mrb[72].mxu1 %v5852_v51  ;;  %v5855_v37 = vld [vmem:[#allocation3 + $0x1f8] sm:$0xff]  ;;  %v3916_v57 = vpack.c.bf16 %v3834_v48, %v3833_v41  ;;  %v2043_v51 = vld [vmem:[#allocation2 + $0x3b0] sm:$0xff]  ;;  %v11865_v46 = vpack.c.bf16 %v4579_v21, %v4578_v18 }
 0x287   : > { %3039 = vrot.lane.b32.xlu1 %v11316_v12, %s9966_s18  ;;  %v7418_v17 = vmax.f32 %v6910_v23, 0.0  ;;  %v2042_v23 = vld [vmem:[#allocation2 + $0x3a8] sm:$0xff]  ;;  %2186 = vst.msk [vmem:[#allocation3 + $0x450] sm:$0xff] %vm1647_vm3, %v2122_v59 }
 0x288   : > { %v11814_v4 = vpack.c.bf16 %v7420_v19, %v7419_v0  ;;  %v11817_v12 = vpop.permute.xlu0 %5326  ;;  %v5644_v0 = vld [vmem:[#allocation2 + $0x48a] sm:$0xff]  ;;  %v5645_v19 = vld [vmem:[#allocation2 + $0x492] sm:$0xff]  ;;  %3980 = vst.msk [vmem:[#allocation3 + $0x440] sm:$0xff] %vm1647_vm3, %v3916_v57  ;;  %v5090_v41 = vld [vmem:[#allocation2 + $0x2e1] sm:$0xff] }
 0x289   : > { %v3531_v9 = vpop.permute.xlu1 %3530  ;;  %v11821_v30 = vpack.c.bf16 %v7418_v17, %v7417_v16  ;;  %v11823_v28 = vpop.f32.mrb[140].mxu0  ;;  %v5718_v7 = vpack.c.bf16 %v5645_v19, %v5644_v0  ;;  %v5091_v48 = vld [vmem:[#allocation2 + $0x2e9] sm:$0xff] }
 0x28a   : > { %3701 = vst.msk [vmem:[#allocation3 + $0x210] sm:$0xff] %vm3678_vm7, %v3531_v9  ;;  %v5856_v15 = vld [vmem:[#allocation3 + $0x200] sm:$0xff]  ;;  %v6922_v3 = vpop.f32.mrb[141].mxu0  ;;  %4832 = vrot.lane.b32.xlu0 %v11819_v27, %s9966_s18  ;;  %v5950_v9 = vld [vmem:[#allocation3 + $0x4f0] sm:$0xff]  ;;  %v5959_v61 = vld [vmem:[#allocation3 + $0x538] sm:$0xff] }
 0x28b   : > { %3552 = vrot.lane.b32.xlu1 %v4671_v14, %s9968_s8  ;;  %v6377_v29 = vpop.f32.mrb[0].mxu1  ;;  %6527 = vmatprep.mubr.bf16.mxu1 %v5856_v15  ;;  %v11832_v44 = vpop.f32.mrb[142].mxu0  ;;  %v3831_v14 = vld [vmem:[#allocation2 + $0x399] sm:$0xff]  ;;  %5782 = vst.msk [vmem:[#allocation3 + $0x520] sm:$0xff] %vm1647_vm3, %v5718_v7  ;;  %v5651_v57 = vld [vmem:[#allocation2 + $0x4ca] sm:$0xff] }
 0x28c   : > { %v6378_v32 = vadd.f32 %v11785_v26, %v6377_v29  ;;  %v6379_v39 = vpop.f32.mrb[1].mxu1  ;;  %9773 = vmatmul.mubr.msk.bf16.gmra.mrb[236].mxu0 %vm1647_vm3, %v5947_v38  ;;  %v6925_v52 = vpop.f32.mrb[143].mxu0  ;;  %v3915_v43 = vpack.c.bf16 %v3832_v1, %v3831_v14  ;;  %v5953_v15 = vld [vmem:[#allocation3 + $0x508] sm:$0xff] }
 0x28d   : > { %v3533_v2 = vpop.permute.xlu1 %3532  ;;  %v4306_v20 = vpop.permute.xlu0 %4305  ;;  %9776 = vmatprep.mubr.msk.bf16.mxu0 %vm1647_vm3, %v5950_v9 }
 0x28e   : > { %v6923_v50 = vadd.f32 %v6922_v3, %v6378_v32  ;;  %3702 = vst.msk [vmem:[#allocation3 + $0x228] sm:$0xff] %vm3678_vm7, %v3533_v2  ;;  %v6380_v62 = vpop.f32.mrb[2].mxu1  ;;  %5344 = vrot.lane.b32.xlu0 %v11835_v60, %s9968_s8  ;;  %6528 = vmatmul.mubr.bf16.gmra.mrb[76].mxu1 %v5855_v37  ;;  %v5649_v37 = vld [vmem:[#allocation2 + $0x4ba] sm:$0xff] }
 0x28f   : > { %2528 = vrot.lane.b32.xlu1 %v11777_v24, %s9965_s17  ;;  %4472 = vst.msk [vmem:[#allocation3 + $0x260] sm:$0xff] %vm2652_vm5, %v4306_v20  ;;  %v6381_v35 = vadd.f32 %v11785_v26, %v6380_v62  ;;  %v6382_v25 = vpop.f32.mrb[3].mxu1  ;;  %v2123_v24 = vpack.c.bf16 %v2043_v51, %v2042_v23  ;;  %v5648_v62 = vld [vmem:[#allocation2 + $0x4b2] sm:$0xff] }
 0x290   : > { %3979 = vst.msk [vmem:[#allocation3 + $0x428] sm:$0xff] %vm1647_vm3, %v3915_v43  ;;  %v7421_v31 = vmax.f32 %v6923_v50, 0.0  ;;  %v5720_v59 = vpack.c.bf16 %v5649_v37, %v5648_v62 }
 0x291   : > { %v6926_v16 = vadd.f32 %v6925_v52, %v6381_v35  ;;  %v2509_v17 = vpop.permute.xlu1 %2508  ;;  %2187 = vst.msk [vmem:[#allocation3 + $0x468] sm:$0xff] %vm1647_vm3, %v2123_v24  ;;  %v4813_v47 = vpop.permute.xlu0 %4812  ;;  %v11878_v35 = vpack.c.bf16 %v5091_v48, %v5090_v41 }
 0x292   : > { %2677 = vst.msk [vmem:[#allocation3 + $0x240] sm:$0xff] %vm2652_vm5, %v2509_v17  ;;  %v11849_v10 = vpop.f32.mrb[144].mxu0  ;;  %4321 = vrot.lane.b32.xlu0 %v11417_v13, %s9965_s17 }
 0x293   : > { %3041 = vrot.lane.b32.xlu1 %v11409_v11, %s9966_s18  ;;  %v7422_v38 = vmax.f32 %v6926_v16, 0.0  ;;  %4982 = vst.msk [vmem:[#allocation3 + $0x218] sm:$0xff] %vm3165_vm6, %v4813_v47  ;;  %v6938_v3 = vpop.f32.mrb[145].mxu0  ;;  %v6385_v29 = vpop.f32.mrb[4].mxu1  ;;  %v4580_v47 = vld [vmem:[#allocation2 + $0x2f8] sm:$0xff] }
 0x294   : > { %v6386_v11 = vadd.f32 %v11785_v26, %v6385_v29  ;;  %v6387_v32 = vpop.f32.mrb[5].mxu1  ;;  %v11860_v39 = vpop.f32.mrb[146].mxu0  ;;  %9777 = vmatmul.mubr.msk.bf16.gmra.mrb[240].mxu0 %vm1647_vm3, %v5953_v15  ;;  %5784 = vst.msk [vmem:[#allocation3 + $0x550] sm:$0xff] %vm1647_vm3, %v5720_v59  ;;  %v4581_v29 = vld [vmem:[#allocation2 + $0x300] sm:$0xff] }
 0x295   : > { %v3022_v14 = vpop.permute.xlu1 %3021  ;;  %v11863_v1 = vpop.f32.mrb[147].mxu0  ;;  %v11867_v2 = vpack.c.bf16 %v7422_v38, %v7421_v31  ;;  %v11911_v48 = vpack.c.bf16 %v4581_v29, %v4580_v47  ;;  %v5093_v59 = vld [vmem:[#allocation2 + $0x301] sm:$0xff] }
 0x296   : > { %v6931_v52 = vadd.f32 %v11823_v28, %v6386_v11  ;;  %3190 = vst.msk [vmem:[#allocation3 + $0x240] sm:$0xff] %vm3165_vm6, %v3022_v14  ;;  %v5325_v43 = vpop.permute.xlu0 %5324  ;;  %v6388_v45 = vpop.f32.mrb[6].mxu1  ;;  %4834 = vrot.lane.b32.xlu0 %v11865_v46, %s9966_s18  ;;  %v5650_v28 = vld [vmem:[#allocation2 + $0x4c2] sm:$0xff] }
 0x297   : > { %3554 = vrot.lane.b32.xlu1 %v11819_v27, %s9968_s8  ;;  %5494 = vst.msk [vmem:[#allocation3 + $0x218] sm:$0xff] %vm3678_vm7, %v5325_v43  ;;  %v6389_v50 = vadd.f32 %v11785_v26, %v6388_v45  ;;  %v6390_v20 = vpop.f32.mrb[7].mxu1  ;;  %v5956_v27 = vld [vmem:[#allocation3 + $0x520] sm:$0xff]  ;;  %v5721_v25 = vpack.c.bf16 %v5651_v57, %v5650_v28  ;;  %v5653_v14 = vld [vmem:[#allocation2 + $0x4e2] sm:$0xff]  ;;  %v5092_v28 = vld [vmem:[#allocation2 + $0x2f9] sm:$0xff] }
 0x298   : > { %9780 = vmatprep.mubr.msk.bf16.mxu0 %vm1647_vm3, %v5956_v27  ;;  %v7423_v24 = vmax.f32 %v6931_v52, 0.0  ;;  %v5654_v52 = vld [vmem:[#allocation2 + $0x4ea] sm:$0xff]  ;;  %v5655_v45 = vld [vmem:[#allocation2 + $0x4f2] sm:$0xff]  ;;  %v2044_v47 = vld [vmem:[#allocation2 + $0x3c0] sm:$0xff] }
 0x299   : > { %v6934_v23 = vadd.f32 %v11832_v44, %v6389_v50  ;;  %v2515_v51 = vpop.permute.xlu1 %2514  ;;  %v11881_v19 = vpop.f32.mrb[148].mxu0  ;;  %5785 = vst.msk [vmem:[#allocation3 + $0x568] sm:$0xff] %vm1647_vm3, %v5721_v25  ;;  %v5723_v20 = vpack.c.bf16 %v5655_v45, %v5654_v52  ;;  %v5657_v45 = vld [vmem:[#allocation2 + $0x50a] sm:$0xff] }
 0x29a   : > { %2680 = vst.msk [vmem:[#allocation3 + $0x288] sm:$0xff] %vm2652_vm5, %v2515_v51  ;;  %v4815_v0 = vpop.permute.xlu0 %4814  ;;  %v11888_v7 = vpop.f32.mrb[149].mxu0  ;;  %5346 = vrot.lane.b32.xlu0 %v11878_v35, %s9968_s8 }
 0x29b   : > { %2530 = vrot.lane.b32.xlu1 %v11757_v36, %s9965_s17  ;;  %v7424_v44 = vmax.f32 %v6934_v23, 0.0  ;;  %4983 = vst.msk [vmem:[#allocation3 + $0x230] sm:$0xff] %vm3165_vm6, %v4815_v0  ;;  %v6393_v6 = vpop.f32.mrb[8].mxu1  ;;  %v11896_v17 = vpop.f32.mrb[150].mxu0  ;;  %v5962_v50 = vld [vmem:[#allocation3 + $0x550] sm:$0xff] }
 0x29c   : > { %5495 = vst.msk [vmem:[#allocation3 + $0x230] sm:$0xff] %vm3678_vm7, %v11817_v12  ;;  %v6394_v36 = vadd.f32 %v11785_v26, %v6393_v6  ;;  %v6395_v16 = vpop.f32.mrb[9].mxu1  ;;  %9781 = vmatmul.mubr.msk.bf16.gmra.mrb[244].mxu0 %vm1647_vm3, %v5959_v61  ;;  %v11899_v54 = vpop.f32.mrb[151].mxu0  ;;  %v5858_v12 = vld [vmem:[#allocation3 + $0x210] sm:$0xff] }
 0x29d   : > { %v3028_v9 = vpop.permute.xlu1 %3027  ;;  %v11901_v18 = vpack.c.bf16 %v7424_v44, %v7423_v24  ;;  %v6396_v31 = vpop.f32.mrb[10].mxu1  ;;  %9784 = vmatprep.mubr.msk.bf16.mxu0 %vm1647_vm3, %v5962_v50  ;;  %5787 = vst.msk [vmem:[#allocation3 + $0x598] sm:$0xff] %vm1647_vm3, %v5723_v20  ;;  %v3835_v24 = vld [vmem:[#allocation2 + $0x3c1] sm:$0xff] }
 0x29e   : > { %v6939_v21 = vadd.f32 %v6938_v3, %v6394_v36  ;;  %3193 = vst.msk [vmem:[#allocation3 + $0x288] sm:$0xff] %vm3165_vm6, %v3028_v9  ;;  %v4304_v15 = vpop.permute.xlu0 %4303  ;;  %v5859_v38 = vld [vmem:[#allocation3 + $0x218] sm:$0xff]  ;;  %v6397_v11 = vadd.f32 %v11785_v26, %v6396_v31  ;;  %v6398_v32 = vpop.f32.mrb[11].mxu1  ;;  %4323 = vrot.lane.b32.xlu0 %v11492_v49, %s9965_s17  ;;  %v5652_v3 = vld [vmem:[#allocation2 + $0x4da] sm:$0xff]  ;;  %v11933_v36 = vpack.c.bf16 %v5093_v59, %v5092_v28 }
 0x29f   : > { %3043 = vrot.lane.b32.xlu1 %v11417_v13, %s9966_s18  ;;  %4471 = vst.msk [vmem:[#allocation3 + $0x248] sm:$0xff] %vm2652_vm5, %v4304_v15  ;;  %6535 = vmatprep.mubr.bf16.mxu1 %v5859_v38  ;;  %v5722_v43 = vpack.c.bf16 %v5653_v14, %v5652_v3  ;;  %v3836_v9 = vld [vmem:[#allocation2 + $0x3c9] sm:$0xff]  ;;  %v3838_v32 = vld [vmem:[#allocation2 + $0x3d9] sm:$0xff] }
 0x2a0   : > { %6536 = vmatmul.mubr.bf16.gmra.mrb[80].mxu1 %v5858_v12  ;;  %v6942_v41 = vadd.f32 %v11863_v1, %v6397_v11  ;;  %v5965_v57 = vld [vmem:[#allocation3 + $0x568] sm:$0xff]  ;;  %v7425_v1 = vmax.f32 %v6939_v21, 0.0  ;;  %v2045_v21 = vld [vmem:[#allocation2 + $0x3c8] sm:$0xff]  ;;  %v3917_v12 = vpack.c.bf16 %v3836_v9, %v3835_v24  ;;  %v2046_v3 = vld [vmem:[#allocation2 + $0x3d0] sm:$0xff] }
 0x2a1   : > { %v3535_v13 = vpop.permute.xlu1 %3534  ;;  %v11916_v37 = vpop.f32.mrb[152].mxu0  ;;  %5786 = vst.msk [vmem:[#allocation3 + $0x580] sm:$0xff] %vm1647_vm3, %v5722_v43  ;;  %v2124_v29 = vpack.c.bf16 %v2045_v21, %v2044_v47  ;;  %v3837_v11 = vld [vmem:[#allocation2 + $0x3d1] sm:$0xff]  ;;  %v5656_v43 = vld [vmem:[#allocation2 + $0x502] sm:$0xff] }
 0x2a2   : > { %3703 = vst.msk [vmem:[#allocation3 + $0x240] sm:$0xff] %vm3678_vm7, %v3535_v13  ;;  %v11914_v62 = vpop.permute.xlu0 %5330  ;;  %v7426_v23 = vmax.f32 %v6942_v41, 0.0  ;;  %v11922_v51 = vpop.f32.mrb[153].mxu0  ;;  %4836 = vrot.lane.b32.xlu0 %v11911_v48, %s9966_s18  ;;  %v3918_v41 = vpack.c.bf16 %v3838_v32, %v3837_v11  ;;  %v5724_v13 = vpack.c.bf16 %v5657_v45, %v5656_v43  ;;  %v5977_v11 = vld [vmem:[#allocation3 + $0x5c8] sm:$0xff] }
 0x2a3   : > { %3556 = vrot.lane.b32.xlu1 %v11865_v46, %s9968_s8  ;;  %v6401_v27 = vpop.f32.mrb[12].mxu1  ;;  %v5862_v25 = vld [vmem:[#allocation3 + $0x230] sm:$0xff]  ;;  %v11928_v61 = vpop.f32.mrb[154].mxu0  ;;  %3981 = vst.msk [vmem:[#allocation3 + $0x458] sm:$0xff] %vm1647_vm3, %v3917_v12  ;;  %2188 = vst.msk [vmem:[#allocation3 + $0x480] sm:$0xff] %vm1647_vm3, %v2124_v29 }
 0x2a4   : > { %v6402_v46 = vadd.f32 %v11785_v26, %v6401_v27  ;;  %6543 = vmatprep.mubr.bf16.mxu1 %v5862_v25  ;;  %v6403_v0 = vpop.f32.mrb[13].mxu1  ;;  %9785 = vmatmul.mubr.msk.bf16.gmra.mrb[248].mxu0 %vm1647_vm3, %v5965_v57  ;;  %v11931_v6 = vpop.f32.mrb[155].mxu0  ;;  %v11935_v16 = vpack.c.bf16 %v7426_v23, %v7425_v1  ;;  %3982 = vst.msk [vmem:[#allocation3 + $0x470] sm:$0xff] %vm1647_vm3, %v3918_v41  ;;  %v4582_v23 = vld [vmem:[#allocation2 + $0x308] sm:$0xff]  ;;  %v4583_v27 = vld [vmem:[#allocation2 + $0x310] sm:$0xff]  ;;  %5788 = vst.msk [vmem:[#allocation3 + $0x5b0] sm:$0xff] %vm1647_vm3, %v5724_v13 }
 0x2a5   : > { %v3537_v44 = vpop.permute.xlu1 %3536  ;;  %v6404_v38 = vpop.f32.mrb[14].mxu1  ;;  %v5971_v25 = vld [vmem:[#allocation3 + $0x598] sm:$0xff]  ;;  %v4675_v9 = vpack.c.bf16 %v4583_v27, %v4582_v23 }
 0x2a6   : > { %v6947_v15 = vadd.f32 %v11849_v10, %v6402_v46  ;;  %3704 = vst.msk [vmem:[#allocation3 + $0x258] sm:$0xff] %vm3678_vm7, %v3537_v44  ;;  %v4310_v31 = vpop.permute.xlu0 %4309  ;;  %v6405_v14 = vadd.f32 %v11785_v26, %v6404_v38  ;;  %v6406_v52 = vpop.f32.mrb[15].mxu1  ;;  %5348 = vrot.lane.b32.xlu0 %v11933_v36, %s9968_s8  ;;  %v5861_v10 = vld [vmem:[#allocation3 + $0x228] sm:$0xff] }
 0x2a7   : > { %2532 = vrot.lane.b32.xlu1 %v11835_v60, %s9965_s17  ;;  %4474 = vst.msk [vmem:[#allocation3 + $0x290] sm:$0xff] %vm2652_vm5, %v4310_v31  ;;  %v2047_v60 = vld [vmem:[#allocation2 + $0x3d8] sm:$0xff] }
 0x2a8   : > { %6544 = vmatmul.mubr.bf16.gmra.mrb[84].mxu1 %v5861_v10  ;;  %v6950_v50 = vadd.f32 %v11860_v39, %v6405_v14  ;;  %v5968_v28 = vld [vmem:[#allocation3 + $0x580] sm:$0xff]  ;;  %v2125_v59 = vpack.c.bf16 %v2047_v60, %v2046_v3  ;;  %v7427_v39 = vmax.f32 %v6947_v15, 0.0 }
 0x2a9   : > { %v2513_v20 = vpop.permute.xlu1 %2512  ;;  %v11950_v1 = vpop.f32.mrb[156].mxu0  ;;  %9788 = vmatprep.mubr.msk.bf16.mxu0 %vm1647_vm3, %v5968_v28  ;;  %v5094_v15 = vld [vmem:[#allocation2 + $0x309] sm:$0xff]  ;;  %v5095_v31 = vld [vmem:[#allocation2 + $0x311] sm:$0xff] }
 0x2aa   : > { %2679 = vst.msk [vmem:[#allocation3 + $0x270] sm:$0xff] %vm2652_vm5, %v2513_v20  ;;  %v4817_v57 = vpop.permute.xlu0 %4816  ;;  %v7428_v46 = vmax.f32 %v6950_v50, 0.0  ;;  %v11957_v0 = vpop.f32.mrb[157].mxu0  ;;  %4325 = vrot.lane.b32.xlu0 %v11498_v22, %s9965_s17  ;;  %v11974_v12 = vpack.c.bf16 %v5095_v31, %v5094_v15  ;;  %v4585_v28 = vld [vmem:[#allocation2 + $0x328] sm:$0xff] }
 0x2ab   : > { %3045 = vrot.lane.b32.xlu1 %v11492_v49, %s9966_s18  ;;  %4984 = vst.msk [vmem:[#allocation3 + $0x248] sm:$0xff] %vm3165_vm6, %v4817_v57  ;;  %v11962_v24 = vpop.f32.mrb[158].mxu0  ;;  %v5974_v29 = vld [vmem:[#allocation3 + $0x5b0] sm:$0xff]  ;;  %v5864_v57 = vld [vmem:[#allocation3 + $0x240] sm:$0xff] }
 0x2ac   : > { %2189 = vst.msk [vmem:[#allocation3 + $0x498] sm:$0xff] %vm1647_vm3, %v2125_v59  ;;  %9789 = vmatmul.mubr.msk.bf16.gmra.mrb[252].mxu0 %vm1647_vm3, %v5971_v25  ;;  %v11965_v44 = vpop.f32.mrb[159].mxu0  ;;  %v11967_v47 = vpack.c.bf16 %v7428_v46, %v7427_v39 }
 0x2ad   : > { %v3026_v49 = vpop.permute.xlu1 %3025  ;;  %9792 = vmatprep.mubr.msk.bf16.mxu0 %vm1647_vm3, %v5974_v29 }
 0x2ae   : > { %3192 = vst.msk [vmem:[#allocation3 + $0x270] sm:$0xff] %vm3165_vm6, %v3026_v49  ;;  %v5329_v21 = vpop.permute.xlu0 %5328  ;;  %4838 = vrot.lane.b32.xlu0 %v4675_v9, %s9966_s18  ;;  %v5097_v49 = vld [vmem:[#allocation2 + $0x329] sm:$0xff] }
 0x2af   : > { %3558 = vrot.lane.b32.xlu1 %v11911_v48, %s9968_s8  ;;  %5496 = vst.msk [vmem:[#allocation3 + $0x248] sm:$0xff] %vm3678_vm7, %v5329_v21 }
 0x2b1   : > { %v2519_v38 = vpop.permute.xlu1 %2518  ;;  %v11982_v14 = vpop.f32.mrb[160].mxu0 }
 0x2b2   : > { %2682 = vst.msk [vmem:[#allocation3 + $0x2b8] sm:$0xff] %vm2652_vm5, %v2519_v38  ;;  %v4819_v32 = vpop.permute.xlu0 %4818  ;;  %5350 = vrot.lane.b32.xlu0 %v11974_v12, %s9968_s8  ;;  %v11988_v10 = vpop.f32.mrb[161].mxu0 }
 0x2b3   : > { %v6409_v3 = vpop.f32.mrb[16].mxu1  ;;  %2534 = vrot.lane.b32.xlu1 %v11878_v35, %s9965_s17  ;;  %4985 = vst.msk [vmem:[#allocation3 + $0x260] sm:$0xff] %vm3165_vm6, %v4819_v32  ;;  %v11993_v41 = vpop.f32.mrb[162].mxu0  ;;  %v3840_v32 = vld [vmem:[#allocation2 + $0x3f1] sm:$0xff] }
 0x2b4   : > { %v6410_v48 = vadd.f32 %v11785_v26, %v6409_v3  ;;  %v6411_v52 = vpop.f32.mrb[17].mxu1  ;;  %5497 = vst.msk [vmem:[#allocation3 + $0x260] sm:$0xff] %vm3678_vm7, %v11914_v62  ;;  %9793 = vmatmul.mubr.msk.bf16.gmra.mrb[0].mxu0 %vm1647_vm3, %v5977_v11  ;;  %v11996_v60 = vpop.f32.mrb[163].mxu0  ;;  %v4584_v62 = vld [vmem:[#allocation2 + $0x320] sm:$0xff]  ;;  %v3839_v11 = vld [vmem:[#allocation2 + $0x3e9] sm:$0xff] }
 0x2b5   : > { %v6412_v43 = vpop.f32.mrb[18].mxu1  ;;  %v3032_v13 = vpop.permute.xlu1 %3031  ;;  %v12004_v39 = vpack.c.bf16 %v4585_v28, %v4584_v62  ;;  %v2048_v52 = vld [vmem:[#allocation2 + $0x3e8] sm:$0xff] }
 0x2b6   : > { %v6955_v35 = vadd.f32 %v11888_v7, %v6410_v48  ;;  %v6413_v45 = vadd.f32 %v11785_v26, %v6412_v43  ;;  %3195 = vst.msk [vmem:[#allocation3 + $0x2b8] sm:$0xff] %vm3165_vm6, %v3032_v13  ;;  %v4308_v50 = vpop.permute.xlu0 %4307  ;;  %v5865_v20 = vld [vmem:[#allocation3 + $0x248] sm:$0xff]  ;;  %v6414_v7 = vpop.f32.mrb[19].mxu1  ;;  %4327 = vrot.lane.b32.xlu0 %v11556_v53, %s9965_s17  ;;  %v2049_v43 = vld [vmem:[#allocation2 + $0x3f0] sm:$0xff] }
 0x2b7   : > { %3047 = vrot.lane.b32.xlu1 %v11498_v22, %s9966_s18  ;;  %4473 = vst.msk [vmem:[#allocation3 + $0x278] sm:$0xff] %vm2652_vm5, %v4308_v50  ;;  %6551 = vmatprep.mubr.bf16.mxu1 %v5865_v20  ;;  %v2126_v28 = vpack.c.bf16 %v2049_v43, %v2048_v52  ;;  %v2050_v7 = vld [vmem:[#allocation2 + $0x3f8] sm:$0xff] }
 0x2b8   : > { %v6958_v59 = vadd.f32 %v11899_v54, %v6413_v45  ;;  %6552 = vmatmul.mubr.bf16.gmra.mrb[88].mxu1 %v5864_v57  ;;  %v7429_v23 = vmax.f32 %v6955_v35, 0.0  ;;  %v5096_v54 = vld [vmem:[#allocation2 + $0x321] sm:$0xff]  ;;  %v3841_v35 = vld [vmem:[#allocation2 + $0x3f9] sm:$0xff] }
 0x2b9   : > { %v3539_v25 = vpop.permute.xlu1 %3538  ;;  %v12011_v15 = vpop.f32.mrb[164].mxu0  ;;  %v12023_v62 = vpack.c.bf16 %v5097_v49, %v5096_v54  ;;  %v2051_v57 = vld [vmem:[#allocation2 + $0x400] sm:$0xff]  ;;  %v5867_v49 = vld [vmem:[#allocation3 + $0x258] sm:$0xff]  ;;  %2190 = vst.msk [vmem:[#allocation3 + $0x4b0] sm:$0xff] %vm1647_vm3, %v2126_v28 }
 0x2ba   : > { %v7430_v27 = vmax.f32 %v6958_v59, 0.0  ;;  %3705 = vst.msk [vmem:[#allocation3 + $0x270] sm:$0xff] %vm3678_vm7, %v3539_v25  ;;  %v12007_v22 = vpop.permute.xlu0 %5334  ;;  %4840 = vrot.lane.b32.xlu0 %v12004_v39, %s9966_s18  ;;  %v12017_v3 = vpop.f32.mrb[165].mxu0  ;;  %v3842_v59 = vld [vmem:[#allocation2 + $0x401] sm:$0xff]  ;;  %v2127_v25 = vpack.c.bf16 %v2051_v57, %v2050_v7 }
 0x2bb   : > { %v6417_v46 = vpop.f32.mrb[20].mxu1  ;;  %3560 = vrot.lane.b32.xlu1 %v4675_v9, %s9968_s8  ;;  %v5868_v38 = vld [vmem:[#allocation3 + $0x260] sm:$0xff]  ;;  %v3919_v9 = vpack.c.bf16 %v3840_v32, %v3839_v11  ;;  %v12021_v50 = vpop.f32.mrb[166].mxu0  ;;  %v4587_v32 = vld [vmem:[#allocation2 + $0x338] sm:$0xff] }
 0x2bc   : > { %v6418_v21 = vadd.f32 %v11785_v26, %v6417_v46  ;;  %v6419_v31 = vpop.f32.mrb[21].mxu1  ;;  %v12015_v29 = vpack.c.bf16 %v7430_v27, %v7429_v23  ;;  %6559 = vmatprep.mubr.bf16.mxu1 %v5868_v38  ;;  %v12026_v23 = vpop.f32.mrb[167].mxu0  ;;  %2191 = vst.msk [vmem:[#allocation3 + $0x4c8] sm:$0xff] %vm1647_vm3, %v2127_v25  ;;  %v4586_v11 = vld [vmem:[#allocation2 + $0x330] sm:$0xff] }
 0x2bd   : > { %v6420_v48 = vpop.f32.mrb[22].mxu1  ;;  %v3541_v20 = vpop.permute.xlu1 %3540  ;;  %3983 = vst.msk [vmem:[#allocation3 + $0x488] sm:$0xff] %vm1647_vm3, %v3919_v9 }
 0x2be   : > { %v6963_v45 = vadd.f32 %v11881_v19, %v6418_v21  ;;  %v6421_v13 = vadd.f32 %v11785_v26, %v6420_v48  ;;  %3706 = vst.msk [vmem:[#allocation3 + $0x288] sm:$0xff] %vm3678_vm7, %v3541_v20  ;;  %v4314_v27 = vpop.permute.xlu0 %4313  ;;  %v3920_v19 = vpack.c.bf16 %v3842_v59, %v3841_v35  ;;  %v6422_v54 = vpop.f32.mrb[23].mxu1  ;;  %5352 = vrot.lane.b32.xlu0 %v12023_v62, %s9968_s8  ;;  %v5099_v20 = vld [vmem:[#allocation2 + $0x339] sm:$0xff] }
 0x2bf   : > { %2536 = vrot.lane.b32.xlu1 %v11933_v36, %s9965_s17  ;;  %4476 = vst.msk [vmem:[#allocation3 + $0x2c0] sm:$0xff] %vm2652_vm5, %v4314_v27 }
 0x2c0   : > { %v6966_v46 = vadd.f32 %v11896_v17, %v6421_v13  ;;  %6560 = vmatmul.mubr.bf16.gmra.mrb[92].mxu1 %v5867_v49  ;;  %3984 = vst.msk [vmem:[#allocation3 + $0x4a0] sm:$0xff] %vm1647_vm3, %v3920_v19  ;;  %v7431_v36 = vmax.f32 %v6963_v45, 0.0  ;;  %v4677_v45 = vpack.c.bf16 %v4587_v32, %v4586_v11  ;;  %v5098_v13 = vld [vmem:[#allocation2 + $0x331] sm:$0xff] }
 0x2c1   : > { %v2517_v31 = vpop.permute.xlu1 %2516  ;;  %v12039_v38 = vpop.f32.mrb[168].mxu0  ;;  %v12059_v59 = vpack.c.bf16 %v5099_v20, %v5098_v13  ;;  %v4589_v11 = vld [vmem:[#allocation2 + $0x350] sm:$0xff] }
 0x2c2   : > { %v7432_v21 = vmax.f32 %v6966_v46, 0.0  ;;  %2681 = vst.msk [vmem:[#allocation3 + $0x2a0] sm:$0xff] %vm2652_vm5, %v2517_v31  ;;  %v4821_v17 = vpop.permute.xlu0 %4820  ;;  %v12044_v48 = vpop.f32.mrb[169].mxu0  ;;  %4329 = vrot.lane.b32.xlu0 %v11561_v55, %s9965_s17 }
 0x2c3   : > { %3049 = vrot.lane.b32.xlu1 %v11556_v53, %s9966_s18  ;;  %4986 = vst.msk [vmem:[#allocation3 + $0x278] sm:$0xff] %vm3165_vm6, %v4821_v17  ;;  %v12050_v52 = vpop.f32.mrb[170].mxu0 }
 0x2c4   : > { %v12048_v9 = vpack.c.bf16 %v7432_v21, %v7431_v36  ;;  %v12052_v35 = vpop.f32.mrb[171].mxu0 }
 0x2c5   : > { %v3030_v43 = vpop.permute.xlu1 %3029 }
 0x2c6   : > { %3194 = vst.msk [vmem:[#allocation3 + $0x2a0] sm:$0xff] %vm3165_vm6, %v3030_v43  ;;  %v5333_v53 = vpop.permute.xlu0 %5332  ;;  %4842 = vrot.lane.b32.xlu0 %v4677_v45, %s9966_s18  ;;  %v5870_v43 = vld [vmem:[#allocation3 + $0x270] sm:$0xff] }
 0x2c7   : > { %3562 = vrot.lane.b32.xlu1 %v12004_v39, %s9968_s8  ;;  %5498 = vst.msk [vmem:[#allocation3 + $0x278] sm:$0xff] %vm3678_vm7, %v5333_v53 }
 0x2c9   : > { %v3543_v28 = vpop.permute.xlu1 %3542  ;;  %v12066_v27 = vpop.f32.mrb[172].mxu0 }
 0x2ca   : > { %3707 = vst.msk [vmem:[#allocation3 + $0x2a0] sm:$0xff] %vm3678_vm7, %v3543_v28  ;;  %v4823_v7 = vpop.permute.xlu0 %4822  ;;  %5354 = vrot.lane.b32.xlu0 %v12059_v59, %s9968_s8  ;;  %v12072_v25 = vpop.f32.mrb[173].mxu0 }
 0x2cb   : > { %v6425_v57 = vpop.f32.mrb[24].mxu1  ;;  %2538 = vrot.lane.b32.xlu1 %v11974_v12, %s9965_s17  ;;  %4987 = vst.msk [vmem:[#allocation3 + $0x290] sm:$0xff] %vm3165_vm6, %v4823_v7  ;;  %v12076_v49 = vpop.f32.mrb[174].mxu0  ;;  %v5100_v7 = vld [vmem:[#allocation2 + $0x349] sm:$0xff] }
 0x2cc   : > { %v6426_v39 = vadd.f32 %v11785_v26, %v6425_v57  ;;  %v6427_v19 = vpop.f32.mrb[25].mxu1  ;;  %5499 = vst.msk [vmem:[#allocation3 + $0x290] sm:$0xff] %vm3678_vm7, %v12007_v22  ;;  %v12079_v21 = vpop.f32.mrb[175].mxu0  ;;  %v4588_v22 = vld [vmem:[#allocation2 + $0x348] sm:$0xff] }
 0x2cd   : > { %v6428_v46 = vpop.f32.mrb[26].mxu1  ;;  %v3545_v36 = vpop.permute.xlu1 %3544  ;;  %v12087_v13 = vpack.c.bf16 %v4589_v11, %v4588_v22  ;;  %v3844_v11 = vld [vmem:[#allocation2 + $0x419] sm:$0xff] }
 0x2ce   : > { %v6971_v54 = vadd.f32 %v11922_v51, %v6426_v39  ;;  %v6429_v12 = vadd.f32 %v11785_v26, %v6428_v46  ;;  %3708 = vst.msk [vmem:[#allocation3 + $0x2b8] sm:$0xff] %vm3678_vm7, %v3545_v36  ;;  %v4312_v31 = vpop.permute.xlu0 %4311  ;;  %v5871_v17 = vld [vmem:[#allocation3 + $0x278] sm:$0xff]  ;;  %v6430_v51 = vpop.f32.mrb[27].mxu1  ;;  %4331 = vrot.lane.b32.xlu0 %v11611_v8, %s9965_s17  ;;  %v3843_v36 = vld [vmem:[#allocation2 + $0x411] sm:$0xff] }
 0x2cf   : > { %3051 = vrot.lane.b32.xlu1 %v11561_v55, %s9966_s18  ;;  %4475 = vst.msk [vmem:[#allocation3 + $0x2a8] sm:$0xff] %vm2652_vm5, %v4312_v31  ;;  %6567 = vmatprep.mubr.bf16.mxu1 %v5871_v17  ;;  %v5101_v55 = vld [vmem:[#allocation2 + $0x351] sm:$0xff] }
 0x2d0   : > { %v6974_v32 = vadd.f32 %v11931_v6, %v6429_v12  ;;  %6568 = vmatmul.mubr.bf16.gmra.mrb[96].mxu1 %v5870_v43  ;;  %v7433_v20 = vmax.f32 %v6971_v54, 0.0  ;;  %v12100_v22 = vpack.c.bf16 %v5101_v55, %v5100_v7  ;;  %v2054_v55 = vld [vmem:[#allocation2 + $0x420] sm:$0xff] }
 0x2d1   : > { %v2521_v53 = vpop.permute.xlu1 %2520  ;;  %v12096_v46 = vpop.f32.mrb[176].mxu0 }
 0x2d2   : > { %v7434_v28 = vmax.f32 %v6974_v32, 0.0  ;;  %2683 = vst.msk [vmem:[#allocation3 + $0x2d0] sm:$0xff] %vm2652_vm5, %v2521_v53  ;;  %v12090_v57 = vpop.permute.xlu0 %5338  ;;  %4844 = vrot.lane.b32.xlu0 %v12087_v13, %s9966_s18  ;;  %13542 = vst [vmem:[#allocation4_spill] sm:$0xff] %v12096_v46  ;;  %v12098_v17 = vpop.f32.mrb[177].mxu0  ;;  %v2052_v32 = vld [vmem:[#allocation2 + $0x410] sm:$0xff] }
 0x2d3   : > { %v6433_v6 = vpop.f32.mrb[28].mxu1  ;;  %3564 = vrot.lane.b32.xlu1 %v4677_v45, %s9968_s8  ;;  %v5874_v54 = vld [vmem:[#allocation3 + $0x290] sm:$0xff]  ;;  %v2053_v45 = vld [vmem:[#allocation2 + $0x418] sm:$0xff]  ;;  %v3846_v46 = vld [vmem:[#allocation2 + $0x429] sm:$0xff]  ;;  %v12108_v7 = vpop.f32.mrb[178].mxu0 }
 0x2d4   : > { %v6434_v39 = vadd.f32 %v11785_v26, %v6433_v6  ;;  %v6435_v19 = vpop.f32.mrb[29].mxu1  ;;  %v7633_v12 = vpack.c.bf16 %v7434_v28, %v7433_v20  ;;  %6575 = vmatprep.mubr.bf16.mxu1 %v5874_v54  ;;  %v2128_v20 = vpack.c.bf16 %v2053_v45, %v2052_v32  ;;  %v3845_v28 = vld [vmem:[#allocation2 + $0x421] sm:$0xff] }
 0x2d5   : > { %v6436_v31 = vpop.f32.mrb[30].mxu1  ;;  %v3034_v53 = vpop.permute.xlu1 %3033  ;;  %v3921_v19 = vpack.c.bf16 %v3844_v11, %v3843_v36  ;;  %v4590_v11 = vld [vmem:[#allocation2 + $0x358] sm:$0xff]  ;;  %v4591_v32 = vld [vmem:[#allocation2 + $0x360] sm:$0xff] }
 0x2d6   : > { %v6979_v51 = vadd.f32 %v11916_v37, %v6434_v39  ;;  %v6437_v43 = vadd.f32 %v11785_v26, %v6436_v31  ;;  %v6438_v6 = vpop.f32.mrb[31].mxu1  ;;  %9226 = vmatprep.subr.bf16.mxu0 %v7633_v12  ;;  %3196 = vst.msk [vmem:[#allocation3 + $0x2d0] sm:$0xff] %vm3165_vm6, %v3034_v53  ;;  %v4318_v54 = vpop.permute.xlu0 %4317  ;;  %v3922_v37 = vpack.c.bf16 %v3846_v46, %v3845_v28  ;;  %v2055_v26 = vld [vmem:[#allocation2 + $0x428] sm:$0xff]  ;;  %v5873_v12 = vld [vmem:[#allocation3 + $0x288] sm:$0xff] }
 0x2d7   : > { %9227 = vmatpush3.bf16.msra.mxu0 %v11821_v30  ;;  %2540 = vrot.lane.b32.xlu1 %v12023_v62, %s9965_s17  ;;  %4478 = vst.msk [vmem:[#allocation3 + $0x2f0] sm:$0xff] %vm2652_vm5, %v4318_v54  ;;  %v12114_v36 = vpop.f32.mrb[179].mxu0  ;;  %v2129_v30 = vpack.c.bf16 %v2055_v26, %v2054_v55  ;;  %v5102_v28 = vld [vmem:[#allocation2 + $0x359] sm:$0xff]  ;;  %v5103_v54 = vld [vmem:[#allocation2 + $0x361] sm:$0xff] }
 0x2d8   : > { %v6982_v39 = vadd.f32 %v11928_v61, %v6437_v43  ;;  %5356 = vrot.lane.b32.xlu0 %v12100_v22, %s9968_s8  ;;  %3985 = vst.msk [vmem:[#allocation3 + $0x4b8] sm:$0xff] %vm1647_vm3, %v3921_v19  ;;  %2192 = vst.msk [vmem:[#allocation3 + $0x4e0] sm:$0xff] %vm1647_vm3, %v2128_v20  ;;  %6576 = vmatmul.mubr.bf16.gmra.mrb[100].mxu1 %v5873_v12  ;;  %v7435_v46 = vmax.f32 %v6979_v51, 0.0  ;;  %v4679_v19 = vpack.c.bf16 %v4591_v32, %v4590_v11 }
 0x2d9   : > { %3986 = vst.msk [vmem:[#allocation3 + $0x4d0] sm:$0xff] %vm1647_vm3, %v3922_v37  ;;  %v2523_v62 = vpop.permute.xlu1 %2522  ;;  %2193 = vst.msk [vmem:[#allocation3 + $0x4f8] sm:$0xff] %vm1647_vm3, %v2129_v30  ;;  %v12123_v45 = vpop.f32.mrb[180].mxu0  ;;  %v12140_v55 = vpack.c.bf16 %v5103_v54, %v5102_v28 }
 0x2da   : > { %v7436_v31 = vmax.f32 %v6982_v39, 0.0  ;;  %2684 = vst.msk [vmem:[#allocation3 + $0x2e8] sm:$0xff] %vm2652_vm5, %v2523_v62  ;;  %v4825_v61 = vpop.permute.xlu0 %4824  ;;  %v12128_v51 = vpop.f32.mrb[181].mxu0 }
 0x2db   : > { %3053 = vrot.lane.b32.xlu1 %v11611_v8, %s9966_s18  ;;  %4988 = vst.msk [vmem:[#allocation3 + $0x2a8] sm:$0xff] %vm3165_vm6, %v4825_v61  ;;  %v12130_v53 = vpop.f32.mrb[182].mxu0 }
 0x2dc   : > { %4333 = vrot.lane.b32.xlu0 %v11615_v40, %s9965_s17  ;;  %v7634_v43 = vpack.c.bf16 %v7436_v31, %v7435_v46  ;;  %v12132_v20 = vpop.f32.mrb[183].mxu0 }
 0x2dd   : > { %v3547_v6 = vpop.permute.xlu1 %3546 }
 0x2de   : > { %9228 = vmatprep.subr.bf16.mxu0 %v7634_v43  ;;  %3709 = vst.msk [vmem:[#allocation3 + $0x2d0] sm:$0xff] %vm3678_vm7, %v3547_v6  ;;  %v5337_v8 = vpop.permute.xlu0 %5336  ;;  %v4592_v6 = vld [vmem:[#allocation2 + $0x370] sm:$0xff] }
 0x2df   : > { %9229 = vmatpush3.bf16.msra.mxu0 %v11814_v4  ;;  %3566 = vrot.lane.b32.xlu1 %v12087_v13, %s9968_s8  ;;  %5500 = vst.msk [vmem:[#allocation3 + $0x2a8] sm:$0xff] %vm3678_vm7, %v5337_v8  ;;  %v12149_v4 = vld [vmem:[%s13538_s4] ss:$0 sm:$0xff]  ;;  %v4593_v8 = vld [vmem:[#allocation2 + $0x378] sm:$0xff] }
 0x2e0   : > { %4846 = vrot.lane.b32.xlu0 %v4679_v19, %s9966_s18 }
 0x2e1   : > { %v3036_v37 = vpop.permute.xlu1 %3035  ;;  %v12154_v30 = vpop.f32.mrb[184].mxu0 }
 0x2e2   : > { %3197 = vst.msk [vmem:[#allocation3 + $0x2e8] sm:$0xff] %vm3165_vm6, %v3036_v37  ;;  %v4827_v26 = vpop.permute.xlu0 %4826  ;;  %13543 = vst [vmem:[#allocation5_spill] sm:$0xff] %v12154_v30 }
 0x2e3   : > { %v6441_v39 = vpop.f32.mrb[32].mxu1  ;;  %2542 = vrot.lane.b32.xlu1 %v12059_v59, %s9965_s17  ;;  %4989 = vst.msk [vmem:[#allocation3 + $0x2c0] sm:$0xff] %vm3165_vm6, %v4827_v26  ;;  %v12158_v59 = vpop.f32.mrb[185].mxu0  ;;  %v12173_v26 = vpack.c.bf16 %v4593_v8, %v4592_v6  ;;  %v3848_v6 = vld [vmem:[#allocation2 + $0x441] sm:$0xff] }
 0x2e4   : > { %v6442_v13 = vadd.f32 %v12149_v4, %v6441_v39  ;;  %5358 = vrot.lane.b32.xlu0 %v12140_v55, %s9968_s8  ;;  %v6443_v12 = vpop.f32.mrb[33].mxu1  ;;  %5501 = vst.msk [vmem:[#allocation3 + $0x2c0] sm:$0xff] %vm3678_vm7, %v12090_v57  ;;  %13544 = vst [vmem:[#allocation6_spill] sm:$0xff] %v12158_v59  ;;  %v12165_v28 = vpop.f32.mrb[186].mxu0  ;;  %v2058_v59 = vld [vmem:[#allocation2 + $0x448] sm:$0xff] }
 0x2e5   : > { %v6444_v62 = vpop.f32.mrb[34].mxu1  ;;  %v3549_v61 = vpop.permute.xlu1 %3548  ;;  %13545 = vst [vmem:[#allocation7_spill] sm:$0xff] %v12165_v28  ;;  %v5104_v12 = vld [vmem:[#allocation2 + $0x371] sm:$0xff]  ;;  %v3849_v28 = vld [vmem:[#allocation2 + $0x449] sm:$0xff] }
 0x2e6   : > { %v6987_v46 = vadd.f32 %v11957_v0, %v6442_v13  ;;  %v6445_v31 = vadd.f32 %v12149_v4, %v6444_v62  ;;  %v6446_v11 = vpop.f32.mrb[35].mxu1  ;;  %3710 = vst.msk [vmem:[#allocation3 + $0x2e8] sm:$0xff] %vm3678_vm7, %v3549_v61  ;;  %v4316_v32 = vpop.permute.xlu0 %4315  ;;  %v5877_v43 = vld [vmem:[#allocation3 + $0x2a8] sm:$0xff]  ;;  %v5876_v0 = vld [vmem:[#allocation3 + $0x2a0] sm:$0xff] }
 0x2e7   : > { %3055 = vrot.lane.b32.xlu1 %v11615_v40, %s9966_s18  ;;  %4477 = vst.msk [vmem:[#allocation3 + $0x2d8] sm:$0xff] %vm2652_vm5, %v4316_v32  ;;  %6583 = vmatprep.mubr.bf16.mxu1 %v5877_v43  ;;  %v12171_v54 = vpop.f32.mrb[187].mxu0  ;;  %v5105_v62 = vld [vmem:[#allocation2 + $0x379] sm:$0xff] }
 0x2e8   : > { %v6990_v57 = vadd.f32 %v11965_v44, %v6445_v31  ;;  %4335 = vrot.lane.b32.xlu0 %v11656_v42, %s9965_s17  ;;  %13546 = vst [vmem:[#allocation8_spill] sm:$0xff] %v12171_v54  ;;  %6584 = vmatmul.mubr.bf16.gmra.mrb[104].mxu1 %v5876_v0  ;;  %v7437_v40 = vmax.f32 %v6987_v46, 0.0  ;;  %v3847_v46 = vld [vmem:[#allocation2 + $0x439] sm:$0xff] }
 0x2e9   : > { %v2525_v37 = vpop.permute.xlu1 %2524  ;;  %v12182_v43 = vpop.f32.mrb[188].mxu0  ;;  %v3923_v0 = vpack.c.bf16 %v3848_v6, %v3847_v46 }
 0x2ea   : > { %v7438_v39 = vmax.f32 %v6990_v57, 0.0  ;;  %2685 = vst.msk [vmem:[#allocation3 + $0x300] sm:$0xff] %vm2652_vm5, %v2525_v37  ;;  %v12176_v13 = vpop.permute.xlu0 %5342  ;;  %13547 = vst [vmem:[#allocation9_spill] sm:$0xff] %v12182_v43  ;;  %v12184_v57 = vpop.f32.mrb[189].mxu0  ;;  %v2057_v37 = vld [vmem:[#allocation2 + $0x440] sm:$0xff]  ;;  %v3850_v43 = vld [vmem:[#allocation2 + $0x451] sm:$0xff] }
 0x2eb   : > { %v6449_v44 = vpop.f32.mrb[36].mxu1  ;;  %3568 = vrot.lane.b32.xlu1 %v4679_v19, %s9968_s8  ;;  %v5880_v32 = vld [vmem:[#allocation3 + $0x2c0] sm:$0xff]  ;;  %v2056_v19 = vld [vmem:[#allocation2 + $0x438] sm:$0xff]  ;;  %v12194_v46 = vpop.f32.mrb[190].mxu0  ;;  %3987 = vst.msk [vmem:[#allocation3 + $0x4e8] sm:$0xff] %vm1647_vm3, %v3923_v0 }
 0x2ec   : > { %v6450_v31 = vadd.f32 %v12149_v4, %v6449_v44  ;;  %4848 = vrot.lane.b32.xlu0 %v12173_v26, %s9966_s18  ;;  %v6451_v61 = vpop.f32.mrb[37].mxu1  ;;  %v7635_v11 = vpack.c.bf16 %v7438_v39, %v7437_v40  ;;  %6591 = vmatprep.mubr.bf16.mxu1 %v5880_v32  ;;  %v12188_v40 = vpack.c.bf16 %v5105_v62, %v5104_v12  ;;  %v12201_v62 = vpop.f32.mrb[191].mxu0 }
 0x2ed   : > { %v6452_v8 = vpop.f32.mrb[38].mxu1  ;;  %v3038_v54 = vpop.permute.xlu1 %3037  ;;  %v2130_v39 = vpack.c.bf16 %v2057_v37, %v2056_v19 }
 0x2ee   : > { %v6995_v44 = vadd.f32 %v11950_v1, %v6450_v31  ;;  %v6453_v30 = vadd.f32 %v12149_v4, %v6452_v8  ;;  %v6454_v61 = vpop.f32.mrb[39].mxu1  ;;  %9230 = vmatprep.subr.bf16.mxu0 %v7635_v11  ;;  %3198 = vst.msk [vmem:[#allocation3 + $0x300] sm:$0xff] %vm3165_vm6, %v3038_v54  ;;  %v4829_v32 = vpop.permute.xlu0 %4828  ;;  %v3924_v1 = vpack.c.bf16 %v3850_v43, %v3849_v28  ;;  %v2059_v31 = vld [vmem:[#allocation2 + $0x450] sm:$0xff]  ;;  %v5879_v54 = vld [vmem:[#allocation3 + $0x2b8] sm:$0xff] }
 0x2ef   : > { %9231 = vmatpush3.bf16.msra.mxu0 %v11867_v2  ;;  %2544 = vrot.lane.b32.xlu1 %v12100_v22, %s9965_s17  ;;  %4990 = vst.msk [vmem:[#allocation3 + $0x2d8] sm:$0xff] %vm3165_vm6, %v4829_v32  ;;  %v2131_v2 = vpack.c.bf16 %v2059_v31, %v2058_v59  ;;  %v4595_v43 = vld [vmem:[#allocation2 + $0x388] sm:$0xff] }
 0x2f0   : > { %v6998_v12 = vadd.f32 %v11962_v24, %v6453_v30  ;;  %5360 = vrot.lane.b32.xlu0 %v12188_v40, %s9968_s8  ;;  %2194 = vst.msk [vmem:[#allocation3 + $0x510] sm:$0xff] %vm1647_vm3, %v2130_v39  ;;  %6592 = vmatmul.mubr.bf16.gmra.mrb[108].mxu1 %v5879_v54  ;;  %3988 = vst.msk [vmem:[#allocation3 + $0x500] sm:$0xff] %vm1647_vm3, %v3924_v1  ;;  %v7439_v11 = vmax.f32 %v6995_v44, 0.0  ;;  %v4594_v30 = vld [vmem:[#allocation2 + $0x380] sm:$0xff]  ;;  %v5107_v39 = vld [vmem:[#allocation2 + $0x389] sm:$0xff] }
 0x2f1   : > { %v3551_v22 = vpop.permute.xlu1 %3550  ;;  %2195 = vst.msk [vmem:[#allocation3 + $0x528] sm:$0xff] %vm1647_vm3, %v2131_v2  ;;  %v12209_v6 = vpop.f32.mrb[192].mxu0  ;;  %v4681_v37 = vpack.c.bf16 %v4595_v43, %v4594_v30  ;;  %v5106_v61 = vld [vmem:[#allocation2 + $0x381] sm:$0xff] }
 0x2f2   : > { %v7440_v28 = vmax.f32 %v6998_v12, 0.0  ;;  %3711 = vst.msk [vmem:[#allocation3 + $0x300] sm:$0xff] %vm3678_vm7, %v3551_v22  ;;  %v5341_v24 = vpop.permute.xlu0 %5340  ;;  %v12214_v8 = vpop.f32.mrb[193].mxu0  ;;  %v12228_v1 = vpack.c.bf16 %v5107_v39, %v5106_v61  ;;  %v5882_v54 = vld [vmem:[#allocation3 + $0x2d0] sm:$0xff] }
 0x2f3   : > { %3057 = vrot.lane.b32.xlu1 %v11656_v42, %s9966_s18  ;;  %5502 = vst.msk [vmem:[#allocation3 + $0x2d8] sm:$0xff] %vm3678_vm7, %v5341_v24  ;;  %v12216_v0 = vpop.f32.mrb[194].mxu0 }
 0x2f4   : > { %4337 = vrot.lane.b32.xlu0 %v11660_v33, %s9965_s17  ;;  %v7636_v59 = vpack.c.bf16 %v7440_v28, %v7439_v11  ;;  %v12218_v44 = vpop.f32.mrb[195].mxu0 }
 0x2f5   : > { %v2527_v19 = vpop.permute.xlu1 %2526 }
 0x2f6   : > { %9232 = vmatprep.subr.bf16.mxu0 %v7636_v59  ;;  %2686 = vst.msk [vmem:[#allocation3 + $0x318] sm:$0xff] %vm2652_vm5, %v2527_v19  ;;  %v4831_v42 = vpop.permute.xlu0 %4830  ;;  %v4596_v59 = vld [vmem:[#allocation2 + $0x398] sm:$0xff]  ;;  %v4597_v19 = vld [vmem:[#allocation2 + $0x3a0] sm:$0xff] }
 0x2f7   : > { %9233 = vmatpush3.bf16.msra.mxu0 %v11901_v18  ;;  %3570 = vrot.lane.b32.xlu1 %v12173_v26, %s9968_s8  ;;  %4991 = vst.msk [vmem:[#allocation3 + $0x2f0] sm:$0xff] %vm3165_vm6, %v4831_v42 }
 0x2f8   : > { %4850 = vrot.lane.b32.xlu0 %v4681_v37, %s9966_s18  ;;  %5503 = vst.msk [vmem:[#allocation3 + $0x2f0] sm:$0xff] %vm3678_vm7, %v12176_v13 }
 0x2f9   : > { %v3040_v32 = vpop.permute.xlu1 %3039  ;;  %v6457_v12 = vpop.f32.mrb[40].mxu1 }
 0x2fa   : > { %3199 = vst.msk [vmem:[#allocation3 + $0x318] sm:$0xff] %vm3165_vm6, %v3040_v32  ;;  %v4320_v31 = vpop.permute.xlu0 %4319  ;;  %v5883_v18 = vld [vmem:[#allocation3 + $0x2d8] sm:$0xff]  ;;  %v6458_v26 = vadd.f32 %v12149_v4, %v6457_v12  ;;  %v6459_v13 = vpop.f32.mrb[41].mxu1 }
 0x2fb   : > { %2546 = vrot.lane.b32.xlu1 %v12140_v55, %s9965_s17  ;;  %4479 = vst.msk [vmem:[#allocation3 + $0x308] sm:$0xff] %vm2652_vm5, %v4320_v31  ;;  %6599 = vmatprep.mubr.bf16.mxu1 %v5883_v18  ;;  %v12237_v2 = vpop.f32.mrb[196].mxu0  ;;  %v6460_v22 = vpop.f32.mrb[42].mxu1  ;;  %v12254_v31 = vpack.c.bf16 %v4597_v19, %v4596_v59  ;;  %v5109_v13 = vld [vmem:[#allocation2 + $0x3a1] sm:$0xff] }
 0x2fc   : > { %5362 = vrot.lane.b32.xlu0 %v12228_v1, %s9968_s8  ;;  %13548 = vst [vmem:[#allocation10_spill] sm:$0xff] %v12237_v2  ;;  %6600 = vmatmul.mubr.bf16.gmra.mrb[112].mxu1 %v5882_v54  ;;  %v12239_v11 = vpop.f32.mrb[197].mxu0  ;;  %v7003_v28 = vadd.f32 %v11988_v10, %v6458_v26  ;;  %v6461_v55 = vadd.f32 %v12149_v4, %v6460_v22  ;;  %v6462_v30 = vpop.f32.mrb[43].mxu1  ;;  %v2062_v2 = vld [vmem:[#allocation2 + $0x470] sm:$0xff] }
 0x2fd   : > { %v3553_v24 = vpop.permute.xlu1 %3552  ;;  %v12246_v42 = vpop.f32.mrb[198].mxu0  ;;  %v3851_v30 = vld [vmem:[#allocation2 + $0x461] sm:$0xff] }
 0x2fe   : > { %3712 = vst.msk [vmem:[#allocation3 + $0x318] sm:$0xff] %vm3678_vm7, %v3553_v24  ;;  %v4833_v43 = vpop.permute.xlu0 %4832  ;;  %13549 = vst [vmem:[#allocation11_spill] sm:$0xff] %v12246_v42  ;;  %v7006_v61 = vadd.f32 %v11996_v60, %v6461_v55  ;;  %v12252_v39 = vpop.f32.mrb[199].mxu0  ;;  %v7441_v12 = vmax.f32 %v7003_v28, 0.0  ;;  %v5108_v60 = vld [vmem:[#allocation2 + $0x399] sm:$0xff] }
 0x2ff   : > { %3059 = vrot.lane.b32.xlu1 %v11660_v33, %s9966_s18  ;;  %4992 = vst.msk [vmem:[#allocation3 + $0x308] sm:$0xff] %vm3165_vm6, %v4833_v43  ;;  %v5886_v10 = vld [vmem:[#allocation3 + $0x2f0] sm:$0xff]  ;;  %v5885_v55 = vld [vmem:[#allocation3 + $0x2e8] sm:$0xff]  ;;  %v3852_v43 = vld [vmem:[#allocation2 + $0x469] sm:$0xff] }
 0x300   : > { %4339 = vrot.lane.b32.xlu0 %v11677_v58, %s9965_s17  ;;  %6607 = vmatprep.mubr.bf16.mxu1 %v5886_v10  ;;  %v7442_v33 = vmax.f32 %v7006_v61, 0.0  ;;  %v2060_v61 = vld [vmem:[#allocation2 + $0x460] sm:$0xff]  ;;  %v2061_v10 = vld [vmem:[#allocation2 + $0x468] sm:$0xff] }
 0x301   : > { %v2529_v32 = vpop.permute.xlu1 %2528  ;;  %v6465_v26 = vpop.f32.mrb[44].mxu1 }
 0x302   : > { %2687 = vst.msk [vmem:[#allocation3 + $0x330] sm:$0xff] %vm2652_vm5, %v2529_v32  ;;  %v5345_v18 = vpop.permute.xlu0 %5344  ;;  %v6466_v54 = vadd.f32 %v12149_v4, %v6465_v26  ;;  %v6467_v22 = vpop.f32.mrb[45].mxu1  ;;  %v7637_v24 = vpack.c.bf16 %v7442_v33, %v7441_v12  ;;  %v3853_v32 = vld [vmem:[#allocation2 + $0x471] sm:$0xff]  ;;  %v12268_v12 = vpack.c.bf16 %v5109_v13, %v5108_v60  ;;  %v2132_v33 = vpack.c.bf16 %v2061_v10, %v2060_v61 }
 0x303   : > { %3572 = vrot.lane.b32.xlu1 %v4681_v37, %s9968_s8  ;;  %5504 = vst.msk [vmem:[#allocation3 + $0x308] sm:$0xff] %vm3678_vm7, %v5345_v18  ;;  %v12262_v28 = vpop.f32.mrb[200].mxu0  ;;  %v6468_v59 = vpop.f32.mrb[46].mxu1  ;;  %v3925_v37 = vpack.c.bf16 %v3852_v43, %v3851_v30  ;;  %v4598_v43 = vld [vmem:[#allocation2 + $0x3a8] sm:$0xff] }
 0x304   : > { %4852 = vrot.lane.b32.xlu0 %v12254_v31, %s9966_s18  ;;  %13550 = vst [vmem:[#allocation12_spill] sm:$0xff] %v12262_v28  ;;  %6608 = vmatmul.mubr.bf16.gmra.mrb[116].mxu1 %v5885_v55  ;;  %v12264_v19 = vpop.f32.mrb[201].mxu0  ;;  %v7011_v18 = vadd.f32 %v11982_v14, %v6466_v54  ;;  %v6469_v26 = vadd.f32 %v12149_v4, %v6468_v59  ;;  %v6470_v22 = vpop.f32.mrb[47].mxu1  ;;  %v3854_v28 = vld [vmem:[#allocation2 + $0x479] sm:$0xff]  ;;  %2196 = vst.msk [vmem:[#allocation3 + $0x540] sm:$0xff] %vm1647_vm3, %v2132_v33  ;;  %v4599_v59 = vld [vmem:[#allocation2 + $0x3b0] sm:$0xff] }
 0x305   : > { %v3042_v42 = vpop.permute.xlu1 %3041  ;;  %9234 = vmatprep.subr.bf16.mxu0 %v7637_v24  ;;  %v12274_v30 = vpop.f32.mrb[202].mxu0  ;;  %3989 = vst.msk [vmem:[#allocation3 + $0x518] sm:$0xff] %vm1647_vm3, %v3925_v37  ;;  %v3926_v14 = vpack.c.bf16 %v3854_v28, %v3853_v32  ;;  %v2063_v54 = vld [vmem:[#allocation2 + $0x478] sm:$0xff]  ;;  %v5110_v33 = vld [vmem:[#allocation2 + $0x3a9] sm:$0xff] }
 0x306   : > { %3200 = vst.msk [vmem:[#allocation3 + $0x330] sm:$0xff] %vm3165_vm6, %v3042_v42  ;;  %v4322_v55 = vpop.permute.xlu0 %4321  ;;  %9235 = vmatpush3.bf16.msra.mxu0 %v11935_v16  ;;  %v7014_v60 = vadd.f32 %v11993_v41, %v6469_v26  ;;  %v12281_v42 = vpop.f32.mrb[203].mxu0  ;;  %v2133_v16 = vpack.c.bf16 %v2063_v54, %v2062_v2  ;;  %v7443_v13 = vmax.f32 %v7011_v18, 0.0  ;;  %v5888_v2 = vld [vmem:[#allocation3 + $0x300] sm:$0xff] }
 0x307   : > { %2548 = vrot.lane.b32.xlu1 %v12188_v40, %s9965_s17  ;;  %4480 = vst.msk [vmem:[#allocation3 + $0x320] sm:$0xff] %vm2652_vm5, %v4322_v55  ;;  %v5111_v55 = vld [vmem:[#allocation2 + $0x3b1] sm:$0xff] }
 0x308   : > { %5364 = vrot.lane.b32.xlu0 %v12268_v12, %s9968_s8  ;;  %3990 = vst.msk [vmem:[#allocation3 + $0x530] sm:$0xff] %vm1647_vm3, %v3926_v14  ;;  %v7444_v24 = vmax.f32 %v7014_v60, 0.0  ;;  %2197 = vst.msk [vmem:[#allocation3 + $0x558] sm:$0xff] %vm1647_vm3, %v2133_v16  ;;  %v12306_v54 = vpack.c.bf16 %v5111_v55, %v5110_v33 }
 0x309   : > { %v3555_v40 = vpop.permute.xlu1 %3554 }
 0x30a   : > { %3713 = vst.msk [vmem:[#allocation3 + $0x330] sm:$0xff] %vm3678_vm7, %v3555_v40  ;;  %v4835_v41 = vpop.permute.xlu0 %4834  ;;  %v5889_v28 = vld [vmem:[#allocation3 + $0x308] sm:$0xff]  ;;  %v12289_v37 = vpop.f32.mrb[204].mxu0  ;;  %v7638_v61 = vpack.c.bf16 %v7444_v24, %v7443_v13 }
 0x30b   : > { %3061 = vrot.lane.b32.xlu1 %v11677_v58, %s9966_s18  ;;  %4993 = vst.msk [vmem:[#allocation3 + $0x320] sm:$0xff] %vm3165_vm6, %v4835_v41  ;;  %6615 = vmatprep.mubr.bf16.mxu1 %v5889_v28  ;;  %v12294_v10 = vpop.f32.mrb[205].mxu0  ;;  %v4683_v58 = vpack.c.bf16 %v4599_v59, %v4598_v43 }
 0x30c   : > { %4341 = vrot.lane.b32.xlu0 %v11680_v63, %s9965_s17  ;;  %6616 = vmatmul.mubr.bf16.gmra.mrb[120].mxu1 %v5888_v2  ;;  %v12296_v32 = vpop.f32.mrb[206].mxu0  ;;  %v4601_v2 = vld [vmem:[#allocation2 + $0x3c8] sm:$0xff] }
 0x30d   : > { %v2531_v18 = vpop.permute.xlu1 %2530  ;;  %9236 = vmatprep.subr.bf16.mxu0 %v7638_v61  ;;  %v12298_v26 = vpop.f32.mrb[207].mxu0 }
 0x30e   : > { %2688 = vst.msk [vmem:[#allocation3 + $0x348] sm:$0xff] %vm2652_vm5, %v2531_v18  ;;  %v5347_v22 = vpop.permute.xlu0 %5346  ;;  %9237 = vmatpush3.bf16.msra.mxu0 %v11967_v47 }
 0x30f   : > { %3574 = vrot.lane.b32.xlu1 %v12254_v31, %s9968_s8  ;;  %5505 = vst.msk [vmem:[#allocation3 + $0x320] sm:$0xff] %vm3678_vm7, %v5347_v22 }
 0x310   : > { %4854 = vrot.lane.b32.xlu0 %v4683_v58, %s9966_s18 }
 0x311   : > { %v3044_v14 = vpop.permute.xlu1 %3043  ;;  %v6473_v16 = vpop.f32.mrb[48].mxu1 }
 0x312   : > { %3201 = vst.msk [vmem:[#allocation3 + $0x348] sm:$0xff] %vm3165_vm6, %v3044_v14  ;;  %v4324_v60 = vpop.permute.xlu0 %4323  ;;  %v6474_v47 = vadd.f32 %v12149_v4, %v6473_v16  ;;  %v6475_v31 = vpop.f32.mrb[49].mxu1  ;;  %v5112_v14 = vld [vmem:[#allocation2 + $0x3c1] sm:$0xff] }
 0x313   : > { %2550 = vrot.lane.b32.xlu1 %v12228_v1, %s9965_s17  ;;  %4481 = vst.msk [vmem:[#allocation3 + $0x338] sm:$0xff] %vm2652_vm5, %v4324_v60  ;;  %v6476_v40 = vpop.f32.mrb[50].mxu1  ;;  %v4600_v1 = vld [vmem:[#allocation2 + $0x3c0] sm:$0xff]  ;;  %v5113_v60 = vld [vmem:[#allocation2 + $0x3c9] sm:$0xff] }
 0x314   : > { %5366 = vrot.lane.b32.xlu0 %v12306_v54, %s9968_s8  ;;  %v7019_v13 = vadd.f32 %v12017_v3, %v6474_v47  ;;  %v6477_v24 = vadd.f32 %v12149_v4, %v6476_v40  ;;  %v6478_v28 = vpop.f32.mrb[51].mxu1  ;;  %v5891_v3 = vld [vmem:[#allocation3 + $0x318] sm:$0xff]  ;;  %v12324_v22 = vpack.c.bf16 %v4601_v2, %v4600_v1  ;;  %v2065_v1 = vld [vmem:[#allocation2 + $0x490] sm:$0xff]  ;;  %v3857_v2 = vld [vmem:[#allocation2 + $0x499] sm:$0xff] }
 0x315   : > { %v3557_v41 = vpop.permute.xlu1 %3556 }
 0x316   : > { %3714 = vst.msk [vmem:[#allocation3 + $0x348] sm:$0xff] %vm3678_vm7, %v3557_v41  ;;  %v4837_v43 = vpop.permute.xlu0 %4836  ;;  %v5892_v59 = vld [vmem:[#allocation3 + $0x320] sm:$0xff]  ;;  %v7022_v61 = vadd.f32 %v12026_v23, %v6477_v24  ;;  %v7445_v33 = vmax.f32 %v7019_v13, 0.0  ;;  %v2064_v41 = vld [vmem:[#allocation2 + $0x488] sm:$0xff] }
 0x317   : > { %3063 = vrot.lane.b32.xlu1 %v11680_v63, %s9966_s18  ;;  %4994 = vst.msk [vmem:[#allocation3 + $0x338] sm:$0xff] %vm3165_vm6, %v4837_v43  ;;  %6623 = vmatprep.mubr.bf16.mxu1 %v5892_v59  ;;  %v3855_v13 = vld [vmem:[#allocation2 + $0x489] sm:$0xff]  ;;  %v3856_v24 = vld [vmem:[#allocation2 + $0x491] sm:$0xff]  ;;  %v12334_v43 = vpack.c.bf16 %v5113_v60, %v5112_v14 }
 0x318   : > { %4343 = vrot.lane.b32.xlu0 %v11700_v56, %s9965_s17  ;;  %6624 = vmatmul.mubr.bf16.gmra.mrb[124].mxu1 %v5891_v3  ;;  %v7446_v55 = vmax.f32 %v7022_v61, 0.0  ;;  %v12332_v40 = vpop.f32.mrb[208].mxu0  ;;  %v3858_v61 = vld [vmem:[#allocation2 + $0x4a1] sm:$0xff] }
 0x319   : > { %v2533_v18 = vpop.permute.xlu1 %2532  ;;  %v6481_v16 = vpop.f32.mrb[52].mxu1  ;;  %13551 = vst [vmem:[#allocation13_spill] sm:$0xff] %v12332_v40  ;;  %v2067_v40 = vld [vmem:[#allocation2 + $0x4a0] sm:$0xff] }
 0x31a   : > { %2689 = vst.msk [vmem:[#allocation3 + $0x360] sm:$0xff] %vm2652_vm5, %v2533_v18  ;;  %v5349_v63 = vpop.permute.xlu0 %5348  ;;  %v6482_v23 = vadd.f32 %v12149_v4, %v6481_v16  ;;  %v6483_v47 = vpop.f32.mrb[53].mxu1  ;;  %v7639_v31 = vpack.c.bf16 %v7446_v55, %v7445_v33  ;;  %v2134_v55 = vpack.c.bf16 %v2065_v1, %v2064_v41  ;;  %v3928_v16 = vpack.c.bf16 %v3858_v61, %v3857_v2  ;;  %v4603_v41 = vld [vmem:[#allocation2 + $0x3d8] sm:$0xff] }
 0x31b   : > { %3576 = vrot.lane.b32.xlu1 %v4683_v58, %s9968_s8  ;;  %5506 = vst.msk [vmem:[#allocation3 + $0x338] sm:$0xff] %vm3678_vm7, %v5349_v63  ;;  %v6484_v28 = vpop.f32.mrb[54].mxu1  ;;  %v12336_v59 = vpop.f32.mrb[209].mxu0  ;;  %v3927_v58 = vpack.c.bf16 %v3856_v24, %v3855_v13  ;;  %v2066_v47 = vld [vmem:[#allocation2 + $0x498] sm:$0xff]  ;;  %v4602_v24 = vld [vmem:[#allocation2 + $0x3d0] sm:$0xff] }
 0x31c   : > { %4856 = vrot.lane.b32.xlu0 %v12324_v22, %s9966_s18  ;;  %v7027_v3 = vadd.f32 %v12011_v15, %v6482_v23  ;;  %v6485_v18 = vadd.f32 %v12149_v4, %v6484_v28  ;;  %v6486_v33 = vpop.f32.mrb[55].mxu1  ;;  %9238 = vmatprep.subr.bf16.mxu0 %v7639_v31  ;;  %v12344_v60 = vpop.f32.mrb[210].mxu0  ;;  %v2135_v15 = vpack.c.bf16 %v2067_v40, %v2066_v47  ;;  %v5894_v28 = vld [vmem:[#allocation3 + $0x330] sm:$0xff] }
 0x31d   : > { %v3046_v63 = vpop.permute.xlu1 %3045  ;;  %9239 = vmatpush3.bf16.msra.mxu0 %v12015_v29  ;;  %3991 = vst.msk [vmem:[#allocation3 + $0x548] sm:$0xff] %vm1647_vm3, %v3927_v58  ;;  %v12351_v31 = vpop.f32.mrb[211].mxu0  ;;  %2198 = vst.msk [vmem:[#allocation3 + $0x570] sm:$0xff] %vm1647_vm3, %v2134_v55  ;;  %v4685_v2 = vpack.c.bf16 %v4603_v41, %v4602_v24  ;;  %v2812_v33 = vld [vmem:[#allocation2 + $0x3b2] sm:$0xff] }
 0x31e   : > { %3202 = vst.msk [vmem:[#allocation3 + $0x360] sm:$0xff] %vm3165_vm6, %v3046_v63  ;;  %v4326_v14 = vpop.permute.xlu0 %4325  ;;  %v7030_v23 = vadd.f32 %v12021_v50, %v6485_v18  ;;  %v2811_v63 = vld [vmem:[#allocation2 + $0x3aa] sm:$0xff] }
 0x31f   : > { %2552 = vrot.lane.b32.xlu1 %v12268_v12, %s9965_s17  ;;  %4482 = vst.msk [vmem:[#allocation3 + $0x350] sm:$0xff] %vm2652_vm5, %v4326_v14  ;;  %v7447_v12 = vmax.f32 %v7027_v3, 0.0  ;;  %v5115_v3 = vld [vmem:[#allocation2 + $0x3d9] sm:$0xff]  ;;  %v2892_v14 = vpack.c.bf16 %v2812_v33, %v2811_v63 }
 0x320   : > { %5368 = vrot.lane.b32.xlu0 %v12334_v43, %s9968_s8  ;;  %3992 = vst.msk [vmem:[#allocation3 + $0x560] sm:$0xff] %vm1647_vm3, %v3928_v16  ;;  %2199 = vst.msk [vmem:[#allocation3 + $0x588] sm:$0xff] %vm1647_vm3, %v2135_v15  ;;  %v7448_v13 = vmax.f32 %v7030_v23, 0.0  ;;  %v12385_v41 = vpop.f32.mrb[212].mxu0 }
 0x321   : > { %v3559_v29 = vpop.permute.xlu1 %3558 }
 0x322   : > { %3715 = vst.msk [vmem:[#allocation3 + $0x360] sm:$0xff] %vm3678_vm7, %v3559_v29  ;;  %v4839_v40 = vpop.permute.xlu0 %4838  ;;  %v5895_v50 = vld [vmem:[#allocation3 + $0x338] sm:$0xff]  ;;  %v7640_v58 = vpack.c.bf16 %v7448_v13, %v7447_v12 }
 0x323   : > { %3065 = vrot.lane.b32.xlu1 %v11700_v56, %s9966_s18  ;;  %4995 = vst.msk [vmem:[#allocation3 + $0x350] sm:$0xff] %vm3165_vm6, %v4839_v40  ;;  %6631 = vmatprep.mubr.bf16.mxu1 %v5895_v50  ;;  %v5114_v56 = vld [vmem:[#allocation2 + $0x3d1] sm:$0xff]  ;;  %v4604_v40 = vld [vmem:[#allocation2 + $0x3e8] sm:$0xff] }
 0x324   : > { %4345 = vrot.lane.b32.xlu0 %v11706_v5, %s9965_s17  ;;  %6632 = vmatmul.mubr.bf16.gmra.mrb[128].mxu1 %v5894_v28  ;;  %v12368_v18 = vpack.c.bf16 %v5115_v3, %v5114_v56  ;;  %v4605_v50 = vld [vmem:[#allocation2 + $0x3f0] sm:$0xff]  ;;  %v12387_v28 = vpop.f32.mrb[213].mxu0 }
 0x325   : > { %v2535_v1 = vpop.permute.xlu1 %2534  ;;  %9240 = vmatprep.subr.bf16.mxu0 %v7640_v58  ;;  %v12389_v56 = vpack.c.bf16 %v4605_v50, %v4604_v40  ;;  %v5116_v3 = vld [vmem:[#allocation2 + $0x3e9] sm:$0xff] }
 0x326   : > { %2690 = vst.msk [vmem:[#allocation3 + $0x378] sm:$0xff] %vm2652_vm5, %v2535_v1  ;;  %v5351_v61 = vpop.permute.xlu0 %5350  ;;  %9241 = vmatpush3.bf16.msra.mxu0 %v12048_v9 }
 0x327   : > { %3578 = vrot.lane.b32.xlu1 %v12324_v22, %s9968_s8  ;;  %5507 = vst.msk [vmem:[#allocation3 + $0x350] sm:$0xff] %vm3678_vm7, %v5351_v61 }
 0x328   : > { %4858 = vrot.lane.b32.xlu0 %v4685_v2, %s9966_s18 }
 0x329   : > { %v3048_v5 = vpop.permute.xlu1 %3047  ;;  %v6489_v16 = vpop.f32.mrb[56].mxu1 }
 0x32a   : > { %3203 = vst.msk [vmem:[#allocation3 + $0x378] sm:$0xff] %vm3165_vm6, %v3048_v5  ;;  %v4328_v55 = vpop.permute.xlu0 %4327  ;;  %v6490_v9 = vadd.f32 %v12149_v4, %v6489_v16  ;;  %v6491_v22 = vpop.f32.mrb[57].mxu1  ;;  %v5117_v5 = vld [vmem:[#allocation2 + $0x3f1] sm:$0xff]  ;;  %v2813_v16 = vld [vmem:[#allocation2 + $0x3c2] sm:$0xff] }
 0x32b   : > { %2554 = vrot.lane.b32.xlu1 %v12306_v54, %s9965_s17  ;;  %4483 = vst.msk [vmem:[#allocation3 + $0x368] sm:$0xff] %vm2652_vm5, %v4328_v55  ;;  %v6492_v47 = vpop.f32.mrb[58].mxu1 }
 0x32c   : > { %5370 = vrot.lane.b32.xlu0 %v12368_v18, %s9968_s8  ;;  %v7035_v15 = vadd.f32 %v12044_v48, %v6490_v9  ;;  %v6493_v23 = vadd.f32 %v12149_v4, %v6492_v47  ;;  %v6494_v12 = vpop.f32.mrb[59].mxu1  ;;  %v5897_v48 = vld [vmem:[#allocation3 + $0x348] sm:$0xff] }
 0x32d   : > { %v3561_v29 = vpop.permute.xlu1 %3560  ;;  %v3859_v47 = vld [vmem:[#allocation2 + $0x4b1] sm:$0xff] }
 0x32e   : > { %3716 = vst.msk [vmem:[#allocation3 + $0x378] sm:$0xff] %vm3678_vm7, %v3561_v29  ;;  %v4841_v13 = vpop.permute.xlu0 %4840  ;;  %v5898_v54 = vld [vmem:[#allocation3 + $0x350] sm:$0xff]  ;;  %v7038_v24 = vadd.f32 %v12052_v35, %v6493_v23  ;;  %v7449_v58 = vmax.f32 %v7035_v15, 0.0  ;;  %v12391_v35 = vpop.f32.mrb[214].mxu0  ;;  %v2068_v15 = vld [vmem:[#allocation2 + $0x4b0] sm:$0xff]  ;;  %v12403_v29 = vpack.c.bf16 %v5117_v5, %v5116_v3  ;;  %v2069_v12 = vld [vmem:[#allocation2 + $0x4b8] sm:$0xff] }
 0x32f   : > { %3067 = vrot.lane.b32.xlu1 %v2892_v14, %s9966_s18  ;;  %4996 = vst.msk [vmem:[#allocation3 + $0x368] sm:$0xff] %vm3165_vm6, %v4841_v13  ;;  %6639 = vmatprep.mubr.bf16.mxu1 %v5898_v54  ;;  %v12401_v22 = vpop.f32.mrb[215].mxu0  ;;  %v3860_v14 = vld [vmem:[#allocation2 + $0x4b9] sm:$0xff]  ;;  %v3861_v13 = vld [vmem:[#allocation2 + $0x4c1] sm:$0xff]  ;;  %v3862_v54 = vld [vmem:[#allocation2 + $0x4c9] sm:$0xff] }
 0x330   : > { %4347 = vrot.lane.b32.xlu0 %v11725_v34, %s9965_s17  ;;  %6640 = vmatmul.mubr.bf16.gmra.mrb[132].mxu1 %v5897_v48  ;;  %v7450_v1 = vmax.f32 %v7038_v24, 0.0  ;;  %v4093_v3 = vld [vmem:[#allocation2 + $0x3d2] sm:$0xff]  ;;  %v4094_v5 = vld [vmem:[#allocation2 + $0x3da] sm:$0xff] }
 0x331   : > { %v2537_v61 = vpop.permute.xlu1 %2536  ;;  %v6497_v33 = vpop.f32.mrb[60].mxu1 }
 0x332   : > { %2691 = vst.msk [vmem:[#allocation3 + $0x390] sm:$0xff] %vm2652_vm5, %v2537_v61  ;;  %v5353_v63 = vpop.permute.xlu0 %5352  ;;  %v6498_v34 = vadd.f32 %v12149_v4, %v6497_v33  ;;  %v6499_v55 = vpop.f32.mrb[61].mxu1  ;;  %v12399_v9 = vpack.c.bf16 %v7450_v1, %v7449_v58  ;;  %v2814_v58 = vld [vmem:[#allocation2 + $0x3ca] sm:$0xff]  ;;  %v2136_v1 = vpack.c.bf16 %v2069_v12, %v2068_v15  ;;  %v3930_v61 = vpack.c.bf16 %v3862_v54, %v3861_v13 }
 0x333   : > { %3580 = vrot.lane.b32.xlu1 %v4685_v2, %s9968_s8  ;;  %5508 = vst.msk [vmem:[#allocation3 + $0x368] sm:$0xff] %vm3678_vm7, %v5353_v63  ;;  %v6500_v23 = vpop.f32.mrb[62].mxu1  ;;  %v3929_v2 = vpack.c.bf16 %v3860_v14, %v3859_v47  ;;  %v2070_v63 = vld [vmem:[#allocation2 + $0x4c0] sm:$0xff]  ;;  %v2071_v33 = vld [vmem:[#allocation2 + $0x4c8] sm:$0xff]  ;;  %v12415_v47 = vpop.f32.mrb[216].mxu0  ;;  %v2893_v14 = vpack.c.bf16 %v2814_v58, %v2813_v16  ;;  %v5900_v16 = vld [vmem:[#allocation3 + $0x360] sm:$0xff] }
 0x334   : > { %4860 = vrot.lane.b32.xlu0 %v12389_v56, %s9966_s18  ;;  %v7043_v40 = vadd.f32 %v12039_v38, %v6498_v34  ;;  %v6501_v50 = vadd.f32 %v12149_v4, %v6500_v23  ;;  %v6502_v48 = vpop.f32.mrb[63].mxu1  ;;  %v2137_v38 = vpack.c.bf16 %v2071_v33, %v2070_v63  ;;  %2200 = vst.msk [vmem:[#allocation3 + $0x5a0] sm:$0xff] %vm1647_vm3, %v2136_v1  ;;  %3994 = vst.msk [vmem:[#allocation3 + $0x590] sm:$0xff] %vm1647_vm3, %v3930_v61  ;;  %v5118_v63 = vld [vmem:[#allocation2 + $0x3f9] sm:$0xff]  ;;  %v5119_v33 = vld [vmem:[#allocation2 + $0x401] sm:$0xff] }
 0x335   : > { %v3050_v24 = vpop.permute.xlu1 %3049  ;;  %3993 = vst.msk [vmem:[#allocation3 + $0x578] sm:$0xff] %vm1647_vm3, %v3929_v2 }
 0x336   : > { %3204 = vst.msk [vmem:[#allocation3 + $0x390] sm:$0xff] %vm3165_vm6, %v3050_v24  ;;  %v4330_v55 = vpop.permute.xlu0 %4329  ;;  %v7046_v34 = vadd.f32 %v12050_v52, %v6501_v50  ;;  %v7451_v15 = vmax.f32 %v7043_v40, 0.0  ;;  %v4174_v52 = vpack.c.bf16 %v4094_v5, %v4093_v3  ;;  %v4606_v50 = vld [vmem:[#allocation2 + $0x3f8] sm:$0xff]  ;;  %v4607_v24 = vld [vmem:[#allocation2 + $0x400] sm:$0xff] }
 0x337   : > { %2556 = vrot.lane.b32.xlu1 %v12334_v43, %s9965_s17  ;;  %4484 = vst.msk [vmem:[#allocation3 + $0x380] sm:$0xff] %vm2652_vm5, %v4330_v55  ;;  %v12419_v43 = vpop.f32.mrb[217].mxu0  ;;  %v4687_v1 = vpack.c.bf16 %v4607_v24, %v4606_v50 }
 0x338   : > { %5372 = vrot.lane.b32.xlu0 %v12403_v29, %s9968_s8  ;;  %2201 = vst.msk [vmem:[#allocation3 + $0x5b8] sm:$0xff] %vm1647_vm3, %v2137_v38  ;;  %v7452_v23 = vmax.f32 %v7046_v34, 0.0  ;;  %v12422_v12 = vpop.f32.mrb[218].mxu0  ;;  %v12441_v38 = vpack.c.bf16 %v5119_v33, %v5118_v63 }
 0x339   : > { %v3563_v2 = vpop.permute.xlu1 %3562  ;;  %v12426_v48 = vpop.f32.mrb[219].mxu0 }
 0x33a   : > { %3717 = vst.msk [vmem:[#allocation3 + $0x390] sm:$0xff] %vm3678_vm7, %v3563_v2  ;;  %v4843_v13 = vpop.permute.xlu0 %4842  ;;  %v5901_v54 = vld [vmem:[#allocation3 + $0x368] sm:$0xff]  ;;  %v12430_v40 = vpack.c.bf16 %v7452_v23, %v7451_v15 }
 0x33b   : > { %3069 = vrot.lane.b32.xlu1 %v2893_v14, %s9966_s18  ;;  %4997 = vst.msk [vmem:[#allocation3 + $0x380] sm:$0xff] %vm3165_vm6, %v4843_v13  ;;  %6647 = vmatprep.mubr.bf16.mxu1 %v5901_v54  ;;  %v12437_v55 = vpop.f32.mrb[220].mxu0  ;;  %v4096_v23 = vld [vmem:[#allocation2 + $0x3f2] sm:$0xff] }
 0x33c   : > { %4349 = vrot.lane.b32.xlu0 %v4174_v52, %s9965_s17  ;;  %6648 = vmatmul.mubr.bf16.gmra.mrb[136].mxu1 %v5900_v16  ;;  %13552 = vst [vmem:[#allocation14_spill] sm:$0xff] %v12437_v55  ;;  %v12439_v3 = vpop.f32.mrb[221].mxu0 }
 0x33d   : > { %v2539_v58 = vpop.permute.xlu1 %2538  ;;  %13553 = vst [vmem:[#allocation15_spill] sm:$0xff] %v12439_v3  ;;  %v12443_v34 = vpop.f32.mrb[222].mxu0 }
 0x33e   : > { %2692 = vst.msk [vmem:[#allocation3 + $0x3a8] sm:$0xff] %vm2652_vm5, %v2539_v58  ;;  %v5355_v61 = vpop.permute.xlu0 %5354  ;;  %13554 = vst [vmem:[#allocation16_spill] sm:$0xff] %v12443_v34  ;;  %v12452_v54 = vpop.f32.mrb[223].mxu0 }
 0x33f   : > { %3582 = vrot.lane.b32.xlu1 %v12389_v56, %s9968_s8  ;;  %5509 = vst.msk [vmem:[#allocation3 + $0x380] sm:$0xff] %vm3678_vm7, %v5355_v61  ;;  %v4095_v56 = vld [vmem:[#allocation2 + $0x3ea] sm:$0xff]  ;;  %13555 = vst [vmem:[#allocation17_spill] sm:$0xff] %v12452_v54 }
 0x340   : > { %4862 = vrot.lane.b32.xlu0 %v4687_v1, %s9966_s18 }
 0x341   : > { %v3052_v5 = vpop.permute.xlu1 %3051  ;;  %v6505_v15 = vpop.f32.mrb[64].mxu1 }
 0x342   : > { %3205 = vst.msk [vmem:[#allocation3 + $0x3a8] sm:$0xff] %vm3165_vm6, %v3052_v5  ;;  %v4332_v14 = vpop.permute.xlu0 %4331  ;;  %v6506_v2 = vadd.f32 %v12149_v4, %v6505_v15  ;;  %v6507_v13 = vpop.f32.mrb[65].mxu1  ;;  %v4608_v5 = vld [vmem:[#allocation2 + $0x410] sm:$0xff] }
 0x343   : > { %2558 = vrot.lane.b32.xlu1 %v12368_v18, %s9965_s17  ;;  %4485 = vst.msk [vmem:[#allocation3 + $0x398] sm:$0xff] %vm2652_vm5, %v4332_v14  ;;  %v6508_v50 = vpop.f32.mrb[66].mxu1  ;;  %v12456_v18 = vpack.c.bf16 %v4096_v23, %v4095_v56  ;;  %v4609_v14 = vld [vmem:[#allocation2 + $0x418] sm:$0xff] }
 0x344   : > { %5374 = vrot.lane.b32.xlu0 %v12441_v38, %s9968_s8  ;;  %v7051_v24 = vadd.f32 %v12072_v25, %v6506_v2  ;;  %v6509_v16 = vadd.f32 %v12149_v4, %v6508_v50  ;;  %v6510_v61 = vpop.f32.mrb[67].mxu1  ;;  %v5903_v25 = vld [vmem:[#allocation3 + $0x378] sm:$0xff]  ;;  %v5120_v56 = vld [vmem:[#allocation2 + $0x411] sm:$0xff] }
 0x345   : > { %v3565_v58 = vpop.permute.xlu1 %3564  ;;  %v5121_v61 = vld [vmem:[#allocation2 + $0x419] sm:$0xff] }
 0x346   : > { %3718 = vst.msk [vmem:[#allocation3 + $0x3a8] sm:$0xff] %vm3678_vm7, %v3565_v58  ;;  %v4845_v63 = vpop.permute.xlu0 %4844  ;;  %v5904_v33 = vld [vmem:[#allocation3 + $0x380] sm:$0xff]  ;;  %v7054_v15 = vadd.f32 %v12079_v21, %v6509_v16  ;;  %v7453_v13 = vmax.f32 %v7051_v24, 0.0  ;;  %v12468_v58 = vpack.c.bf16 %v4609_v14, %v4608_v5  ;;  %v12484_v55 = vpack.c.bf16 %v5121_v61, %v5120_v56  ;;  %v4097_v56 = vld [vmem:[#allocation2 + $0x3fa] sm:$0xff]  ;;  %v4098_v61 = vld [vmem:[#allocation2 + $0x402] sm:$0xff] }
 0x347   : > { %3071 = vrot.lane.b32.xlu1 %v4174_v52, %s9966_s18  ;;  %4998 = vst.msk [vmem:[#allocation3 + $0x398] sm:$0xff] %vm3165_vm6, %v4845_v63  ;;  %6655 = vmatprep.mubr.bf16.mxu1 %v5904_v33  ;;  %v12464_v2 = vpop.f32.mrb[224].mxu0  ;;  %v5142_v16 = vld [vmem:[#allocation2 + $0x4e9] sm:$0xff]  ;;  %v5143_v63 = vld [vmem:[#allocation2 + $0x4f1] sm:$0xff] }
 0x348   : > { %4351 = vrot.lane.b32.xlu0 %v12456_v18, %s9965_s17  ;;  %13556 = vst [vmem:[#allocation18_spill] sm:$0xff] %v12464_v2  ;;  %6656 = vmatmul.mubr.bf16.gmra.mrb[140].mxu1 %v5903_v25  ;;  %v12466_v23 = vpop.f32.mrb[225].mxu0  ;;  %v7454_v50 = vmax.f32 %v7054_v15, 0.0  ;;  %v12474_v25 = vpack.c.bf16 %v5143_v63, %v5142_v16  ;;  %v2072_v2 = vld [vmem:[#allocation2 + $0x4d8] sm:$0xff]  ;;  %v2073_v16 = vld [vmem:[#allocation2 + $0x4e0] sm:$0xff]  ;;  %v2075_v63 = vld [vmem:[#allocation2 + $0x4f0] sm:$0xff] }
 0x349   : > { %13557 = vst [vmem:[#allocation19_spill] sm:$0xff] %v12466_v23  ;;  %v2541_v52 = vpop.permute.xlu1 %2540  ;;  %v12470_v21 = vpop.f32.mrb[226].mxu0 }
 0x34a   : > { %13558 = vst [vmem:[#allocation20_spill] sm:$0xff] %v12470_v21  ;;  %2693 = vst.msk [vmem:[#allocation3 + $0x3c0] sm:$0xff] %vm2652_vm5, %v2541_v52  ;;  %v5357_v33 = vpop.permute.xlu0 %5356  ;;  %v6513_v34 = vpop.f32.mrb[68].mxu1  ;;  %v12480_v14 = vpack.c.bf16 %v7454_v50, %v7453_v13  ;;  %v3863_v21 = vld [vmem:[#allocation2 + $0x4d9] sm:$0xff]  ;;  %v3864_v52 = vld [vmem:[#allocation2 + $0x4e1] sm:$0xff] }
 0x34b   : > { %3584 = vrot.lane.b32.xlu1 %v4687_v1, %s9968_s8  ;;  %5510 = vst.msk [vmem:[#allocation3 + $0x398] sm:$0xff] %vm3678_vm7, %v5357_v33  ;;  %v6514_v24 = vadd.f32 %v12149_v4, %v6513_v34  ;;  %v6515_v5 = vpop.f32.mrb[69].mxu1  ;;  %v12482_v15 = vpop.f32.mrb[227].mxu0  ;;  %v3931_v1 = vpack.c.bf16 %v3864_v52, %v3863_v21  ;;  %v2074_v34 = vld [vmem:[#allocation2 + $0x4e8] sm:$0xff] }
 0x34c   : > { %4864 = vrot.lane.b32.xlu0 %v12468_v58, %s9966_s18  ;;  %13559 = vst [vmem:[#allocation21_spill] sm:$0xff] %v12482_v15  ;;  %v6516_v23 = vpop.f32.mrb[70].mxu1  ;;  %3996 = vst.msk [vmem:[#allocation3 + $0x5c0] sm:$0xff] %vm1647_vm3, %v12474_v25  ;;  %v2138_v15 = vpack.c.bf16 %v2073_v16, %v2072_v2  ;;  %v2139_v54 = vpack.c.bf16 %v2075_v63, %v2074_v34  ;;  %v4611_v16 = vld [vmem:[#allocation2 + $0x428] sm:$0xff] }
 0x34d   : > { %v7059_v33 = vadd.f32 %v12066_v27, %v6514_v24  ;;  %v6517_v13 = vadd.f32 %v12149_v4, %v6516_v23  ;;  %v3054_v50 = vpop.permute.xlu1 %3053  ;;  %v6518_v5 = vpop.f32.mrb[71].mxu1  ;;  %3995 = vst.msk [vmem:[#allocation3 + $0x5a8] sm:$0xff] %vm1647_vm3, %v3931_v1  ;;  %v4176_v24 = vpack.c.bf16 %v4098_v61, %v4097_v56  ;;  %v4610_v1 = vld [vmem:[#allocation2 + $0x420] sm:$0xff] }
 0x34e   : > { %3206 = vst.msk [vmem:[#allocation3 + $0x3c0] sm:$0xff] %vm3165_vm6, %v3054_v50  ;;  %v4334_v3 = vpop.permute.xlu0 %4333  ;;  %v5123_v50 = vld [vmem:[#allocation2 + $0x429] sm:$0xff] }
 0x34f   : > { %2560 = vrot.lane.b32.xlu1 %v12403_v29, %s9965_s17  ;;  %v7062_v21 = vadd.f32 %v12076_v49, %v6517_v13  ;;  %4486 = vst.msk [vmem:[#allocation3 + $0x3b0] sm:$0xff] %vm2652_vm5, %v4334_v3  ;;  %v12498_v27 = vpop.f32.mrb[228].mxu0  ;;  %v7455_v29 = vmax.f32 %v7059_v33, 0.0  ;;  %v4689_v33 = vpack.c.bf16 %v4611_v16, %v4610_v1 }
 0x350   : > { %5376 = vrot.lane.b32.xlu0 %v12484_v55, %s9968_s8  ;;  %2202 = vst.msk [vmem:[#allocation3 + $0x5d0] sm:$0xff] %vm1647_vm3, %v2138_v15  ;;  %2203 = vst.msk [vmem:[#allocation3 + $0x5e8] sm:$0xff] %vm1647_vm3, %v2139_v54  ;;  %v12502_v4 = vpop.f32.mrb[229].mxu0  ;;  %v5906_v54 = vld [vmem:[#allocation3 + $0x390] sm:$0xff] }
 0x351   : > { %v7456_v2 = vmax.f32 %v7062_v21, 0.0  ;;  %v3567_v23 = vpop.permute.xlu1 %3566  ;;  %v12504_v52 = vpop.f32.mrb[230].mxu0 }
 0x352   : > { %13560 = vst [vmem:[#allocation22_spill] sm:$0xff] %v12504_v52  ;;  %3719 = vst.msk [vmem:[#allocation3 + $0x3c0] sm:$0xff] %vm3678_vm7, %v3567_v23  ;;  %v4847_v49 = vpop.permute.xlu0 %4846  ;;  %v5907_v3 = vld [vmem:[#allocation3 + $0x398] sm:$0xff]  ;;  %v12509_v15 = vpop.f32.mrb[231].mxu0 }
 0x353   : > { %3073 = vrot.lane.b32.xlu1 %v12456_v18, %s9966_s18  ;;  %4999 = vst.msk [vmem:[#allocation3 + $0x3b0] sm:$0xff] %vm3165_vm6, %v4847_v49  ;;  %6663 = vmatprep.mubr.bf16.mxu1 %v5907_v3  ;;  %v12513_v34 = vpack.c.bf16 %v7456_v2, %v7455_v29  ;;  %v5122_v18 = vld [vmem:[#allocation2 + $0x421] sm:$0xff]  ;;  %v12535_v3 = vld [vmem:[%s13538_s4] ss:$0 sm:$0xff] }
 0x354   : > { %4353 = vrot.lane.b32.xlu0 %v4176_v24, %s9965_s17  ;;  %6664 = vmatmul.mubr.bf16.gmra.mrb[144].mxu1 %v5906_v54  ;;  %v12524_v21 = vpack.c.bf16 %v5123_v50, %v5122_v18  ;;  %v4100_v49 = vld [vmem:[#allocation2 + $0x41a] sm:$0xff] }
 0x355   : > { %v2543_v63 = vpop.permute.xlu1 %2542 }
 0x356   : > { %2694 = vst.msk [vmem:[#allocation3 + $0x3d8] sm:$0xff] %vm2652_vm5, %v2543_v63  ;;  %v5359_v13 = vpop.permute.xlu0 %5358 }
 0x357   : > { %3586 = vrot.lane.b32.xlu1 %v12468_v58, %s9968_s8  ;;  %5511 = vst.msk [vmem:[#allocation3 + $0x3b0] sm:$0xff] %vm3678_vm7, %v5359_v13  ;;  %v12520_v5 = vpop.f32.mrb[232].mxu0  ;;  %v4099_v58 = vld [vmem:[#allocation2 + $0x412] sm:$0xff] }
 0x358   : > { %4866 = vrot.lane.b32.xlu0 %v4689_v33, %s9966_s18  ;;  %13561 = vst [vmem:[#allocation23_spill] sm:$0xff] %v12520_v5  ;;  %v12522_v56 = vpop.f32.mrb[233].mxu0  ;;  %v4613_v5 = vld [vmem:[#allocation2 + $0x440] sm:$0xff] }
 0x359   : > { %13562 = vst [vmem:[#allocation24_spill] sm:$0xff] %v12522_v56  ;;  %v3056_v61 = vpop.permute.xlu1 %3055  ;;  %v12526_v29 = vpop.f32.mrb[234].mxu0 }
 0x35a   : > { %13563 = vst [vmem:[#allocation25_spill] sm:$0xff] %v12526_v29  ;;  %3207 = vst.msk [vmem:[#allocation3 + $0x3d8] sm:$0xff] %vm3165_vm6, %v3056_v61  ;;  %v4336_v2 = vpop.permute.xlu0 %4335  ;;  %v6521_v23 = vpop.f32.mrb[72].mxu1  ;;  %v12544_v61 = vpack.c.bf16 %v4100_v49, %v4099_v58  ;;  %v5144_v58 = vld [vmem:[#allocation2 + $0x501] sm:$0xff]  ;;  %v5145_v49 = vld [vmem:[#allocation2 + $0x509] sm:$0xff] }
 0x35b   : > { %2562 = vrot.lane.b32.xlu1 %v12441_v38, %s9965_s17  ;;  %4487 = vst.msk [vmem:[#allocation3 + $0x3c8] sm:$0xff] %vm2652_vm5, %v4336_v2  ;;  %v6522_v1 = vadd.f32 %v12535_v3, %v6521_v23  ;;  %v6523_v16 = vpop.f32.mrb[73].mxu1  ;;  %v12540_v54 = vpop.f32.mrb[235].mxu0  ;;  %v4612_v23 = vld [vmem:[#allocation2 + $0x438] sm:$0xff] }
 0x35c   : > { %5378 = vrot.lane.b32.xlu0 %v12524_v21, %s9968_s8  ;;  %13564 = vst [vmem:[#allocation26_spill] sm:$0xff] %v12540_v54  ;;  %v6524_v63 = vpop.f32.mrb[74].mxu1 }
 0x35d   : > { %v7067_v38 = vadd.f32 %v12098_v17, %v6522_v1  ;;  %v6525_v13 = vadd.f32 %v12535_v3, %v6524_v63  ;;  %v3569_v18 = vpop.permute.xlu1 %3568  ;;  %v6526_v50 = vpop.f32.mrb[75].mxu1  ;;  %v5909_v17 = vld [vmem:[#allocation3 + $0x3a8] sm:$0xff] }
 0x35e   : > { %3720 = vst.msk [vmem:[#allocation3 + $0x3d8] sm:$0xff] %vm3678_vm7, %v3569_v18  ;;  %v4849_v2 = vpop.permute.xlu0 %4848  ;;  %v5910_v29 = vld [vmem:[#allocation3 + $0x3b0] sm:$0xff]  ;;  %v12556_v18 = vpack.c.bf16 %v5145_v49, %v5144_v58 }
 0x35f   : > { %3075 = vrot.lane.b32.xlu1 %v4176_v24, %s9966_s18  ;;  %v7070_v16 = vadd.f32 %v12114_v36, %v6525_v13  ;;  %5000 = vst.msk [vmem:[#allocation3 + $0x3c8] sm:$0xff] %vm3165_vm6, %v4849_v2  ;;  %6671 = vmatprep.mubr.bf16.mxu1 %v5910_v29  ;;  %v12552_v1 = vpop.f32.mrb[236].mxu0  ;;  %v5146_v24 = vld [vmem:[#allocation2 + $0x511] sm:$0xff]  ;;  %v5147_v50 = vld [vmem:[#allocation2 + $0x519] sm:$0xff]  ;;  %v7457_v54 = vmax.f32 %v7067_v38, 0.0  ;;  %v4690_v2 = vpack.c.bf16 %v4613_v5, %v4612_v23 }
 0x360   : > { %4355 = vrot.lane.b32.xlu0 %v12544_v61, %s9965_s17  ;;  %13565 = vst [vmem:[#allocation27_spill] sm:$0xff] %v12552_v1  ;;  %6672 = vmatmul.mubr.bf16.gmra.mrb[148].mxu1 %v5909_v17  ;;  %v12554_v63 = vpop.f32.mrb[237].mxu0  ;;  %v12560_v56 = vpack.c.bf16 %v5147_v50, %v5146_v24  ;;  %v5124_v17 = vld [vmem:[#allocation2 + $0x439] sm:$0xff]  ;;  %3997 = vst.msk [vmem:[#allocation3 + $0x5d8] sm:$0xff] %vm1647_vm3, %v12556_v18 }
 0x361   : > { %13566 = vst [vmem:[#allocation28_spill] sm:$0xff] %v12554_v63  ;;  %v7458_v36 = vmax.f32 %v7070_v16, 0.0  ;;  %v2545_v13 = vpop.permute.xlu1 %2544  ;;  %v12558_v29 = vpop.f32.mrb[238].mxu0  ;;  %v5125_v63 = vld [vmem:[#allocation2 + $0x441] sm:$0xff]  ;;  %v13569_v16 = vld [vmem:[#allocation4_spill] sm:$0xff] }
 0x362   : > { %13567 = vst [vmem:[#allocation29_spill] sm:$0xff] %v12558_v29  ;;  %2695 = vst.msk [vmem:[#allocation3 + $0x3f0] sm:$0xff] %vm2652_vm5, %v2545_v13  ;;  %v5361_v1 = vpop.permute.xlu0 %5360  ;;  %v6529_v52 = vpop.f32.mrb[76].mxu1  ;;  %v4102_v13 = vld [vmem:[#allocation2 + $0x42a] sm:$0xff] }
 0x363   : > { %3588 = vrot.lane.b32.xlu1 %v4689_v33, %s9968_s8  ;;  %v12566_v58 = vpack.c.bf16 %v7458_v36, %v7457_v54  ;;  %5512 = vst.msk [vmem:[#allocation3 + $0x3c8] sm:$0xff] %vm3678_vm7, %v5361_v1  ;;  %v6530_v5 = vadd.f32 %v12535_v3, %v6529_v52  ;;  %v6531_v38 = vpop.f32.mrb[77].mxu1  ;;  %v12571_v23 = vpop.f32.mrb[239].mxu0  ;;  %v12577_v36 = vpack.c.bf16 %v5125_v63, %v5124_v17  ;;  %v4101_v1 = vld [vmem:[#allocation2 + $0x422] sm:$0xff] }
 0x364   : > { %4868 = vrot.lane.b32.xlu0 %v4690_v2, %s9966_s18  ;;  %13568 = vst [vmem:[#allocation30_spill] sm:$0xff] %v12571_v23  ;;  %3998 = vst.msk [vmem:[#allocation3 + $0x5f0] sm:$0xff] %vm1647_vm3, %v12560_v56  ;;  %v6532_v33 = vpop.f32.mrb[78].mxu1 }
 0x365   : > { %v7075_v49 = vadd.f32 %v13569_v16, %v6530_v5  ;;  %v6533_v24 = vadd.f32 %v12535_v3, %v6532_v33  ;;  %v3058_v50 = vpop.permute.xlu1 %3057  ;;  %v6534_v54 = vpop.f32.mrb[79].mxu1 }
 0x366   : > { %3208 = vst.msk [vmem:[#allocation3 + $0x3f0] sm:$0xff] %vm3165_vm6, %v3058_v50  ;;  %v4338_v52 = vpop.permute.xlu0 %4337  ;;  %v4178_v50 = vpack.c.bf16 %v4102_v13, %v4101_v1 }
 0x367   : > { %2564 = vrot.lane.b32.xlu1 %v12484_v55, %s9965_s17  ;;  %v7078_v38 = vadd.f32 %v12108_v7, %v6533_v24  ;;  %4488 = vst.msk [vmem:[#allocation3 + $0x3e0] sm:$0xff] %vm2652_vm5, %v4338_v52  ;;  %v12586_v5 = vpop.f32.mrb[240].mxu0  ;;  %v7459_v63 = vmax.f32 %v7075_v49, 0.0  ;;  %v4614_v7 = vld [vmem:[#allocation2 + $0x448] sm:$0xff]  ;;  %v4615_v24 = vld [vmem:[#allocation2 + $0x450] sm:$0xff] }
 0x368   : > { %5380 = vrot.lane.b32.xlu0 %v12577_v36, %s9968_s8  ;;  %13570 = vst [vmem:[#allocation4_spill] sm:$0xff] %v12586_v5  ;;  %v12588_v33 = vpop.f32.mrb[241].mxu0  ;;  %v5912_v49 = vld [vmem:[#allocation3 + $0x3c0] sm:$0xff]  ;;  %v4691_v13 = vpack.c.bf16 %v4615_v24, %v4614_v7  ;;  %v4104_v24 = vld [vmem:[#allocation2 + $0x442] sm:$0xff] }
 0x369   : > { %13571 = vst [vmem:[#allocation31_spill] sm:$0xff] %v12588_v33  ;;  %v7460_v17 = vmax.f32 %v7078_v38, 0.0  ;;  %v3571_v16 = vpop.permute.xlu1 %3570  ;;  %v12590_v54 = vpop.f32.mrb[242].mxu0  ;;  %v4617_v33 = vld [vmem:[#allocation2 + $0x468] sm:$0xff] }
 0x36a   : > { %13572 = vst [vmem:[#allocation32_spill] sm:$0xff] %v12590_v54  ;;  %3721 = vst.msk [vmem:[#allocation3 + $0x3f0] sm:$0xff] %vm3678_vm7, %v3571_v16  ;;  %v4851_v55 = vpop.permute.xlu0 %4850  ;;  %v5913_v29 = vld [vmem:[#allocation3 + $0x3c8] sm:$0xff]  ;;  %v12595_v52 = vpop.f32.mrb[243].mxu0 }
 0x36b   : > { %3077 = vrot.lane.b32.xlu1 %v12544_v61, %s9966_s18  ;;  %13573 = vst [vmem:[#allocation33_spill] sm:$0xff] %v12595_v52  ;;  %v12597_v5 = vpack.c.bf16 %v7460_v17, %v7459_v63  ;;  %5001 = vst.msk [vmem:[#allocation3 + $0x3e0] sm:$0xff] %vm3165_vm6, %v4851_v55  ;;  %6679 = vmatprep.mubr.bf16.mxu1 %v5913_v29  ;;  %v5126_v61 = vld [vmem:[#allocation2 + $0x449] sm:$0xff]  ;;  %v5127_v16 = vld [vmem:[#allocation2 + $0x451] sm:$0xff] }
 0x36c   : > { %4357 = vrot.lane.b32.xlu0 %v4178_v50, %s9965_s17  ;;  %6680 = vmatmul.mubr.bf16.gmra.mrb[152].mxu1 %v5912_v49  ;;  %v12609_v55 = vpack.c.bf16 %v5127_v16, %v5126_v61 }
 0x36d   : > { %v2547_v1 = vpop.permute.xlu1 %2546 }
 0x36e   : > { %2696 = vst.msk [vmem:[#allocation3 + $0x408] sm:$0xff] %vm2652_vm5, %v2547_v1  ;;  %v5363_v38 = vpop.permute.xlu0 %5362 }
 0x36f   : > { %3590 = vrot.lane.b32.xlu1 %v4690_v2, %s9968_s8  ;;  %5513 = vst.msk [vmem:[#allocation3 + $0x3e0] sm:$0xff] %vm3678_vm7, %v5363_v38  ;;  %v12605_v63 = vpop.f32.mrb[244].mxu0  ;;  %v4103_v2 = vld [vmem:[#allocation2 + $0x43a] sm:$0xff] }
 0x370   : > { %4870 = vrot.lane.b32.xlu0 %v4691_v13, %s9966_s18  ;;  %13574 = vst [vmem:[#allocation34_spill] sm:$0xff] %v12605_v63  ;;  %v12607_v29 = vpop.f32.mrb[245].mxu0 }
 0x371   : > { %13575 = vst [vmem:[#allocation35_spill] sm:$0xff] %v12607_v29  ;;  %v3060_v17 = vpop.permute.xlu1 %3059  ;;  %v12611_v49 = vpop.f32.mrb[246].mxu0 }
 0x372   : > { %13576 = vst [vmem:[#allocation36_spill] sm:$0xff] %v12611_v49  ;;  %3209 = vst.msk [vmem:[#allocation3 + $0x408] sm:$0xff] %vm3165_vm6, %v3060_v17  ;;  %v4340_v7 = vpop.permute.xlu0 %4339  ;;  %v12616_v1 = vpop.f32.mrb[247].mxu0  ;;  %v4179_v17 = vpack.c.bf16 %v4104_v24, %v4103_v2 }
 0x373   : > { %2566 = vrot.lane.b32.xlu1 %v12524_v21, %s9965_s17  ;;  %13577 = vst [vmem:[#allocation37_spill] sm:$0xff] %v12616_v1  ;;  %4489 = vst.msk [vmem:[#allocation3 + $0x3f8] sm:$0xff] %vm2652_vm5, %v4340_v7  ;;  %v6537_v38 = vpop.f32.mrb[80].mxu1  ;;  %v4616_v7 = vld [vmem:[#allocation2 + $0x460] sm:$0xff] }
 0x374   : > { %5382 = vrot.lane.b32.xlu0 %v12609_v55, %s9968_s8  ;;  %v6538_v61 = vadd.f32 %v12535_v3, %v6537_v38  ;;  %v6539_v16 = vpop.f32.mrb[81].mxu1  ;;  %v5915_v38 = vld [vmem:[#allocation3 + $0x3d8] sm:$0xff]  ;;  %v4692_v24 = vpack.c.bf16 %v4617_v33, %v4616_v7 }
 0x375   : > { %v6540_v49 = vpop.f32.mrb[82].mxu1  ;;  %v3573_v63 = vpop.permute.xlu1 %3572  ;;  %v5129_v16 = vld [vmem:[#allocation2 + $0x469] sm:$0xff] }
 0x376   : > { %v7083_v29 = vadd.f32 %v12128_v51, %v6538_v61  ;;  %v6541_v21 = vadd.f32 %v12535_v3, %v6540_v49  ;;  %3722 = vst.msk [vmem:[#allocation3 + $0x408] sm:$0xff] %vm3678_vm7, %v3573_v63  ;;  %v4853_v54 = vpop.permute.xlu0 %4852  ;;  %v6542_v1 = vpop.f32.mrb[83].mxu1  ;;  %v5916_v52 = vld [vmem:[#allocation3 + $0x3e0] sm:$0xff] }
 0x377   : > { %3079 = vrot.lane.b32.xlu1 %v4178_v50, %s9966_s18  ;;  %5002 = vst.msk [vmem:[#allocation3 + $0x3f8] sm:$0xff] %vm3165_vm6, %v4853_v54  ;;  %6687 = vmatprep.mubr.bf16.mxu1 %v5916_v52  ;;  %v12628_v2 = vpop.f32.mrb[248].mxu0  ;;  %v5128_v52 = vld [vmem:[#allocation2 + $0x461] sm:$0xff] }
 0x378   : > { %4359 = vrot.lane.b32.xlu0 %v4179_v17, %s9965_s17  ;;  %13578 = vst [vmem:[#allocation38_spill] sm:$0xff] %v12628_v2  ;;  %v7086_v51 = vadd.f32 %v12132_v20, %v6541_v21  ;;  %6688 = vmatmul.mubr.bf16.gmra.mrb[156].mxu1 %v5915_v38  ;;  %v12631_v49 = vpop.f32.mrb[249].mxu0  ;;  %v7461_v50 = vmax.f32 %v7083_v29, 0.0  ;;  %v4619_v2 = vld [vmem:[#allocation2 + $0x478] sm:$0xff] }
 0x379   : > { %v2549_v63 = vpop.permute.xlu1 %2548  ;;  %v12633_v1 = vpop.f32.mrb[250].mxu0 }
 0x37a   : > { %13579 = vst [vmem:[#allocation39_spill] sm:$0xff] %v12633_v1  ;;  %v7462_v61 = vmax.f32 %v7086_v51, 0.0  ;;  %2697 = vst.msk [vmem:[#allocation3 + $0x420] sm:$0xff] %vm2652_vm5, %v2549_v63  ;;  %v5365_v54 = vpop.permute.xlu0 %5364  ;;  %v12637_v23 = vpop.f32.mrb[251].mxu0  ;;  %v12644_v51 = vpack.c.bf16 %v5129_v16, %v5128_v52 }
 0x37b   : > { %3592 = vrot.lane.b32.xlu1 %v4691_v13, %s9968_s8  ;;  %13580 = vst [vmem:[#allocation40_spill] sm:$0xff] %v12637_v23  ;;  %5514 = vst.msk [vmem:[#allocation3 + $0x3f8] sm:$0xff] %vm3678_vm7, %v5365_v54  ;;  %v6545_v20 = vpop.f32.mrb[84].mxu1 }
 0x37c   : > { %4872 = vrot.lane.b32.xlu0 %v4692_v24, %s9966_s18  ;;  %v12641_v21 = vpack.c.bf16 %v7462_v61, %v7461_v50  ;;  %v6546_v33 = vadd.f32 %v12535_v3, %v6545_v20  ;;  %v6547_v29 = vpop.f32.mrb[85].mxu1  ;;  %v4105_v50 = vld [vmem:[#allocation2 + $0x44a] sm:$0xff]  ;;  %v4106_v61 = vld [vmem:[#allocation2 + $0x452] sm:$0xff] }
 0x37d   : > { %v6548_v7 = vpop.f32.mrb[86].mxu1  ;;  %v3062_v38 = vpop.permute.xlu1 %3061 }
 0x37e   : > { %v7091_v13 = vadd.f32 %v12123_v45, %v6546_v33  ;;  %v6549_v63 = vadd.f32 %v12535_v3, %v6548_v7  ;;  %3210 = vst.msk [vmem:[#allocation3 + $0x420] sm:$0xff] %vm3165_vm6, %v3062_v38  ;;  %v4342_v1 = vpop.permute.xlu0 %4341  ;;  %v6550_v54 = vpop.f32.mrb[87].mxu1  ;;  %v4180_v33 = vpack.c.bf16 %v4106_v61, %v4105_v50 }
 0x37f   : > { %2568 = vrot.lane.b32.xlu1 %v12577_v36, %s9965_s17  ;;  %4490 = vst.msk [vmem:[#allocation3 + $0x410] sm:$0xff] %vm2652_vm5, %v4342_v1  ;;  %v12654_v52 = vpop.f32.mrb[252].mxu0  ;;  %v4618_v1 = vld [vmem:[#allocation2 + $0x470] sm:$0xff] }
 0x380   : > { %5384 = vrot.lane.b32.xlu0 %v12644_v51, %s9968_s8  ;;  %13581 = vst [vmem:[#allocation41_spill] sm:$0xff] %v12654_v52  ;;  %v7094_v45 = vadd.f32 %v12130_v53, %v6549_v63  ;;  %v12657_v16 = vpop.f32.mrb[253].mxu0  ;;  %v7463_v7 = vmax.f32 %v7091_v13, 0.0  ;;  %v5918_v53 = vld [vmem:[#allocation3 + $0x3f0] sm:$0xff]  ;;  %v4693_v50 = vpack.c.bf16 %v4619_v2, %v4618_v1  ;;  %v4108_v1 = vld [vmem:[#allocation2 + $0x46a] sm:$0xff] }
 0x381   : > { %13582 = vst [vmem:[#allocation42_spill] sm:$0xff] %v12657_v16  ;;  %v3575_v20 = vpop.permute.xlu1 %3574  ;;  %v12659_v29 = vpop.f32.mrb[254].mxu0 }
 0x382   : > { %13583 = vst [vmem:[#allocation43_spill] sm:$0xff] %v12659_v29  ;;  %v7464_v38 = vmax.f32 %v7094_v45, 0.0  ;;  %3723 = vst.msk [vmem:[#allocation3 + $0x420] sm:$0xff] %vm3678_vm7, %v3575_v20  ;;  %v4855_v36 = vpop.permute.xlu0 %4854  ;;  %v5919_v54 = vld [vmem:[#allocation3 + $0x3f8] sm:$0xff]  ;;  %v12663_v23 = vpop.f32.mrb[255].mxu0  ;;  %v5131_v45 = vld [vmem:[#allocation2 + $0x479] sm:$0xff] }
 0x383   : > { %3081 = vrot.lane.b32.xlu1 %v4179_v17, %s9966_s18  ;;  %13584 = vst [vmem:[#allocation44_spill] sm:$0xff] %v12663_v23  ;;  %5003 = vst.msk [vmem:[#allocation3 + $0x410] sm:$0xff] %vm3165_vm6, %v4855_v36  ;;  %6695 = vmatprep.mubr.bf16.mxu1 %v5919_v54  ;;  %v5130_v17 = vld [vmem:[#allocation2 + $0x471] sm:$0xff] }
 0x384   : > { %4361 = vrot.lane.b32.xlu0 %v4180_v33, %s9965_s17  ;;  %v12667_v63 = vpack.c.bf16 %v7464_v38, %v7463_v7  ;;  %6696 = vmatmul.mubr.bf16.gmra.mrb[160].mxu1 %v5918_v53  ;;  %v12677_v38 = vpack.c.bf16 %v5131_v45, %v5130_v17  ;;  %v4621_v23 = vld [vmem:[#allocation2 + $0x490] sm:$0xff] }
 0x385   : > { %v2551_v13 = vpop.permute.xlu1 %2550 }
 0x386   : > { %2698 = vst.msk [vmem:[#allocation3 + $0x438] sm:$0xff] %vm2652_vm5, %v2551_v13  ;;  %v5367_v61 = vpop.permute.xlu0 %5366 }
 0x387   : > { %3594 = vrot.lane.b32.xlu1 %v4692_v24, %s9968_s8  ;;  %5515 = vst.msk [vmem:[#allocation3 + $0x410] sm:$0xff] %vm3678_vm7, %v5367_v61  ;;  %v12673_v20 = vpop.f32.mrb[0].mxu0  ;;  %v4107_v24 = vld [vmem:[#allocation2 + $0x462] sm:$0xff] }
 0x388   : > { %4874 = vrot.lane.b32.xlu0 %v4693_v50, %s9966_s18  ;;  %13585 = vst [vmem:[#allocation45_spill] sm:$0xff] %v12673_v20  ;;  %v12675_v36 = vpop.f32.mrb[1].mxu0  ;;  %v13589_v20 = vld [vmem:[#allocation6_spill] sm:$0xff] }
 0x389   : > { %13586 = vst [vmem:[#allocation46_spill] sm:$0xff] %v12675_v36  ;;  %v3064_v7 = vpop.permute.xlu1 %3063  ;;  %v12679_v54 = vpop.f32.mrb[2].mxu0 }
 0x38a   : > { %13587 = vst [vmem:[#allocation47_spill] sm:$0xff] %v12679_v54  ;;  %3211 = vst.msk [vmem:[#allocation3 + $0x438] sm:$0xff] %vm3165_vm6, %v3064_v7  ;;  %v4344_v2 = vpop.permute.xlu0 %4343  ;;  %v12684_v53 = vpop.f32.mrb[3].mxu0  ;;  %v4181_v7 = vpack.c.bf16 %v4108_v1, %v4107_v24  ;;  %v13590_v24 = vld [vmem:[#allocation8_spill] sm:$0xff] }
 0x38b   : > { %2570 = vrot.lane.b32.xlu1 %v12609_v55, %s9965_s17  ;;  %13588 = vst [vmem:[#allocation48_spill] sm:$0xff] %v12684_v53  ;;  %4491 = vst.msk [vmem:[#allocation3 + $0x428] sm:$0xff] %vm2652_vm5, %v4344_v2  ;;  %v6553_v13 = vpop.f32.mrb[88].mxu1  ;;  %v4620_v2 = vld [vmem:[#allocation2 + $0x488] sm:$0xff] }
 0x38c   : > { %5386 = vrot.lane.b32.xlu0 %v12677_v38, %s9968_s8  ;;  %v6554_v61 = vadd.f32 %v12535_v3, %v6553_v13  ;;  %v6555_v17 = vpop.f32.mrb[89].mxu1  ;;  %v5921_v13 = vld [vmem:[#allocation3 + $0x408] sm:$0xff] }
 0x38d   : > { %v6556_v45 = vpop.f32.mrb[90].mxu1  ;;  %v3577_v54 = vpop.permute.xlu1 %3576 }
 0x38e   : > { %v7099_v36 = vadd.f32 %v13589_v20, %v6554_v61  ;;  %v6557_v55 = vadd.f32 %v12535_v3, %v6556_v45  ;;  %3724 = vst.msk [vmem:[#allocation3 + $0x438] sm:$0xff] %vm3678_vm7, %v3577_v54  ;;  %v4857_v29 = vpop.permute.xlu0 %4856  ;;  %v6558_v53 = vpop.f32.mrb[91].mxu1  ;;  %v5922_v52 = vld [vmem:[#allocation3 + $0x410] sm:$0xff]  ;;  %v4694_v61 = vpack.c.bf16 %v4621_v23, %v4620_v2  ;;  %v5133_v45 = vld [vmem:[#allocation2 + $0x491] sm:$0xff] }
 0x38f   : > { %3083 = vrot.lane.b32.xlu1 %v4180_v33, %s9966_s18  ;;  %5004 = vst.msk [vmem:[#allocation3 + $0x428] sm:$0xff] %vm3165_vm6, %v4857_v29  ;;  %6703 = vmatprep.mubr.bf16.mxu1 %v5922_v52  ;;  %v5132_v33 = vld [vmem:[#allocation2 + $0x489] sm:$0xff]  ;;  %v13591_v2 = vld [vmem:[#allocation5_spill] sm:$0xff] }
 0x390   : > { %4363 = vrot.lane.b32.xlu0 %v4181_v7, %s9965_s17  ;;  %v7102_v1 = vadd.f32 %v13590_v24, %v6557_v55  ;;  %6704 = vmatmul.mubr.bf16.gmra.mrb[164].mxu1 %v5921_v13  ;;  %v7465_v17 = vmax.f32 %v7099_v36, 0.0  ;;  %v12702_v36 = vpack.c.bf16 %v5133_v45, %v5132_v33 }
 0x391   : > { %v2553_v20 = vpop.permute.xlu1 %2552 }
 0x392   : > { %v7466_v54 = vmax.f32 %v7102_v1, 0.0  ;;  %2699 = vst.msk [vmem:[#allocation3 + $0x450] sm:$0xff] %vm2652_vm5, %v2553_v20  ;;  %v5369_v53 = vpop.permute.xlu0 %5368 }
 0x393   : > { %3596 = vrot.lane.b32.xlu1 %v4693_v50, %s9968_s8  ;;  %5516 = vst.msk [vmem:[#allocation3 + $0x428] sm:$0xff] %vm3678_vm7, %v5369_v53  ;;  %v6561_v52 = vpop.f32.mrb[92].mxu1  ;;  %v4109_v53 = vld [vmem:[#allocation2 + $0x472] sm:$0xff] }
 0x394   : > { %4876 = vrot.lane.b32.xlu0 %v4694_v61, %s9966_s18  ;;  %v6562_v29 = vadd.f32 %v12535_v3, %v6561_v52  ;;  %v6563_v55 = vpop.f32.mrb[93].mxu1  ;;  %v7649_v13 = vpack.c.bf16 %v7466_v54, %v7465_v17  ;;  %v4110_v52 = vld [vmem:[#allocation2 + $0x47a] sm:$0xff]  ;;  %v13592_v17 = vld [vmem:[#allocation7_spill] sm:$0xff] }
 0x395   : > { %v6564_v24 = vpop.f32.mrb[94].mxu1  ;;  %v3066_v23 = vpop.permute.xlu1 %3065  ;;  %v4182_v45 = vpack.c.bf16 %v4110_v52, %v4109_v53 }
 0x396   : > { %v7107_v1 = vadd.f32 %v13591_v2, %v6562_v29  ;;  %v6565_v20 = vadd.f32 %v12535_v3, %v6564_v24  ;;  %3212 = vst.msk [vmem:[#allocation3 + $0x450] sm:$0xff] %vm3165_vm6, %v3066_v23  ;;  %v4346_v50 = vpop.permute.xlu0 %4345  ;;  %v6566_v16 = vpop.f32.mrb[95].mxu1  ;;  %9302 = vmatprep.subr.bf16.mxu1 %v7649_v13  ;;  %v4623_v24 = vld [vmem:[#allocation2 + $0x4a0] sm:$0xff] }
 0x397   : > { %2572 = vrot.lane.b32.xlu1 %v12644_v51, %s9965_s17  ;;  %4492 = vst.msk [vmem:[#allocation3 + $0x440] sm:$0xff] %vm2652_vm5, %v4346_v50  ;;  %9303 = vmatpush3.bf16.msra.mxu1 %v12399_v9  ;;  %v4622_v51 = vld [vmem:[#allocation2 + $0x498] sm:$0xff]  ;;  %v5924_v9 = vld [vmem:[#allocation3 + $0x420] sm:$0xff] }
 0x398   : > { %5388 = vrot.lane.b32.xlu0 %v12702_v36, %s9968_s8  ;;  %v7110_v54 = vadd.f32 %v13592_v17, %v6565_v20  ;;  %v7467_v29 = vmax.f32 %v7107_v1, 0.0  ;;  %v4695_v20 = vpack.c.bf16 %v4623_v24, %v4622_v51  ;;  %v5134_v50 = vld [vmem:[#allocation2 + $0x499] sm:$0xff] }
 0x399   : > { %v3579_v33 = vpop.permute.xlu1 %3578 }
 0x39a   : > { %v7468_v55 = vmax.f32 %v7110_v54, 0.0  ;;  %3725 = vst.msk [vmem:[#allocation3 + $0x450] sm:$0xff] %vm3678_vm7, %v3579_v33  ;;  %v4859_v16 = vpop.permute.xlu0 %4858  ;;  %v5925_v13 = vld [vmem:[#allocation3 + $0x428] sm:$0xff]  ;;  %v4111_v54 = vld [vmem:[#allocation2 + $0x48a] sm:$0xff] }
 0x39b   : > { %3085 = vrot.lane.b32.xlu1 %v4181_v7, %s9966_s18  ;;  %5005 = vst.msk [vmem:[#allocation3 + $0x440] sm:$0xff] %vm3165_vm6, %v4859_v16  ;;  %6711 = vmatprep.mubr.bf16.mxu1 %v5925_v13  ;;  %v5135_v7 = vld [vmem:[#allocation2 + $0x4a1] sm:$0xff]  ;;  %v4112_v33 = vld [vmem:[#allocation2 + $0x492] sm:$0xff] }
 0x39c   : > { %4365 = vrot.lane.b32.xlu0 %v4182_v45, %s9965_s17  ;;  %6712 = vmatmul.mubr.bf16.gmra.mrb[168].mxu1 %v5924_v9  ;;  %v7650_v23 = vpack.c.bf16 %v7468_v55, %v7467_v29  ;;  %v12723_v52 = vpack.c.bf16 %v5135_v7, %v5134_v50  ;;  %v4183_v13 = vpack.c.bf16 %v4112_v33, %v4111_v54  ;;  %v5927_v50 = vld [vmem:[#allocation3 + $0x438] sm:$0xff] }
 0x39d   : > { %v2555_v2 = vpop.permute.xlu1 %2554 }
 0x39e   : > { %2700 = vst.msk [vmem:[#allocation3 + $0x468] sm:$0xff] %vm2652_vm5, %v2555_v2  ;;  %v5371_v1 = vpop.permute.xlu0 %5370  ;;  %9304 = vmatprep.subr.bf16.mxu1 %v7650_v23  ;;  %v4624_v2 = vld [vmem:[#allocation2 + $0x4b0] sm:$0xff] }
 0x39f   : > { %3598 = vrot.lane.b32.xlu1 %v4694_v61, %s9968_s8  ;;  %5517 = vst.msk [vmem:[#allocation3 + $0x440] sm:$0xff] %vm3678_vm7, %v5371_v1  ;;  %9305 = vmatpush3.bf16.msra.mxu1 %v12430_v40  ;;  %v4625_v1 = vld [vmem:[#allocation2 + $0x4b8] sm:$0xff] }
 0x3a0   : > { %4878 = vrot.lane.b32.xlu0 %v4695_v20, %s9966_s18 }
 0x3a1   : > { %v3068_v53 = vpop.permute.xlu1 %3067 }
 0x3a2   : > { %3213 = vst.msk [vmem:[#allocation3 + $0x468] sm:$0xff] %vm3165_vm6, %v3068_v53  ;;  %v4348_v17 = vpop.permute.xlu0 %4347  ;;  %v4696_v53 = vpack.c.bf16 %v4625_v1, %v4624_v2  ;;  %v4113_v1 = vld [vmem:[#allocation2 + $0x49a] sm:$0xff] }
 0x3a3   : > { %2574 = vrot.lane.b32.xlu1 %v12677_v38, %s9965_s17  ;;  %4493 = vst.msk [vmem:[#allocation3 + $0x458] sm:$0xff] %vm2652_vm5, %v4348_v17  ;;  %v6569_v61 = vpop.f32.mrb[96].mxu1 }
 0x3a4   : > { %5390 = vrot.lane.b32.xlu0 %v12723_v52, %s9968_s8  ;;  %v6570_v40 = vadd.f32 %v12535_v3, %v6569_v61  ;;  %v6571_v29 = vpop.f32.mrb[97].mxu1  ;;  %v5137_v61 = vld [vmem:[#allocation2 + $0x4b9] sm:$0xff] }
 0x3a5   : > { %v6572_v55 = vpop.f32.mrb[98].mxu1  ;;  %v3581_v16 = vpop.permute.xlu1 %3580 }
 0x3a6   : > { %v7115_v51 = vadd.f32 %v12184_v57, %v6570_v40  ;;  %v6573_v24 = vadd.f32 %v12535_v3, %v6572_v55  ;;  %3726 = vst.msk [vmem:[#allocation3 + $0x468] sm:$0xff] %vm3678_vm7, %v3581_v16  ;;  %v4861_v38 = vpop.permute.xlu0 %4860  ;;  %v6574_v9 = vpop.f32.mrb[99].mxu1  ;;  %v5928_v23 = vld [vmem:[#allocation3 + $0x440] sm:$0xff] }
 0x3a7   : > { %3087 = vrot.lane.b32.xlu1 %v4182_v45, %s9966_s18  ;;  %5006 = vst.msk [vmem:[#allocation3 + $0x458] sm:$0xff] %vm3165_vm6, %v4861_v38  ;;  %6719 = vmatprep.mubr.bf16.mxu1 %v5928_v23  ;;  %v5136_v45 = vld [vmem:[#allocation2 + $0x4b1] sm:$0xff] }
 0x3a8   : > { %4367 = vrot.lane.b32.xlu0 %v4183_v13, %s9965_s17  ;;  %v7118_v7 = vadd.f32 %v12201_v62, %v6573_v24  ;;  %6720 = vmatmul.mubr.bf16.gmra.mrb[172].mxu1 %v5927_v50  ;;  %v7469_v17 = vmax.f32 %v7115_v51, 0.0  ;;  %v12744_v51 = vpack.c.bf16 %v5137_v61, %v5136_v45  ;;  %v13593_v38 = vld [vmem:[#allocation9_spill] sm:$0xff]  ;;  %v4114_v50 = vld [vmem:[#allocation2 + $0x4a2] sm:$0xff] }
 0x3a9   : > { %v2557_v57 = vpop.permute.xlu1 %2556 }
 0x3aa   : > { %v7470_v54 = vmax.f32 %v7118_v7, 0.0  ;;  %2701 = vst.msk [vmem:[#allocation3 + $0x480] sm:$0xff] %vm2652_vm5, %v2557_v57  ;;  %v5373_v33 = vpop.permute.xlu0 %5372 }
 0x3ab   : > { %3600 = vrot.lane.b32.xlu1 %v4695_v20, %s9968_s8  ;;  %5518 = vst.msk [vmem:[#allocation3 + $0x458] sm:$0xff] %vm3678_vm7, %v5373_v33  ;;  %v6577_v40 = vpop.f32.mrb[100].mxu1 }
 0x3ac   : > { %4880 = vrot.lane.b32.xlu0 %v4696_v53, %s9966_s18  ;;  %v6578_v29 = vadd.f32 %v12535_v3, %v6577_v40  ;;  %v6579_v62 = vpop.f32.mrb[101].mxu1  ;;  %v7651_v55 = vpack.c.bf16 %v7470_v54, %v7469_v17  ;;  %v4184_v17 = vpack.c.bf16 %v4114_v50, %v4113_v1  ;;  %v4627_v40 = vld [vmem:[#allocation2 + $0x4c8] sm:$0xff] }
 0x3ad   : > { %v6580_v16 = vpop.f32.mrb[102].mxu1  ;;  %v3070_v24 = vpop.permute.xlu1 %3069 }
 0x3ae   : > { %v7123_v9 = vadd.f32 %v13593_v38, %v6578_v29  ;;  %v6581_v23 = vadd.f32 %v12535_v3, %v6580_v16  ;;  %3214 = vst.msk [vmem:[#allocation3 + $0x480] sm:$0xff] %vm3165_vm6, %v3070_v24  ;;  %v4350_v20 = vpop.permute.xlu0 %4349  ;;  %v6582_v2 = vpop.f32.mrb[103].mxu1  ;;  %9306 = vmatprep.subr.bf16.mxu1 %v7651_v55  ;;  %v5138_v16 = vld [vmem:[#allocation2 + $0x4c1] sm:$0xff] }
 0x3af   : > { %2576 = vrot.lane.b32.xlu1 %v12702_v36, %s9965_s17  ;;  %4494 = vst.msk [vmem:[#allocation3 + $0x470] sm:$0xff] %vm2652_vm5, %v4350_v20  ;;  %9307 = vmatpush3.bf16.msra.mxu1 %v12480_v14  ;;  %v4626_v36 = vld [vmem:[#allocation2 + $0x4c0] sm:$0xff] }
 0x3b0   : > { %5392 = vrot.lane.b32.xlu0 %v12744_v51, %s9968_s8  ;;  %v7126_v7 = vadd.f32 %v12194_v46, %v6581_v23  ;;  %v7471_v54 = vmax.f32 %v7123_v9, 0.0  ;;  %v5930_v14 = vld [vmem:[#allocation3 + $0x450] sm:$0xff]  ;;  %v4697_v62 = vpack.c.bf16 %v4627_v40, %v4626_v36  ;;  %v4115_v23 = vld [vmem:[#allocation2 + $0x4b2] sm:$0xff] }
 0x3b1   : > { %v3583_v57 = vpop.permute.xlu1 %3582  ;;  %v4116_v20 = vld [vmem:[#allocation2 + $0x4ba] sm:$0xff] }
 0x3b2   : > { %v7472_v33 = vmax.f32 %v7126_v7, 0.0  ;;  %3727 = vst.msk [vmem:[#allocation3 + $0x480] sm:$0xff] %vm3678_vm7, %v3583_v57  ;;  %v4863_v45 = vpop.permute.xlu0 %4862  ;;  %v5931_v61 = vld [vmem:[#allocation3 + $0x458] sm:$0xff]  ;;  %v12774_v7 = vpack.c.bf16 %v4116_v20, %v4115_v23  ;;  %v4629_v36 = vld [vmem:[#allocation2 + $0x4e0] sm:$0xff]  ;;  %v5933_v40 = vld [vmem:[#allocation3 + $0x468] sm:$0xff] }
 0x3b3   : > { %3089 = vrot.lane.b32.xlu1 %v4183_v13, %s9966_s18  ;;  %5007 = vst.msk [vmem:[#allocation3 + $0x470] sm:$0xff] %vm3165_vm6, %v4863_v45  ;;  %6727 = vmatprep.mubr.bf16.mxu1 %v5931_v61  ;;  %v5139_v13 = vld [vmem:[#allocation2 + $0x4c9] sm:$0xff]  ;;  %v4628_v61 = vld [vmem:[#allocation2 + $0x4d8] sm:$0xff] }
 0x3b4   : > { %4369 = vrot.lane.b32.xlu0 %v4184_v17, %s9965_s17  ;;  %6728 = vmatmul.mubr.bf16.gmra.mrb[176].mxu1 %v5930_v14  ;;  %v7652_v46 = vpack.c.bf16 %v7472_v33, %v7471_v54  ;;  %v12765_v38 = vpack.c.bf16 %v5139_v13, %v5138_v16  ;;  %v5660_v14 = vld [vmem:[#allocation2 + $0x52a] sm:$0xff]  ;;  %v5663_v13 = vld [vmem:[#allocation2 + $0x542] sm:$0xff]  ;;  %v5140_v20 = vld [vmem:[#allocation2 + $0x4d9] sm:$0xff] }
 0x3b5   : > { %v2559_v29 = vpop.permute.xlu1 %2558 }
 0x3b6   : > { %2702 = vst.msk [vmem:[#allocation3 + $0x498] sm:$0xff] %vm2652_vm5, %v2559_v29  ;;  %v5375_v55 = vpop.permute.xlu0 %5374  ;;  %9308 = vmatprep.subr.bf16.mxu1 %v7652_v46  ;;  %v5661_v46 = vld [vmem:[#allocation2 + $0x532] sm:$0xff] }
 0x3b7   : > { %3602 = vrot.lane.b32.xlu1 %v4696_v53, %s9968_s8  ;;  %5519 = vst.msk [vmem:[#allocation3 + $0x470] sm:$0xff] %vm3678_vm7, %v5375_v55  ;;  %9309 = vmatpush3.bf16.msra.mxu1 %v12513_v34  ;;  %v12784_v55 = vpack.c.bf16 %v4629_v36, %v4628_v61  ;;  %v5726_v16 = vpack.c.bf16 %v5661_v46, %v5660_v14  ;;  %v4117_v61 = vld [vmem:[#allocation2 + $0x4c2] sm:$0xff]  ;;  %v4118_v36 = vld [vmem:[#allocation2 + $0x4ca] sm:$0xff] }
 0x3b8   : > { %4882 = vrot.lane.b32.xlu0 %v4697_v62, %s9966_s18  ;;  %v4186_v14 = vpack.c.bf16 %v4118_v36, %v4117_v61  ;;  %v4630_v46 = vld [vmem:[#allocation2 + $0x4e8] sm:$0xff]  ;;  %v4119_v61 = vld [vmem:[#allocation2 + $0x4da] sm:$0xff] }
 0x3b9   : > { %v3072_v24 = vpop.permute.xlu1 %3071  ;;  %5790 = vst.msk [vmem:[#allocation3 + $0x5e0] sm:$0xff] %vm1647_vm3, %v5726_v16  ;;  %v4120_v36 = vld [vmem:[#allocation2 + $0x4e2] sm:$0xff] }
 0x3ba   : > { %3215 = vst.msk [vmem:[#allocation3 + $0x498] sm:$0xff] %vm3165_vm6, %v3072_v24  ;;  %v4352_v9 = vpop.permute.xlu0 %4351 }
 0x3bb   : > { %2578 = vrot.lane.b32.xlu1 %v12723_v52, %s9965_s17  ;;  %4495 = vst.msk [vmem:[#allocation3 + $0x488] sm:$0xff] %vm2652_vm5, %v4352_v9  ;;  %v6585_v53 = vpop.f32.mrb[104].mxu1 }
 0x3bc   : > { %5394 = vrot.lane.b32.xlu0 %v12765_v38, %s9968_s8  ;;  %v6586_v34 = vadd.f32 %v12535_v3, %v6585_v53  ;;  %v6587_v2 = vpop.f32.mrb[105].mxu1  ;;  %v5141_v53 = vld [vmem:[#allocation2 + $0x4e1] sm:$0xff] }
 0x3bd   : > { %v6588_v1 = vpop.f32.mrb[106].mxu1  ;;  %v3585_v50 = vpop.permute.xlu1 %3584 }
 0x3be   : > { %v7131_v57 = vadd.f32 %v12214_v8, %v6586_v34  ;;  %v6589_v54 = vadd.f32 %v12535_v3, %v6588_v1  ;;  %3728 = vst.msk [vmem:[#allocation3 + $0x498] sm:$0xff] %vm3678_vm7, %v3585_v50  ;;  %v4865_v52 = vpop.permute.xlu0 %4864  ;;  %v5934_v33 = vld [vmem:[#allocation3 + $0x470] sm:$0xff]  ;;  %v6590_v45 = vpop.f32.mrb[107].mxu1 }
 0x3bf   : > { %3091 = vrot.lane.b32.xlu1 %v4184_v17, %s9966_s18  ;;  %5008 = vst.msk [vmem:[#allocation3 + $0x488] sm:$0xff] %vm3165_vm6, %v4865_v52  ;;  %6735 = vmatprep.mubr.bf16.mxu1 %v5934_v33  ;;  %v5662_v17 = vld [vmem:[#allocation2 + $0x53a] sm:$0xff] }
 0x3c0   : > { %4371 = vrot.lane.b32.xlu0 %v12774_v7, %s9965_s17  ;;  %v7134_v8 = vadd.f32 %v12218_v44, %v6589_v54  ;;  %6736 = vmatmul.mubr.bf16.gmra.mrb[180].mxu1 %v5933_v40  ;;  %v7473_v24 = vmax.f32 %v7131_v57, 0.0  ;;  %v5727_v34 = vpack.c.bf16 %v5663_v13, %v5662_v17 }
 0x3c1   : > { %v2561_v29 = vpop.permute.xlu1 %2560 }
 0x3c2   : > { %v7474_v9 = vmax.f32 %v7134_v8, 0.0  ;;  %2703 = vst.msk [vmem:[#allocation3 + $0x4b0] sm:$0xff] %vm2652_vm5, %v2561_v29  ;;  %v5377_v23 = vpop.permute.xlu0 %5376  ;;  %v4631_v29 = vld [vmem:[#allocation2 + $0x4f0] sm:$0xff] }
 0x3c3   : > { %3604 = vrot.lane.b32.xlu1 %v4697_v62, %s9968_s8  ;;  %5520 = vst.msk [vmem:[#allocation3 + $0x488] sm:$0xff] %vm3678_vm7, %v5377_v23  ;;  %v6593_v44 = vpop.f32.mrb[108].mxu1  ;;  %v12794_v62 = vpack.c.bf16 %v5141_v53, %v5140_v20  ;;  %v7549_v23 = vld [vmem:[%s13539_s5 + $0x20] sm:$0xff] }
 0x3c4   : > { %4884 = vrot.lane.b32.xlu0 %v12784_v55, %s9966_s18  ;;  %v6594_v2 = vadd.f32 %v12535_v3, %v6593_v44  ;;  %v6595_v1 = vpop.f32.mrb[109].mxu1  ;;  %v7653_v50 = vpack.c.bf16 %v7474_v9, %v7473_v24  ;;  %5791 = vst.msk [vmem:[#allocation3 + $0x5f8] sm:$0xff] %vm1647_vm3, %v5727_v34  ;;  %v5980_v24 = vld [vmem:[#allocation3 + $0x5e0] sm:$0xff]  ;;  %v4699_v34 = vpack.c.bf16 %v4631_v29, %v4630_v46 }
 0x3c5   : > { %v6596_v57 = vpop.f32.mrb[110].mxu1  ;;  %v3074_v54 = vpop.permute.xlu1 %3073  ;;  %9796 = vmatprep.mubr.msk.bf16.mxu0 %vm1647_vm3, %v5980_v24 }
 0x3c6   : > { %v7139_v52 = vadd.f32 %v12209_v6, %v6594_v2  ;;  %v6597_v33 = vadd.f32 %v12535_v3, %v6596_v57  ;;  %3216 = vst.msk [vmem:[#allocation3 + $0x4b0] sm:$0xff] %vm3165_vm6, %v3074_v54  ;;  %v4354_v45 = vpop.permute.xlu0 %4353  ;;  %9310 = vmatprep.subr.bf16.mxu1 %v7653_v50  ;;  %v6598_v40 = vpop.f32.mrb[111].mxu1 }
 0x3c7   : > { %2580 = vrot.lane.b32.xlu1 %v12744_v51, %s9965_s17  ;;  %4496 = vst.msk [vmem:[#allocation3 + $0x4a0] sm:$0xff] %vm2652_vm5, %v4354_v45  ;;  %9311 = vmatpush3.bf16.msra.mxu1 %v12566_v58  ;;  %v7545_v58 = vld [vmem:[%s13539_s5] sm:$0xff] }
 0x3c8   : > { %5396 = vrot.lane.b32.xlu0 %v12794_v62, %s9968_s8  ;;  %v7142_v6 = vadd.f32 %v12216_v0, %v6597_v33  ;;  %v7475_v16 = vmax.f32 %v7139_v52, 0.0  ;;  %v5936_v0 = vld [vmem:[#allocation3 + $0x480] sm:$0xff]  ;;  %v9007_v52 = vcombine.low %v7545_v58, %v7549_v23 }
 0x3c9   : > { %v3587_v8 = vpop.permute.xlu1 %3586 }
 0x3ca   : > { %v7476_v17 = vmax.f32 %v7142_v6, 0.0  ;;  %3729 = vst.msk [vmem:[#allocation3 + $0x4b0] sm:$0xff] %vm3678_vm7, %v3587_v8  ;;  %v4867_v51 = vpop.permute.xlu0 %4866  ;;  %v5937_v13 = vld [vmem:[#allocation3 + $0x488] sm:$0xff] }
 0x3cb   : > { %3093 = vrot.lane.b32.xlu1 %v12774_v7, %s9966_s18  ;;  %5009 = vst.msk [vmem:[#allocation3 + $0x4a0] sm:$0xff] %vm3165_vm6, %v4867_v51  ;;  %6743 = vmatprep.mubr.bf16.mxu1 %v5937_v13  ;;  %v5983_v9 = vld [vmem:[#allocation3 + $0x5f8] sm:$0xff]  ;;  %v9008_v7 = vcombine.high %v7545_v58, %v7549_v23 }
 0x3cc   : > { %4373 = vrot.lane.b32.xlu0 %v4186_v14, %s9965_s17  ;;  %6744 = vmatmul.mubr.bf16.gmra.mrb[184].mxu1 %v5936_v0  ;;  %v7654_v20 = vpack.c.bf16 %v7476_v17, %v7475_v16  ;;  %v4633_v17 = vld [vmem:[#allocation2 + $0x508] sm:$0xff] }
 0x3cd   : > { %v2563_v53 = vpop.permute.xlu1 %2562  ;;  %9797 = vmatmul.mubr.msk.bf16.gmra.mrb[4].mxu0 %vm1647_vm3, %v5983_v9 }
 0x3ce   : > { %2704 = vst.msk [vmem:[#allocation3 + $0x4c8] sm:$0xff] %vm2652_vm5, %v2563_v53  ;;  %v5379_v44 = vpop.permute.xlu0 %5378  ;;  %9312 = vmatprep.subr.bf16.mxu1 %v7654_v20  ;;  %8121 = vmatprep.mubr.bf16.mxu0 %v9008_v7  ;;  %v13594_v20 = vld [vmem:[#allocation10_spill] sm:$0xff] }
 0x3cf   : > { %3606 = vrot.lane.b32.xlu1 %v12784_v55, %s9968_s8  ;;  %5521 = vst.msk [vmem:[#allocation3 + $0x4a0] sm:$0xff] %vm3678_vm7, %v5379_v44  ;;  %v6601_v2 = vpop.f32.mrb[112].mxu1  ;;  %9313 = vmatpush3.bf16.msra.mxu1 %v12597_v5 }
 0x3d0   : > { %4886 = vrot.lane.b32.xlu0 %v4699_v34, %s9966_s18  ;;  %v6602_v1 = vadd.f32 %v12535_v3, %v6601_v2  ;;  %v6603_v50 = vpop.f32.mrb[113].mxu1  ;;  %v13595_v2 = vld [vmem:[#allocation11_spill] sm:$0xff] }
 0x3d1   : > { %v6604_v57 = vpop.f32.mrb[114].mxu1  ;;  %v3076_v54 = vpop.permute.xlu1 %3075 }
 0x3d2   : > { %v7147_v33 = vadd.f32 %v12239_v11, %v6602_v1  ;;  %v6605_v45 = vadd.f32 %v12535_v3, %v6604_v57  ;;  %3217 = vst.msk [vmem:[#allocation3 + $0x4c8] sm:$0xff] %vm3165_vm6, %v3076_v54  ;;  %v4356_v55 = vpop.permute.xlu0 %4355  ;;  %v6606_v5 = vpop.f32.mrb[115].mxu1  ;;  %v4187_v11 = vpack.c.bf16 %v4120_v36, %v4119_v61 }
 0x3d3   : > { %2582 = vrot.lane.b32.xlu1 %v12765_v38, %s9965_s17  ;;  %4497 = vst.msk [vmem:[#allocation3 + $0x4b8] sm:$0xff] %vm2652_vm5, %v4356_v55  ;;  %v4632_v38 = vld [vmem:[#allocation2 + $0x500] sm:$0xff] }
 0x3d4   : > { %5398 = vrot.lane.b32.xlu0 %v12474_v25, %s9968_s8  ;;  %v7150_v40 = vadd.f32 %v12252_v39, %v6605_v45  ;;  %v7477_v8 = vmax.f32 %v7147_v33, 0.0  ;;  %v5939_v39 = vld [vmem:[#allocation3 + $0x498] sm:$0xff]  ;;  %v4700_v23 = vpack.c.bf16 %v4633_v17, %v4632_v38  ;;  %v12857_v33 = vld [vmem:[%s13538_s4] ss:$0 sm:$0xff]  ;;  %v4635_v38 = vld [vmem:[#allocation2 + $0x518] sm:$0xff] }
 0x3d5   : > { %v3589_v6 = vpop.permute.xlu1 %3588  ;;  %8122 = vmatmul.mubr.bf16.vlgmr.msra.gmra.mrb[8].mxu0 %v9007_v52  ;;  %v4122_v52 = vld [vmem:[#allocation2 + $0x4f2] sm:$0xff] }
 0x3d6   : > { %v7478_v46 = vmax.f32 %v7150_v40, 0.0  ;;  %3730 = vst.msk [vmem:[#allocation3 + $0x4c8] sm:$0xff] %vm3678_vm7, %v3589_v6  ;;  %v4869_v29 = vpop.permute.xlu0 %4868  ;;  %v5940_v16 = vld [vmem:[#allocation3 + $0x4a0] sm:$0xff] }
 0x3d7   : > { %3095 = vrot.lane.b32.xlu1 %v4186_v14, %s9966_s18  ;;  %5010 = vst.msk [vmem:[#allocation3 + $0x4b8] sm:$0xff] %vm3165_vm6, %v4869_v29  ;;  %v6609_v51 = vpop.f32.mrb[116].mxu1  ;;  %6751 = vmatprep.mubr.bf16.mxu1 %v5940_v16  ;;  %v5942_v29 = vld [vmem:[#allocation3 + $0x4b0] sm:$0xff]  ;;  %v4634_v16 = vld [vmem:[#allocation2 + $0x510] sm:$0xff] }
 0x3d8   : > { %4375 = vrot.lane.b32.xlu0 %v4187_v11, %s9965_s17  ;;  %v6610_v13 = vadd.f32 %v12535_v3, %v6609_v51  ;;  %v6611_v24 = vpop.f32.mrb[117].mxu1  ;;  %6752 = vmatmul.mubr.bf16.gmra.mrb[188].mxu1 %v5939_v39  ;;  %v7655_v58 = vpack.c.bf16 %v7478_v46, %v7477_v8 }
 0x3d9   : > { %v6612_v0 = vpop.f32.mrb[118].mxu1  ;;  %v2565_v9 = vpop.permute.xlu1 %2564 }
 0x3da   : > { %v7155_v7 = vadd.f32 %v13594_v20, %v6610_v13  ;;  %v6613_v14 = vadd.f32 %v12535_v3, %v6612_v0  ;;  %2705 = vst.msk [vmem:[#allocation3 + $0x4e0] sm:$0xff] %vm2652_vm5, %v2565_v9  ;;  %v5381_v53 = vpop.permute.xlu0 %5380  ;;  %9314 = vmatprep.subr.bf16.mxu1 %v7655_v58  ;;  %v6614_v44 = vpop.f32.mrb[119].mxu1  ;;  %v4701_v13 = vpack.c.bf16 %v4635_v38, %v4634_v16  ;;  %v4123_v0 = vld [vmem:[#allocation2 + $0x502] sm:$0xff]  ;;  %v4124_v9 = vld [vmem:[#allocation2 + $0x50a] sm:$0xff] }
 0x3db   : > { %3608 = vrot.lane.b32.xlu1 %v4699_v34, %s9968_s8  ;;  %5522 = vst.msk [vmem:[#allocation3 + $0x4b8] sm:$0xff] %vm3678_vm7, %v5381_v53  ;;  %9315 = vmatpush3.bf16.msra.mxu1 %v12641_v21  ;;  %v4121_v21 = vld [vmem:[#allocation2 + $0x4ea] sm:$0xff] }
 0x3dc   : > { %4888 = vrot.lane.b32.xlu0 %v4700_v23, %s9966_s18  ;;  %v7158_v1 = vadd.f32 %v13595_v2, %v6613_v14  ;;  %v7479_v57 = vmax.f32 %v7155_v7, 0.0  ;;  %v4188_v8 = vpack.c.bf16 %v4122_v52, %v4121_v21  ;;  %v4636_v53 = vld [vmem:[#allocation2 + $0x528] sm:$0xff]  ;;  %v4637_v44 = vld [vmem:[#allocation2 + $0x530] sm:$0xff] }
 0x3dd   : > { %v3078_v50 = vpop.permute.xlu1 %3077  ;;  %v13596_v2 = vld [vmem:[#allocation12_spill] sm:$0xff]  ;;  %v4702_v21 = vpack.c.bf16 %v4637_v44, %v4636_v53 }
 0x3de   : > { %v7480_v54 = vmax.f32 %v7158_v1, 0.0  ;;  %3218 = vst.msk [vmem:[#allocation3 + $0x4e0] sm:$0xff] %vm3165_vm6, %v3078_v50  ;;  %v4358_v3 = vpop.permute.xlu0 %4357 }
 0x3df   : > { %2584 = vrot.lane.b32.xlu1 %v12794_v62, %s9965_s17  ;;  %4498 = vst.msk [vmem:[#allocation3 + $0x4d0] sm:$0xff] %vm2652_vm5, %v4358_v3  ;;  %v6617_v34 = vpop.f32.mrb[120].mxu1 }
 0x3e0   : > { %5400 = vrot.lane.b32.xlu0 %v12556_v18, %s9968_s8  ;;  %v6618_v45 = vadd.f32 %v12857_v33, %v6617_v34  ;;  %v6619_v55 = vpop.f32.mrb[121].mxu1  ;;  %v7656_v5 = vpack.c.bf16 %v7480_v54, %v7479_v57  ;;  %v4189_v54 = vpack.c.bf16 %v4124_v9, %v4123_v0 }
 0x3e1   : > { %v6620_v61 = vpop.f32.mrb[122].mxu1  ;;  %v3591_v36 = vpop.permute.xlu1 %3590  ;;  %v5149_v55 = vld [vmem:[#allocation2 + $0x531] sm:$0xff] }
 0x3e2   : > { %v7163_v62 = vadd.f32 %v12264_v19, %v6618_v45  ;;  %v6621_v40 = vadd.f32 %v12857_v33, %v6620_v61  ;;  %3731 = vst.msk [vmem:[#allocation3 + $0x4e0] sm:$0xff] %vm3678_vm7, %v3591_v36  ;;  %v4871_v18 = vpop.permute.xlu0 %4870  ;;  %9316 = vmatprep.subr.bf16.mxu1 %v7656_v5  ;;  %v5943_v6 = vld [vmem:[#allocation3 + $0x4b8] sm:$0xff]  ;;  %v6622_v46 = vpop.f32.mrb[123].mxu1 }
 0x3e3   : > { %3097 = vrot.lane.b32.xlu1 %v4187_v11, %s9966_s18  ;;  %5011 = vst.msk [vmem:[#allocation3 + $0x4d0] sm:$0xff] %vm3165_vm6, %v4871_v18  ;;  %6759 = vmatprep.mubr.bf16.mxu1 %v5943_v6  ;;  %v5148_v45 = vld [vmem:[#allocation2 + $0x529] sm:$0xff]  ;;  %v4126_v46 = vld [vmem:[#allocation2 + $0x51a] sm:$0xff] }
 0x3e4   : > { %9317 = vmatpush3.bf16.msra.mxu1 %v12667_v63  ;;  %v7166_v19 = vadd.f32 %v12281_v42, %v6621_v40  ;;  %4377 = vrot.lane.b32.xlu0 %v4188_v8, %s9965_s17  ;;  %v7481_v51 = vmax.f32 %v7163_v62, 0.0 }
 0x3e5   : > { %6760 = vmatmul.mubr.bf16.gmra.mrb[192].mxu1 %v5942_v29  ;;  %v2567_v17 = vpop.permute.xlu1 %2566 }
 0x3e6   : > { %v7482_v39 = vmax.f32 %v7166_v19, 0.0  ;;  %2706 = vst.msk [vmem:[#allocation3 + $0x4f8] sm:$0xff] %vm2652_vm5, %v2567_v17  ;;  %v5383_v11 = vpop.permute.xlu0 %5382  ;;  %v4638_v17 = vld [vmem:[#allocation2 + $0x538] sm:$0xff] }
 0x3e7   : > { %3610 = vrot.lane.b32.xlu1 %v4700_v23, %s9968_s8  ;;  %5523 = vst.msk [vmem:[#allocation3 + $0x4d0] sm:$0xff] %vm3678_vm7, %v5383_v11 }
 0x3e8   : > { %v12871_v63 = vpack.c.bf16 %v7482_v39, %v7481_v51  ;;  %4890 = vrot.lane.b32.xlu0 %v4701_v13, %s9966_s18  ;;  %v4639_v51 = vld [vmem:[#allocation2 + $0x540] sm:$0xff] }
 0x3e9   : > { %v3080_v24 = vpop.permute.xlu1 %3079  ;;  %v5948_v0 = vld [vmem:[#allocation3 + $0x4e0] sm:$0xff] }
 0x3ea   : > { %3219 = vst.msk [vmem:[#allocation3 + $0x4f8] sm:$0xff] %vm3165_vm6, %v3080_v24  ;;  %v4360_v42 = vpop.permute.xlu0 %4359 }
 0x3eb   : > { %2586 = vrot.lane.b32.xlu1 %v12474_v25, %s9965_s17  ;;  %4499 = vst.msk [vmem:[#allocation3 + $0x4e8] sm:$0xff] %vm2652_vm5, %v4360_v42  ;;  %v6625_v58 = vpop.f32.mrb[124].mxu1 }
 0x3ec   : > { %v6626_v23 = vadd.f32 %v12857_v33, %v6625_v58  ;;  %5402 = vrot.lane.b32.xlu0 %v12560_v56, %s9968_s8  ;;  %v6627_v20 = vpop.f32.mrb[125].mxu1  ;;  %v5945_v56 = vld [vmem:[#allocation3 + $0x4c8] sm:$0xff] }
 0x3ed   : > { %v6628_v7 = vpop.f32.mrb[126].mxu1  ;;  %v3593_v14 = vpop.permute.xlu1 %3592 }
 0x3ee   : > { %v7171_v1 = vadd.f32 %v13596_v2, %v6626_v23  ;;  %v6629_v50 = vadd.f32 %v12857_v33, %v6628_v7  ;;  %3732 = vst.msk [vmem:[#allocation3 + $0x4f8] sm:$0xff] %vm3678_vm7, %v3593_v14  ;;  %v4873_v25 = vpop.permute.xlu0 %4872  ;;  %v5946_v57 = vld [vmem:[#allocation3 + $0x4d0] sm:$0xff]  ;;  %v6630_v3 = vpop.f32.mrb[127].mxu1  ;;  %v4703_v23 = vpack.c.bf16 %v4639_v51, %v4638_v17 }
 0x3ef   : > { %3099 = vrot.lane.b32.xlu1 %v4188_v8, %s9966_s18  ;;  %5012 = vst.msk [vmem:[#allocation3 + $0x4e8] sm:$0xff] %vm3165_vm6, %v4873_v25  ;;  %6767 = vmatprep.mubr.bf16.mxu1 %v5946_v57  ;;  %v4125_v8 = vld [vmem:[#allocation2 + $0x512] sm:$0xff]  ;;  %v5151_v7 = vld [vmem:[#allocation2 + $0x541] sm:$0xff] }
 0x3f0   : > { %v7174_v34 = vadd.f32 %v12274_v30, %v6629_v50  ;;  %4379 = vrot.lane.b32.xlu0 %v4189_v54, %s9965_s17  ;;  %6768 = vmatmul.mubr.bf16.gmra.mrb[196].mxu1 %v5945_v56  ;;  %v7483_v5 = vmax.f32 %v7171_v1, 0.0  ;;  %v5214_v30 = vpack.c.bf16 %v5149_v55, %v5148_v45  ;;  %v4190_v42 = vpack.c.bf16 %v4126_v46, %v4125_v8 }
 0x3f1   : > { %v2569_v52 = vpop.permute.xlu1 %2568 }
 0x3f2   : > { %v7484_v61 = vmax.f32 %v7174_v34, 0.0  ;;  %2707 = vst.msk [vmem:[#allocation3 + $0x510] sm:$0xff] %vm2652_vm5, %v2569_v52  ;;  %v5385_v36 = vpop.permute.xlu0 %5384 }
 0x3f3   : > { %3612 = vrot.lane.b32.xlu1 %v4701_v13, %s9968_s8  ;;  %5524 = vst.msk [vmem:[#allocation3 + $0x4e8] sm:$0xff] %vm3678_vm7, %v5385_v36 }
 0x3f4   : > { %v12891_v62 = vpack.c.bf16 %v7484_v61, %v7483_v5  ;;  %4892 = vrot.lane.b32.xlu0 %v4702_v21, %s9966_s18 }
 0x3f5   : > { %v3082_v40 = vpop.permute.xlu1 %3081  ;;  %v5951_v5 = vld [vmem:[#allocation3 + $0x4f8] sm:$0xff] }
 0x3f6   : > { %3220 = vst.msk [vmem:[#allocation3 + $0x510] sm:$0xff] %vm3165_vm6, %v3082_v40  ;;  %v4362_v18 = vpop.permute.xlu0 %4361 }
 0x3f7   : > { %4500 = vst.msk [vmem:[#allocation3 + $0x500] sm:$0xff] %vm2652_vm5, %v4362_v18  ;;  %v6633_v6 = vpop.f32.mrb[128].mxu1 }
 0x3f8   : > { %v6634_v29 = vadd.f32 %v12857_v33, %v6633_v6  ;;  %5404 = vrot.lane.b32.xlu0 %v5214_v30, %s9968_s8  ;;  %v6635_v16 = vpop.f32.mrb[129].mxu1 }
 0x3f9   : > { %v6636_v38 = vpop.f32.mrb[130].mxu1  ;;  %v3595_v19 = vpop.permute.xlu1 %3594 }
 0x3fa   : > { %v7179_v39 = vadd.f32 %v12294_v10, %v6634_v29  ;;  %v6637_v11 = vadd.f32 %v12857_v33, %v6636_v38  ;;  %3733 = vst.msk [vmem:[#allocation3 + $0x510] sm:$0xff] %vm3678_vm7, %v3595_v19  ;;  %v4875_v13 = vpop.permute.xlu0 %4874  ;;  %v5949_v24 = vld [vmem:[#allocation3 + $0x4e8] sm:$0xff]  ;;  %v6638_v58 = vpop.f32.mrb[131].mxu1 }
 0x3fb   : > { %5013 = vst.msk [vmem:[#allocation3 + $0x500] sm:$0xff] %vm3165_vm6, %v4875_v13  ;;  %6775 = vmatprep.mubr.bf16.mxu1 %v5949_v24  ;;  %v5150_v10 = vld [vmem:[#allocation2 + $0x539] sm:$0xff] }
 0x3fc   : > { %v7182_v9 = vadd.f32 %v12298_v26, %v6637_v11  ;;  %4381 = vrot.lane.b32.xlu0 %v4190_v42, %s9965_s17  ;;  %6776 = vmatmul.mubr.bf16.gmra.mrb[200].mxu1 %v5948_v0  ;;  %v7485_v14 = vmax.f32 %v7179_v39, 0.0  ;;  %v5215_v1 = vpack.c.bf16 %v5151_v7, %v5150_v10  ;;  %s9979_s17 = smov 117  }
 0x3fd   : > { %v2571_v20 = vpop.permute.xlu1 %2570 }
 0x3fe   : > { %v7486_v53 = vmax.f32 %v7182_v9, 0.0  ;;  %2708 = vst.msk [vmem:[#allocation3 + $0x528] sm:$0xff] %vm2652_vm5, %v2571_v20  ;;  %v5387_v44 = vpop.permute.xlu0 %5386 }
 0x3ff   : > { %5525 = vst.msk [vmem:[#allocation3 + $0x500] sm:$0xff] %vm3678_vm7, %v5387_v44  ;;  %v13597_v44 = vld [vmem:[#allocation13_spill] sm:$0xff] }
 0x400   : > { %v12906_v2 = vpack.c.bf16 %v7486_v53, %v7485_v14  ;;  %4894 = vrot.lane.b32.xlu0 %v4703_v23, %s9966_s18  ;;  %s9980_s18 = smov 116  }
 0x401   : > { %v3084_v26 = vpop.permute.xlu1 %3083  ;;  %v5954_v13 = vld [vmem:[#allocation3 + $0x510] sm:$0xff] }
 0x402   : > { %3221 = vst.msk [vmem:[#allocation3 + $0x528] sm:$0xff] %vm3165_vm6, %v3084_v26  ;;  %v4364_v50 = vpop.permute.xlu0 %4363 }
 0x403   : > { %4501 = vst.msk [vmem:[#allocation3 + $0x518] sm:$0xff] %vm2652_vm5, %v4364_v50  ;;  %v6641_v25 = vpop.f32.mrb[132].mxu1 }
 0x404   : > { %v6642_v57 = vadd.f32 %v12857_v33, %v6641_v25  ;;  %5406 = vrot.lane.b32.xlu0 %v5215_v1, %s9968_s8  ;;  %v6643_v54 = vpop.f32.mrb[133].mxu1  ;;  %s9981_s8 = smov 115  }
 0x405   : > { %v6644_v3 = vpop.f32.mrb[134].mxu1  ;;  %v3597_v56 = vpop.permute.xlu1 %3596 }
 0x406   : > { %v7187_v34 = vadd.f32 %v12289_v37, %v6642_v57  ;;  %v6645_v21 = vadd.f32 %v12857_v33, %v6644_v3  ;;  %3734 = vst.msk [vmem:[#allocation3 + $0x528] sm:$0xff] %vm3678_vm7, %v3597_v56  ;;  %v4877_v52 = vpop.permute.xlu0 %4876  ;;  %v6646_v45 = vpop.f32.mrb[135].mxu1  ;;  %v5952_v55 = vld [vmem:[#allocation3 + $0x500] sm:$0xff] }
 0x407   : > { %5014 = vst.msk [vmem:[#allocation3 + $0x518] sm:$0xff] %vm3165_vm6, %v4877_v52  ;;  %6783 = vmatprep.mubr.bf16.mxu1 %v5952_v55 }
 0x408   : > { %v7190_v61 = vadd.f32 %v12296_v32, %v6645_v21  ;;  %6784 = vmatmul.mubr.bf16.gmra.mrb[204].mxu1 %v5951_v5  ;;  %v7487_v30 = vmax.f32 %v7187_v34, 0.0 }
 0x409   : > { %v2573_v36 = vpop.permute.xlu1 %2572 }
 0x40a   : > { %v7488_v40 = vmax.f32 %v7190_v61, 0.0  ;;  %2709 = vst.msk [vmem:[#allocation3 + $0x540] sm:$0xff] %vm2652_vm5, %v2573_v36  ;;  %v5389_v37 = vpop.permute.xlu0 %5388 }
 0x40b   : > { %5526 = vst.msk [vmem:[#allocation3 + $0x518] sm:$0xff] %vm3678_vm7, %v5389_v37 }
 0x40c   : > { %v12920_v18 = vpack.c.bf16 %v7488_v40, %v7487_v30 }
 0x40d   : > { %v3086_v6 = vpop.permute.xlu1 %3085  ;;  %v5957_v54 = vld [vmem:[#allocation3 + $0x528] sm:$0xff] }
 0x40e   : > { %3222 = vst.msk [vmem:[#allocation3 + $0x540] sm:$0xff] %vm3165_vm6, %v3086_v6  ;;  %v4366_v8 = vpop.permute.xlu0 %4365 }
 0x40f   : > { %4502 = vst.msk [vmem:[#allocation3 + $0x530] sm:$0xff] %vm2652_vm5, %v4366_v8  ;;  %v6649_v46 = vpop.f32.mrb[136].mxu1 }
 0x410   : > { %v6650_v32 = vadd.f32 %v12857_v33, %v6649_v46  ;;  %v6651_v29 = vpop.f32.mrb[137].mxu1 }
 0x411   : > { %v6652_v16 = vpop.f32.mrb[138].mxu1  ;;  %v3599_v38 = vpop.permute.xlu1 %3598 }
 0x412   : > { %v7195_v19 = vadd.f32 %v12336_v59, %v6650_v32  ;;  %v6653_v17 = vadd.f32 %v12857_v33, %v6652_v16  ;;  %3735 = vst.msk [vmem:[#allocation3 + $0x540] sm:$0xff] %vm3678_vm7, %v3599_v38  ;;  %v4879_v51 = vpop.permute.xlu0 %4878  ;;  %v6654_v39 = vpop.f32.mrb[139].mxu1  ;;  %v5955_v11 = vld [vmem:[#allocation3 + $0x518] sm:$0xff] }
 0x413   : > { %5015 = vst.msk [vmem:[#allocation3 + $0x530] sm:$0xff] %vm3165_vm6, %v4879_v51  ;;  %6791 = vmatprep.mubr.bf16.mxu1 %v5955_v11 }
 0x414   : > { %v7198_v24 = vadd.f32 %v12351_v31, %v6653_v17  ;;  %6792 = vmatmul.mubr.bf16.gmra.mrb[208].mxu1 %v5954_v13  ;;  %v7489_v58 = vmax.f32 %v7195_v19, 0.0 }
 0x415   : > { %v2575_v42 = vpop.permute.xlu1 %2574 }
 0x416   : > { %v7490_v0 = vmax.f32 %v7198_v24, 0.0  ;;  %2710 = vst.msk [vmem:[#allocation3 + $0x558] sm:$0xff] %vm2652_vm5, %v2575_v42  ;;  %v5391_v59 = vpop.permute.xlu0 %5390 }
 0x417   : > { %5527 = vst.msk [vmem:[#allocation3 + $0x530] sm:$0xff] %vm3678_vm7, %v5391_v59 }
 0x418   : > { %v12932_v9 = vpack.c.bf16 %v7490_v0, %v7489_v58 }
 0x419   : > { %v3088_v23 = vpop.permute.xlu1 %3087  ;;  %v5960_v29 = vld [vmem:[#allocation3 + $0x540] sm:$0xff] }
 0x41a   : > { %3223 = vst.msk [vmem:[#allocation3 + $0x558] sm:$0xff] %vm3165_vm6, %v3088_v23  ;;  %v4368_v20 = vpop.permute.xlu0 %4367 }
 0x41b   : > { %4503 = vst.msk [vmem:[#allocation3 + $0x548] sm:$0xff] %vm2652_vm5, %v4368_v20  ;;  %v6657_v10 = vpop.f32.mrb[140].mxu1 }
 0x41c   : > { %v6658_v31 = vadd.f32 %v12857_v33, %v6657_v10  ;;  %v6659_v7 = vpop.f32.mrb[141].mxu1 }
 0x41d   : > { %v6660_v14 = vpop.f32.mrb[142].mxu1  ;;  %v3601_v53 = vpop.permute.xlu1 %3600 }
 0x41e   : > { %v7203_v1 = vadd.f32 %v13597_v44, %v6658_v31  ;;  %v6661_v26 = vadd.f32 %v12857_v33, %v6660_v14  ;;  %3736 = vst.msk [vmem:[#allocation3 + $0x558] sm:$0xff] %vm3678_vm7, %v3601_v53  ;;  %v4881_v50 = vpop.permute.xlu0 %4880  ;;  %v6662_v25 = vpop.f32.mrb[143].mxu1  ;;  %v5958_v57 = vld [vmem:[#allocation3 + $0x530] sm:$0xff] }
 0x41f   : > { %5016 = vst.msk [vmem:[#allocation3 + $0x548] sm:$0xff] %vm3165_vm6, %v4881_v50  ;;  %6799 = vmatprep.mubr.bf16.mxu1 %v5958_v57 }
 0x420   : > { %v7206_v3 = vadd.f32 %v12344_v60, %v6661_v26  ;;  %6800 = vmatmul.mubr.bf16.gmra.mrb[212].mxu1 %v5957_v54  ;;  %v7491_v34 = vmax.f32 %v7203_v1, 0.0 }
 0x421   : > { %v2577_v56 = vpop.permute.xlu1 %2576 }
 0x422   : > { %v7492_v21 = vmax.f32 %v7206_v3, 0.0  ;;  %2711 = vst.msk [vmem:[#allocation3 + $0x570] sm:$0xff] %vm2652_vm5, %v2577_v56  ;;  %v5393_v52 = vpop.permute.xlu0 %5392 }
 0x423   : > { %5528 = vst.msk [vmem:[#allocation3 + $0x548] sm:$0xff] %vm3678_vm7, %v5393_v52 }
 0x424   : > { %v12944_v45 = vpack.c.bf16 %v7492_v21, %v7491_v34 }
 0x425   : > { %v3090_v55 = vpop.permute.xlu1 %3089  ;;  %v5963_v31 = vld [vmem:[#allocation3 + $0x558] sm:$0xff] }
 0x426   : > { %3224 = vst.msk [vmem:[#allocation3 + $0x570] sm:$0xff] %vm3165_vm6, %v3090_v55  ;;  %v4370_v5 = vpop.permute.xlu0 %4369 }
 0x427   : > { %4504 = vst.msk [vmem:[#allocation3 + $0x560] sm:$0xff] %vm2652_vm5, %v4370_v5  ;;  %v6665_v61 = vpop.f32.mrb[144].mxu1 }
 0x428   : > { %v6666_v60 = vadd.f32 %v12857_v33, %v6665_v61  ;;  %v6667_v36 = vpop.f32.mrb[145].mxu1 }
 0x429   : > { %v6668_v30 = vpop.f32.mrb[146].mxu1  ;;  %v3603_v40 = vpop.permute.xlu1 %3602 }
 0x42a   : > { %v7211_v37 = vadd.f32 %v12387_v28, %v6666_v60  ;;  %v6669_v6 = vadd.f32 %v12857_v33, %v6668_v30  ;;  %3737 = vst.msk [vmem:[#allocation3 + $0x570] sm:$0xff] %vm3678_vm7, %v3603_v40  ;;  %v4883_v8 = vpop.permute.xlu0 %4882  ;;  %v6670_v46 = vpop.f32.mrb[147].mxu1  ;;  %v5961_v32 = vld [vmem:[#allocation3 + $0x548] sm:$0xff] }
 0x42b   : > { %5017 = vst.msk [vmem:[#allocation3 + $0x560] sm:$0xff] %vm3165_vm6, %v4883_v8  ;;  %6807 = vmatprep.mubr.bf16.mxu1 %v5961_v32  ;;  %v7553_v32 = vld [vmem:[%s13539_s5 + $0x40] sm:$0xff] }
 0x42c   : > { %v7214_v16 = vadd.f32 %v12401_v22, %v6669_v6  ;;  %6808 = vmatmul.mubr.bf16.gmra.mrb[216].mxu1 %v5960_v29  ;;  %v7493_v19 = vmax.f32 %v7211_v37, 0.0  ;;  %v7557_v29 = vld [vmem:[%s13539_s5 + $0x60] sm:$0xff] }
 0x42d   : > { %v2579_v38 = vpop.permute.xlu1 %2578 }
 0x42e   : > { %v7494_v17 = vmax.f32 %v7214_v16, 0.0  ;;  %2712 = vst.msk [vmem:[#allocation3 + $0x588] sm:$0xff] %vm2652_vm5, %v2579_v38  ;;  %v5395_v28 = vpop.permute.xlu0 %5394 }
 0x42f   : > { %5529 = vst.msk [vmem:[#allocation3 + $0x560] sm:$0xff] %vm3678_vm7, %v5395_v28 }
 0x430   : > { %v12956_v51 = vpack.c.bf16 %v7494_v17, %v7493_v19  ;;  %v9016_v19 = vcombine.high %v7553_v32, %v7557_v29 }
 0x431   : > { %v3092_v39 = vpop.permute.xlu1 %3091  ;;  %v5966_v5 = vld [vmem:[#allocation3 + $0x570] sm:$0xff] }
 0x432   : > { %3225 = vst.msk [vmem:[#allocation3 + $0x588] sm:$0xff] %vm3165_vm6, %v3092_v39  ;;  %v4372_v11 = vpop.permute.xlu0 %4371  ;;  %8129 = vmatprep.mubr.bf16.mxu0 %v9016_v19  ;;  %v13600_v19 = vld [vmem:[#allocation14_spill] sm:$0xff] }
 0x433   : > { %4505 = vst.msk [vmem:[#allocation3 + $0x578] sm:$0xff] %vm2652_vm5, %v4372_v11  ;;  %v6673_v13 = vpop.f32.mrb[148].mxu1 }
 0x434   : > { %v6674_v22 = vadd.f32 %v12857_v33, %v6673_v13  ;;  %v6675_v24 = vpop.f32.mrb[149].mxu1  ;;  %v9015_v13 = vcombine.low %v7553_v32, %v7557_v29  ;;  %v7581_v32 = vld [vmem:[%s13539_s5 + $0x120] sm:$0xff] }
 0x435   : > { %v6676_v42 = vpop.f32.mrb[150].mxu1  ;;  %v3605_v58 = vpop.permute.xlu1 %3604 }
 0x436   : > { %v7219_v0 = vadd.f32 %v12385_v41, %v6674_v22  ;;  %v6677_v59 = vadd.f32 %v12857_v33, %v6676_v42  ;;  %3738 = vst.msk [vmem:[#allocation3 + $0x588] sm:$0xff] %vm3678_vm7, %v3605_v58  ;;  %v4885_v23 = vpop.permute.xlu0 %4884  ;;  %v6678_v20 = vpop.f32.mrb[151].mxu1  ;;  %v5964_v10 = vld [vmem:[#allocation3 + $0x560] sm:$0xff]  ;;  %8130 = vmatmul.mubr.bf16.gmra.mrb[12].mxu0 %v9015_v13 }
 0x437   : > { %5018 = vst.msk [vmem:[#allocation3 + $0x578] sm:$0xff] %vm3165_vm6, %v4885_v23  ;;  %6815 = vmatprep.mubr.bf16.mxu1 %v5964_v10  ;;  %v7561_v23 = vld [vmem:[%s13539_s5 + $0x80] sm:$0xff] }
 0x438   : > { %v7222_v7 = vadd.f32 %v12391_v35, %v6677_v59  ;;  %6816 = vmatmul.mubr.bf16.gmra.mrb[220].mxu1 %v5963_v31  ;;  %v7495_v53 = vmax.f32 %v7219_v0, 0.0  ;;  %v7565_v20 = vld [vmem:[%s13539_s5 + $0xa0] sm:$0xff] }
 0x439   : > { %v2581_v14 = vpop.permute.xlu1 %2580  ;;  %v9024_v10 = vcombine.high %v7561_v23, %v7565_v20 }
 0x43a   : > { %v7496_v44 = vmax.f32 %v7222_v7, 0.0  ;;  %2713 = vst.msk [vmem:[#allocation3 + $0x5a0] sm:$0xff] %vm2652_vm5, %v2581_v14  ;;  %v5397_v41 = vpop.permute.xlu0 %5396  ;;  %v9023_v7 = vcombine.low %v7561_v23, %v7565_v20  ;;  %v7589_v23 = vld [vmem:[%s13539_s5 + $0x160] sm:$0xff] }
 0x43b   : > { %5530 = vst.msk [vmem:[#allocation3 + $0x578] sm:$0xff] %vm3678_vm7, %v5397_v41  ;;  %8137 = vmatprep.mubr.bf16.mxu0 %v9024_v10 }
 0x43c   : > { %v12968_v1 = vpack.c.bf16 %v7496_v44, %v7495_v53 }
 0x43d   : > { %v3094_v26 = vpop.permute.xlu1 %3093  ;;  %v5969_v22 = vld [vmem:[#allocation3 + $0x588] sm:$0xff] }
 0x43e   : > { %3226 = vst.msk [vmem:[#allocation3 + $0x5a0] sm:$0xff] %vm3165_vm6, %v3094_v26  ;;  %v4374_v50 = vpop.permute.xlu0 %4373  ;;  %8138 = vmatmul.mubr.bf16.gmra.mrb[16].mxu0 %v9023_v7 }
 0x43f   : > { %4506 = vst.msk [vmem:[#allocation3 + $0x590] sm:$0xff] %vm2652_vm5, %v4374_v50  ;;  %v6681_v25 = vpop.f32.mrb[152].mxu1  ;;  %v13598_v50 = vld [vmem:[#allocation15_spill] sm:$0xff] }
 0x440   : > { %v6682_v35 = vadd.f32 %v12857_v33, %v6681_v25  ;;  %v6683_v57 = vpop.f32.mrb[153].mxu1 }
 0x441   : > { %v6684_v54 = vpop.f32.mrb[154].mxu1  ;;  %v3607_v3 = vpop.permute.xlu1 %3606 }
 0x442   : > { %v7227_v56 = vadd.f32 %v12419_v43, %v6682_v35  ;;  %v6685_v34 = vadd.f32 %v12857_v33, %v6684_v54  ;;  %3739 = vst.msk [vmem:[#allocation3 + $0x5a0] sm:$0xff] %vm3678_vm7, %v3607_v3  ;;  %v4887_v21 = vpop.permute.xlu0 %4886  ;;  %v6686_v52 = vpop.f32.mrb[155].mxu1  ;;  %v5967_v55 = vld [vmem:[#allocation3 + $0x578] sm:$0xff] }
 0x443   : > { %5019 = vst.msk [vmem:[#allocation3 + $0x590] sm:$0xff] %vm3165_vm6, %v4887_v21  ;;  %6823 = vmatprep.mubr.bf16.mxu1 %v5967_v55  ;;  %v7569_v21 = vld [vmem:[%s13539_s5 + $0xc0] sm:$0xff] }
 0x444   : > { %v7230_v61 = vadd.f32 %v12426_v48, %v6685_v34  ;;  %6824 = vmatmul.mubr.bf16.gmra.mrb[224].mxu1 %v5966_v5  ;;  %v7497_v36 = vmax.f32 %v7227_v56, 0.0  ;;  %v13599_v56 = vld [vmem:[#allocation17_spill] sm:$0xff]  ;;  %v7573_v52 = vld [vmem:[%s13539_s5 + $0xe0] sm:$0xff] }
 0x445   : > { %v2583_v60 = vpop.permute.xlu1 %2582  ;;  %v9032_v5 = vcombine.high %v7569_v21, %v7573_v52 }
 0x446   : > { %v7498_v30 = vmax.f32 %v7230_v61, 0.0  ;;  %2714 = vst.msk [vmem:[#allocation3 + $0x5b8] sm:$0xff] %vm2652_vm5, %v2583_v60  ;;  %v5399_v43 = vpop.permute.xlu0 %5398 }
 0x447   : > { %5531 = vst.msk [vmem:[#allocation3 + $0x590] sm:$0xff] %vm3678_vm7, %v5399_v43  ;;  %8145 = vmatprep.mubr.bf16.mxu0 %v9032_v5 }
 0x448   : > { %v7665_v40 = vpack.c.bf16 %v7498_v30, %v7497_v36  ;;  %v9031_v30 = vcombine.low %v7569_v21, %v7573_v52 }
 0x449   : > { %v3096_v37 = vpop.permute.xlu1 %3095 }
 0x44a   : > { %3227 = vst.msk [vmem:[#allocation3 + $0x5b8] sm:$0xff] %vm3165_vm6, %v3096_v37  ;;  %v4376_v6 = vpop.permute.xlu0 %4375  ;;  %9378 = vmatprep.subr.bf16.mxu0 %v7665_v40  ;;  %8146 = vmatmul.mubr.bf16.gmra.mrb[20].mxu0 %v9031_v30  ;;  %v7601_v30 = vld [vmem:[%s13539_s5 + $0x1c0] sm:$0xff] }
 0x44b   : > { %4507 = vst.msk [vmem:[#allocation3 + $0x5a8] sm:$0xff] %vm2652_vm5, %v4376_v6  ;;  %v6689_v8 = vpop.f32.mrb[156].mxu1  ;;  %9379 = vmatpush3.bf16.msra.mxu0 %v12871_v63 }
 0x44c   : > { %v6690_v48 = vadd.f32 %v12857_v33, %v6689_v8  ;;  %v6691_v46 = vpop.f32.mrb[157].mxu1 }
 0x44d   : > { %v6692_v16 = vpop.f32.mrb[158].mxu1  ;;  %v3609_v38 = vpop.permute.xlu1 %3608  ;;  %v7577_v46 = vld [vmem:[%s13539_s5 + $0x100] sm:$0xff] }
 0x44e   : > { %v7235_v17 = vadd.f32 %v12415_v47, %v6690_v48  ;;  %v6693_v28 = vadd.f32 %v12857_v33, %v6692_v16  ;;  %3740 = vst.msk [vmem:[#allocation3 + $0x5b8] sm:$0xff] %vm3678_vm7, %v3609_v38  ;;  %v4889_v63 = vpop.permute.xlu0 %4888  ;;  %v6694_v39 = vpop.f32.mrb[159].mxu1  ;;  %v5970_v11 = vld [vmem:[#allocation3 + $0x590] sm:$0xff]  ;;  %v9040_v38 = vcombine.high %v7577_v46, %v7581_v32 }
 0x44f   : > { %5020 = vst.msk [vmem:[#allocation3 + $0x5a8] sm:$0xff] %vm3165_vm6, %v4889_v63  ;;  %6831 = vmatprep.mubr.bf16.mxu1 %v5970_v11  ;;  %v9039_v11 = vcombine.low %v7577_v46, %v7581_v32 }
 0x450   : > { %v7238_v24 = vadd.f32 %v12422_v12, %v6693_v28  ;;  %6832 = vmatmul.mubr.bf16.gmra.mrb[228].mxu1 %v5969_v22  ;;  %v7499_v58 = vmax.f32 %v7235_v17, 0.0  ;;  %8153 = vmatprep.mubr.bf16.mxu0 %v9040_v38  ;;  %v13601_v22 = vld [vmem:[#allocation16_spill] sm:$0xff] }
 0x451   : > { %v2585_v42 = vpop.permute.xlu1 %2584 }
 0x452   : > { %v7500_v47 = vmax.f32 %v7238_v24, 0.0  ;;  %2715 = vst.msk [vmem:[#allocation3 + $0x5d0] sm:$0xff] %vm2652_vm5, %v2585_v42  ;;  %v5401_v0 = vpop.permute.xlu0 %5400  ;;  %8154 = vmatmul.mubr.bf16.gmra.mrb[24].mxu0 %v9039_v11  ;;  %v7546_v11 = vld [vmem:[%s13539_s5 + $0x8] sm:$0xff] }
 0x453   : > { %5532 = vst.msk [vmem:[#allocation3 + $0x5a8] sm:$0xff] %vm3678_vm7, %v5401_v0 }
 0x454   : > { %v7666_v59 = vpack.c.bf16 %v7500_v47, %v7499_v58 }
 0x455   : > { %v3098_v12 = vpop.permute.xlu1 %3097  ;;  %v5975_v13 = vld [vmem:[#allocation3 + $0x5b8] sm:$0xff] }
 0x456   : > { %3228 = vst.msk [vmem:[#allocation3 + $0x5d0] sm:$0xff] %vm3165_vm6, %v3098_v12  ;;  %v4378_v31 = vpop.permute.xlu0 %4377  ;;  %9380 = vmatprep.subr.bf16.mxu0 %v7666_v59  ;;  %v7585_v59 = vld [vmem:[%s13539_s5 + $0x140] sm:$0xff] }
 0x457   : > { %4508 = vst.msk [vmem:[#allocation3 + $0x5c0] sm:$0xff] %vm2652_vm5, %v4378_v31  ;;  %v6697_v14 = vpop.f32.mrb[160].mxu1  ;;  %9381 = vmatpush3.bf16.msra.mxu0 %v12891_v62  ;;  %v5972_v62 = vld [vmem:[#allocation3 + $0x5a0] sm:$0xff]  ;;  %v9048_v20 = vcombine.high %v7585_v59, %v7589_v23  ;;  %v9047_v10 = vcombine.low %v7585_v59, %v7589_v23 }
 0x458   : > { %v6698_v53 = vadd.f32 %v12857_v33, %v6697_v14  ;;  %v6699_v44 = vpop.f32.mrb[161].mxu1 }
 0x459   : > { %v6700_v41 = vpop.f32.mrb[162].mxu1  ;;  %v3611_v26 = vpop.permute.xlu1 %3610  ;;  %8161 = vmatprep.mubr.bf16.mxu0 %v9048_v20  ;;  %v13602_v44 = vld [vmem:[#allocation19_spill] sm:$0xff] }
 0x45a   : > { %v7243_v25 = vadd.f32 %v13598_v50, %v6698_v53  ;;  %v6701_v35 = vadd.f32 %v12857_v33, %v6700_v41  ;;  %3741 = vst.msk [vmem:[#allocation3 + $0x5d0] sm:$0xff] %vm3678_vm7, %v3611_v26  ;;  %v4891_v57 = vpop.permute.xlu0 %4890  ;;  %v6702_v54 = vpop.f32.mrb[163].mxu1  ;;  %v5973_v3 = vld [vmem:[#allocation3 + $0x5a8] sm:$0xff]  ;;  %8162 = vmatmul.mubr.bf16.gmra.mrb[28].mxu0 %v9047_v10 }
 0x45b   : > { %5021 = vst.msk [vmem:[#allocation3 + $0x5c0] sm:$0xff] %vm3165_vm6, %v4891_v57  ;;  %6839 = vmatprep.mubr.bf16.mxu1 %v5973_v3  ;;  %v13603_v54 = vld [vmem:[#allocation21_spill] sm:$0xff] }
 0x45c   : > { %v7246_v34 = vadd.f32 %v13599_v56, %v6701_v35  ;;  %6840 = vmatmul.mubr.bf16.gmra.mrb[232].mxu1 %v5972_v62  ;;  %v7501_v61 = vmax.f32 %v7243_v25, 0.0  ;;  %v7597_v62 = vld [vmem:[%s13539_s5 + $0x1a0] sm:$0xff] }
 0x45d   : > { %v2587_v55 = vpop.permute.xlu1 %2586 }
 0x45e   : > { %v7502_v60 = vmax.f32 %v7246_v34, 0.0  ;;  %2716 = vst.msk [vmem:[#allocation3 + $0x5e8] sm:$0xff] %vm2652_vm5, %v2587_v55  ;;  %v5403_v36 = vpop.permute.xlu0 %5402 }
 0x45f   : > { %5533 = vst.msk [vmem:[#allocation3 + $0x5c0] sm:$0xff] %vm3678_vm7, %v5403_v36 }
 0x460   : > { %v7667_v43 = vpack.c.bf16 %v7502_v60, %v7501_v61 }
 0x461   : > { %v3100_v40 = vpop.permute.xlu1 %3099  ;;  %v5978_v57 = vld [vmem:[#allocation3 + $0x5d0] sm:$0xff] }
 0x462   : > { %3229 = vst.msk [vmem:[#allocation3 + $0x5e8] sm:$0xff] %vm3165_vm6, %v3100_v40  ;;  %v4380_v37 = vpop.permute.xlu0 %4379  ;;  %9382 = vmatprep.subr.bf16.mxu0 %v7667_v43  ;;  %v7605_v43 = vld [vmem:[%s13539_s5 + $0x1e0] sm:$0xff] }
 0x463   : > { %4509 = vst.msk [vmem:[#allocation3 + $0x5d8] sm:$0xff] %vm2652_vm5, %v4380_v37  ;;  %v6705_v6 = vpop.f32.mrb[164].mxu1  ;;  %9383 = vmatpush3.bf16.msra.mxu0 %v12906_v2  ;;  %v9064_v37 = vcombine.high %v7601_v30, %v7605_v43 }
 0x464   : > { %v6706_v8 = vadd.f32 %v12857_v33, %v6705_v6  ;;  %v6707_v48 = vpop.f32.mrb[165].mxu1  ;;  %v13604_v6 = vld [vmem:[#allocation18_spill] sm:$0xff] }
 0x465   : > { %v6708_v29 = vpop.f32.mrb[166].mxu1  ;;  %v3613_v16 = vpop.permute.xlu1 %3612 }
 0x466   : > { %v7251_v17 = vadd.f32 %v13600_v19, %v6706_v8  ;;  %v6709_v28 = vadd.f32 %v12857_v33, %v6708_v29  ;;  %3742 = vst.msk [vmem:[#allocation3 + $0x5e8] sm:$0xff] %vm3678_vm7, %v3613_v16  ;;  %v4893_v2 = vpop.permute.xlu0 %4892  ;;  %v6710_v63 = vpop.f32.mrb[167].mxu1  ;;  %v5976_v39 = vld [vmem:[#allocation3 + $0x5c0] sm:$0xff] }
 0x467   : > { %5022 = vst.msk [vmem:[#allocation3 + $0x5d8] sm:$0xff] %vm3165_vm6, %v4893_v2  ;;  %6847 = vmatprep.mubr.bf16.mxu1 %v5976_v39  ;;  %v13605_v16 = vld [vmem:[#allocation20_spill] sm:$0xff]  ;;  %v7609_v2 = vld [vmem:[%s13539_s5 + $0x200] sm:$0xff] }
 0x468   : > { %v7254_v24 = vadd.f32 %v13601_v22, %v6709_v28  ;;  %6848 = vmatmul.mubr.bf16.gmra.mrb[236].mxu1 %v5975_v13  ;;  %v7503_v42 = vmax.f32 %v7251_v17, 0.0  ;;  %v7613_v63 = vld [vmem:[%s13539_s5 + $0x220] sm:$0xff]  ;;  %v7550_v13 = vld [vmem:[%s13539_s5 + $0x28] sm:$0xff] }
 0x469   : > { %v9072_v39 = vcombine.high %v7609_v2, %v7613_v63  ;;  %v9071_v22 = vcombine.low %v7609_v2, %v7613_v63 }
 0x46a   : > { %v7504_v58 = vmax.f32 %v7254_v24, 0.0  ;;  %v5405_v47 = vpop.permute.xlu0 %5404 }
 0x46b   : > { %5534 = vst.msk [vmem:[#allocation3 + $0x5d8] sm:$0xff] %vm3678_vm7, %v5405_v47 }
 0x46c   : > { %v7668_v0 = vpack.c.bf16 %v7504_v58, %v7503_v42  ;;  %v9009_v42 = vcombine.low %v7546_v11, %v7550_v13  ;;  %v9010_v58 = vcombine.high %v7546_v11, %v7550_v13 }
 0x46d   : > { %v5981_v29 = vld [vmem:[#allocation3 + $0x5e8] sm:$0xff] }
 0x46e   : > { %v4382_v12 = vpop.permute.xlu0 %4381  ;;  %9384 = vmatprep.subr.bf16.mxu0 %v7668_v0 }
 0x46f   : > { %4510 = vst.msk [vmem:[#allocation3 + $0x5f0] sm:$0xff] %vm2652_vm5, %v4382_v12  ;;  %v6713_v31 = vpop.f32.mrb[168].mxu1  ;;  %9385 = vmatpush3.bf16.msra.mxu0 %v12920_v18  ;;  %v7593_v18 = vld [vmem:[%s13539_s5 + $0x180] sm:$0xff] }
 0x470   : > { %v6714_v7 = vadd.f32 %v12857_v33, %v6713_v31  ;;  %v6715_v14 = vpop.f32.mrb[169].mxu1  ;;  %v9056_v56 = vcombine.high %v7593_v18, %v7597_v62  ;;  %v9055_v55 = vcombine.low %v7593_v18, %v7597_v62  ;;  %v7621_v31 = vld [vmem:[%s13539_s5 + $0x260] sm:$0xff] }
 0x471   : > { %v6716_v53 = vpop.f32.mrb[170].mxu1 }
 0x472   : > { %v7259_v41 = vadd.f32 %v13602_v44, %v6714_v7  ;;  %v6717_v26 = vadd.f32 %v12857_v33, %v6716_v53  ;;  %v4895_v50 = vpop.permute.xlu0 %4894  ;;  %v6718_v25 = vpop.f32.mrb[171].mxu1  ;;  %v5979_v35 = vld [vmem:[#allocation3 + $0x5d8] sm:$0xff]  ;;  %8169 = vmatprep.mubr.bf16.mxu0 %v9056_v56 }
 0x473   : > { %5023 = vst.msk [vmem:[#allocation3 + $0x5f0] sm:$0xff] %vm3165_vm6, %v4895_v50  ;;  %6855 = vmatprep.mubr.bf16.mxu1 %v5979_v35  ;;  %8170 = vmatmul.mubr.bf16.gmra.mrb[32].mxu0 %v9055_v55  ;;  %v7547_v50 = vld [vmem:[%s13539_s5 + $0x10] sm:$0xff] }
 0x474   : > { %v7262_v3 = vadd.f32 %v13603_v54, %v6717_v26  ;;  %6856 = vmatmul.mubr.bf16.gmra.mrb[240].mxu1 %v5978_v57  ;;  %v7505_v34 = vmax.f32 %v7259_v41, 0.0  ;;  %8177 = vmatprep.mubr.bf16.mxu0 %v9064_v37  ;;  %v7551_v25 = vld [vmem:[%s13539_s5 + $0x30] sm:$0xff] }
 0x475   : > { %v9012_v57 = vcombine.high %v7547_v50, %v7551_v25 }
 0x476   : > { %v7506_v21 = vmax.f32 %v7262_v3, 0.0  ;;  %v5407_v52 = vpop.permute.xlu0 %5406 }
 0x477   : > { %5535 = vst.msk [vmem:[#allocation3 + $0x5f0] sm:$0xff] %vm3678_vm7, %v5407_v52  ;;  %v7558_v52 = vld [vmem:[%s13539_s5 + $0x68] sm:$0xff] }
 0x478   : > { %v7669_v5 = vpack.c.bf16 %v7506_v21, %v7505_v34  ;;  %v7554_v21 = vld [vmem:[%s13539_s5 + $0x48] sm:$0xff] }
 0x479   : > { %v9018_v55 = vcombine.high %v7554_v21, %v7558_v52 }
 0x47a   : > { %9386 = vmatprep.subr.bf16.mxu0 %v7669_v5 }
 0x47b   : > { %v6721_v61 = vpop.f32.mrb[172].mxu1  ;;  %9387 = vmatpush3.bf16.msra.mxu0 %v12932_v9  ;;  %v9063_v9 = vcombine.low %v7601_v30, %v7605_v43  ;;  %v7566_v30 = vld [vmem:[%s13539_s5 + $0xa8] sm:$0xff]  ;;  %v9011_v43 = vcombine.low %v7547_v50, %v7551_v25 }
 0x47c   : > { %v6722_v60 = vadd.f32 %v12857_v33, %v6721_v61  ;;  %v6723_v36 = vpop.f32.mrb[173].mxu1  ;;  %v9017_v61 = vcombine.low %v7554_v21, %v7558_v52  ;;  %v7582_v50 = vld [vmem:[%s13539_s5 + $0x128] sm:$0xff] }
 0x47d   : > { %v6724_v40 = vpop.f32.mrb[174].mxu1  ;;  %8178 = vmatmul.mubr.bf16.gmra.mrb[36].mxu0 %v9063_v9  ;;  %v7562_v36 = vld [vmem:[%s13539_s5 + $0x88] sm:$0xff] }
 0x47e   : > { %v7267_v8 = vadd.f32 %v13604_v6, %v6722_v60  ;;  %v6725_v48 = vadd.f32 %v12857_v33, %v6724_v40  ;;  %v6726_v46 = vpop.f32.mrb[175].mxu1  ;;  %v5982_v32 = vld [vmem:[#allocation3 + $0x5f0] sm:$0xff]  ;;  %8185 = vmatprep.mubr.bf16.mxu0 %v9072_v39  ;;  %v7559_v60 = vld [vmem:[%s13539_s5 + $0x70] sm:$0xff]  ;;  %v9026_v37 = vcombine.high %v7562_v36, %v7566_v30 }
 0x47f   : > { %6863 = vmatprep.mubr.bf16.mxu1 %v5982_v32  ;;  %v13607_v32 = vld [vmem:[#allocation24_spill] sm:$0xff] }
 0x480   : > { %v7270_v38 = vadd.f32 %v13605_v16, %v6725_v48  ;;  %6864 = vmatmul.mubr.bf16.gmra.mrb[244].mxu1 %v5981_v29  ;;  %v7507_v19 = vmax.f32 %v7267_v8, 0.0  ;;  %v13125_v29 = vld [vmem:[%s13538_s4] ss:$0 sm:$0xff] }
 0x481   : > { %8234 = vmatprep.mubr.bf16.mxu1 %v9010_v58 }
 0x482   : > { %v7508_v17 = vmax.f32 %v7270_v38, 0.0 }
 0x484   : > { %v7670_v28 = vpack.c.bf16 %v7508_v17, %v7507_v19  ;;  %v9025_v19 = vcombine.low %v7562_v36, %v7566_v30 }
 0x485   : > { %8186 = vmatmul.mubr.bf16.gmra.mrb[40].mxu0 %v9071_v22  ;;  %v7570_v22 = vld [vmem:[%s13539_s5 + $0xc8] sm:$0xff] }
 0x486   : > { %9388 = vmatprep.subr.bf16.mxu0 %v7670_v28  ;;  %v7567_v28 = vld [vmem:[%s13539_s5 + $0xb0] sm:$0xff] }
 0x487   : > { %v6729_v24 = vpop.f32.mrb[176].mxu1  ;;  %9389 = vmatpush3.bf16.msra.mxu0 %v12944_v45  ;;  %v7617_v45 = vld [vmem:[%s13539_s5 + $0x240] sm:$0xff] }
 0x488   : > { %v6730_v47 = vadd.f32 %v12857_v33, %v6729_v24  ;;  %v6731_v0 = vpop.f32.mrb[177].mxu1  ;;  %8235 = vmatmul.mubr.bf16.vlgmr.msra.gmra.mrb[248].mxu1 %v9009_v42  ;;  %v9080_v7 = vcombine.high %v7617_v45, %v7621_v31  ;;  %v9079_v44 = vcombine.low %v7617_v45, %v7621_v31  ;;  %v7574_v24 = vld [vmem:[%s13539_s5 + $0xe8] sm:$0xff] }
 0x489   : > { %v6732_v59 = vpop.f32.mrb[178].mxu1  ;;  %8242 = vmatprep.mubr.bf16.mxu1 %v9018_v55  ;;  %v9033_v58 = vcombine.low %v7570_v22, %v7574_v24 }
 0x48a   : > { %v7275_v23 = vadd.f32 %v12502_v4, %v6730_v47  ;;  %v6733_v20 = vadd.f32 %v12857_v33, %v6732_v59  ;;  %v6734_v12 = vpop.f32.mrb[179].mxu1  ;;  %8193 = vmatprep.mubr.bf16.mxu0 %v9080_v7  ;;  %v9034_v47 = vcombine.high %v7570_v22, %v7574_v24 }
 0x48c   : > { %v7278_v10 = vadd.f32 %v12509_v15, %v6733_v20  ;;  %v7509_v14 = vmax.f32 %v7275_v23, 0.0  ;;  %v7571_v23 = vld [vmem:[%s13539_s5 + $0xd0] sm:$0xff] }
 0x48d   : > { %8194 = vmatmul.mubr.bf16.gmra.mrb[44].mxu0 %v9079_v44  ;;  %v7575_v20 = vld [vmem:[%s13539_s5 + $0xf0] sm:$0xff]  ;;  %v13610_v44 = vld [vmem:[#allocation25_spill] sm:$0xff] }
 0x48e   : > { %v7510_v53 = vmax.f32 %v7278_v10, 0.0  ;;  %8347 = vmatprep.mubr.bf16.mxu0 %v9012_v57  ;;  %v13609_v10 = vld [vmem:[#allocation23_spill] sm:$0xff] }
 0x490   : > { %v7671_v4 = vpack.c.bf16 %v7510_v53, %v7509_v14  ;;  %8243 = vmatmul.mubr.bf16.gmra.mrb[252].mxu1 %v9017_v61  ;;  %v9036_v53 = vcombine.high %v7571_v23, %v7575_v20  ;;  %v13611_v61 = vld [vmem:[#allocation28_spill] sm:$0xff] }
 0x491   : > { %8250 = vmatprep.mubr.bf16.mxu1 %v9026_v37  ;;  %v7587_v37 = vld [vmem:[%s13539_s5 + $0x150] sm:$0xff] }
 0x492   : > { %9390 = vmatprep.subr.bf16.mxu0 %v7671_v4 }
 0x493   : > { %v6737_v41 = vpop.f32.mrb[180].mxu1  ;;  %9391 = vmatpush3.bf16.msra.mxu0 %v12956_v51  ;;  %v13606_v51 = vld [vmem:[#allocation22_spill] sm:$0xff] }
 0x494   : > { %v6738_v15 = vadd.f32 %v12857_v33, %v6737_v41  ;;  %v6739_v26 = vpop.f32.mrb[181].mxu1 }
 0x495   : > { %v6740_v35 = vpop.f32.mrb[182].mxu1  ;;  %v7578_v26 = vld [vmem:[%s13539_s5 + $0x108] sm:$0xff] }
 0x496   : > { %v7283_v54 = vadd.f32 %v12498_v27, %v6738_v15  ;;  %v6741_v3 = vadd.f32 %v12857_v33, %v6740_v35  ;;  %v6742_v18 = vpop.f32.mrb[183].mxu1  ;;  %v7555_v27 = vld [vmem:[%s13539_s5 + $0x50] sm:$0xff]  ;;  %v9042_v25 = vcombine.high %v7578_v26, %v7582_v50  ;;  %v9041_v57 = vcombine.low %v7578_v26, %v7582_v50 }
 0x497   : > { %v9020_v6 = vcombine.high %v7555_v27, %v7559_v60  ;;  %v9019_v39 = vcombine.low %v7555_v27, %v7559_v60  ;;  %v7586_v18 = vld [vmem:[%s13539_s5 + $0x148] sm:$0xff] }
 0x498   : > { %v7286_v62 = vadd.f32 %v13606_v51, %v6741_v3  ;;  %v7511_v56 = vmax.f32 %v7283_v54, 0.0  ;;  %8251 = vmatmul.mubr.bf16.gmra.mrb[0].mxu1 %v9025_v19  ;;  %v7579_v54 = vld [vmem:[%s13539_s5 + $0x110] sm:$0xff]  ;;  %v7590_v51 = vld [vmem:[%s13539_s5 + $0x168] sm:$0xff] }
 0x499   : > { %8258 = vmatprep.mubr.bf16.mxu1 %v9034_v47  ;;  %v7583_v3 = vld [vmem:[%s13539_s5 + $0x130] sm:$0xff]  ;;  %v9049_v30 = vcombine.low %v7586_v18, %v7590_v51 }
 0x49a   : > { %v7512_v34 = vmax.f32 %v7286_v62, 0.0  ;;  %v9035_v62 = vcombine.low %v7571_v23, %v7575_v20  ;;  %v9044_v21 = vcombine.high %v7579_v54, %v7583_v3 }
 0x49c   : > { %v7672_v5 = vpack.c.bf16 %v7512_v34, %v7511_v56  ;;  %v9050_v34 = vcombine.high %v7586_v18, %v7590_v51  ;;  %v7614_v18 = vld [vmem:[%s13539_s5 + $0x228] sm:$0xff] }
 0x49e   : > { %9392 = vmatprep.subr.bf16.mxu0 %v7672_v5 }
 0x49f   : > { %v6745_v40 = vpop.f32.mrb[184].mxu1  ;;  %9393 = vmatpush3.bf16.msra.mxu0 %v12968_v1  ;;  %v13608_v1 = vld [vmem:[#allocation26_spill] sm:$0xff] }
 0x4a0   : > { %v6746_v8 = vadd.f32 %v12857_v33, %v6745_v40  ;;  %v6747_v48 = vpop.f32.mrb[185].mxu1  ;;  %v7563_v33 = vld [vmem:[%s13539_s5 + $0x90] sm:$0xff]  ;;  %8259 = vmatmul.mubr.bf16.gmra.mrb[4].mxu1 %v9033_v58  ;;  %v13201_v23 = vpop.f32.mrb[4].mxu0 }
 0x4a1   : > { %v6748_v46 = vpop.f32.mrb[186].mxu1  ;;  %v9028_v11 = vcombine.high %v7563_v33, %v7567_v28  ;;  %v9027_v14 = vcombine.low %v7563_v33, %v7567_v28  ;;  %8266 = vmatprep.mubr.bf16.mxu1 %v9042_v25 }
 0x4a2   : > { %v7291_v9 = vadd.f32 %v13607_v32, %v6746_v8  ;;  %v6749_v16 = vadd.f32 %v13125_v29, %v6748_v46  ;;  %v6750_v38 = vpop.f32.mrb[187].mxu1  ;;  %8348 = vmatmul.mubr.bf16.vlgmr.msra.gmra.mrb[48].mxu0 %v9011_v43  ;;  %v13612_v43 = vld [vmem:[#allocation30_spill] sm:$0xff]  ;;  %v9043_v46 = vcombine.low %v7579_v54, %v7583_v3  ;;  %v7610_v3 = vld [vmem:[%s13539_s5 + $0x208] sm:$0xff] }
 0x4a3   : > { %8355 = vmatprep.mubr.bf16.mxu0 %v9020_v6  ;;  %v7591_v6 = vld [vmem:[%s13539_s5 + $0x170] sm:$0xff]  ;;  %v7598_v38 = vld [vmem:[%s13539_s5 + $0x1a8] sm:$0xff] }
 0x4a4   : > { %v7294_v17 = vadd.f32 %v13608_v1, %v6749_v16  ;;  %v7513_v2 = vmax.f32 %v7291_v9, 0.0  ;;  %v9052_v32 = vcombine.high %v7587_v37, %v7591_v6  ;;  %v7594_v16 = vld [vmem:[%s13539_s5 + $0x188] sm:$0xff]  ;;  %v9051_v58 = vcombine.low %v7587_v37, %v7591_v6 }
 0x4a5   : > { %v9057_v1 = vcombine.low %v7594_v16, %v7598_v38  ;;  %v7618_v6 = vld [vmem:[%s13539_s5 + $0x248] sm:$0xff] }
 0x4a6   : > { %v7514_v63 = vmax.f32 %v7294_v17, 0.0  ;;  %v9058_v17 = vcombine.high %v7594_v16, %v7598_v38 }
 0x4a8   : > { %v13135_v13 = vpack.c.bf16 %v7514_v63, %v7513_v2  ;;  %8267 = vmatmul.mubr.bf16.gmra.mrb[8].mxu1 %v9041_v57  ;;  %v7595_v2 = vld [vmem:[%s13539_s5 + $0x190] sm:$0xff] }
 0x4a9   : > { %8274 = vmatprep.mubr.bf16.mxu1 %v9050_v34  ;;  %v7599_v63 = vld [vmem:[%s13539_s5 + $0x1b0] sm:$0xff] }
 0x4aa   : > { %8356 = vmatmul.mubr.bf16.gmra.mrb[52].mxu0 %v9019_v39  ;;  %v9060_v47 = vcombine.high %v7595_v2, %v7599_v63  ;;  %v9059_v26 = vcombine.low %v7595_v2, %v7599_v63 }
 0x4ab   : > { %v6753_v42 = vpop.f32.mrb[188].mxu1  ;;  %8363 = vmatprep.mubr.bf16.mxu0 %v9028_v11  ;;  %v13613_v11 = vld [vmem:[#allocation27_spill] sm:$0xff] }
 0x4ac   : > { %v6754_v0 = vadd.f32 %v13125_v29, %v6753_v42  ;;  %v6755_v59 = vpop.f32.mrb[189].mxu1 }
 0x4ad   : > { %v6756_v12 = vpop.f32.mrb[190].mxu1 }
 0x4ae   : > { %v7299_v45 = vadd.f32 %v13609_v10, %v6754_v0  ;;  %v6757_v31 = vadd.f32 %v13125_v29, %v6756_v12  ;;  %v6758_v7 = vpop.f32.mrb[191].mxu1  ;;  %v13614_v0 = vld [vmem:[#allocation29_spill] sm:$0xff]  ;;  %v13203_v10 = vpop.f32.mrb[5].mxu0 }
 0x4b0   : > { %v7302_v4 = vadd.f32 %v13610_v44, %v6757_v31  ;;  %v7515_v41 = vmax.f32 %v7299_v45, 0.0  ;;  %8275 = vmatmul.mubr.bf16.gmra.mrb[12].mxu1 %v9049_v30  ;;  %v7602_v45 = vld [vmem:[%s13539_s5 + $0x1c8] sm:$0xff]  ;;  %v13213_v44 = vpop.f32.mrb[6].mxu0 }
 0x4b1   : > { %8282 = vmatprep.mubr.bf16.mxu1 %v9058_v17  ;;  %v7606_v31 = vld [vmem:[%s13539_s5 + $0x1e8] sm:$0xff] }
 0x4b2   : > { %v7516_v15 = vmax.f32 %v7302_v4, 0.0  ;;  %8364 = vmatmul.mubr.bf16.gmra.mrb[56].mxu0 %v9027_v14  ;;  %v9066_v7 = vcombine.high %v7602_v45, %v7606_v31  ;;  %v7603_v4 = vld [vmem:[%s13539_s5 + $0x1d0] sm:$0xff] }
 0x4b3   : > { %8371 = vmatprep.mubr.bf16.mxu0 %v9036_v53  ;;  %v9065_v53 = vcombine.low %v7602_v45, %v7606_v31 }
 0x4b4   : > { %v13159_v35 = vpack.c.bf16 %v7516_v15, %v7515_v41  ;;  %v7607_v41 = vld [vmem:[%s13539_s5 + $0x1f0] sm:$0xff]  ;;  %v13221_v15 = vpop.f32.mrb[7].mxu0 }
 0x4b5   : > { %v9068_v25 = vcombine.high %v7603_v4, %v7607_v41 }
 0x4b8   : > { %v6761_v56 = vpop.f32.mrb[192].mxu1  ;;  %8283 = vmatmul.mubr.bf16.gmra.mrb[16].mxu1 %v9057_v1  ;;  %v7623_v1 = vld [vmem:[%s13539_s5 + $0x270] sm:$0xff] }
 0x4b9   : > { %v6762_v52 = vadd.f32 %v13125_v29, %v6761_v56  ;;  %v6763_v55 = vpop.f32.mrb[193].mxu1  ;;  %8290 = vmatprep.mubr.bf16.mxu1 %v9066_v7  ;;  %v13615_v56 = vld [vmem:[#allocation31_spill] sm:$0xff] }
 0x4ba   : > { %v6764_v5 = vpop.f32.mrb[194].mxu1  ;;  %8372 = vmatmul.mubr.bf16.gmra.mrb[60].mxu0 %v9035_v62  ;;  %v9074_v62 = vcombine.high %v7610_v3, %v7614_v18  ;;  %v9073_v55 = vcombine.low %v7610_v3, %v7614_v18 }
 0x4bb   : > { %v7307_v27 = vadd.f32 %v13611_v61, %v6762_v52  ;;  %v6765_v60 = vadd.f32 %v13125_v29, %v6764_v5  ;;  %v6766_v36 = vpop.f32.mrb[195].mxu1  ;;  %8379 = vmatprep.mubr.bf16.mxu0 %v9044_v21  ;;  %v13616_v5 = vld [vmem:[#allocation33_spill] sm:$0xff] }
 0x4bd   : > { %v7310_v40 = vadd.f32 %v13612_v43, %v6765_v60  ;;  %v7517_v8 = vmax.f32 %v7307_v27, 0.0  ;;  %v7611_v27 = vld [vmem:[%s13539_s5 + $0x210] sm:$0xff]  ;;  %v9067_v43 = vcombine.low %v7603_v4, %v7607_v41  ;;  %v13619_v41 = vld [vmem:[#allocation35_spill] sm:$0xff] }
 0x4be   : > { %v7615_v60 = vld [vmem:[%s13539_s5 + $0x230] sm:$0xff] }
 0x4bf   : > { %v7518_v48 = vmax.f32 %v7310_v40, 0.0  ;;  %v9076_v40 = vcombine.high %v7611_v27, %v7615_v60 }
 0x4c0   : > { %8291 = vmatmul.mubr.bf16.gmra.mrb[20].mxu1 %v9065_v53 }
 0x4c1   : > { %v13183_v9 = vpack.c.bf16 %v7518_v48, %v7517_v8  ;;  %8298 = vmatprep.mubr.bf16.mxu1 %v9074_v62  ;;  %v7622_v8 = vld [vmem:[%s13539_s5 + $0x268] sm:$0xff] }
 0x4c2   : > { %8380 = vmatmul.mubr.bf16.gmra.mrb[64].mxu0 %v9043_v46  ;;  %v9081_v46 = vcombine.low %v7618_v6, %v7622_v8 }
 0x4c3   : > { %v6769_v19 = vpop.f32.mrb[196].mxu1  ;;  %8387 = vmatprep.mubr.bf16.mxu0 %v9052_v32  ;;  %v9082_v32 = vcombine.high %v7618_v6, %v7622_v8 }
 0x4c4   : > { %v6770_v33 = vadd.f32 %v13125_v29, %v6769_v19  ;;  %v6771_v28 = vpop.f32.mrb[197].mxu1  ;;  %v7619_v19 = vld [vmem:[%s13539_s5 + $0x250] sm:$0xff] }
 0x4c5   : > { %v6772_v39 = vpop.f32.mrb[198].mxu1  ;;  %v9083_v45 = vcombine.low %v7619_v19, %v7623_v1 }
 0x4c6   : > { %v7315_v22 = vadd.f32 %v13613_v11, %v6770_v33  ;;  %v6773_v24 = vadd.f32 %v13125_v29, %v6772_v39  ;;  %v6774_v42 = vpop.f32.mrb[199].mxu1  ;;  %v13617_v33 = vld [vmem:[#allocation4_spill] sm:$0xff]  ;;  %v9075_v39 = vcombine.low %v7611_v27, %v7615_v60  ;;  %v13259_v11 = vld [vmem:[%s13539_s5 + $0x18] sm:$0xff] }
 0x4c7   : > { %v13618_v42 = vld [vmem:[#allocation32_spill] sm:$0xff] }
 0x4c8   : > { %v7318_v59 = vadd.f32 %v13614_v0, %v6773_v24  ;;  %v7519_v20 = vmax.f32 %v7315_v22, 0.0  ;;  %8299 = vmatmul.mubr.bf16.gmra.mrb[24].mxu1 %v9073_v55  ;;  %v13264_v22 = vld [vmem:[%s13539_s5 + $0x38] sm:$0xff]  ;;  %v9084_v24 = vcombine.high %v7619_v19, %v7623_v1  ;;  %v13622_v27 = vld [vmem:[#allocation36_spill] sm:$0xff] }
 0x4c9   : > { %8306 = vmatprep.mubr.bf16.mxu1 %v9082_v32  ;;  %v9014_v0 = vcombine.high %v13259_v11, %v13264_v22 }
 0x4ca   : > { %v7520_v12 = vmax.f32 %v7318_v59, 0.0  ;;  %8388 = vmatmul.mubr.bf16.gmra.mrb[68].mxu0 %v9051_v58 }
 0x4cb   : > { %8395 = vmatprep.mubr.bf16.mxu0 %v9060_v47  ;;  %v9013_v47 = vcombine.low %v13259_v11, %v13264_v22 }
 0x4cc   : > { %v13211_v14 = vpack.c.bf16 %v7520_v12, %v7519_v20 }
 0x4cf   : > { %v6777_v50 = vpop.f32.mrb[200].mxu1 }
 0x4d0   : > { %v6778_v57 = vadd.f32 %v13125_v29, %v6777_v50  ;;  %v6779_v54 = vpop.f32.mrb[201].mxu1  ;;  %8307 = vmatmul.mubr.bf16.gmra.mrb[28].mxu1 %v9081_v46 }
 0x4d1   : > { %v6780_v51 = vpop.f32.mrb[202].mxu1  ;;  %8460 = vmatprep.mubr.bf16.mxu1 %v9014_v0  ;;  %v13625_v0 = vld [vmem:[#allocation39_spill] sm:$0xff] }
 0x4d2   : > { %v7323_v34 = vadd.f32 %v13615_v56, %v6778_v57  ;;  %v6781_v21 = vadd.f32 %v13125_v29, %v6780_v51  ;;  %v6782_v52 = vpop.f32.mrb[203].mxu1  ;;  %8396 = vmatmul.mubr.bf16.gmra.mrb[72].mxu0 %v9059_v26  ;;  %v13620_v57 = vld [vmem:[#allocation37_spill] sm:$0xff] }
 0x4d3   : > { %8403 = vmatprep.mubr.bf16.mxu0 %v9068_v25  ;;  %v13621_v52 = vld [vmem:[#allocation34_spill] sm:$0xff] }
 0x4d4   : > { %v7326_v61 = vadd.f32 %v13616_v5, %v6781_v21  ;;  %v7521_v36 = vmax.f32 %v7323_v34, 0.0 }
 0x4d6   : > { %v7522_v30 = vmax.f32 %v7326_v61, 0.0 }
 0x4d8   : > { %v13239_v37 = vpack.c.bf16 %v7522_v30, %v7521_v36 }
 0x4da   : > { %8404 = vmatmul.mubr.bf16.gmra.mrb[76].mxu0 %v9067_v43 }
 0x4db   : > { %v6785_v48 = vpop.f32.mrb[204].mxu1  ;;  %8411 = vmatprep.mubr.bf16.mxu0 %v9076_v40 }
 0x4dc   : > { %v6786_v16 = vadd.f32 %v13125_v29, %v6785_v48  ;;  %v6787_v38 = vpop.f32.mrb[205].mxu1 }
 0x4dd   : > { %v6788_v17 = vpop.f32.mrb[206].mxu1  ;;  %v13623_v38 = vld [vmem:[#allocation40_spill] sm:$0xff] }
 0x4de   : > { %v7331_v28 = vadd.f32 %v13617_v33, %v6786_v16  ;;  %v6789_v2 = vadd.f32 %v13125_v29, %v6788_v17  ;;  %v6790_v63 = vpop.f32.mrb[207].mxu1 }
 0x4e0   : > { %v7334_v58 = vadd.f32 %v13618_v42, %v6789_v2  ;;  %v7523_v59 = vmax.f32 %v7331_v28, 0.0 }
 0x4e2   : > { %v7524_v20 = vmax.f32 %v7334_v58, 0.0  ;;  %8412 = vmatmul.mubr.bf16.gmra.mrb[80].mxu0 %v9075_v39 }
 0x4e3   : > { %8419 = vmatprep.mubr.bf16.mxu0 %v9084_v24  ;;  %v13624_v24 = vld [vmem:[#allocation38_spill] sm:$0xff] }
 0x4e4   : > { %v13271_v12 = vpack.c.bf16 %v7524_v20, %v7523_v59 }
 0x4e7   : > { %v6793_v31 = vpop.f32.mrb[208].mxu1 }
 0x4e8   : > { %v6794_v7 = vadd.f32 %v13125_v29, %v6793_v31  ;;  %v6795_v53 = vpop.f32.mrb[209].mxu1 }
 0x4e9   : > { %v6796_v4 = vpop.f32.mrb[210].mxu1 }
 0x4ea   : > { %v7339_v26 = vadd.f32 %v13619_v41, %v6794_v7  ;;  %v6797_v50 = vadd.f32 %v13125_v29, %v6796_v4  ;;  %v6798_v25 = vpop.f32.mrb[211].mxu1  ;;  %8420 = vmatmul.mubr.bf16.gmra.mrb[84].mxu0 %v9083_v45  ;;  %v13626_v41 = vld [vmem:[#allocation42_spill] sm:$0xff] }
 0x4ec   : > { %v7342_v54 = vadd.f32 %v13620_v57, %v6797_v50  ;;  %v7525_v3 = vmax.f32 %v7339_v26, 0.0  ;;  %v13627_v57 = vld [vmem:[#allocation44_spill] sm:$0xff] }
 0x4ee   : > { %v7526_v18 = vmax.f32 %v7342_v54, 0.0 }
 0x4f0   : > { %v13277_v51 = vpack.c.bf16 %v7526_v18, %v7525_v3 }
 0x4f3   : > { %v6801_v62 = vpop.f32.mrb[212].mxu1 }
 0x4f4   : > { %v6802_v56 = vadd.f32 %v13125_v29, %v6801_v62  ;;  %v6803_v34 = vpop.f32.mrb[213].mxu1 }
 0x4f5   : > { %v6804_v21 = vpop.f32.mrb[214].mxu1 }
 0x4f6   : > { %v7347_v55 = vadd.f32 %v13621_v52, %v6802_v56  ;;  %v6805_v5 = vadd.f32 %v13125_v29, %v6804_v21  ;;  %v6806_v61 = vpop.f32.mrb[215].mxu1  ;;  %v13628_v52 = vld [vmem:[#allocation41_spill] sm:$0xff] }
 0x4f8   : > { %v7350_v60 = vadd.f32 %v13622_v27, %v6805_v5  ;;  %v7527_v36 = vmax.f32 %v7347_v55, 0.0  ;;  %v13629_v27 = vld [vmem:[#allocation43_spill] sm:$0xff] }
 0x4fa   : > { %v7528_v30 = vmax.f32 %v7350_v60, 0.0 }
 0x4fc   : > { %v13283_v43 = vpack.c.bf16 %v7528_v30, %v7527_v36 }
 0x4ff   : > { %v6809_v40 = vpop.f32.mrb[216].mxu1 }
 0x500   : > { %v6810_v6 = vadd.f32 %v13125_v29, %v6809_v40  ;;  %v6811_v8 = vpop.f32.mrb[217].mxu1  ;;  %v9242_v40 = vpop.f32.mrb[8].mxu0 }
 0x501   : > { %v6812_v48 = vpop.f32.mrb[218].mxu1 }
 0x502   : > { %v7355_v46 = vadd.f32 %v12631_v49, %v6810_v6  ;;  %v6813_v32 = vadd.f32 %v13125_v29, %v6812_v48  ;;  %v6814_v16 = vpop.f32.mrb[219].mxu1  ;;  %v9243_v6 = vpop.f32.mrb[9].mxu0 }
 0x503   : > { %v13304_v48 = vadd.f32 %v9243_v6, %v9242_v40  ;;  %v13633_v40 = vld [vmem:[#allocation47_spill] sm:$0xff] }
 0x504   : > { %v7358_v19 = vadd.f32 %v13623_v38, %v6813_v32  ;;  %v7529_v1 = vmax.f32 %v7355_v46, 0.0  ;;  %v9245_v46 = vpop.f32.mrb[10].mxu0 }
 0x506   : > { %v7530_v17 = vmax.f32 %v7358_v19, 0.0 }
 0x508   : > { %v7681_v33 = vpack.c.bf16 %v7530_v17, %v7529_v1 }
 0x50a   : > { %9454 = vmatprep.subr.bf16.mxu1 %v7681_v33 }
 0x50b   : > { %v6817_v28 = vpop.f32.mrb[220].mxu1  ;;  %9455 = vmatpush3.bf16.msra.mxu1 %v13135_v13 }
 0x50c   : > { %v6818_v2 = vadd.f32 %v13125_v29, %v6817_v28  ;;  %v6819_v63 = vpop.f32.mrb[221].mxu1 }
 0x50d   : > { %v6820_v39 = vpop.f32.mrb[222].mxu1 }
 0x50e   : > { %v7363_v42 = vadd.f32 %v13624_v24, %v6818_v2  ;;  %v6821_v49 = vadd.f32 %v13125_v29, %v6820_v39  ;;  %v6822_v58 = vpop.f32.mrb[223].mxu1  ;;  %v13630_v39 = vld [vmem:[#allocation46_spill] sm:$0xff] }
 0x510   : > { %v7366_v59 = vadd.f32 %v13625_v0, %v6821_v49  ;;  %v7531_v20 = vmax.f32 %v7363_v42, 0.0 }
 0x512   : > { %v7532_v45 = vmax.f32 %v7366_v59, 0.0 }
 0x514   : > { %v7682_v31 = vpack.c.bf16 %v7532_v45, %v7531_v20  ;;  %v13631_v20 = vld [vmem:[#allocation48_spill] sm:$0xff] }
 0x516   : > { %9456 = vmatprep.subr.bf16.mxu1 %v7682_v31 }
 0x517   : > { %v6825_v7 = vpop.f32.mrb[224].mxu1  ;;  %9457 = vmatpush3.bf16.msra.mxu1 %v13159_v35 }
 0x518   : > { %v6826_v13 = vadd.f32 %v13125_v29, %v6825_v7  ;;  %v6827_v53 = vpop.f32.mrb[225].mxu1 }
 0x519   : > { %v6828_v4 = vpop.f32.mrb[226].mxu1 }
 0x51a   : > { %v7371_v26 = vadd.f32 %v13626_v41, %v6826_v13  ;;  %v6829_v50 = vadd.f32 %v13125_v29, %v6828_v4  ;;  %v6830_v25 = vpop.f32.mrb[227].mxu1 }
 0x51c   : > { %v7374_v54 = vadd.f32 %v13627_v57, %v6829_v50  ;;  %v7533_v3 = vmax.f32 %v7371_v26, 0.0 }
 0x51e   : > { %v7534_v18 = vmax.f32 %v7374_v54, 0.0 }
 0x520   : > { %v7683_v62 = vpack.c.bf16 %v7534_v18, %v7533_v3 }
 0x522   : > { %9458 = vmatprep.subr.bf16.mxu1 %v7683_v62 }
 0x523   : > { %v6833_v56 = vpop.f32.mrb[228].mxu1  ;;  %9459 = vmatpush3.bf16.msra.mxu1 %v13183_v9  ;;  %v9246_v9 = vpop.f32.mrb[11].mxu0 }
 0x524   : > { %v6834_v35 = vadd.f32 %v13125_v29, %v6833_v56  ;;  %v6835_v34 = vpop.f32.mrb[229].mxu1  ;;  %v13306_v32 = vadd.f32 %v9246_v9, %v9245_v46  ;;  %v9248_v16 = vpop.f32.mrb[12].mxu0 }
 0x525   : > { %v6836_v21 = vpop.f32.mrb[230].mxu1  ;;  %v9249_v19 = vpop.f32.mrb[13].mxu0 }
 0x526   : > { %v7379_v55 = vadd.f32 %v13628_v52, %v6834_v35  ;;  %v6837_v5 = vadd.f32 %v13125_v29, %v6836_v21  ;;  %v6838_v61 = vpop.f32.mrb[231].mxu1  ;;  %v13310_v33 = vadd.f32 %v9249_v19, %v9248_v16  ;;  %v9251_v28 = vpop.f32.mrb[14].mxu0 }
 0x527   : > { %v9252_v63 = vpop.f32.mrb[15].mxu0 }
 0x528   : > { %v7382_v60 = vadd.f32 %v13629_v27, %v6837_v5  ;;  %v7535_v36 = vmax.f32 %v7379_v55, 0.0  ;;  %v13314_v58 = vadd.f32 %v9252_v63, %v9251_v28  ;;  %v9254_v0 = vpop.f32.mrb[16].mxu0  ;;  %v13632_v5 = vld [vmem:[#allocation45_spill] sm:$0xff] }
 0x529   : > { %v9255_v59 = vpop.f32.mrb[17].mxu0 }
 0x52a   : > { %v7536_v30 = vmax.f32 %v7382_v60, 0.0  ;;  %v13317_v45 = vadd.f32 %v9255_v59, %v9254_v0  ;;  %v9257_v31 = vpop.f32.mrb[18].mxu0 }
 0x52b   : > { %v9258_v7 = vpop.f32.mrb[19].mxu0 }
 0x52c   : > { %v7684_v8 = vpack.c.bf16 %v7536_v30, %v7535_v36  ;;  %v13319_v4 = vadd.f32 %v9258_v7, %v9257_v31  ;;  %v9260_v41 = vpop.f32.mrb[20].mxu0 }
 0x52d   : > { %v9261_v26 = vpop.f32.mrb[21].mxu0 }
 0x52e   : > { %9460 = vmatprep.subr.bf16.mxu1 %v7684_v8  ;;  %v13321_v25 = vadd.f32 %v9261_v26, %v9260_v41  ;;  %v9263_v57 = vpop.f32.mrb[22].mxu0 }
 0x52f   : > { %v6841_v38 = vpop.f32.mrb[232].mxu1  ;;  %9461 = vmatpush3.bf16.msra.mxu1 %v13211_v14  ;;  %v9264_v54 = vpop.f32.mrb[23].mxu0 }
 0x530   : > { %v6842_v1 = vadd.f32 %v13125_v29, %v6841_v38  ;;  %v6843_v17 = vpop.f32.mrb[233].mxu1  ;;  %v13323_v3 = vadd.f32 %v9264_v54, %v9263_v57  ;;  %v9266_v62 = vpop.f32.mrb[24].mxu0 }
 0x531   : > { %v6844_v2 = vpop.f32.mrb[234].mxu1  ;;  %v9267_v34 = vpop.f32.mrb[25].mxu0 }
 0x532   : > { %v7387_v24 = vadd.f32 %v13630_v39, %v6842_v1  ;;  %v6845_v42 = vadd.f32 %v13125_v29, %v6844_v2  ;;  %v6846_v49 = vpop.f32.mrb[235].mxu1  ;;  %v13327_v52 = vadd.f32 %v9267_v34, %v9266_v62  ;;  %v9269_v55 = vpop.f32.mrb[26].mxu0 }
 0x533   : > { %v9270_v36 = vpop.f32.mrb[27].mxu0 }
 0x534   : > { %v7390_v14 = vadd.f32 %v13631_v20, %v6845_v42  ;;  %v7537_v13 = vmax.f32 %v7387_v24, 0.0  ;;  %v13331_v30 = vadd.f32 %v9270_v36, %v9269_v55  ;;  %v9272_v46 = vpop.f32.mrb[28].mxu0  ;;  %v7556_v36 = vld [vmem:[%s13539_s5 + $0x58] sm:$0xff] }
 0x535   : > { %v9273_v16 = vpop.f32.mrb[29].mxu0 }
 0x536   : > { %v7538_v53 = vmax.f32 %v7390_v14, 0.0  ;;  %v13334_v38 = vadd.f32 %v9273_v16, %v9272_v46  ;;  %v9275_v19 = vpop.f32.mrb[30].mxu0 }
 0x537   : > { %v9276_v1 = vpop.f32.mrb[31].mxu0 }
 0x538   : > { %v7685_v50 = vpack.c.bf16 %v7538_v53, %v7537_v13  ;;  %v13337_v28 = vadd.f32 %v9276_v1, %v9275_v19 }
 0x53a   : > { %9462 = vmatprep.subr.bf16.mxu1 %v7685_v50 }
 0x53b   : > { %v6849_v18 = vpop.f32.mrb[236].mxu1  ;;  %9463 = vmatpush3.bf16.msra.mxu1 %v13239_v37 }
 0x53c   : > { %v6850_v56 = vadd.f32 %v13125_v29, %v6849_v18  ;;  %v6851_v35 = vpop.f32.mrb[237].mxu1 }
 0x53d   : > { %v6852_v21 = vpop.f32.mrb[238].mxu1 }
 0x53e   : > { %v7395_v61 = vadd.f32 %v13632_v5, %v6850_v56  ;;  %v6853_v27 = vadd.f32 %v13125_v29, %v6852_v21  ;;  %v6854_v60 = vpop.f32.mrb[239].mxu1 }
 0x540   : > { %v7398_v6 = vadd.f32 %v13633_v40, %v6853_v27  ;;  %v7539_v37 = vmax.f32 %v7395_v61, 0.0 }
 0x542   : > { %v7540_v8 = vmax.f32 %v7398_v6, 0.0 }
 0x544   : > { %v7686_v9 = vpack.c.bf16 %v7540_v8, %v7539_v37 }
 0x546   : > { %9464 = vmatprep.subr.bf16.mxu1 %v7686_v9  ;;  %v9278_v0 = vpop.f32.mrb[32].mxu0 }
 0x547   : > { %v6857_v17 = vpop.f32.mrb[240].mxu1  ;;  %9465 = vmatpush3.bf16.msra.mxu1 %v13271_v12  ;;  %v9279_v20 = vpop.f32.mrb[33].mxu0 }
 0x548   : > { %v6858_v2 = vadd.f32 %v13125_v29, %v6857_v17  ;;  %v6859_v63 = vpop.f32.mrb[241].mxu1  ;;  %v13343_v14 = vadd.f32 %v9279_v20, %v9278_v0  ;;  %v9281_v31 = vpop.f32.mrb[34].mxu0 }
 0x549   : > { %v6860_v39 = vpop.f32.mrb[242].mxu1  ;;  %v9282_v13 = vpop.f32.mrb[35].mxu0 }
 0x54a   : > { %v6861_v24 = vadd.f32 %v13125_v29, %v6860_v39  ;;  %v7403_v42 = vadd.f32 %v13203_v10, %v6858_v2  ;;  %v6862_v49 = vpop.f32.mrb[243].mxu1  ;;  %v13345_v53 = vadd.f32 %v9282_v13, %v9281_v31 }
 0x54c   : > { %v7406_v59 = vadd.f32 %v13221_v15, %v6861_v24  ;;  %v7541_v7 = vmax.f32 %v7403_v42, 0.0  ;;  %v7568_v24 = vld [vmem:[%s13539_s5 + $0xb8] sm:$0xff] }
 0x54e   : > { %v7542_v12 = vmax.f32 %v7406_v59, 0.0 }
 0x550   : > { %v7687_v41 = vpack.c.bf16 %v7542_v12, %v7541_v7  ;;  %v9284_v50 = vpop.f32.mrb[36].mxu0 }
 0x551   : > { %v9285_v54 = vpop.f32.mrb[37].mxu0 }
 0x552   : > { %9466 = vmatprep.subr.bf16.mxu1 %v7687_v41  ;;  %v13349_v18 = vadd.f32 %v9285_v54, %v9284_v50  ;;  %v9287_v62 = vpop.f32.mrb[38].mxu0  ;;  %v7584_v50 = vld [vmem:[%s13539_s5 + $0x138] sm:$0xff] }
 0x553   : > { %v6865_v26 = vpop.f32.mrb[244].mxu1  ;;  %9467 = vmatpush3.bf16.msra.mxu1 %v13277_v51  ;;  %v9288_v21 = vpop.f32.mrb[39].mxu0 }
 0x554   : > { %v6866_v10 = vadd.f32 %v13125_v29, %v6865_v26  ;;  %v6867_v57 = vpop.f32.mrb[245].mxu1  ;;  %v13353_v55 = vadd.f32 %v9288_v21, %v9287_v62  ;;  %v7580_v26 = vld [vmem:[%s13539_s5 + $0x118] sm:$0xff] }
 0x555   : > { %v6868_v15 = vpop.f32.mrb[246].mxu1 }
 0x556   : > { %v7411_v56 = vadd.f32 %v13201_v23, %v6866_v10  ;;  %v6869_v35 = vadd.f32 %v13125_v29, %v6868_v15  ;;  %v6870_v34 = vpop.f32.mrb[247].mxu1  ;;  %v7560_v23 = vld [vmem:[%s13539_s5 + $0x78] sm:$0xff] }
 0x557   : > { %v9022_v46 = vcombine.high %v7556_v36, %v7560_v23  ;;  %v9021_v0 = vcombine.low %v7556_v36, %v7560_v23 }
 0x558   : > { %v7414_v5 = vadd.f32 %v13213_v44, %v6869_v35  ;;  %v7543_v51 = vmax.f32 %v7411_v56, 0.0  ;;  %v9290_v27 = vpop.f32.mrb[40].mxu0  ;;  %v9046_v35 = vcombine.high %v7580_v26, %v7584_v50 }
 0x559   : > { %v9291_v40 = vpop.f32.mrb[41].mxu0 }
 0x55a   : > { %v7544_v61 = vmax.f32 %v7414_v5, 0.0  ;;  %v13362_v6 = vadd.f32 %v9291_v40, %v9290_v27  ;;  %v9293_v37 = vpop.f32.mrb[42].mxu0 }
 0x55b   : > { %v9318_v29 = vpop.f32.mrb[248].mxu1  ;;  %v9294_v44 = vpop.f32.mrb[43].mxu0 }
 0x55c   : > { %v7688_v60 = vpack.c.bf16 %v7544_v61, %v7543_v51  ;;  %v9319_v8 = vpop.f32.mrb[249].mxu1  ;;  %v13365_v19 = vadd.f32 %v9294_v44, %v9293_v37 }
 0x55d   : > { %v9320_v9 = vadd.f32 %v9319_v8, %v9318_v29  ;;  %v9321_v16 = vpop.f32.mrb[250].mxu1  ;;  %v7588_v29 = vld [vmem:[%s13539_s5 + $0x158] sm:$0xff] }
 0x55e   : > { %9468 = vmatprep.subr.bf16.mxu1 %v7688_v60  ;;  %v9322_v1 = vpop.f32.mrb[251].mxu1 }
 0x55f   : > { %9469 = vmatpush3.bf16.msra.mxu1 %v13283_v43  ;;  %v8237_v17 = vadd.f32 %v9320_v9, %v13304_v48  ;;  %v9323_v2 = vadd.f32 %v9322_v1, %v9321_v16  ;;  %v7564_v43 = vld [vmem:[%s13539_s5 + $0x98] sm:$0xff]  ;;  %v9045_v9 = vcombine.low %v7580_v26, %v7584_v50 }
 0x560   : > { %v9296_v39 = vpop.f32.mrb[44].mxu0  ;;  %v9030_v11 = vcombine.high %v7564_v43, %v7568_v24  ;;  %v9029_v20 = vcombine.low %v7564_v43, %v7568_v24 }
 0x561   : > { %v8240_v63 = vadd.f32 %v9323_v2, %v13306_v32  ;;  %v9297_v42 = vpop.f32.mrb[45].mxu0  ;;  %v7576_v32 = vld [vmem:[%s13539_s5 + $0xf8] sm:$0xff] }
 0x562   : > { %8461 = vmatmul.mubr.bf16.vlgmr.msra.gmra.mrb[32].mxu1 %v9013_v47  ;;  %v13378_v49 = vadd.f32 %v9297_v42, %v9296_v39  ;;  %v9299_v48 = vpop.f32.mrb[46].mxu0  ;;  %v7572_v47 = vld [vmem:[%s13539_s5 + $0xd8] sm:$0xff] }
 0x563   : > { %8468 = vmatprep.mubr.bf16.mxu1 %v9022_v46  ;;  %v9300_v59 = vpop.f32.mrb[47].mxu0  ;;  %v9038_v31 = vcombine.high %v7572_v47, %v7576_v32  ;;  %v9324_v7 = vpop.f32.mrb[252].mxu1  ;;  %v9037_v62 = vcombine.low %v7572_v47, %v7576_v32 }
 0x564   : > { %v13380_v22 = vadd.f32 %v9300_v59, %v9299_v48  ;;  %v9325_v12 = vpop.f32.mrb[253].mxu1 }
 0x565   : > { %v9326_v13 = vadd.f32 %v9325_v12, %v9324_v7  ;;  %v9327_v41 = vpop.f32.mrb[254].mxu1 }
 0x566   : > { %v9328_v10 = vpop.f32.mrb[255].mxu1 }
 0x567   : > { %v8245_v57 = vadd.f32 %v9326_v13, %v13310_v33  ;;  %v9329_v54 = vadd.f32 %v9328_v10, %v9327_v41 }
 0x569   : > { %v8248_v34 = vadd.f32 %v9329_v54, %v13314_v58  ;;  %v7592_v58 = vld [vmem:[%s13539_s5 + $0x178] sm:$0xff] }
 0x56a   : > { %8469 = vmatmul.mubr.bf16.gmra.mrb[36].mxu1 %v9021_v0  ;;  %v9054_v1 = vcombine.high %v7588_v29, %v7592_v58  ;;  %v9053_v7 = vcombine.low %v7588_v29, %v7592_v58 }
 0x56b   : > { %8476 = vmatprep.mubr.bf16.mxu1 %v9030_v11  ;;  %v9330_v61 = vpop.f32.mrb[0].mxu1  ;;  %v7596_v11 = vld [vmem:[%s13539_s5 + $0x198] sm:$0xff] }
 0x56c   : > { %v9331_v36 = vpop.f32.mrb[1].mxu1 }
 0x56d   : > { %v9332_v23 = vadd.f32 %v9331_v36, %v9330_v61  ;;  %v9333_v40 = vpop.f32.mrb[2].mxu1 }
 0x56e   : > { %v9334_v37 = vpop.f32.mrb[3].mxu1 }
 0x56f   : > { %v8253_v8 = vadd.f32 %v9332_v23, %v13317_v45  ;;  %v9335_v44 = vadd.f32 %v9334_v37, %v9333_v40 }
 0x572   : > { %8477 = vmatmul.mubr.bf16.gmra.mrb[40].mxu1 %v9029_v20 }
 0x573   : > { %8484 = vmatprep.mubr.bf16.mxu1 %v9038_v31  ;;  %v9336_v43 = vpop.f32.mrb[4].mxu1 }
 0x574   : > { %v9337_v48 = vpop.f32.mrb[5].mxu1 }
 0x575   : > { %v9394_v15 = vpop.f32.mrb[48].mxu0  ;;  %v9338_v0 = vadd.f32 %v9337_v48, %v9336_v43  ;;  %v9339_v59 = vpop.f32.mrb[6].mxu1 }
 0x576   : > { %v9395_v56 = vpop.f32.mrb[49].mxu0  ;;  %v9340_v47 = vpop.f32.mrb[7].mxu1 }
 0x577   : > { %v9396_v21 = vadd.f32 %v9395_v56, %v9394_v15  ;;  %v9397_v5 = vpop.f32.mrb[50].mxu0  ;;  %v8261_v32 = vadd.f32 %v9338_v0, %v13321_v25  ;;  %v9341_v20 = vadd.f32 %v9340_v47, %v9339_v59 }
 0x578   : > { %v9398_v51 = vpop.f32.mrb[51].mxu0 }
 0x579   : > { %v13396_v27 = vadd.f32 %v9396_v21, %v8237_v17  ;;  %v9399_v60 = vadd.f32 %v9398_v51, %v9397_v5  ;;  %v8256_v17 = vadd.f32 %v9335_v44, %v13319_v4  ;;  %v7600_v4 = vld [vmem:[%s13539_s5 + $0x1b8] sm:$0xff]  ;;  %v8264_v41 = vadd.f32 %v9341_v20, %v13323_v3 }
 0x57a   : > { %8485 = vmatmul.mubr.bf16.gmra.mrb[44].mxu1 %v9037_v62  ;;  %v9062_v13 = vcombine.high %v7596_v11, %v7600_v4  ;;  %v7608_v3 = vld [vmem:[%s13539_s5 + $0x1f8] sm:$0xff] }
 0x57b   : > { %8492 = vmatprep.mubr.bf16.mxu1 %v9046_v35  ;;  %v13398_v33 = vadd.f32 %v9399_v60, %v8240_v63  ;;  %v9061_v60 = vcombine.low %v7596_v11, %v7600_v4 }
 0x57d   : > { %v9400_v46 = vpop.f32.mrb[52].mxu0 }
 0x57e   : > { %v9401_v16 = vpop.f32.mrb[53].mxu0 }
 0x57f   : > { %v9402_v2 = vadd.f32 %v9401_v16, %v9400_v46  ;;  %v9403_v63 = vpop.f32.mrb[54].mxu0 }
 0x580   : > { %v9404_v39 = vpop.f32.mrb[55].mxu0 }
 0x581   : > { %v13408_v24 = vadd.f32 %v9402_v2, %v8245_v57  ;;  %v9405_v42 = vadd.f32 %v9404_v39, %v9403_v63  ;;  %v9342_v57 = vpop.f32.mrb[8].mxu1 }
 0x582   : > { %8493 = vmatmul.mubr.bf16.gmra.mrb[48].mxu1 %v9045_v9  ;;  %v9343_v62 = vpop.f32.mrb[9].mxu1 }
 0x583   : > { %8500 = vmatprep.mubr.bf16.mxu1 %v9054_v1  ;;  %v13410_v45 = vadd.f32 %v9405_v42, %v8248_v34  ;;  %v9344_v56 = vadd.f32 %v9343_v62, %v9342_v57  ;;  %v9345_v35 = vpop.f32.mrb[10].mxu1  ;;  %v7604_v34 = vld [vmem:[%s13539_s5 + $0x1d8] sm:$0xff] }
 0x584   : > { %v9346_v21 = vpop.f32.mrb[11].mxu1  ;;  %v9070_v23 = vcombine.high %v7604_v34, %v7608_v3  ;;  %v9069_v42 = vcombine.low %v7604_v34, %v7608_v3 }
 0x585   : > { %v9406_v31 = vpop.f32.mrb[56].mxu0  ;;  %v8269_v5 = vadd.f32 %v9344_v56, %v13327_v52  ;;  %v9347_v51 = vadd.f32 %v9346_v21, %v9345_v35 }
 0x586   : > { %v9407_v12 = vpop.f32.mrb[57].mxu0 }
 0x587   : > { %v9408_v26 = vadd.f32 %v9407_v12, %v9406_v31  ;;  %v9409_v50 = vpop.f32.mrb[58].mxu0  ;;  %v8272_v40 = vadd.f32 %v9347_v51, %v13331_v30  ;;  %v7616_v30 = vld [vmem:[%s13539_s5 + $0x238] sm:$0xff] }
 0x588   : > { %v9410_v10 = vpop.f32.mrb[59].mxu0 }
 0x589   : > { %v13420_v54 = vadd.f32 %v9408_v26, %v8253_v8  ;;  %v9411_v15 = vadd.f32 %v9410_v10, %v9409_v50  ;;  %v9348_v8 = vpop.f32.mrb[12].mxu1 }
 0x58a   : > { %8501 = vmatmul.mubr.bf16.gmra.mrb[52].mxu1 %v9053_v7  ;;  %v9349_v9 = vpop.f32.mrb[13].mxu1 }
 0x58b   : > { %8508 = vmatprep.mubr.bf16.mxu1 %v9062_v13  ;;  %v13422_v25 = vadd.f32 %v9411_v15, %v8256_v17  ;;  %v9350_v16 = vadd.f32 %v9349_v9, %v9348_v8  ;;  %v9351_v1 = vpop.f32.mrb[14].mxu1  ;;  %v7612_v17 = vld [vmem:[%s13539_s5 + $0x218] sm:$0xff] }
 0x58c   : > { %v9352_v2 = vpop.f32.mrb[15].mxu1  ;;  %v9078_v0 = vcombine.high %v7612_v17, %v7616_v30  ;;  %v9077_v15 = vcombine.low %v7612_v17, %v7616_v30 }
 0x58d   : > { %v9412_v61 = vpop.f32.mrb[60].mxu0  ;;  %v8277_v63 = vadd.f32 %v9350_v16, %v13334_v38  ;;  %v9353_v39 = vadd.f32 %v9352_v2, %v9351_v1 }
 0x58e   : > { %v9413_v36 = vpop.f32.mrb[61].mxu0 }
 0x58f   : > { %v9414_v29 = vadd.f32 %v9413_v36, %v9412_v61  ;;  %v9415_v58 = vpop.f32.mrb[62].mxu0  ;;  %v8280_v59 = vadd.f32 %v9353_v39, %v13337_v28  ;;  %v7624_v28 = vld [vmem:[%s13539_s5 + $0x278] sm:$0xff] }
 0x590   : > { %v9416_v37 = vpop.f32.mrb[63].mxu0 }
 0x591   : > { %v13432_v44 = vadd.f32 %v9414_v29, %v8261_v32  ;;  %v9417_v46 = vadd.f32 %v9416_v37, %v9415_v58  ;;  %v9354_v32 = vpop.f32.mrb[16].mxu1 }
 0x592   : > { %8509 = vmatmul.mubr.bf16.gmra.mrb[56].mxu1 %v9061_v60  ;;  %v9355_v7 = vpop.f32.mrb[17].mxu1 }
 0x593   : > { %8516 = vmatprep.mubr.bf16.mxu1 %v9070_v23  ;;  %v13434_v52 = vadd.f32 %v9417_v46, %v8264_v41  ;;  %v9356_v12 = vadd.f32 %v9355_v7, %v9354_v32  ;;  %v9357_v13 = vpop.f32.mrb[18].mxu1  ;;  %v7620_v41 = vld [vmem:[%s13539_s5 + $0x258] sm:$0xff] }
 0x594   : > { %v9358_v26 = vpop.f32.mrb[19].mxu1  ;;  %v9086_v56 = vcombine.high %v7620_v41, %v7624_v28 }
 0x595   : > { %v9418_v43 = vpop.f32.mrb[64].mxu0  ;;  %v8285_v50 = vadd.f32 %v9356_v12, %v13343_v14  ;;  %v9359_v10 = vadd.f32 %v9358_v26, %v9357_v13 }
 0x596   : > { %v9419_v48 = vpop.f32.mrb[65].mxu0 }
 0x597   : > { %v9420_v11 = vadd.f32 %v9419_v48, %v9418_v43  ;;  %v9421_v4 = vpop.f32.mrb[66].mxu0  ;;  %v8288_v35 = vadd.f32 %v9359_v10, %v13345_v53  ;;  %v9085_v53 = vcombine.low %v7620_v41, %v7624_v28 }
 0x598   : > { %v9422_v47 = vpop.f32.mrb[67].mxu0 }
 0x599   : > { %v13444_v20 = vadd.f32 %v9420_v11, %v8269_v5  ;;  %v9423_v31 = vadd.f32 %v9422_v47, %v9421_v4  ;;  %v9360_v5 = vpop.f32.mrb[20].mxu1 }
 0x59a   : > { %8517 = vmatmul.mubr.bf16.gmra.mrb[60].mxu1 %v9069_v42  ;;  %v9361_v60 = vpop.f32.mrb[21].mxu1 }
 0x59b   : > { %8524 = vmatprep.mubr.bf16.mxu1 %v9078_v0  ;;  %v13446_v38 = vadd.f32 %v9423_v31, %v8272_v40  ;;  %v9362_v36 = vadd.f32 %v9361_v60, %v9360_v5  ;;  %v9363_v23 = vpop.f32.mrb[22].mxu1 }
 0x59c   : > { %v9364_v40 = vpop.f32.mrb[23].mxu1 }
 0x59d   : > { %v9424_v57 = vpop.f32.mrb[68].mxu0  ;;  %v8293_v29 = vadd.f32 %v9362_v36, %v13349_v18  ;;  %v9365_v58 = vadd.f32 %v9364_v40, %v9363_v23  ;;  %v9366_v17 = vpop.f32.mrb[24].mxu1 }
 0x59e   : > { %v9425_v62 = vpop.f32.mrb[69].mxu0 }
 0x59f   : > { %v9426_v34 = vadd.f32 %v9425_v62, %v9424_v57  ;;  %v9427_v3 = vpop.f32.mrb[70].mxu0  ;;  %v8296_v46 = vadd.f32 %v9365_v58, %v13353_v55 }
 0x5a0   : > { %v9428_v21 = vpop.f32.mrb[71].mxu0 }
 0x5a1   : > { %v13456_v51 = vadd.f32 %v9426_v34, %v8277_v63  ;;  %v9429_v61 = vadd.f32 %v9428_v21, %v9427_v3  ;;  %v9367_v63 = vpop.f32.mrb[25].mxu1 }
 0x5a2   : > { %8525 = vmatmul.mubr.bf16.gmra.mrb[64].mxu1 %v9077_v15  ;;  %v9368_v39 = vadd.f32 %v9367_v63, %v9366_v17  ;;  %v9369_v43 = vpop.f32.mrb[26].mxu1 }
 0x5a3   : > { %8532 = vmatprep.mubr.bf16.mxu1 %v9086_v56  ;;  %v13458_v14 = vadd.f32 %v9429_v61, %v8280_v59  ;;  %v9370_v18 = vpop.f32.mrb[27].mxu1 }
 0x5a4   : > { %v8301_v48 = vadd.f32 %v9368_v39, %v13362_v6  ;;  %v9371_v0 = vadd.f32 %v9370_v18, %v9369_v43  ;;  %v9372_v31 = vpop.f32.mrb[28].mxu1 }
 0x5a5   : > { %v9430_v37 = vpop.f32.mrb[72].mxu0  ;;  %v9373_v13 = vpop.f32.mrb[29].mxu1 }
 0x5a6   : > { %v9431_v8 = vpop.f32.mrb[73].mxu0  ;;  %v8304_v55 = vadd.f32 %v9371_v0, %v13365_v19  ;;  %v9374_v41 = vadd.f32 %v9373_v13, %v9372_v31  ;;  %v9375_v28 = vpop.f32.mrb[30].mxu1 }
 0x5a7   : > { %v9432_v9 = vadd.f32 %v9431_v8, %v9430_v37  ;;  %v9433_v16 = vpop.f32.mrb[74].mxu0 }
 0x5a8   : > { %v9434_v1 = vpop.f32.mrb[75].mxu0  ;;  %v8309_v6 = vadd.f32 %v9374_v41, %v13378_v49 }
 0x5a9   : > { %v13462_v30 = vadd.f32 %v9432_v9, %v8285_v50  ;;  %v9435_v2 = vadd.f32 %v9434_v1, %v9433_v16  ;;  %v9376_v50 = vpop.f32.mrb[31].mxu1 }
 0x5aa   : > { %8533 = vmatmul.mubr.bf16.gmra.mrb[68].mxu1 %v9085_v53  ;;  %v9377_v10 = vadd.f32 %v9376_v50, %v9375_v28 }
 0x5ab   : > { %v13464_v42 = vadd.f32 %v9435_v2, %v8288_v35 }
 0x5ac   : > { %v8312_v19 = vadd.f32 %v9377_v10, %v13380_v22 }
 0x5ad   : > { %v9436_v59 = vpop.f32.mrb[76].mxu0 }
 0x5ae   : > { %v9437_v11 = vpop.f32.mrb[77].mxu0 }
 0x5af   : > { %v9438_v4 = vadd.f32 %v9437_v11, %v9436_v59  ;;  %v9439_v47 = vpop.f32.mrb[78].mxu0 }
 0x5b0   : > { %v9440_v32 = vpop.f32.mrb[79].mxu0 }
 0x5b1   : > { %v13468_v7 = vadd.f32 %v9438_v4, %v8293_v29  ;;  %v9441_v12 = vadd.f32 %v9440_v32, %v9439_v47 }
 0x5b3   : > { %v13470_v26 = vadd.f32 %v9441_v12, %v8296_v46 }
 0x5b5   : > { %v9442_v57 = vpop.f32.mrb[80].mxu0 }
 0x5b6   : > { %v9443_v15 = vpop.f32.mrb[81].mxu0 }
 0x5b7   : > { %v9444_v62 = vadd.f32 %v9443_v15, %v9442_v57  ;;  %v9445_v56 = vpop.f32.mrb[82].mxu0 }
 0x5b8   : > { %v9446_v35 = vpop.f32.mrb[83].mxu0 }
 0x5b9   : > { %v13474_v34 = vadd.f32 %v9444_v62, %v8301_v48  ;;  %v9447_v3 = vadd.f32 %v9446_v35, %v9445_v56 }
 0x5bb   : > { %v13476_v21 = vadd.f32 %v9447_v3, %v8304_v55 }
 0x5bd   : > { %v9448_v5 = vpop.f32.mrb[84].mxu0 }
 0x5be   : > { %v9449_v61 = vpop.f32.mrb[85].mxu0 }
 0x5bf   : > { %v9450_v60 = vadd.f32 %v9449_v61, %v9448_v5  ;;  %v9451_v36 = vpop.f32.mrb[86].mxu0 }
 0x5c0   : > { %v9452_v23 = vpop.f32.mrb[87].mxu0 }
 0x5c1   : > { %v13478_v40 = vadd.f32 %v9450_v60, %v8309_v6  ;;  %v9453_v49 = vadd.f32 %v9452_v23, %v9451_v36 }
 0x5c3   : > { %v13480_v29 = vadd.f32 %v9453_v49, %v8312_v19 }
 0x635   : > { %v9470_v58 = vpop.f32.mrb[32].mxu1 }
 0x636   : > { %v9471_v22 = vpop.f32.mrb[33].mxu1 }
 0x637   : > { %v9472_v37 = vadd.f32 %v9471_v22, %v9470_v58  ;;  %v9473_v53 = vpop.f32.mrb[34].mxu1 }
 0x638   : > { %v9474_v8 = vpop.f32.mrb[35].mxu1 }
 0x639   : > { %v13483_v46 = vadd.f32 %v9472_v37, %v13396_v27  ;;  %v9475_v9 = vadd.f32 %v9474_v8, %v9473_v53 }
 0x63b   : > { %v13486_v16 = vadd.f32 %v9475_v9, %v13398_v33 }
 0x63d   : > { %v9476_v1 = vpop.f32.mrb[36].mxu1  ;;  %v8547_v48 = vrot.slane %v13486_v16, 2 }
 0x63e   : > { %v9477_v17 = vpop.f32.mrb[37].mxu1 }
 0x63f   : > { %v9478_v2 = vadd.f32 %v9477_v17, %v9476_v1  ;;  %v9479_v63 = vpop.f32.mrb[38].mxu1 }
 0x640   : > { %v9480_v39 = vpop.f32.mrb[39].mxu1 }
 0x641   : > { %v8471_v43 = vadd.f32 %v9478_v2, %v13408_v24  ;;  %v9481_v18 = vadd.f32 %v9480_v39, %v9479_v63 }
 0x643   : > { %v8548_v0 = vrot.slane %v8471_v43, 2  ;;  %v8474_v59 = vadd.f32 %v9481_v18, %v13410_v45  ;;  %v8560_v27 = vrot.slane %v8471_v43, 4 }
 0x645   : > { %v8561_v11 = vrot.slane %v8474_v59, 4  ;;  %v9482_v55 = vpop.f32.mrb[40].mxu1  ;;  %8552 = vrot.lane.b32.xlu1 %v8548_v0, %s9969_s9  ;;  %v8549_v33 = vsel %vm968_vm1, %v8547_v48, %v8548_v0  ;;  %v8573_v45 = vrot.slane %v8474_v59, 6 }
 0x646   : > { %v9483_v4 = vpop.f32.mrb[41].mxu1  ;;  %8550 = vrot.lane.b32.xlu0 %v8549_v33, %s9969_s9 }
 0x647   : > { %v9484_v47 = vadd.f32 %v9483_v4, %v9482_v55  ;;  %v9485_v32 = vpop.f32.mrb[42].mxu1  ;;  %v8562_v24 = vsel %vm8559_vm8, %v8560_v27, %v8561_v11 }
 0x648   : > { %v9486_v31 = vpop.f32.mrb[43].mxu1 }
 0x649   : > { %v8479_v12 = vadd.f32 %v9484_v47, %v13420_v54  ;;  %v9487_v13 = vadd.f32 %v9486_v31, %v9485_v32  ;;  %8565 = vrot.lane.b32.xlu1 %v8561_v11, %s9970_s10 }
 0x64a   : > { %8563 = vrot.lane.b32.xlu0 %v8562_v24, %s9970_s10  ;;  %s278_s10 = scalar_lea.vmem %s13541_s7, %s9090_s29 }
 0x64b   : > { %v8574_v41 = vrot.slane %v8479_v12, 6  ;;  %v8482_v28 = vadd.f32 %v9487_v13, %v13422_v25 }
 0x64d   : > { %v9488_v50 = vpop.f32.mrb[44].mxu1  ;;  %8578 = vrot.lane.b32.xlu1 %v8574_v41, %s9971_s11  ;;  %v8575_v6 = vsel %vm8572_vm9, %v8573_v45, %v8574_v41 }
 0x64e   : > { %v9489_v10 = vpop.f32.mrb[45].mxu1  ;;  %8586 = vrot.lane.b32.xlu0 %v8482_v28, %s9972_s12 }
 0x64f   : > { %v9490_v57 = vadd.f32 %v9489_v10, %v9488_v50  ;;  %v9491_v15 = vpop.f32.mrb[46].mxu1 }
 0x650   : > { %v9492_v54 = vpop.f32.mrb[47].mxu1 }
 0x651   : > { %v8487_v19 = vadd.f32 %v9490_v57, %v13432_v44  ;;  %v9493_v62 = vadd.f32 %v9492_v54, %v9491_v15 }
 0x652   : > { %8576 = vrot.lane.b32.xlu0 %v8575_v6, %s9971_s11 }
 0x653   : > { %v8490_v56 = vadd.f32 %v9493_v62, %v13434_v52  ;;  %8588 = vrot.lane.b32.xlu1 %v8487_v19, %s9972_s12  ;;  %v8595_v35 = vrot.slane %v8487_v19, 2 }
 0x655   : > { %v8596_v25 = vrot.slane %v8490_v56, 2  ;;  %v9494_v3 = vpop.f32.mrb[48].mxu1  ;;  %v8607_v58 = vrot.slane %v8490_v56, 4 }
 0x656   : > { %v9495_v5 = vpop.f32.mrb[49].mxu1 }
 0x657   : > { %v9496_v61 = vadd.f32 %v9495_v5, %v9494_v3  ;;  %8600 = vrot.lane.b32.xlu1 %v8596_v25, %s9973_s16  ;;  %v8597_v60 = vsel %vm968_vm1, %v8595_v35, %v8596_v25  ;;  %v9497_v36 = vpop.f32.mrb[50].mxu1 }
 0x658   : > { %8598 = vrot.lane.b32.xlu0 %v8597_v60, %s9973_s16  ;;  %v9498_v23 = vpop.f32.mrb[51].mxu1 }
 0x659   : > { %v8495_v49 = vadd.f32 %v9496_v61, %v13444_v20  ;;  %v9499_v44 = vadd.f32 %v9498_v23, %v9497_v36 }
 0x65b   : > { %v8608_v22 = vrot.slane %v8495_v49, 4  ;;  %v8498_v52 = vadd.f32 %v9499_v44, %v13446_v38  ;;  %v8619_v37 = vrot.slane %v8495_v49, 6 }
 0x65d   : > { %v8620_v53 = vrot.slane %v8498_v52, 6  ;;  %v9500_v8 = vpop.f32.mrb[52].mxu1  ;;  %8612 = vrot.lane.b32.xlu1 %v8608_v22, %s9974_s13  ;;  %v8609_v9 = vsel %vm8559_vm8, %v8607_v58, %v8608_v22 }
 0x65e   : > { %v9501_v1 = vpop.f32.mrb[53].mxu1  ;;  %8610 = vrot.lane.b32.xlu0 %v8609_v9, %s9974_s13 }
 0x65f   : > { %v9502_v17 = vadd.f32 %v9501_v1, %v9500_v8  ;;  %v9503_v2 = vpop.f32.mrb[54].mxu1  ;;  %v8621_v63 = vsel %vm8572_vm9, %v8619_v37, %v8620_v53 }
 0x660   : > { %v9504_v39 = vpop.f32.mrb[55].mxu1 }
 0x661   : > { %v8503_v20 = vadd.f32 %v9502_v17, %v13456_v51  ;;  %v9505_v43 = vadd.f32 %v9504_v39, %v9503_v2  ;;  %8624 = vrot.lane.b32.xlu1 %v8620_v53, %s9975_s14 }
 0x662   : > { %8622 = vrot.lane.b32.xlu0 %v8621_v63, %s9975_s14 }
 0x663   : > { %v8506_v38 = vadd.f32 %v9505_v43, %v13458_v14 }
 0x665   : > { %v9506_v18 = vpop.f32.mrb[56].mxu1  ;;  %8634 = vrot.lane.b32.xlu1 %v8506_v38, %s9976_s15  ;;  %v8641_v33 = vrot.slane %v8506_v38, 2 }
 0x666   : > { %v9507_v48 = vpop.f32.mrb[57].mxu1  ;;  %8632 = vrot.lane.b32.xlu0 %v8503_v20, %s9976_s15 }
 0x667   : > { %v9508_v0 = vadd.f32 %v9507_v48, %v9506_v18  ;;  %v9509_v59 = vpop.f32.mrb[58].mxu1 }
 0x668   : > { %v9510_v27 = vpop.f32.mrb[59].mxu1 }
 0x669   : > { %v8511_v11 = vadd.f32 %v9508_v0, %v13462_v30  ;;  %v9511_v55 = vadd.f32 %v9510_v27, %v9509_v59  ;;  %v8541_v0 = vld [vmem:[%s13540_s6] sm:$0xff]  ;;  %v8542_v59 = vld [vmem:[%s13540_s6 + $0x8] sm:$0x3] }
 0x66a   : > { %v8543_v27 = vadd.f32 %v8541_v0, %v13483_v46 }
 0x66b   : > { %v8642_v4 = vrot.slane %v8511_v11, 2  ;;  %v8514_v51 = vadd.f32 %v9511_v55, %v13464_v42  ;;  %v8653_v47 = vrot.slane %v8511_v11, 4 }
 0x66d   : > { %v8654_v32 = vrot.slane %v8514_v51, 4  ;;  %v9512_v24 = vpop.f32.mrb[60].mxu1  ;;  %8646 = vrot.lane.b32.xlu1 %v8642_v4, %s9977_s19  ;;  %v8643_v14 = vsel %vm968_vm1, %v8641_v33, %v8642_v4  ;;  %v8665_v42 = vrot.slane %v8514_v51, 6  ;;  %v8544_v4 = vadd.f32 %v8542_v59, %v13486_v16 }
 0x66e   : > { %v9513_v31 = vpop.f32.mrb[61].mxu1  ;;  %8644 = vrot.lane.b32.xlu0 %v8643_v14, %s9977_s19 }
 0x66f   : > { %v9514_v12 = vadd.f32 %v9513_v31, %v9512_v24  ;;  %v9515_v13 = vpop.f32.mrb[62].mxu1  ;;  %v8655_v45 = vsel %vm8559_vm8, %v8653_v47, %v8654_v32 }
 0x670   : > { %v9516_v41 = vpop.f32.mrb[63].mxu1 }
 0x671   : > { %v8519_v30 = vadd.f32 %v9514_v12, %v13468_v7  ;;  %v9517_v28 = vadd.f32 %v9516_v41, %v9515_v13  ;;  %8658 = vrot.lane.b32.xlu1 %v8654_v32, %s9978_s20 }
 0x672   : > { %8656 = vrot.lane.b32.xlu0 %v8655_v45, %s9978_s20 }
 0x673   : > { %v8666_v50 = vrot.slane %v8519_v30, 6  ;;  %v8522_v6 = vadd.f32 %v9517_v28, %v13470_v26 }
 0x675   : > { %v9518_v10 = vpop.f32.mrb[64].mxu1  ;;  %8670 = vrot.lane.b32.xlu1 %v8666_v50, %s9979_s17  ;;  %v8667_v57 = vsel %vm8572_vm9, %v8665_v42, %v8666_v50 }
 0x676   : > { %v9519_v15 = vpop.f32.mrb[65].mxu1  ;;  %8678 = vrot.lane.b32.xlu0 %v8522_v6, %s9980_s18 }
 0x677   : > { %v9520_v54 = vadd.f32 %v9519_v15, %v9518_v10  ;;  %v9521_v19 = vpop.f32.mrb[66].mxu1 }
 0x678   : > { %v9522_v62 = vpop.f32.mrb[67].mxu1 }
 0x679   : > { %v8527_v7 = vadd.f32 %v9520_v54, %v13474_v34  ;;  %v9523_v56 = vadd.f32 %v9522_v62, %v9521_v19 }
 0x67a   : > { %8668 = vrot.lane.b32.xlu0 %v8667_v57, %s9979_s17 }
 0x67b   : > { %v8530_v35 = vadd.f32 %v9523_v56, %v13476_v21  ;;  %8680 = vrot.lane.b32.xlu1 %v8527_v7, %s9980_s18  ;;  %v8687_v25 = vrot.slane %v8527_v7, 2 }
 0x67d   : > { %v8688_v26 = vrot.slane %v8530_v35, 2  ;;  %v9524_v3 = vpop.f32.mrb[68].mxu1  ;;  %v8699_v44 = vrot.slane %v8530_v35, 4 }
 0x67e   : > { %v9525_v5 = vpop.f32.mrb[69].mxu1 }
 0x67f   : > { %v9526_v61 = vadd.f32 %v9525_v5, %v9524_v3  ;;  %8692 = vrot.lane.b32.xlu1 %v8688_v26, %s9981_s8  ;;  %v8689_v60 = vsel %vm968_vm1, %v8687_v25, %v8688_v26  ;;  %v9527_v36 = vpop.f32.mrb[70].mxu1 }
 0x680   : > { %8690 = vrot.lane.b32.xlu0 %v8689_v60, %s9981_s8  ;;  %v9528_v23 = vpop.f32.mrb[71].mxu1 }
 0x681   : > { %v8535_v49 = vadd.f32 %v9526_v61, %v13478_v40  ;;  %v9529_v34 = vadd.f32 %v9528_v23, %v9527_v36 }
 0x683   : > { %v8700_v58 = vrot.slane %v8535_v49, 4  ;;  %v8538_v21 = vadd.f32 %v9529_v34, %v13480_v29  ;;  %v8711_v22 = vrot.slane %v8535_v49, 6 }
 0x685   : > { %v8712_v52 = vrot.slane %v8538_v21, 6  ;;  %8704 = vrot.lane.b32.xlu1 %v8700_v58, %s9982_s21  ;;  %v8701_v37 = vsel %vm8559_vm8, %v8699_v44, %v8700_v58 }
 0x686   : > { %8702 = vrot.lane.b32.xlu0 %v8701_v37, %s9982_s21 }
 0x687   : > { %v8713_v53 = vsel %vm8572_vm9, %v8711_v22, %v8712_v52 }
 0x689   : > { %8716 = vrot.lane.b32.xlu1 %v8712_v52, %s9983_s22 }
 0x68a   : > { %8714 = vrot.lane.b32.xlu0 %v8713_v53, %s9983_s22 }
 0x6b7   : > { %v8553_v8 = vpop.permute.xlu1 %8552 }
 0x6b8   : > { %v8551_v9 = vpop.permute.xlu0 %8550  ;;  %v8557_v32 = vadd.f32 %v8553_v8, %v8544_v4 }
 0x6b9   : > { %v8556_v33 = vadd.f32 %v8551_v9, %v8543_v27 }
 0x6bb   : > { %v8566_v40 = vpop.permute.xlu1 %8565 }
 0x6bc   : > { %v8564_v1 = vpop.permute.xlu0 %8563  ;;  %v8570_v31 = vadd.f32 %v8566_v40, %v8557_v32 }
 0x6bd   : > { %v8569_v51 = vadd.f32 %v8564_v1, %v8556_v33 }
 0x6bf   : > { %v8579_v17 = vpop.permute.xlu1 %8578 }
 0x6c0   : > { %v8587_v2 = vpop.permute.xlu0 %8586  ;;  %v8583_v13 = vadd.f32 %v8579_v17, %v8570_v31 }
 0x6c4   : > { %v8577_v29 = vpop.permute.xlu0 %8576 }
 0x6c5   : > { %v8589_v63 = vpop.permute.xlu1 %8588  ;;  %v8582_v14 = vadd.f32 %v8577_v29, %v8569_v51 }
 0x6c6   : > { %v8593_v30 = vadd.f32 %v8589_v63, %v8583_v13 }
 0x6c7   : > { %v8592_v41 = vadd.f32 %v8587_v2, %v8582_v14 }
 0x6c9   : > { %v8601_v39 = vpop.permute.xlu1 %8600 }
 0x6ca   : > { %v8599_v20 = vpop.permute.xlu0 %8598  ;;  %v8605_v42 = vadd.f32 %v8601_v39, %v8593_v30 }
 0x6cb   : > { %v8604_v28 = vadd.f32 %v8599_v20, %v8592_v41 }
 0x6cf   : > { %v8613_v43 = vpop.permute.xlu1 %8612 }
 0x6d0   : > { %v8611_v38 = vpop.permute.xlu0 %8610  ;;  %v8617_v6 = vadd.f32 %v8613_v43, %v8605_v42 }
 0x6d1   : > { %v8616_v50 = vadd.f32 %v8611_v38, %v8604_v28 }
 0x6d3   : > { %v8625_v18 = vpop.permute.xlu1 %8624 }
 0x6d4   : > { %v8623_v48 = vpop.permute.xlu0 %8622  ;;  %v8629_v15 = vadd.f32 %v8625_v18, %v8617_v6 }
 0x6d5   : > { %v8628_v57 = vadd.f32 %v8623_v48, %v8616_v50 }
 0x6d7   : > { %v8635_v11 = vpop.permute.xlu1 %8634 }
 0x6d8   : > { %v8633_v55 = vpop.permute.xlu0 %8632  ;;  %v8639_v19 = vadd.f32 %v8635_v11, %v8629_v15 }
 0x6d9   : > { %v8638_v16 = vadd.f32 %v8633_v55, %v8628_v57 }
 0x6df   : > { %v8647_v47 = vpop.permute.xlu1 %8646 }
 0x6e0   : > { %v8645_v24 = vpop.permute.xlu0 %8644  ;;  %v8651_v7 = vadd.f32 %v8647_v47, %v8639_v19 }
 0x6e1   : > { %v8650_v62 = vadd.f32 %v8645_v24, %v8638_v16 }
 0x6e3   : > { %v8659_v12 = vpop.permute.xlu1 %8658 }
 0x6e4   : > { %v8657_v45 = vpop.permute.xlu0 %8656  ;;  %v8663_v25 = vadd.f32 %v8659_v12, %v8651_v7 }
 0x6e5   : > { %v8662_v35 = vadd.f32 %v8657_v45, %v8650_v62 }
 0x6e7   : > { %v8671_v46 = vpop.permute.xlu1 %8670 }
 0x6e8   : > { %v8679_v10 = vpop.permute.xlu0 %8678  ;;  %v8675_v5 = vadd.f32 %v8671_v46, %v8663_v25 }
 0x6ec   : > { %v8669_v56 = vpop.permute.xlu0 %8668 }
 0x6ed   : > { %v8681_v54 = vpop.permute.xlu1 %8680  ;;  %v8674_v26 = vadd.f32 %v8669_v56, %v8662_v35 }
 0x6ee   : > { %v8685_v60 = vadd.f32 %v8681_v54, %v8675_v5 }
 0x6ef   : > { %v8684_v36 = vadd.f32 %v8679_v10, %v8674_v26 }
 0x6f1   : > { %v8693_v3 = vpop.permute.xlu1 %8692 }
 0x6f2   : > { %v8691_v61 = vpop.permute.xlu0 %8690  ;;  %v8697_v49 = vadd.f32 %v8693_v3, %v8685_v60 }
 0x6f3   : > { %v8696_v44 = vadd.f32 %v8691_v61, %v8684_v36 }
 0x6f7   : > { %v8705_v23 = vpop.permute.xlu1 %8704 }
 0x6f8   : > { %v8703_v34 = vpop.permute.xlu0 %8702  ;;  %v8709_v58 = vadd.f32 %v8705_v23, %v8697_v49 }
 0x6f9   : > { %v8708_v21 = vadd.f32 %v8703_v34, %v8696_v44 }
 0x6fb   : > { %v8717_v22 = vpop.permute.xlu1 %8716 }
 0x6fc   : > { %v8721_v52 = vadd.f32 %v8717_v22, %v8709_v58  ;;  %v8715_v37 = vpop.permute.xlu0 %8714 }
 0x6fd   : > { %v8720_v53 = vadd.f32 %v8715_v37, %v8708_v21 }
 0x6fe   : > { %8725 = vst.msk [vmem:[%s278_s10 + $0x8] sm:$0x3] %vm8724_vm10, %v8721_v52 }
 0x6ff   : > { %8723 = vst.msk [vmem:[%s278_s10] sm:$0xff] %vm8722_vm11, %v8720_v53 }
 0x700 PF: > { %s17_s24 = sadd.s32 1, %s9961_s24  }
 0x701   : > { %p14_p4 = scmp.ge.s32.totalorder %s17_s24, 4  }
 0x703   :  { %16 = sbr.rel (!%p14_p4) target bundleno = 1 (0x1), region = 80 }

</bundles_post_ra>
